<compile_context>
chip_gen: v6e
topology: v6e:2x2x1
jax: 0.10.0
libtpu: 0.0.40
codegen_flags: <defaults>
</compile_context>

<pallas_src>
import functools

import jax
import jax.numpy as jnp
from jax import lax
from jax.experimental import pallas as pl
from jax.experimental.pallas import tpu as pltpu


def fused_cnn_kernel(cols1_ref, w1_ref, b1_ref, w2_ref, b2_ref, w3_ref, b3_ref,
                     wfc_ref, bfc_ref, o_ref, h1p_ref, h2p_ref):
    # cols1_ref: (hw, nt, 9*cin)   conv1 im2col block, rows ordered (y, x, img)
    # w1_ref:    (9*cin, 32)       conv1 weight (im2col matrix)
    # w2/w3_ref: (9, cin_l, cout_l) per-tap conv weights, tap = ky*3 + kx
    # b*_ref:    (1, cout_l)
    # wfc_ref:   (hw, 128, NCpad)  bf16 FC weight, [p, c, class]
    # o_ref:     (nt, NCpad)
    # h1p/h2p:   (ho+2, wo+2, nt, 32/64) zero-halo padded conv inputs (VMEM scratch)
    hw, nt, k1 = cols1_ref.shape
    hp, wp = h1p_ref.shape[0], h1p_ref.shape[1]
    ho, wo = hp - 2, wp - 2
    m = hw * nt
    ncpad = o_ref.shape[-1]

    # ---- conv1 ('valid'): im2col was built host-side -> one MXU matmul. ------------
    h = jnp.dot(cols1_ref[...].reshape(m, k1), w1_ref[...],
                preferred_element_type=jnp.float32)
    h = jnp.maximum(h + b1_ref[...], 0.0)                  # (m, 32), rows (y, x, img)

    def conv3x3_relu(hprev, pad_ref, w_ref, b_ref):
        cin = pad_ref.shape[-1]
        cout = w_ref.shape[-1]
        # padding=1: zero only the 1-px halo each step (interior fully overwritten).
        zrow = jnp.zeros((1, wp, nt, cin), jnp.float32)
        zcol = jnp.zeros((hp - 2, 1, nt, cin), jnp.float32)
        pad_ref[0:1, :, :, :] = zrow
        pad_ref[hp - 1:hp, :, :, :] = zrow
        pad_ref[1:hp - 1, 0:1, :, :] = zcol
        pad_ref[1:hp - 1, wp - 1:wp, :, :] = zcol
        pad_ref[1:1 + ho, 1:1 + wo, :, :] = hprev.reshape(ho, wo, nt, cin)
        # 9 per-tap matmuls; each shifted slice is a leading-dim slab (no relayout).
        acc = jnp.zeros((m, cout), jnp.float32)
        for k in range(9):
            ky, kx = k // 3, k % 3
            tap = pad_ref[ky:ky + ho, kx:kx + wo, :, :].reshape(m, cin)
            acc = acc + jnp.dot(tap, w_ref[k], preferred_element_type=jnp.float32)
        return jnp.maximum(acc + b_ref[...], 0.0)

    h = conv3x3_relu(h, h1p_ref, w2_ref, b2_ref)           # (m, 64)
    h = conv3x3_relu(h, h2p_ref, w3_ref, b3_ref)           # (m, 128)

    # ---- FC fused with the flatten: out[img] = sum_p h[(p, img), :] @ Wfc[p] + b. ---
    # Rows are (p, img)-ordered, so h[p] is a free leading-dim slab; no gather/stores.
    h = h.astype(jnp.bfloat16).reshape(hw, nt, h.shape[-1])
    acc = jnp.zeros((nt, ncpad), jnp.float32)
    for p in range(hw):
        acc = acc + jnp.dot(h[p], wfc_ref[p], preferred_element_type=jnp.float32)
    o_ref[...] = acc + bfc_ref[...]


def _choose_batch_tile(n):
    """Batch tile (multiple of 8 when possible) and padded batch size."""
    if n <= 8:
        return n, n                       # single block == full batch dim (legal)
    nt = 32                               # fits comfortably in 32 MiB scoped VMEM
    # TODO(synk): sweep nt in {32, 64 (v7x 64 MiB cap), 128 (v5e/v6e)} per generation.
    if n < nt:
        nt = ((n + 7) // 8) * 8
    n_pad = ((n + nt - 1) // nt) * nt
    return nt, n_pad


@functools.partial(jax.jit, static_argnames=("num_classes",))
def cnn_forward(pp, x_nchw, *, num_classes):
    x = jnp.transpose(x_nchw.astype(jnp.float32), (0, 2, 3, 1))   # NCHW -> NHWC
    n, hin, win, cin = x.shape
    ho, wo = hin - 2, win - 2
    hw = ho * wo
    ncpad = pp["bfc"].shape[-1]
    c1 = pp["w1"].shape[-1]
    c2 = pp["w2"].shape[-1]
    nt, n_pad = _choose_batch_tile(n)

    # Host-side im2col for conv1 (layout plumbing only): rows ordered (y, x, img) so the
    # kernel never needs a batch/position transpose.
    patches = [x[:, ky:ky + ho, kx:kx + wo, :] for ky in range(3) for kx in range(3)]
    cols1 = jnp.concatenate(patches, axis=-1)                      # (n, ho, wo, 9*cin)
    cols1 = jnp.transpose(cols1, (1, 2, 0, 3)).reshape(hw, n, 9 * cin)
    if n_pad != n:
        cols1 = jnp.pad(cols1, ((0, 0), (0, n_pad - n), (0, 0)))

    out = pl.pallas_call(
        fused_cnn_kernel,
        grid=(n_pad // nt,),
        in_specs=[
            pl.BlockSpec((hw, nt, 9 * cin), lambda b: (0, b, 0)),
            pl.BlockSpec(pp["w1"].shape, lambda b: (0, 0)),
            pl.BlockSpec(pp["b1"].shape, lambda b: (0, 0)),
            pl.BlockSpec(pp["w2"].shape, lambda b: (0, 0, 0)),
            pl.BlockSpec(pp["b2"].shape, lambda b: (0, 0)),
            pl.BlockSpec(pp["w3"].shape, lambda b: (0, 0, 0)),
            pl.BlockSpec(pp["b3"].shape, lambda b: (0, 0)),
            pl.BlockSpec(pp["wfc"].shape, lambda b: (0, 0, 0)),
            pl.BlockSpec(pp["bfc"].shape, lambda b: (0, 0)),
        ],
        out_specs=pl.BlockSpec((nt, ncpad), lambda b: (b, 0)),
        out_shape=jax.ShapeDtypeStruct((n_pad, ncpad), jnp.float32),
        scratch_shapes=[
            pltpu.VMEM((ho + 2, wo + 2, nt, c1), jnp.float32),   # padded conv2 input
            pltpu.VMEM((ho + 2, wo + 2, nt, c2), jnp.float32),   # padded conv3 input
        ],
        compiler_params=pltpu.CompilerParams(
            dimension_semantics=("parallel",),
            vmem_limit_bytes=32 * 1024 * 1024),
    )(cols1, pp["w1"], pp["b1"], pp["w2"], pp["b2"], pp["w3"], pp["b3"],
      pp["wfc"], pp["bfc"])
    return out[:n, :num_classes]


def prepare_pallas_params(params, ho, wo):
    """One-time repack of PyTorch-convention params into Pallas-friendly layouts."""
    def conv_taps(w_oihw):
        cout, cin = w_oihw.shape[0], w_oihw.shape[1]
        # OIHW -> (ky, kx, ci, co) -> (9, cin, cout), tap index = ky*3 + kx.
        return jnp.transpose(w_oihw, (2, 3, 1, 0)).reshape(9, cin, cout)

    def conv1_mat(w_oihw):
        cout, cin = w_oihw.shape[0], w_oihw.shape[1]
        # im2col matrix, rows in (ky, kx, ci) order.
        return jnp.transpose(w_oihw, (2, 3, 1, 0)).reshape(9 * cin, cout)

    nc, feat = params["wfc"].shape
    c3 = params["w3"].shape[0]
    hw = ho * wo
    assert feat == c3 * hw
    nc_pad = max(128, ((nc + 127) // 128) * 128)
    # PyTorch flattens (C, H, W); the kernel consumes per-position (p, c) blocks, so
    # repack to (p, c, class), lane-pad classes to 128, and store in bf16.
    wfc = params["wfc"].reshape(nc, c3, ho, wo)                    # (nc, c, y, x)
    wfc = jnp.transpose(wfc, (2, 3, 1, 0)).reshape(hw, c3, nc)     # (p, c, nc)
    wfc = jnp.pad(wfc, ((0, 0), (0, 0), (0, nc_pad - nc))).astype(jnp.bfloat16)
    bfc = jnp.pad(params["bfc"], (0, nc_pad - nc)).reshape(1, nc_pad)
    return {
        "w1": conv1_mat(params["w1"]), "b1": params["b1"].reshape(1, -1),
        "w2": conv_taps(params["w2"]), "b2": params["b2"].reshape(1, -1),
        "w3": conv_taps(params["w3"]), "b3": params["b3"].reshape(1, -1),
        "wfc": wfc, "bfc": bfc,
    }


def init_params(key, in_channels, num_classes):
    # Deterministic, PyTorch-convention shapes (OIHW conv weights, [out,in] linear).
    ks = jax.random.split(key, 8)

    def u(k, shape, fan_in):
        bound = 1.0 / jnp.sqrt(float(fan_in))
        return jax.random.uniform(k, shape, jnp.float32, -bound, bound)

    return {
        "w1": u(ks[0], (32, in_channels, 3, 3), in_channels * 9),
        "b1": u(ks[1], (32,), in_channels * 9),
        "w2": u(ks[2], (64, 32, 3, 3), 32 * 9),
        "b2": u(ks[3], (64,), 32 * 9),
        "w3": u(ks[4], (128, 64, 3, 3), 64 * 9),
        "b3": u(ks[5], (128,), 64 * 9),
        "wfc": u(ks[6], (num_classes, 3584), 3584),
        "bfc": u(ks[7], (num_classes,), 3584),
    }


def cnn_reference(params, x_nchw):
    x = x_nchw.astype(jnp.float32)

    def conv(h, w, b, pad):
        y = lax.conv_general_dilated(
            h, w, window_strides=(1, 1), padding=[(pad, pad), (pad, pad)],
            dimension_numbers=("NCHW", "OIHW", "NCHW"))
        return jnp.maximum(y + b[None, :, None, None], 0.0)

    h = conv(x, params["w1"], params["b1"], 0)
    h = conv(h, params["w2"], params["b2"], 1)
    h = conv(h, params["w3"], params["b3"], 1)
    h = h.reshape(h.shape[0], -1)
    return h @ params["wfc"].T + params["bfc"]


if __name__ == "__main__":
    key = jax.random.PRNGKey(0)
    kx, kp = jax.random.split(key)
    in_channels, num_classes = 4, 10
    # Spatial 6x9: Conv2d(k=3, no pad) -> 4x7, so the flatten is 128*4*7 = 3584,
    # matching Linear(3584, num_classes) exactly.
    x = jax.random.normal(kx, (2, in_channels, 6, 9), jnp.float32)
    params = init_params(kp, in_channels, num_classes)
    pp = prepare_pallas_params(params, ho=4, wo=7)

    out = cnn_forward(pp, x, num_classes=num_classes)
    jax.block_until_ready(out)

    ref = cnn_reference(params, x)
    assert out.shape == (2, num_classes)
    max_err = float(jnp.max(jnp.abs(out - ref)))
    # bf16 FC weights -> slightly looser tolerance than pure f32.
    assert jnp.allclose(out, ref, rtol=2e-2, atol=5e-3), max_err
    print("KERNEL_OK")
</pallas_src>

<mosaic_0001>
module attributes {stable_mosaic.version = 11 : i64} {
  func.func @fused_cnn_kernel(%arg0: i32, %arg1: memref<28x2x36xf32, #tpu.memory_space<vmem>>, %arg2: memref<36x32xf32, #tpu.memory_space<vmem>>, %arg3: memref<1x32xf32, #tpu.memory_space<vmem>>, %arg4: memref<9x32x64xf32, #tpu.memory_space<vmem>>, %arg5: memref<1x64xf32, #tpu.memory_space<vmem>>, %arg6: memref<9x64x128xf32, #tpu.memory_space<vmem>>, %arg7: memref<1x128xf32, #tpu.memory_space<vmem>>, %arg8: memref<28x128x128xbf16, #tpu.memory_space<vmem>>, %arg9: memref<1x128xf32, #tpu.memory_space<vmem>>, %arg10: memref<2x128xf32, #tpu.memory_space<vmem>>, %arg11: memref<6x9x2x32xf32, #tpu.memory_space<vmem>>, %arg12: memref<6x9x2x64xf32, #tpu.memory_space<vmem>>) attributes {dimension_semantics = [#tpu.dimension_semantics<parallel>], iteration_bounds = array<i64: 1>, scalar_prefetch = 0 : i64, scratch_operands = 2 : i64, tpu.core_type = #tpu.core_type<tc>, window_params = [{transform_indices = @transform_0, window_bounds = array<i64: 28, 2, 36>}, {pipeline_mode = #tpu.pipeline_mode<synchronous>, transform_indices = @transform_1, window_bounds = array<i64: 36, 32>}, {pipeline_mode = #tpu.pipeline_mode<synchronous>, transform_indices = @transform_2, window_bounds = array<i64: 1, 32>}, {pipeline_mode = #tpu.pipeline_mode<synchronous>, transform_indices = @transform_3, window_bounds = array<i64: 9, 32, 64>}, {pipeline_mode = #tpu.pipeline_mode<synchronous>, transform_indices = @transform_4, window_bounds = array<i64: 1, 64>}, {pipeline_mode = #tpu.pipeline_mode<synchronous>, transform_indices = @transform_5, window_bounds = array<i64: 9, 64, 128>}, {pipeline_mode = #tpu.pipeline_mode<synchronous>, transform_indices = @transform_6, window_bounds = array<i64: 1, 128>}, {pipeline_mode = #tpu.pipeline_mode<synchronous>, transform_indices = @transform_7, window_bounds = array<i64: 28, 128, 128>}, {pipeline_mode = #tpu.pipeline_mode<synchronous>, transform_indices = @transform_8, window_bounds = array<i64: 1, 128>}, {transform_indices = @transform_9, window_bounds = array<i64: 2, 128>}]} {
    %c0 = arith.constant 0 : index
    %c0_0 = arith.constant 0 : index
    %c0_1 = arith.constant 0 : index
    %0 = vector.load %arg1[%c0, %c0_0, %c0_1] : memref<28x2x36xf32, #tpu.memory_space<vmem>>, vector<28x2x36xf32>
    %1 = vector.shape_cast %0 : vector<28x2x36xf32> to vector<56x36xf32>
    %c0_2 = arith.constant 0 : index
    %c0_3 = arith.constant 0 : index
    %2 = vector.load %arg2[%c0_2, %c0_3] : memref<36x32xf32, #tpu.memory_space<vmem>>, vector<36x32xf32>
    %cst = arith.constant dense<0.000000e+00> : vector<56x32xf32>
    %3 = tpu.matmul %1, %2, %cst {dimension_numbers = #tpu.dot_dimension_numbers<[1], [0], [0], [1], [0, 0, 1, 1], [], []>} : vector<56x36xf32>, vector<36x32xf32>, vector<56x32xf32> -> vector<56x32xf32>
    %c0_4 = arith.constant 0 : index
    %c0_5 = arith.constant 0 : index
    %4 = vector.load %arg3[%c0_4, %c0_5] : memref<1x32xf32, #tpu.memory_space<vmem>>, vector<1x32xf32>
    %5 = vector.broadcast %4 : vector<1x32xf32> to vector<56x32xf32>
    %6 = arith.addf %3, %5 : vector<56x32xf32>
    %cst_6 = arith.constant 0.000000e+00 : f32
    %7 = vector.broadcast %cst_6 : f32 to vector<56x32xf32>
    %8 = arith.maximumf %6, %7 : vector<56x32xf32>
    %cst_7 = arith.constant 0.000000e+00 : f32
    %9 = vector.broadcast %cst_7 : f32 to vector<1x9x2x32xf32>
    %cst_8 = arith.constant 0.000000e+00 : f32
    %10 = vector.broadcast %cst_8 : f32 to vector<4x1x2x32xf32>
    %c0_9 = arith.constant 0 : index
    %c0_10 = arith.constant 0 : index
    %c0_11 = arith.constant 0 : index
    %c0_12 = arith.constant 0 : index
    %11 = vector.load %arg11[%c0_9, %c0_10, %c0_11, %c0_12] : memref<6x9x2x32xf32, #tpu.memory_space<vmem>>, vector<1x9x2x32xf32>
    tpu.vector_store %arg11[%c0_9, %c0_10, %c0_11, %c0_12], %9 {strides = array<i32>} : memref<6x9x2x32xf32, #tpu.memory_space<vmem>>, vector<1x9x2x32xf32>,
    %c5 = arith.constant 5 : index
    %c0_13 = arith.constant 0 : index
    %c0_14 = arith.constant 0 : index
    %c0_15 = arith.constant 0 : index
    %12 = vector.load %arg11[%c5, %c0_13, %c0_14, %c0_15] : memref<6x9x2x32xf32, #tpu.memory_space<vmem>>, vector<1x9x2x32xf32>
    tpu.vector_store %arg11[%c5, %c0_13, %c0_14, %c0_15], %9 {strides = array<i32>} : memref<6x9x2x32xf32, #tpu.memory_space<vmem>>, vector<1x9x2x32xf32>,
    %c1 = arith.constant 1 : index
    %c0_16 = arith.constant 0 : index
    %c0_17 = arith.constant 0 : index
    %c0_18 = arith.constant 0 : index
    %13 = vector.load %arg11[%c1, %c0_16, %c0_17, %c0_18] : memref<6x9x2x32xf32, #tpu.memory_space<vmem>>, vector<4x1x2x32xf32>
    tpu.vector_store %arg11[%c1, %c0_16, %c0_17, %c0_18], %10 {strides = array<i32>} : memref<6x9x2x32xf32, #tpu.memory_space<vmem>>, vector<4x1x2x32xf32>,
    %c1_19 = arith.constant 1 : index
    %c8 = arith.constant 8 : index
    %c0_20 = arith.constant 0 : index
    %c0_21 = arith.constant 0 : index
    %14 = vector.load %arg11[%c1_19, %c8, %c0_20, %c0_21] : memref<6x9x2x32xf32, #tpu.memory_space<vmem>>, vector<4x1x2x32xf32>
    tpu.vector_store %arg11[%c1_19, %c8, %c0_20, %c0_21], %10 {strides = array<i32>} : memref<6x9x2x32xf32, #tpu.memory_space<vmem>>, vector<4x1x2x32xf32>,
    %15 = vector.shape_cast %8 : vector<56x32xf32> to vector<4x7x2x32xf32>
    %c1_22 = arith.constant 1 : index
    %c1_23 = arith.constant 1 : index
    %c0_24 = arith.constant 0 : index
    %c0_25 = arith.constant 0 : index
    %16 = vector.load %arg11[%c1_22, %c1_23, %c0_24, %c0_25] : memref<6x9x2x32xf32, #tpu.memory_space<vmem>>, vector<4x7x2x32xf32>
    tpu.vector_store %arg11[%c1_22, %c1_23, %c0_24, %c0_25], %15 {strides = array<i32>} : memref<6x9x2x32xf32, #tpu.memory_space<vmem>>, vector<4x7x2x32xf32>,
    %cst_26 = arith.constant 0.000000e+00 : f32
    %17 = vector.broadcast %cst_26 : f32 to vector<56x64xf32>
    %c0_27 = arith.constant 0 : index
    %c0_28 = arith.constant 0 : index
    %c0_29 = arith.constant 0 : index
    %c0_30 = arith.constant 0 : index
    %18 = vector.load %arg11[%c0_27, %c0_28, %c0_29, %c0_30] : memref<6x9x2x32xf32, #tpu.memory_space<vmem>>, vector<4x7x2x32xf32>
    %19 = vector.shape_cast %18 : vector<4x7x2x32xf32> to vector<56x32xf32>
    %c0_31 = arith.constant 0 : index
    %c0_32 = arith.constant 0 : index
    %c0_33 = arith.constant 0 : index
    %20 = vector.load %arg4[%c0_31, %c0_32, %c0_33] : memref<9x32x64xf32, #tpu.memory_space<vmem>>, vector<1x32x64xf32>
    %21 = vector.shape_cast %20 : vector<1x32x64xf32> to vector<32x64xf32>
    %cst_34 = arith.constant dense<0.000000e+00> : vector<56x64xf32>
    %22 = tpu.matmul %19, %21, %cst_34 {dimension_numbers = #tpu.dot_dimension_numbers<[1], [0], [0], [1], [0, 0, 1, 1], [], []>} : vector<56x32xf32>, vector<32x64xf32>, vector<56x64xf32> -> vector<56x64xf32>
    %23 = arith.addf %17, %22 : vector<56x64xf32>
    %c0_35 = arith.constant 0 : index
    %c1_36 = arith.constant 1 : index
    %c0_37 = arith.constant 0 : index
    %c0_38 = arith.constant 0 : index
    %24 = vector.load %arg11[%c0_35, %c1_36, %c0_37, %c0_38] : memref<6x9x2x32xf32, #tpu.memory_space<vmem>>, vector<4x7x2x32xf32>
    %25 = vector.shape_cast %24 : vector<4x7x2x32xf32> to vector<56x32xf32>
    %c1_39 = arith.constant 1 : index
    %c0_40 = arith.constant 0 : index
    %c0_41 = arith.constant 0 : index
    %26 = vector.load %arg4[%c1_39, %c0_40, %c0_41] : memref<9x32x64xf32, #tpu.memory_space<vmem>>, vector<1x32x64xf32>
    %27 = vector.shape_cast %26 : vector<1x32x64xf32> to vector<32x64xf32>
    %cst_42 = arith.constant dense<0.000000e+00> : vector<56x64xf32>
    %28 = tpu.matmul %25, %27, %cst_42 {dimension_numbers = #tpu.dot_dimension_numbers<[1], [0], [0], [1], [0, 0, 1, 1], [], []>} : vector<56x32xf32>, vector<32x64xf32>, vector<56x64xf32> -> vector<56x64xf32>
    %29 = arith.addf %23, %28 : vector<56x64xf32>
    %c0_43 = arith.constant 0 : index
    %c2 = arith.constant 2 : index
    %c0_44 = arith.constant 0 : index
    %c0_45 = arith.constant 0 : index
    %30 = vector.load %arg11[%c0_43, %c2, %c0_44, %c0_45] : memref<6x9x2x32xf32, #tpu.memory_space<vmem>>, vector<4x7x2x32xf32>
    %31 = vector.shape_cast %30 : vector<4x7x2x32xf32> to vector<56x32xf32>
    %c2_46 = arith.constant 2 : index
    %c0_47 = arith.constant 0 : index
    %c0_48 = arith.constant 0 : index
    %32 = vector.load %arg4[%c2_46, %c0_47, %c0_48] : memref<9x32x64xf32, #tpu.memory_space<vmem>>, vector<1x32x64xf32>
    %33 = vector.shape_cast %32 : vector<1x32x64xf32> to vector<32x64xf32>
    %cst_49 = arith.constant dense<0.000000e+00> : vector<56x64xf32>
    %34 = tpu.matmul %31, %33, %cst_49 {dimension_numbers = #tpu.dot_dimension_numbers<[1], [0], [0], [1], [0, 0, 1, 1], [], []>} : vector<56x32xf32>, vector<32x64xf32>, vector<56x64xf32> -> vector<56x64xf32>
    %35 = arith.addf %29, %34 : vector<56x64xf32>
    %c1_50 = arith.constant 1 : index
    %c0_51 = arith.constant 0 : index
    %c0_52 = arith.constant 0 : index
    %c0_53 = arith.constant 0 : index
    %36 = vector.load %arg11[%c1_50, %c0_51, %c0_52, %c0_53] : memref<6x9x2x32xf32, #tpu.memory_space<vmem>>, vector<4x7x2x32xf32>
    %37 = vector.shape_cast %36 : vector<4x7x2x32xf32> to vector<56x32xf32>
    %c3 = arith.constant 3 : index
    %c0_54 = arith.constant 0 : index
    %c0_55 = arith.constant 0 : index
    %38 = vector.load %arg4[%c3, %c0_54, %c0_55] : memref<9x32x64xf32, #tpu.memory_space<vmem>>, vector<1x32x64xf32>
    %39 = vector.shape_cast %38 : vector<1x32x64xf32> to vector<32x64xf32>
    %cst_56 = arith.constant dense<0.000000e+00> : vector<56x64xf32>
    %40 = tpu.matmul %37, %39, %cst_56 {dimension_numbers = #tpu.dot_dimension_numbers<[1], [0], [0], [1], [0, 0, 1, 1], [], []>} : vector<56x32xf32>, vector<32x64xf32>, vector<56x64xf32> -> vector<56x64xf32>
    %41 = arith.addf %35, %40 : vector<56x64xf32>
    %c1_57 = arith.constant 1 : index
    %c1_58 = arith.constant 1 : index
    %c0_59 = arith.constant 0 : index
    %c0_60 = arith.constant 0 : index
    %42 = vector.load %arg11[%c1_57, %c1_58, %c0_59, %c0_60] : memref<6x9x2x32xf32, #tpu.memory_space<vmem>>, vector<4x7x2x32xf32>
    %43 = vector.shape_cast %42 : vector<4x7x2x32xf32> to vector<56x32xf32>
    %c4 = arith.constant 4 : index
    %c0_61 = arith.constant 0 : index
    %c0_62 = arith.constant 0 : index
    %44 = vector.load %arg4[%c4, %c0_61, %c0_62] : memref<9x32x64xf32, #tpu.memory_space<vmem>>, vector<1x32x64xf32>
    %45 = vector.shape_cast %44 : vector<1x32x64xf32> to vector<32x64xf32>
    %cst_63 = arith.constant dense<0.000000e+00> : vector<56x64xf32>
    %46 = tpu.matmul %43, %45, %cst_63 {dimension_numbers = #tpu.dot_dimension_numbers<[1], [0], [0], [1], [0, 0, 1, 1], [], []>} : vector<56x32xf32>, vector<32x64xf32>, vector<56x64xf32> -> vector<56x64xf32>
    %47 = arith.addf %41, %46 : vector<56x64xf32>
    %c1_64 = arith.constant 1 : index
    %c2_65 = arith.constant 2 : index
    %c0_66 = arith.constant 0 : index
    %c0_67 = arith.constant 0 : index
    %48 = vector.load %arg11[%c1_64, %c2_65, %c0_66, %c0_67] : memref<6x9x2x32xf32, #tpu.memory_space<vmem>>, vector<4x7x2x32xf32>
    %49 = vector.shape_cast %48 : vector<4x7x2x32xf32> to vector<56x32xf32>
    %c5_68 = arith.constant 5 : index
    %c0_69 = arith.constant 0 : index
    %c0_70 = arith.constant 0 : index
    %50 = vector.load %arg4[%c5_68, %c0_69, %c0_70] : memref<9x32x64xf32, #tpu.memory_space<vmem>>, vector<1x32x64xf32>
    %51 = vector.shape_cast %50 : vector<1x32x64xf32> to vector<32x64xf32>
    %cst_71 = arith.constant dense<0.000000e+00> : vector<56x64xf32>
    %52 = tpu.matmul %49, %51, %cst_71 {dimension_numbers = #tpu.dot_dimension_numbers<[1], [0], [0], [1], [0, 0, 1, 1], [], []>} : vector<56x32xf32>, vector<32x64xf32>, vector<56x64xf32> -> vector<56x64xf32>
    %53 = arith.addf %47, %52 : vector<56x64xf32>
    %c2_72 = arith.constant 2 : index
    %c0_73 = arith.constant 0 : index
    %c0_74 = arith.constant 0 : index
    %c0_75 = arith.constant 0 : index
    %54 = vector.load %arg11[%c2_72, %c0_73, %c0_74, %c0_75] : memref<6x9x2x32xf32, #tpu.memory_space<vmem>>, vector<4x7x2x32xf32>
    %55 = vector.shape_cast %54 : vector<4x7x2x32xf32> to vector<56x32xf32>
    %c6 = arith.constant 6 : index
    %c0_76 = arith.constant 0 : index
    %c0_77 = arith.constant 0 : index
    %56 = vector.load %arg4[%c6, %c0_76, %c0_77] : memref<9x32x64xf32, #tpu.memory_space<vmem>>, vector<1x32x64xf32>
    %57 = vector.shape_cast %56 : vector<1x32x64xf32> to vector<32x64xf32>
    %cst_78 = arith.constant dense<0.000000e+00> : vector<56x64xf32>
    %58 = tpu.matmul %55, %57, %cst_78 {dimension_numbers = #tpu.dot_dimension_numbers<[1], [0], [0], [1], [0, 0, 1, 1], [], []>} : vector<56x32xf32>, vector<32x64xf32>, vector<56x64xf32> -> vector<56x64xf32>
    %59 = arith.addf %53, %58 : vector<56x64xf32>
    %c2_79 = arith.constant 2 : index
    %c1_80 = arith.constant 1 : index
    %c0_81 = arith.constant 0 : index
    %c0_82 = arith.constant 0 : index
    %60 = vector.load %arg11[%c2_79, %c1_80, %c0_81, %c0_82] : memref<6x9x2x32xf32, #tpu.memory_space<vmem>>, vector<4x7x2x32xf32>
    %61 = vector.shape_cast %60 : vector<4x7x2x32xf32> to vector<56x32xf32>
    %c7 = arith.constant 7 : index
    %c0_83 = arith.constant 0 : index
    %c0_84 = arith.constant 0 : index
    %62 = vector.load %arg4[%c7, %c0_83, %c0_84] : memref<9x32x64xf32, #tpu.memory_space<vmem>>, vector<1x32x64xf32>
    %63 = vector.shape_cast %62 : vector<1x32x64xf32> to vector<32x64xf32>
    %cst_85 = arith.constant dense<0.000000e+00> : vector<56x64xf32>
    %64 = tpu.matmul %61, %63, %cst_85 {dimension_numbers = #tpu.dot_dimension_numbers<[1], [0], [0], [1], [0, 0, 1, 1], [], []>} : vector<56x32xf32>, vector<32x64xf32>, vector<56x64xf32> -> vector<56x64xf32>
    %65 = arith.addf %59, %64 : vector<56x64xf32>
    %c2_86 = arith.constant 2 : index
    %c2_87 = arith.constant 2 : index
    %c0_88 = arith.constant 0 : index
    %c0_89 = arith.constant 0 : index
    %66 = vector.load %arg11[%c2_86, %c2_87, %c0_88, %c0_89] : memref<6x9x2x32xf32, #tpu.memory_space<vmem>>, vector<4x7x2x32xf32>
    %67 = vector.shape_cast %66 : vector<4x7x2x32xf32> to vector<56x32xf32>
    %c8_90 = arith.constant 8 : index
    %c0_91 = arith.constant 0 : index
    %c0_92 = arith.constant 0 : index
    %68 = vector.load %arg4[%c8_90, %c0_91, %c0_92] : memref<9x32x64xf32, #tpu.memory_space<vmem>>, vector<1x32x64xf32>
    %69 = vector.shape_cast %68 : vector<1x32x64xf32> to vector<32x64xf32>
    %cst_93 = arith.constant dense<0.000000e+00> : vector<56x64xf32>
    %70 = tpu.matmul %67, %69, %cst_93 {dimension_numbers = #tpu.dot_dimension_numbers<[1], [0], [0], [1], [0, 0, 1, 1], [], []>} : vector<56x32xf32>, vector<32x64xf32>, vector<56x64xf32> -> vector<56x64xf32>
    %71 = arith.addf %65, %70 : vector<56x64xf32>
    %c0_94 = arith.constant 0 : index
    %c0_95 = arith.constant 0 : index
    %72 = vector.load %arg5[%c0_94, %c0_95] : memref<1x64xf32, #tpu.memory_space<vmem>>, vector<1x64xf32>
    %73 = vector.broadcast %72 : vector<1x64xf32> to vector<56x64xf32>
    %74 = arith.addf %71, %73 : vector<56x64xf32>
    %cst_96 = arith.constant 0.000000e+00 : f32
    %75 = vector.broadcast %cst_96 : f32 to vector<56x64xf32>
    %76 = arith.maximumf %74, %75 : vector<56x64xf32>
    %cst_97 = arith.constant 0.000000e+00 : f32
    %77 = vector.broadcast %cst_97 : f32 to vector<1x9x2x64xf32>
    %cst_98 = arith.constant 0.000000e+00 : f32
    %78 = vector.broadcast %cst_98 : f32 to vector<4x1x2x64xf32>
    %c0_99 = arith.constant 0 : index
    %c0_100 = arith.constant 0 : index
    %c0_101 = arith.constant 0 : index
    %c0_102 = arith.constant 0 : index
    %79 = vector.load %arg12[%c0_99, %c0_100, %c0_101, %c0_102] : memref<6x9x2x64xf32, #tpu.memory_space<vmem>>, vector<1x9x2x64xf32>
    tpu.vector_store %arg12[%c0_99, %c0_100, %c0_101, %c0_102], %77 {strides = array<i32>} : memref<6x9x2x64xf32, #tpu.memory_space<vmem>>, vector<1x9x2x64xf32>,
    %c5_103 = arith.constant 5 : index
    %c0_104 = arith.constant 0 : index
    %c0_105 = arith.constant 0 : index
    %c0_106 = arith.constant 0 : index
    %80 = vector.load %arg12[%c5_103, %c0_104, %c0_105, %c0_106] : memref<6x9x2x64xf32, #tpu.memory_space<vmem>>, vector<1x9x2x64xf32>
    tpu.vector_store %arg12[%c5_103, %c0_104, %c0_105, %c0_106], %77 {strides = array<i32>} : memref<6x9x2x64xf32, #tpu.memory_space<vmem>>, vector<1x9x2x64xf32>,
    %c1_107 = arith.constant 1 : index
    %c0_108 = arith.constant 0 : index
    %c0_109 = arith.constant 0 : index
    %c0_110 = arith.constant 0 : index
    %81 = vector.load %arg12[%c1_107, %c0_108, %c0_109, %c0_110] : memref<6x9x2x64xf32, #tpu.memory_space<vmem>>, vector<4x1x2x64xf32>
    tpu.vector_store %arg12[%c1_107, %c0_108, %c0_109, %c0_110], %78 {strides = array<i32>} : memref<6x9x2x64xf32, #tpu.memory_space<vmem>>, vector<4x1x2x64xf32>,
    %c1_111 = arith.constant 1 : index
    %c8_112 = arith.constant 8 : index
    %c0_113 = arith.constant 0 : index
    %c0_114 = arith.constant 0 : index
    %82 = vector.load %arg12[%c1_111, %c8_112, %c0_113, %c0_114] : memref<6x9x2x64xf32, #tpu.memory_space<vmem>>, vector<4x1x2x64xf32>
    tpu.vector_store %arg12[%c1_111, %c8_112, %c0_113, %c0_114], %78 {strides = array<i32>} : memref<6x9x2x64xf32, #tpu.memory_space<vmem>>, vector<4x1x2x64xf32>,
    %83 = vector.shape_cast %76 : vector<56x64xf32> to vector<4x7x2x64xf32>
    %c1_115 = arith.constant 1 : index
    %c1_116 = arith.constant 1 : index
    %c0_117 = arith.constant 0 : index
    %c0_118 = arith.constant 0 : index
    %84 = vector.load %arg12[%c1_115, %c1_116, %c0_117, %c0_118] : memref<6x9x2x64xf32, #tpu.memory_space<vmem>>, vector<4x7x2x64xf32>
    tpu.vector_store %arg12[%c1_115, %c1_116, %c0_117, %c0_118], %83 {strides = array<i32>} : memref<6x9x2x64xf32, #tpu.memory_space<vmem>>, vector<4x7x2x64xf32>,
    %cst_119 = arith.constant 0.000000e+00 : f32
    %85 = vector.broadcast %cst_119 : f32 to vector<56x128xf32>
    %c0_120 = arith.constant 0 : index
    %c0_121 = arith.constant 0 : index
    %c0_122 = arith.constant 0 : index
    %c0_123 = arith.constant 0 : index
    %86 = vector.load %arg12[%c0_120, %c0_121, %c0_122, %c0_123] : memref<6x9x2x64xf32, #tpu.memory_space<vmem>>, vector<4x7x2x64xf32>
    %87 = vector.shape_cast %86 : vector<4x7x2x64xf32> to vector<56x64xf32>
    %c0_124 = arith.constant 0 : index
    %c0_125 = arith.constant 0 : index
    %c0_126 = arith.constant 0 : index
    %88 = vector.load %arg6[%c0_124, %c0_125, %c0_126] : memref<9x64x128xf32, #tpu.memory_space<vmem>>, vector<1x64x128xf32>
    %89 = vector.shape_cast %88 : vector<1x64x128xf32> to vector<64x128xf32>
    %cst_127 = arith.constant dense<0.000000e+00> : vector<56x128xf32>
    %90 = tpu.matmul %87, %89, %cst_127 {dimension_numbers = #tpu.dot_dimension_numbers<[1], [0], [0], [1], [0, 0, 1, 1], [], []>} : vector<56x64xf32>, vector<64x128xf32>, vector<56x128xf32> -> vector<56x128xf32>
    %91 = arith.addf %85, %90 : vector<56x128xf32>
    %c0_128 = arith.constant 0 : index
    %c1_129 = arith.constant 1 : index
    %c0_130 = arith.constant 0 : index
    %c0_131 = arith.constant 0 : index
    %92 = vector.load %arg12[%c0_128, %c1_129, %c0_130, %c0_131] : memref<6x9x2x64xf32, #tpu.memory_space<vmem>>, vector<4x7x2x64xf32>
    %93 = vector.shape_cast %92 : vector<4x7x2x64xf32> to vector<56x64xf32>
    %c1_132 = arith.constant 1 : index
    %c0_133 = arith.constant 0 : index
    %c0_134 = arith.constant 0 : index
    %94 = vector.load %arg6[%c1_132, %c0_133, %c0_134] : memref<9x64x128xf32, #tpu.memory_space<vmem>>, vector<1x64x128xf32>
    %95 = vector.shape_cast %94 : vector<1x64x128xf32> to vector<64x128xf32>
    %cst_135 = arith.constant dense<0.000000e+00> : vector<56x128xf32>
    %96 = tpu.matmul %93, %95, %cst_135 {dimension_numbers = #tpu.dot_dimension_numbers<[1], [0], [0], [1], [0, 0, 1, 1], [], []>} : vector<56x64xf32>, vector<64x128xf32>, vector<56x128xf32> -> vector<56x128xf32>
    %97 = arith.addf %91, %96 : vector<56x128xf32>
    %c0_136 = arith.constant 0 : index
    %c2_137 = arith.constant 2 : index
    %c0_138 = arith.constant 0 : index
    %c0_139 = arith.constant 0 : index
    %98 = vector.load %arg12[%c0_136, %c2_137, %c0_138, %c0_139] : memref<6x9x2x64xf32, #tpu.memory_space<vmem>>, vector<4x7x2x64xf32>
    %99 = vector.shape_cast %98 : vector<4x7x2x64xf32> to vector<56x64xf32>
    %c2_140 = arith.constant 2 : index
    %c0_141 = arith.constant 0 : index
    %c0_142 = arith.constant 0 : index
    %100 = vector.load %arg6[%c2_140, %c0_141, %c0_142] : memref<9x64x128xf32, #tpu.memory_space<vmem>>, vector<1x64x128xf32>
    %101 = vector.shape_cast %100 : vector<1x64x128xf32> to vector<64x128xf32>
    %cst_143 = arith.constant dense<0.000000e+00> : vector<56x128xf32>
    %102 = tpu.matmul %99, %101, %cst_143 {dimension_numbers = #tpu.dot_dimension_numbers<[1], [0], [0], [1], [0, 0, 1, 1], [], []>} : vector<56x64xf32>, vector<64x128xf32>, vector<56x128xf32> -> vector<56x128xf32>
    %103 = arith.addf %97, %102 : vector<56x128xf32>
    %c1_144 = arith.constant 1 : index
    %c0_145 = arith.constant 0 : index
    %c0_146 = arith.constant 0 : index
    %c0_147 = arith.constant 0 : index
    %104 = vector.load %arg12[%c1_144, %c0_145, %c0_146, %c0_147] : memref<6x9x2x64xf32, #tpu.memory_space<vmem>>, vector<4x7x2x64xf32>
    %105 = vector.shape_cast %104 : vector<4x7x2x64xf32> to vector<56x64xf32>
    %c3_148 = arith.constant 3 : index
    %c0_149 = arith.constant 0 : index
    %c0_150 = arith.constant 0 : index
    %106 = vector.load %arg6[%c3_148, %c0_149, %c0_150] : memref<9x64x128xf32, #tpu.memory_space<vmem>>, vector<1x64x128xf32>
    %107 = vector.shape_cast %106 : vector<1x64x128xf32> to vector<64x128xf32>
    %cst_151 = arith.constant dense<0.000000e+00> : vector<56x128xf32>
    %108 = tpu.matmul %105, %107, %cst_151 {dimension_numbers = #tpu.dot_dimension_numbers<[1], [0], [0], [1], [0, 0, 1, 1], [], []>} : vector<56x64xf32>, vector<64x128xf32>, vector<56x128xf32> -> vector<56x128xf32>
    %109 = arith.addf %103, %108 : vector<56x128xf32>
    %c1_152 = arith.constant 1 : index
    %c1_153 = arith.constant 1 : index
    %c0_154 = arith.constant 0 : index
    %c0_155 = arith.constant 0 : index
    %110 = vector.load %arg12[%c1_152, %c1_153, %c0_154, %c0_155] : memref<6x9x2x64xf32, #tpu.memory_space<vmem>>, vector<4x7x2x64xf32>
    %111 = vector.shape_cast %110 : vector<4x7x2x64xf32> to vector<56x64xf32>
    %c4_156 = arith.constant 4 : index
    %c0_157 = arith.constant 0 : index
    %c0_158 = arith.constant 0 : index
    %112 = vector.load %arg6[%c4_156, %c0_157, %c0_158] : memref<9x64x128xf32, #tpu.memory_space<vmem>>, vector<1x64x128xf32>
    %113 = vector.shape_cast %112 : vector<1x64x128xf32> to vector<64x128xf32>
    %cst_159 = arith.constant dense<0.000000e+00> : vector<56x128xf32>
    %114 = tpu.matmul %111, %113, %cst_159 {dimension_numbers = #tpu.dot_dimension_numbers<[1], [0], [0], [1], [0, 0, 1, 1], [], []>} : vector<56x64xf32>, vector<64x128xf32>, vector<56x128xf32> -> vector<56x128xf32>
    %115 = arith.addf %109, %114 : vector<56x128xf32>
    %c1_160 = arith.constant 1 : index
    %c2_161 = arith.constant 2 : index
    %c0_162 = arith.constant 0 : index
    %c0_163 = arith.constant 0 : index
    %116 = vector.load %arg12[%c1_160, %c2_161, %c0_162, %c0_163] : memref<6x9x2x64xf32, #tpu.memory_space<vmem>>, vector<4x7x2x64xf32>
    %117 = vector.shape_cast %116 : vector<4x7x2x64xf32> to vector<56x64xf32>
    %c5_164 = arith.constant 5 : index
    %c0_165 = arith.constant 0 : index
    %c0_166 = arith.constant 0 : index
    %118 = vector.load %arg6[%c5_164, %c0_165, %c0_166] : memref<9x64x128xf32, #tpu.memory_space<vmem>>, vector<1x64x128xf32>
    %119 = vector.shape_cast %118 : vector<1x64x128xf32> to vector<64x128xf32>
    %cst_167 = arith.constant dense<0.000000e+00> : vector<56x128xf32>
    %120 = tpu.matmul %117, %119, %cst_167 {dimension_numbers = #tpu.dot_dimension_numbers<[1], [0], [0], [1], [0, 0, 1, 1], [], []>} : vector<56x64xf32>, vector<64x128xf32>, vector<56x128xf32> -> vector<56x128xf32>
    %121 = arith.addf %115, %120 : vector<56x128xf32>
    %c2_168 = arith.constant 2 : index
    %c0_169 = arith.constant 0 : index
    %c0_170 = arith.constant 0 : index
    %c0_171 = arith.constant 0 : index
    %122 = vector.load %arg12[%c2_168, %c0_169, %c0_170, %c0_171] : memref<6x9x2x64xf32, #tpu.memory_space<vmem>>, vector<4x7x2x64xf32>
    %123 = vector.shape_cast %122 : vector<4x7x2x64xf32> to vector<56x64xf32>
    %c6_172 = arith.constant 6 : index
    %c0_173 = arith.constant 0 : index
    %c0_174 = arith.constant 0 : index
    %124 = vector.load %arg6[%c6_172, %c0_173, %c0_174] : memref<9x64x128xf32, #tpu.memory_space<vmem>>, vector<1x64x128xf32>
    %125 = vector.shape_cast %124 : vector<1x64x128xf32> to vector<64x128xf32>
    %cst_175 = arith.constant dense<0.000000e+00> : vector<56x128xf32>
    %126 = tpu.matmul %123, %125, %cst_175 {dimension_numbers = #tpu.dot_dimension_numbers<[1], [0], [0], [1], [0, 0, 1, 1], [], []>} : vector<56x64xf32>, vector<64x128xf32>, vector<56x128xf32> -> vector<56x128xf32>
    %127 = arith.addf %121, %126 : vector<56x128xf32>
    %c2_176 = arith.constant 2 : index
    %c1_177 = arith.constant 1 : index
    %c0_178 = arith.constant 0 : index
    %c0_179 = arith.constant 0 : index
    %128 = vector.load %arg12[%c2_176, %c1_177, %c0_178, %c0_179] : memref<6x9x2x64xf32, #tpu.memory_space<vmem>>, vector<4x7x2x64xf32>
    %129 = vector.shape_cast %128 : vector<4x7x2x64xf32> to vector<56x64xf32>
    %c7_180 = arith.constant 7 : index
    %c0_181 = arith.constant 0 : index
    %c0_182 = arith.constant 0 : index
    %130 = vector.load %arg6[%c7_180, %c0_181, %c0_182] : memref<9x64x128xf32, #tpu.memory_space<vmem>>, vector<1x64x128xf32>
    %131 = vector.shape_cast %130 : vector<1x64x128xf32> to vector<64x128xf32>
    %cst_183 = arith.constant dense<0.000000e+00> : vector<56x128xf32>
    %132 = tpu.matmul %129, %131, %cst_183 {dimension_numbers = #tpu.dot_dimension_numbers<[1], [0], [0], [1], [0, 0, 1, 1], [], []>} : vector<56x64xf32>, vector<64x128xf32>, vector<56x128xf32> -> vector<56x128xf32>
    %133 = arith.addf %127, %132 : vector<56x128xf32>
    %c2_184 = arith.constant 2 : index
    %c2_185 = arith.constant 2 : index
    %c0_186 = arith.constant 0 : index
    %c0_187 = arith.constant 0 : index
    %134 = vector.load %arg12[%c2_184, %c2_185, %c0_186, %c0_187] : memref<6x9x2x64xf32, #tpu.memory_space<vmem>>, vector<4x7x2x64xf32>
    %135 = vector.shape_cast %134 : vector<4x7x2x64xf32> to vector<56x64xf32>
    %c8_188 = arith.constant 8 : index
    %c0_189 = arith.constant 0 : index
    %c0_190 = arith.constant 0 : index
    %136 = vector.load %arg6[%c8_188, %c0_189, %c0_190] : memref<9x64x128xf32, #tpu.memory_space<vmem>>, vector<1x64x128xf32>
    %137 = vector.shape_cast %136 : vector<1x64x128xf32> to vector<64x128xf32>
    %cst_191 = arith.constant dense<0.000000e+00> : vector<56x128xf32>
    %138 = tpu.matmul %135, %137, %cst_191 {dimension_numbers = #tpu.dot_dimension_numbers<[1], [0], [0], [1], [0, 0, 1, 1], [], []>} : vector<56x64xf32>, vector<64x128xf32>, vector<56x128xf32> -> vector<56x128xf32>
    %139 = arith.addf %133, %138 : vector<56x128xf32>
    %c0_192 = arith.constant 0 : index
    %c0_193 = arith.constant 0 : index
    %140 = vector.load %arg7[%c0_192, %c0_193] : memref<1x128xf32, #tpu.memory_space<vmem>>, vector<1x128xf32>
    %141 = vector.broadcast %140 : vector<1x128xf32> to vector<56x128xf32>
    %142 = arith.addf %139, %141 : vector<56x128xf32>
    %cst_194 = arith.constant 0.000000e+00 : f32
    %143 = vector.broadcast %cst_194 : f32 to vector<56x128xf32>
    %144 = arith.maximumf %142, %143 : vector<56x128xf32>
    %145 = arith.truncf %144 : vector<56x128xf32> to vector<56x128xbf16>
    %146 = vector.shape_cast %145 : vector<56x128xbf16> to vector<28x2x128xbf16>
    %cst_195 = arith.constant 0.000000e+00 : f32
    %147 = vector.broadcast %cst_195 : f32 to vector<2x128xf32>
    %148 = vector.extract_strided_slice %146 {offsets = [0, 0, 0], sizes = [1, 2, 128], strides = [1, 1, 1]} : vector<28x2x128xbf16> to vector<1x2x128xbf16>
    %149 = vector.shape_cast %148 : vector<1x2x128xbf16> to vector<2x128xbf16>
    %c0_196 = arith.constant 0 : index
    %c0_197 = arith.constant 0 : index
    %c0_198 = arith.constant 0 : index
    %150 = vector.load %arg8[%c0_196, %c0_197, %c0_198] : memref<28x128x128xbf16, #tpu.memory_space<vmem>>, vector<1x128x128xbf16>
    %151 = vector.shape_cast %150 : vector<1x128x128xbf16> to vector<128x128xbf16>
    %cst_199 = arith.constant dense<0.000000e+00> : vector<2x128xf32>
    %152 = tpu.matmul %149, %151, %cst_199 {dimension_numbers = #tpu.dot_dimension_numbers<[1], [0], [0], [1], [0, 0, 1, 1], [], []>} : vector<2x128xbf16>, vector<128x128xbf16>, vector<2x128xf32> -> vector<2x128xf32>
    %153 = arith.addf %147, %152 : vector<2x128xf32>
    %154 = vector.extract_strided_slice %146 {offsets = [1, 0, 0], sizes = [1, 2, 128], strides = [1, 1, 1]} : vector<28x2x128xbf16> to vector<1x2x128xbf16>
    %155 = vector.shape_cast %154 : vector<1x2x128xbf16> to vector<2x128xbf16>
    %c1_200 = arith.constant 1 : index
    %c0_201 = arith.constant 0 : index
    %c0_202 = arith.constant 0 : index
    %156 = vector.load %arg8[%c1_200, %c0_201, %c0_202] : memref<28x128x128xbf16, #tpu.memory_space<vmem>>, vector<1x128x128xbf16>
    %157 = vector.shape_cast %156 : vector<1x128x128xbf16> to vector<128x128xbf16>
    %cst_203 = arith.constant dense<0.000000e+00> : vector<2x128xf32>
    %158 = tpu.matmul %155, %157, %cst_203 {dimension_numbers = #tpu.dot_dimension_numbers<[1], [0], [0], [1], [0, 0, 1, 1], [], []>} : vector<2x128xbf16>, vector<128x128xbf16>, vector<2x128xf32> -> vector<2x128xf32>
    %159 = arith.addf %153, %158 : vector<2x128xf32>
    %160 = vector.extract_strided_slice %146 {offsets = [2, 0, 0], sizes = [1, 2, 128], strides = [1, 1, 1]} : vector<28x2x128xbf16> to vector<1x2x128xbf16>
    %161 = vector.shape_cast %160 : vector<1x2x128xbf16> to vector<2x128xbf16>
    %c2_204 = arith.constant 2 : index
    %c0_205 = arith.constant 0 : index
    %c0_206 = arith.constant 0 : index
    %162 = vector.load %arg8[%c2_204, %c0_205, %c0_206] : memref<28x128x128xbf16, #tpu.memory_space<vmem>>, vector<1x128x128xbf16>
    %163 = vector.shape_cast %162 : vector<1x128x128xbf16> to vector<128x128xbf16>
    %cst_207 = arith.constant dense<0.000000e+00> : vector<2x128xf32>
    %164 = tpu.matmul %161, %163, %cst_207 {dimension_numbers = #tpu.dot_dimension_numbers<[1], [0], [0], [1], [0, 0, 1, 1], [], []>} : vector<2x128xbf16>, vector<128x128xbf16>, vector<2x128xf32> -> vector<2x128xf32>
    %165 = arith.addf %159, %164 : vector<2x128xf32>
    %166 = vector.extract_strided_slice %146 {offsets = [3, 0, 0], sizes = [1, 2, 128], strides = [1, 1, 1]} : vector<28x2x128xbf16> to vector<1x2x128xbf16>
    %167 = vector.shape_cast %166 : vector<1x2x128xbf16> to vector<2x128xbf16>
    %c3_208 = arith.constant 3 : index
    %c0_209 = arith.constant 0 : index
    %c0_210 = arith.constant 0 : index
    %168 = vector.load %arg8[%c3_208, %c0_209, %c0_210] : memref<28x128x128xbf16, #tpu.memory_space<vmem>>, vector<1x128x128xbf16>
    %169 = vector.shape_cast %168 : vector<1x128x128xbf16> to vector<128x128xbf16>
    %cst_211 = arith.constant dense<0.000000e+00> : vector<2x128xf32>
    %170 = tpu.matmul %167, %169, %cst_211 {dimension_numbers = #tpu.dot_dimension_numbers<[1], [0], [0], [1], [0, 0, 1, 1], [], []>} : vector<2x128xbf16>, vector<128x128xbf16>, vector<2x128xf32> -> vector<2x128xf32>
    %171 = arith.addf %165, %170 : vector<2x128xf32>
    %172 = vector.extract_strided_slice %146 {offsets = [4, 0, 0], sizes = [1, 2, 128], strides = [1, 1, 1]} : vector<28x2x128xbf16> to vector<1x2x128xbf16>
    %173 = vector.shape_cast %172 : vector<1x2x128xbf16> to vector<2x128xbf16>
    %c4_212 = arith.constant 4 : index
    %c0_213 = arith.constant 0 : index
    %c0_214 = arith.constant 0 : index
    %174 = vector.load %arg8[%c4_212, %c0_213, %c0_214] : memref<28x128x128xbf16, #tpu.memory_space<vmem>>, vector<1x128x128xbf16>
    %175 = vector.shape_cast %174 : vector<1x128x128xbf16> to vector<128x128xbf16>
    %cst_215 = arith.constant dense<0.000000e+00> : vector<2x128xf32>
    %176 = tpu.matmul %173, %175, %cst_215 {dimension_numbers = #tpu.dot_dimension_numbers<[1], [0], [0], [1], [0, 0, 1, 1], [], []>} : vector<2x128xbf16>, vector<128x128xbf16>, vector<2x128xf32> -> vector<2x128xf32>
    %177 = arith.addf %171, %176 : vector<2x128xf32>
    %178 = vector.extract_strided_slice %146 {offsets = [5, 0, 0], sizes = [1, 2, 128], strides = [1, 1, 1]} : vector<28x2x128xbf16> to vector<1x2x128xbf16>
    %179 = vector.shape_cast %178 : vector<1x2x128xbf16> to vector<2x128xbf16>
    %c5_216 = arith.constant 5 : index
    %c0_217 = arith.constant 0 : index
    %c0_218 = arith.constant 0 : index
    %180 = vector.load %arg8[%c5_216, %c0_217, %c0_218] : memref<28x128x128xbf16, #tpu.memory_space<vmem>>, vector<1x128x128xbf16>
    %181 = vector.shape_cast %180 : vector<1x128x128xbf16> to vector<128x128xbf16>
    %cst_219 = arith.constant dense<0.000000e+00> : vector<2x128xf32>
    %182 = tpu.matmul %179, %181, %cst_219 {dimension_numbers = #tpu.dot_dimension_numbers<[1], [0], [0], [1], [0, 0, 1, 1], [], []>} : vector<2x128xbf16>, vector<128x128xbf16>, vector<2x128xf32> -> vector<2x128xf32>
    %183 = arith.addf %177, %182 : vector<2x128xf32>
    %184 = vector.extract_strided_slice %146 {offsets = [6, 0, 0], sizes = [1, 2, 128], strides = [1, 1, 1]} : vector<28x2x128xbf16> to vector<1x2x128xbf16>
    %185 = vector.shape_cast %184 : vector<1x2x128xbf16> to vector<2x128xbf16>
    %c6_220 = arith.constant 6 : index
    %c0_221 = arith.constant 0 : index
    %c0_222 = arith.constant 0 : index
    %186 = vector.load %arg8[%c6_220, %c0_221, %c0_222] : memref<28x128x128xbf16, #tpu.memory_space<vmem>>, vector<1x128x128xbf16>
    %187 = vector.shape_cast %186 : vector<1x128x128xbf16> to vector<128x128xbf16>
    %cst_223 = arith.constant dense<0.000000e+00> : vector<2x128xf32>
    %188 = tpu.matmul %185, %187, %cst_223 {dimension_numbers = #tpu.dot_dimension_numbers<[1], [0], [0], [1], [0, 0, 1, 1], [], []>} : vector<2x128xbf16>, vector<128x128xbf16>, vector<2x128xf32> -> vector<2x128xf32>
    %189 = arith.addf %183, %188 : vector<2x128xf32>
    %190 = vector.extract_strided_slice %146 {offsets = [7, 0, 0], sizes = [1, 2, 128], strides = [1, 1, 1]} : vector<28x2x128xbf16> to vector<1x2x128xbf16>
    %191 = vector.shape_cast %190 : vector<1x2x128xbf16> to vector<2x128xbf16>
    %c7_224 = arith.constant 7 : index
    %c0_225 = arith.constant 0 : index
    %c0_226 = arith.constant 0 : index
    %192 = vector.load %arg8[%c7_224, %c0_225, %c0_226] : memref<28x128x128xbf16, #tpu.memory_space<vmem>>, vector<1x128x128xbf16>
    %193 = vector.shape_cast %192 : vector<1x128x128xbf16> to vector<128x128xbf16>
    %cst_227 = arith.constant dense<0.000000e+00> : vector<2x128xf32>
    %194 = tpu.matmul %191, %193, %cst_227 {dimension_numbers = #tpu.dot_dimension_numbers<[1], [0], [0], [1], [0, 0, 1, 1], [], []>} : vector<2x128xbf16>, vector<128x128xbf16>, vector<2x128xf32> -> vector<2x128xf32>
    %195 = arith.addf %189, %194 : vector<2x128xf32>
    %196 = vector.extract_strided_slice %146 {offsets = [8, 0, 0], sizes = [1, 2, 128], strides = [1, 1, 1]} : vector<28x2x128xbf16> to vector<1x2x128xbf16>
    %197 = vector.shape_cast %196 : vector<1x2x128xbf16> to vector<2x128xbf16>
    %c8_228 = arith.constant 8 : index
    %c0_229 = arith.constant 0 : index
    %c0_230 = arith.constant 0 : index
    %198 = vector.load %arg8[%c8_228, %c0_229, %c0_230] : memref<28x128x128xbf16, #tpu.memory_space<vmem>>, vector<1x128x128xbf16>
    %199 = vector.shape_cast %198 : vector<1x128x128xbf16> to vector<128x128xbf16>
    %cst_231 = arith.constant dense<0.000000e+00> : vector<2x128xf32>
    %200 = tpu.matmul %197, %199, %cst_231 {dimension_numbers = #tpu.dot_dimension_numbers<[1], [0], [0], [1], [0, 0, 1, 1], [], []>} : vector<2x128xbf16>, vector<128x128xbf16>, vector<2x128xf32> -> vector<2x128xf32>
    %201 = arith.addf %195, %200 : vector<2x128xf32>
    %202 = vector.extract_strided_slice %146 {offsets = [9, 0, 0], sizes = [1, 2, 128], strides = [1, 1, 1]} : vector<28x2x128xbf16> to vector<1x2x128xbf16>
    %203 = vector.shape_cast %202 : vector<1x2x128xbf16> to vector<2x128xbf16>
    %c9 = arith.constant 9 : index
    %c0_232 = arith.constant 0 : index
    %c0_233 = arith.constant 0 : index
    %204 = vector.load %arg8[%c9, %c0_232, %c0_233] : memref<28x128x128xbf16, #tpu.memory_space<vmem>>, vector<1x128x128xbf16>
    %205 = vector.shape_cast %204 : vector<1x128x128xbf16> to vector<128x128xbf16>
    %cst_234 = arith.constant dense<0.000000e+00> : vector<2x128xf32>
    %206 = tpu.matmul %203, %205, %cst_234 {dimension_numbers = #tpu.dot_dimension_numbers<[1], [0], [0], [1], [0, 0, 1, 1], [], []>} : vector<2x128xbf16>, vector<128x128xbf16>, vector<2x128xf32> -> vector<2x128xf32>
    %207 = arith.addf %201, %206 : vector<2x128xf32>
    %208 = vector.extract_strided_slice %146 {offsets = [10, 0, 0], sizes = [1, 2, 128], strides = [1, 1, 1]} : vector<28x2x128xbf16> to vector<1x2x128xbf16>
    %209 = vector.shape_cast %208 : vector<1x2x128xbf16> to vector<2x128xbf16>
    %c10 = arith.constant 10 : index
    %c0_235 = arith.constant 0 : index
    %c0_236 = arith.constant 0 : index
    %210 = vector.load %arg8[%c10, %c0_235, %c0_236] : memref<28x128x128xbf16, #tpu.memory_space<vmem>>, vector<1x128x128xbf16>
    %211 = vector.shape_cast %210 : vector<1x128x128xbf16> to vector<128x128xbf16>
    %cst_237 = arith.constant dense<0.000000e+00> : vector<2x128xf32>
    %212 = tpu.matmul %209, %211, %cst_237 {dimension_numbers = #tpu.dot_dimension_numbers<[1], [0], [0], [1], [0, 0, 1, 1], [], []>} : vector<2x128xbf16>, vector<128x128xbf16>, vector<2x128xf32> -> vector<2x128xf32>
    %213 = arith.addf %207, %212 : vector<2x128xf32>
    %214 = vector.extract_strided_slice %146 {offsets = [11, 0, 0], sizes = [1, 2, 128], strides = [1, 1, 1]} : vector<28x2x128xbf16> to vector<1x2x128xbf16>
    %215 = vector.shape_cast %214 : vector<1x2x128xbf16> to vector<2x128xbf16>
    %c11 = arith.constant 11 : index
    %c0_238 = arith.constant 0 : index
    %c0_239 = arith.constant 0 : index
    %216 = vector.load %arg8[%c11, %c0_238, %c0_239] : memref<28x128x128xbf16, #tpu.memory_space<vmem>>, vector<1x128x128xbf16>
    %217 = vector.shape_cast %216 : vector<1x128x128xbf16> to vector<128x128xbf16>
    %cst_240 = arith.constant dense<0.000000e+00> : vector<2x128xf32>
    %218 = tpu.matmul %215, %217, %cst_240 {dimension_numbers = #tpu.dot_dimension_numbers<[1], [0], [0], [1], [0, 0, 1, 1], [], []>} : vector<2x128xbf16>, vector<128x128xbf16>, vector<2x128xf32> -> vector<2x128xf32>
    %219 = arith.addf %213, %218 : vector<2x128xf32>
    %220 = vector.extract_strided_slice %146 {offsets = [12, 0, 0], sizes = [1, 2, 128], strides = [1, 1, 1]} : vector<28x2x128xbf16> to vector<1x2x128xbf16>
    %221 = vector.shape_cast %220 : vector<1x2x128xbf16> to vector<2x128xbf16>
    %c12 = arith.constant 12 : index
    %c0_241 = arith.constant 0 : index
    %c0_242 = arith.constant 0 : index
    %222 = vector.load %arg8[%c12, %c0_241, %c0_242] : memref<28x128x128xbf16, #tpu.memory_space<vmem>>, vector<1x128x128xbf16>
    %223 = vector.shape_cast %222 : vector<1x128x128xbf16> to vector<128x128xbf16>
    %cst_243 = arith.constant dense<0.000000e+00> : vector<2x128xf32>
    %224 = tpu.matmul %221, %223, %cst_243 {dimension_numbers = #tpu.dot_dimension_numbers<[1], [0], [0], [1], [0, 0, 1, 1], [], []>} : vector<2x128xbf16>, vector<128x128xbf16>, vector<2x128xf32> -> vector<2x128xf32>
    %225 = arith.addf %219, %224 : vector<2x128xf32>
    %226 = vector.extract_strided_slice %146 {offsets = [13, 0, 0], sizes = [1, 2, 128], strides = [1, 1, 1]} : vector<28x2x128xbf16> to vector<1x2x128xbf16>
    %227 = vector.shape_cast %226 : vector<1x2x128xbf16> to vector<2x128xbf16>
    %c13 = arith.constant 13 : index
    %c0_244 = arith.constant 0 : index
    %c0_245 = arith.constant 0 : index
    %228 = vector.load %arg8[%c13, %c0_244, %c0_245] : memref<28x128x128xbf16, #tpu.memory_space<vmem>>, vector<1x128x128xbf16>
    %229 = vector.shape_cast %228 : vector<1x128x128xbf16> to vector<128x128xbf16>
    %cst_246 = arith.constant dense<0.000000e+00> : vector<2x128xf32>
    %230 = tpu.matmul %227, %229, %cst_246 {dimension_numbers = #tpu.dot_dimension_numbers<[1], [0], [0], [1], [0, 0, 1, 1], [], []>} : vector<2x128xbf16>, vector<128x128xbf16>, vector<2x128xf32> -> vector<2x128xf32>
    %231 = arith.addf %225, %230 : vector<2x128xf32>
    %232 = vector.extract_strided_slice %146 {offsets = [14, 0, 0], sizes = [1, 2, 128], strides = [1, 1, 1]} : vector<28x2x128xbf16> to vector<1x2x128xbf16>
    %233 = vector.shape_cast %232 : vector<1x2x128xbf16> to vector<2x128xbf16>
    %c14 = arith.constant 14 : index
    %c0_247 = arith.constant 0 : index
    %c0_248 = arith.constant 0 : index
    %234 = vector.load %arg8[%c14, %c0_247, %c0_248] : memref<28x128x128xbf16, #tpu.memory_space<vmem>>, vector<1x128x128xbf16>
    %235 = vector.shape_cast %234 : vector<1x128x128xbf16> to vector<128x128xbf16>
    %cst_249 = arith.constant dense<0.000000e+00> : vector<2x128xf32>
    %236 = tpu.matmul %233, %235, %cst_249 {dimension_numbers = #tpu.dot_dimension_numbers<[1], [0], [0], [1], [0, 0, 1, 1], [], []>} : vector<2x128xbf16>, vector<128x128xbf16>, vector<2x128xf32> -> vector<2x128xf32>
    %237 = arith.addf %231, %236 : vector<2x128xf32>
    %238 = vector.extract_strided_slice %146 {offsets = [15, 0, 0], sizes = [1, 2, 128], strides = [1, 1, 1]} : vector<28x2x128xbf16> to vector<1x2x128xbf16>
    %239 = vector.shape_cast %238 : vector<1x2x128xbf16> to vector<2x128xbf16>
    %c15 = arith.constant 15 : index
    %c0_250 = arith.constant 0 : index
    %c0_251 = arith.constant 0 : index
    %240 = vector.load %arg8[%c15, %c0_250, %c0_251] : memref<28x128x128xbf16, #tpu.memory_space<vmem>>, vector<1x128x128xbf16>
    %241 = vector.shape_cast %240 : vector<1x128x128xbf16> to vector<128x128xbf16>
    %cst_252 = arith.constant dense<0.000000e+00> : vector<2x128xf32>
    %242 = tpu.matmul %239, %241, %cst_252 {dimension_numbers = #tpu.dot_dimension_numbers<[1], [0], [0], [1], [0, 0, 1, 1], [], []>} : vector<2x128xbf16>, vector<128x128xbf16>, vector<2x128xf32> -> vector<2x128xf32>
    %243 = arith.addf %237, %242 : vector<2x128xf32>
    %244 = vector.extract_strided_slice %146 {offsets = [16, 0, 0], sizes = [1, 2, 128], strides = [1, 1, 1]} : vector<28x2x128xbf16> to vector<1x2x128xbf16>
    %245 = vector.shape_cast %244 : vector<1x2x128xbf16> to vector<2x128xbf16>
    %c16 = arith.constant 16 : index
    %c0_253 = arith.constant 0 : index
    %c0_254 = arith.constant 0 : index
    %246 = vector.load %arg8[%c16, %c0_253, %c0_254] : memref<28x128x128xbf16, #tpu.memory_space<vmem>>, vector<1x128x128xbf16>
    %247 = vector.shape_cast %246 : vector<1x128x128xbf16> to vector<128x128xbf16>
    %cst_255 = arith.constant dense<0.000000e+00> : vector<2x128xf32>
    %248 = tpu.matmul %245, %247, %cst_255 {dimension_numbers = #tpu.dot_dimension_numbers<[1], [0], [0], [1], [0, 0, 1, 1], [], []>} : vector<2x128xbf16>, vector<128x128xbf16>, vector<2x128xf32> -> vector<2x128xf32>
    %249 = arith.addf %243, %248 : vector<2x128xf32>
    %250 = vector.extract_strided_slice %146 {offsets = [17, 0, 0], sizes = [1, 2, 128], strides = [1, 1, 1]} : vector<28x2x128xbf16> to vector<1x2x128xbf16>
    %251 = vector.shape_cast %250 : vector<1x2x128xbf16> to vector<2x128xbf16>
    %c17 = arith.constant 17 : index
    %c0_256 = arith.constant 0 : index
    %c0_257 = arith.constant 0 : index
    %252 = vector.load %arg8[%c17, %c0_256, %c0_257] : memref<28x128x128xbf16, #tpu.memory_space<vmem>>, vector<1x128x128xbf16>
    %253 = vector.shape_cast %252 : vector<1x128x128xbf16> to vector<128x128xbf16>
    %cst_258 = arith.constant dense<0.000000e+00> : vector<2x128xf32>
    %254 = tpu.matmul %251, %253, %cst_258 {dimension_numbers = #tpu.dot_dimension_numbers<[1], [0], [0], [1], [0, 0, 1, 1], [], []>} : vector<2x128xbf16>, vector<128x128xbf16>, vector<2x128xf32> -> vector<2x128xf32>
    %255 = arith.addf %249, %254 : vector<2x128xf32>
    %256 = vector.extract_strided_slice %146 {offsets = [18, 0, 0], sizes = [1, 2, 128], strides = [1, 1, 1]} : vector<28x2x128xbf16> to vector<1x2x128xbf16>
    %257 = vector.shape_cast %256 : vector<1x2x128xbf16> to vector<2x128xbf16>
    %c18 = arith.constant 18 : index
    %c0_259 = arith.constant 0 : index
    %c0_260 = arith.constant 0 : index
    %258 = vector.load %arg8[%c18, %c0_259, %c0_260] : memref<28x128x128xbf16, #tpu.memory_space<vmem>>, vector<1x128x128xbf16>
    %259 = vector.shape_cast %258 : vector<1x128x128xbf16> to vector<128x128xbf16>
    %cst_261 = arith.constant dense<0.000000e+00> : vector<2x128xf32>
    %260 = tpu.matmul %257, %259, %cst_261 {dimension_numbers = #tpu.dot_dimension_numbers<[1], [0], [0], [1], [0, 0, 1, 1], [], []>} : vector<2x128xbf16>, vector<128x128xbf16>, vector<2x128xf32> -> vector<2x128xf32>
    %261 = arith.addf %255, %260 : vector<2x128xf32>
    %262 = vector.extract_strided_slice %146 {offsets = [19, 0, 0], sizes = [1, 2, 128], strides = [1, 1, 1]} : vector<28x2x128xbf16> to vector<1x2x128xbf16>
    %263 = vector.shape_cast %262 : vector<1x2x128xbf16> to vector<2x128xbf16>
    %c19 = arith.constant 19 : index
    %c0_262 = arith.constant 0 : index
    %c0_263 = arith.constant 0 : index
    %264 = vector.load %arg8[%c19, %c0_262, %c0_263] : memref<28x128x128xbf16, #tpu.memory_space<vmem>>, vector<1x128x128xbf16>
    %265 = vector.shape_cast %264 : vector<1x128x128xbf16> to vector<128x128xbf16>
    %cst_264 = arith.constant dense<0.000000e+00> : vector<2x128xf32>
    %266 = tpu.matmul %263, %265, %cst_264 {dimension_numbers = #tpu.dot_dimension_numbers<[1], [0], [0], [1], [0, 0, 1, 1], [], []>} : vector<2x128xbf16>, vector<128x128xbf16>, vector<2x128xf32> -> vector<2x128xf32>
    %267 = arith.addf %261, %266 : vector<2x128xf32>
    %268 = vector.extract_strided_slice %146 {offsets = [20, 0, 0], sizes = [1, 2, 128], strides = [1, 1, 1]} : vector<28x2x128xbf16> to vector<1x2x128xbf16>
    %269 = vector.shape_cast %268 : vector<1x2x128xbf16> to vector<2x128xbf16>
    %c20 = arith.constant 20 : index
    %c0_265 = arith.constant 0 : index
    %c0_266 = arith.constant 0 : index
    %270 = vector.load %arg8[%c20, %c0_265, %c0_266] : memref<28x128x128xbf16, #tpu.memory_space<vmem>>, vector<1x128x128xbf16>
    %271 = vector.shape_cast %270 : vector<1x128x128xbf16> to vector<128x128xbf16>
    %cst_267 = arith.constant dense<0.000000e+00> : vector<2x128xf32>
    %272 = tpu.matmul %269, %271, %cst_267 {dimension_numbers = #tpu.dot_dimension_numbers<[1], [0], [0], [1], [0, 0, 1, 1], [], []>} : vector<2x128xbf16>, vector<128x128xbf16>, vector<2x128xf32> -> vector<2x128xf32>
    %273 = arith.addf %267, %272 : vector<2x128xf32>
    %274 = vector.extract_strided_slice %146 {offsets = [21, 0, 0], sizes = [1, 2, 128], strides = [1, 1, 1]} : vector<28x2x128xbf16> to vector<1x2x128xbf16>
    %275 = vector.shape_cast %274 : vector<1x2x128xbf16> to vector<2x128xbf16>
    %c21 = arith.constant 21 : index
    %c0_268 = arith.constant 0 : index
    %c0_269 = arith.constant 0 : index
    %276 = vector.load %arg8[%c21, %c0_268, %c0_269] : memref<28x128x128xbf16, #tpu.memory_space<vmem>>, vector<1x128x128xbf16>
    %277 = vector.shape_cast %276 : vector<1x128x128xbf16> to vector<128x128xbf16>
    %cst_270 = arith.constant dense<0.000000e+00> : vector<2x128xf32>
    %278 = tpu.matmul %275, %277, %cst_270 {dimension_numbers = #tpu.dot_dimension_numbers<[1], [0], [0], [1], [0, 0, 1, 1], [], []>} : vector<2x128xbf16>, vector<128x128xbf16>, vector<2x128xf32> -> vector<2x128xf32>
    %279 = arith.addf %273, %278 : vector<2x128xf32>
    %280 = vector.extract_strided_slice %146 {offsets = [22, 0, 0], sizes = [1, 2, 128], strides = [1, 1, 1]} : vector<28x2x128xbf16> to vector<1x2x128xbf16>
    %281 = vector.shape_cast %280 : vector<1x2x128xbf16> to vector<2x128xbf16>
    %c22 = arith.constant 22 : index
    %c0_271 = arith.constant 0 : index
    %c0_272 = arith.constant 0 : index
    %282 = vector.load %arg8[%c22, %c0_271, %c0_272] : memref<28x128x128xbf16, #tpu.memory_space<vmem>>, vector<1x128x128xbf16>
    %283 = vector.shape_cast %282 : vector<1x128x128xbf16> to vector<128x128xbf16>
    %cst_273 = arith.constant dense<0.000000e+00> : vector<2x128xf32>
    %284 = tpu.matmul %281, %283, %cst_273 {dimension_numbers = #tpu.dot_dimension_numbers<[1], [0], [0], [1], [0, 0, 1, 1], [], []>} : vector<2x128xbf16>, vector<128x128xbf16>, vector<2x128xf32> -> vector<2x128xf32>
    %285 = arith.addf %279, %284 : vector<2x128xf32>
    %286 = vector.extract_strided_slice %146 {offsets = [23, 0, 0], sizes = [1, 2, 128], strides = [1, 1, 1]} : vector<28x2x128xbf16> to vector<1x2x128xbf16>
    %287 = vector.shape_cast %286 : vector<1x2x128xbf16> to vector<2x128xbf16>
    %c23 = arith.constant 23 : index
    %c0_274 = arith.constant 0 : index
    %c0_275 = arith.constant 0 : index
    %288 = vector.load %arg8[%c23, %c0_274, %c0_275] : memref<28x128x128xbf16, #tpu.memory_space<vmem>>, vector<1x128x128xbf16>
    %289 = vector.shape_cast %288 : vector<1x128x128xbf16> to vector<128x128xbf16>
    %cst_276 = arith.constant dense<0.000000e+00> : vector<2x128xf32>
    %290 = tpu.matmul %287, %289, %cst_276 {dimension_numbers = #tpu.dot_dimension_numbers<[1], [0], [0], [1], [0, 0, 1, 1], [], []>} : vector<2x128xbf16>, vector<128x128xbf16>, vector<2x128xf32> -> vector<2x128xf32>
    %291 = arith.addf %285, %290 : vector<2x128xf32>
    %292 = vector.extract_strided_slice %146 {offsets = [24, 0, 0], sizes = [1, 2, 128], strides = [1, 1, 1]} : vector<28x2x128xbf16> to vector<1x2x128xbf16>
    %293 = vector.shape_cast %292 : vector<1x2x128xbf16> to vector<2x128xbf16>
    %c24 = arith.constant 24 : index
    %c0_277 = arith.constant 0 : index
    %c0_278 = arith.constant 0 : index
    %294 = vector.load %arg8[%c24, %c0_277, %c0_278] : memref<28x128x128xbf16, #tpu.memory_space<vmem>>, vector<1x128x128xbf16>
    %295 = vector.shape_cast %294 : vector<1x128x128xbf16> to vector<128x128xbf16>
    %cst_279 = arith.constant dense<0.000000e+00> : vector<2x128xf32>
    %296 = tpu.matmul %293, %295, %cst_279 {dimension_numbers = #tpu.dot_dimension_numbers<[1], [0], [0], [1], [0, 0, 1, 1], [], []>} : vector<2x128xbf16>, vector<128x128xbf16>, vector<2x128xf32> -> vector<2x128xf32>
    %297 = arith.addf %291, %296 : vector<2x128xf32>
    %298 = vector.extract_strided_slice %146 {offsets = [25, 0, 0], sizes = [1, 2, 128], strides = [1, 1, 1]} : vector<28x2x128xbf16> to vector<1x2x128xbf16>
    %299 = vector.shape_cast %298 : vector<1x2x128xbf16> to vector<2x128xbf16>
    %c25 = arith.constant 25 : index
    %c0_280 = arith.constant 0 : index
    %c0_281 = arith.constant 0 : index
    %300 = vector.load %arg8[%c25, %c0_280, %c0_281] : memref<28x128x128xbf16, #tpu.memory_space<vmem>>, vector<1x128x128xbf16>
    %301 = vector.shape_cast %300 : vector<1x128x128xbf16> to vector<128x128xbf16>
    %cst_282 = arith.constant dense<0.000000e+00> : vector<2x128xf32>
    %302 = tpu.matmul %299, %301, %cst_282 {dimension_numbers = #tpu.dot_dimension_numbers<[1], [0], [0], [1], [0, 0, 1, 1], [], []>} : vector<2x128xbf16>, vector<128x128xbf16>, vector<2x128xf32> -> vector<2x128xf32>
    %303 = arith.addf %297, %302 : vector<2x128xf32>
    %304 = vector.extract_strided_slice %146 {offsets = [26, 0, 0], sizes = [1, 2, 128], strides = [1, 1, 1]} : vector<28x2x128xbf16> to vector<1x2x128xbf16>
    %305 = vector.shape_cast %304 : vector<1x2x128xbf16> to vector<2x128xbf16>
    %c26 = arith.constant 26 : index
    %c0_283 = arith.constant 0 : index
    %c0_284 = arith.constant 0 : index
    %306 = vector.load %arg8[%c26, %c0_283, %c0_284] : memref<28x128x128xbf16, #tpu.memory_space<vmem>>, vector<1x128x128xbf16>
    %307 = vector.shape_cast %306 : vector<1x128x128xbf16> to vector<128x128xbf16>
    %cst_285 = arith.constant dense<0.000000e+00> : vector<2x128xf32>
    %308 = tpu.matmul %305, %307, %cst_285 {dimension_numbers = #tpu.dot_dimension_numbers<[1], [0], [0], [1], [0, 0, 1, 1], [], []>} : vector<2x128xbf16>, vector<128x128xbf16>, vector<2x128xf32> -> vector<2x128xf32>
    %309 = arith.addf %303, %308 : vector<2x128xf32>
    %310 = vector.extract_strided_slice %146 {offsets = [27, 0, 0], sizes = [1, 2, 128], strides = [1, 1, 1]} : vector<28x2x128xbf16> to vector<1x2x128xbf16>
    %311 = vector.shape_cast %310 : vector<1x2x128xbf16> to vector<2x128xbf16>
    %c27 = arith.constant 27 : index
    %c0_286 = arith.constant 0 : index
    %c0_287 = arith.constant 0 : index
    %312 = vector.load %arg8[%c27, %c0_286, %c0_287] : memref<28x128x128xbf16, #tpu.memory_space<vmem>>, vector<1x128x128xbf16>
    %313 = vector.shape_cast %312 : vector<1x128x128xbf16> to vector<128x128xbf16>
    %cst_288 = arith.constant dense<0.000000e+00> : vector<2x128xf32>
    %314 = tpu.matmul %311, %313, %cst_288 {dimension_numbers = #tpu.dot_dimension_numbers<[1], [0], [0], [1], [0, 0, 1, 1], [], []>} : vector<2x128xbf16>, vector<128x128xbf16>, vector<2x128xf32> -> vector<2x128xf32>
    %315 = arith.addf %309, %314 : vector<2x128xf32>
    %c0_289 = arith.constant 0 : index
    %c0_290 = arith.constant 0 : index
    %316 = vector.load %arg9[%c0_289, %c0_290] : memref<1x128xf32, #tpu.memory_space<vmem>>, vector<1x128xf32>
    %317 = vector.broadcast %316 : vector<1x128xf32> to vector<2x128xf32>
    %318 = arith.addf %315, %317 : vector<2x128xf32>
    %c0_291 = arith.constant 0 : index
    %c0_292 = arith.constant 0 : index
    %319 = vector.load %arg10[%c0_291, %c0_292] : memref<2x128xf32, #tpu.memory_space<vmem>>, vector<2x128xf32>
    tpu.vector_store %arg10[%c0_291, %c0_292], %318 {strides = array<i32>} : memref<2x128xf32, #tpu.memory_space<vmem>>, vector<2x128xf32>,
    return
  }
  func.func @transform_0(%arg0: i32) -> (i32, i32, i32) {
    %c0_i32 = arith.constant 0 : i32
    %c0_i32_0 = arith.constant 0 : i32
    %c0_i32_1 = arith.constant 0 : i32
    return %c0_i32, %arg0, %c0_i32_0 : i32, i32, i32
  }
  func.func @transform_1(%arg0: i32) -> (i32, i32) {
    %c0_i32 = arith.constant 0 : i32
    %c0_i32_0 = arith.constant 0 : i32
    %c0_i32_1 = arith.constant 0 : i32
    return %c0_i32, %c0_i32_0 : i32, i32
  }
  func.func @transform_2(%arg0: i32) -> (i32, i32) {
    %c0_i32 = arith.constant 0 : i32
    %c0_i32_0 = arith.constant 0 : i32
    %c0_i32_1 = arith.constant 0 : i32
    return %c0_i32, %c0_i32_0 : i32, i32
  }
  func.func @transform_3(%arg0: i32) -> (i32, i32, i32) {
    %c0_i32 = arith.constant 0 : i32
    %c0_i32_0 = arith.constant 0 : i32
    %c0_i32_1 = arith.constant 0 : i32
    %c0_i32_2 = arith.constant 0 : i32
    return %c0_i32, %c0_i32_0, %c0_i32_1 : i32, i32, i32
  }
  func.func @transform_4(%arg0: i32) -> (i32, i32) {
    %c0_i32 = arith.constant 0 : i32
    %c0_i32_0 = arith.constant 0 : i32
    %c0_i32_1 = arith.constant 0 : i32
    return %c0_i32, %c0_i32_0 : i32, i32
  }
  func.func @transform_5(%arg0: i32) -> (i32, i32, i32) {
    %c0_i32 = arith.constant 0 : i32
    %c0_i32_0 = arith.constant 0 : i32
    %c0_i32_1 = arith.constant 0 : i32
    %c0_i32_2 = arith.constant 0 : i32
    return %c0_i32, %c0_i32_0, %c0_i32_1 : i32, i32, i32
  }
  func.func @transform_6(%arg0: i32) -> (i32, i32) {
    %c0_i32 = arith.constant 0 : i32
    %c0_i32_0 = arith.constant 0 : i32
    %c0_i32_1 = arith.constant 0 : i32
    return %c0_i32, %c0_i32_0 : i32, i32
  }
  func.func @transform_7(%arg0: i32) -> (i32, i32, i32) {
    %c0_i32 = arith.constant 0 : i32
    %c0_i32_0 = arith.constant 0 : i32
    %c0_i32_1 = arith.constant 0 : i32
    %c0_i32_2 = arith.constant 0 : i32
    return %c0_i32, %c0_i32_0, %c0_i32_1 : i32, i32, i32
  }
  func.func @transform_8(%arg0: i32) -> (i32, i32) {
    %c0_i32 = arith.constant 0 : i32
    %c0_i32_0 = arith.constant 0 : i32
    %c0_i32_1 = arith.constant 0 : i32
    return %c0_i32, %c0_i32_0 : i32, i32
  }
  func.func @transform_9(%arg0: i32) -> (i32, i32) {
    %c0_i32 = arith.constant 0 : i32
    %c0_i32_0 = arith.constant 0 : i32
    return %arg0, %c0_i32 : i32, i32
  }
}

</mosaic_0001>

<bundles_post_ra>
// kernel: cnn_forward.1
= control target key start
LH: loop header
LB: loop body
LE: loop exit
PB: predicated region body
PF: predicated region fallthrough
CT: control target
= control target key end

     0   :  { %14 = vsyncpa [#allocation5], 0  ;;  %s14672_s0 = inlined_call_operand.vmem [shape: f32[28,2,36], index: 0, kind: input, shape index: {}]   ;;  %s14673_s1 = inlined_call_operand.vmem [shape: f32[36,32], index: 1, kind: input, shape index: {}]   ;;  %s14674_s2 = inlined_call_operand.vmem [shape: f32[1,32], index: 2, kind: input, shape index: {}]   ;;  %s14675_s3 = inlined_call_operand.hbm [shape: f32[9,32,64], index: 3, kind: input, shape index: {}]   ;;  %s14676_s4 = inlined_call_operand.vmem [shape: f32[1,64], index: 4, kind: input, shape index: {}]   ;;  %s14677_s5 = inlined_call_operand.hbm [shape: f32[9,64,128], index: 5, kind: input, shape index: {}]   ;;  %s14678_s6 = inlined_call_operand.vmem [shape: f32[1,128], index: 6, kind: input, shape index: {}]   ;;  %s14679_s7 = inlined_call_operand.vmem [shape: bf16[28,128,128], index: 7, kind: input, shape index: {}]   ;;  %s14680_s8 = inlined_call_operand.vmem [shape: f32[1,128], index: 8, kind: input, shape index: {}]   ;;  %s14681_s9 = inlined_call_operand.hbm [shape: f32[2,128], index: 9, kind: output, shape index: {}]  }
   0x1   :  { %15 = vsyncpa [#allocation8], 0 }
   0x2   :  { %16 = vsyncpa [#allocation6], 0  ;;  %s12301_s30 = smov [#allocation4]  }
   0x3   :  { %s28_s10 = sshll.u32 %s12301_s30, 4  ;;  %s29_s10 = int_to_ptr.vmem [resolvable:$true] %s28_s10 }
   0x4   :  { %s12243_s11 = scalar_lea.vmem %s29_s10, 4608  ;;  %p12248_p1 = scmp.lt.s32.totalorder %s29_s10, %s29_s10 }
   0x5   :  { %p12244_p0 = scmp.ne.s32.totalorder %s29_s10, %s12243_s11  ;;  %p12249_p2 = scmp.lt.s32.totalorder %s12243_s11, %s12243_s11 }
   0x7   :  { %p12250_p3 = por %p12249_p2, %p12248_p1 }
   0x9   :  { %p12251_p4 = pnand %p12250_p3, %p12244_p0 }
   0xb   :  { %12254 = shalt.err (!%p12251_p4)
}
   0xc   :  { %s12302_s12 = smov 128   ;;  %s12303_s13 = smov 8  }
   0xd   :  { %34 = dma.hbm_to_vmem [thread:$0]  %s14675_s3, 4608, %s29_s10, [#allocation5], %s12302_s12, %s12302_s12, %s12303_s13  }
   0xe   :  { %s12304_s16 = smov [#allocation7]  }
   0xf   :  { %s42_s17 = sshll.u32 %s12304_s16, 4  ;;  %s43_s17 = int_to_ptr.vmem [resolvable:$true] %s42_s17 }
  0x10   :  { %s12263_s18 = scalar_lea.vmem %s43_s17, 9216  ;;  %p12268_p6 = scmp.lt.s32.totalorder %s43_s17, %s43_s17 }
  0x11   :  { %p12264_p5 = scmp.ne.s32.totalorder %s43_s17, %s12263_s18  ;;  %p12269_p7 = scmp.lt.s32.totalorder %s12263_s18, %s12263_s18 }
  0x13   :  { %p12270_p8 = por %p12269_p7, %p12268_p6 }
  0x15   :  { %p12271_p9 = pnand %p12270_p8, %p12264_p5 }
  0x17   :  { %12274 = shalt.err (!%p12271_p9)
}
  0x18   :  { %48 = dma.hbm_to_vmem [thread:$0]  %s14677_s5, 9216, %s43_s17, [#allocation8], %s12302_s12, %s12302_s12, %s12303_s13  }
  0x19   :  { %12295 = dma.done.wait [#allocation5], 4608  }
  0x1a   :  { %12296 = vsyncadd [#allocation5], 4294962688 }
  0x1b   :  { %12297 = dma.done.wait [#allocation8], 9216  }
  0x1c   :  { %12298 = vsyncadd [#allocation8], 4294958080  ;;  %v135_v0 = vlaneseq  ;;  %v12305_v1 = vmov 0.0   ;;  %vm12306_vm0 = vmmov 0   ;;  %v12307_v2 = vmov 1983009808  }
  0x1d   :  { %10773 = vmatprep.subr.mxu0 %v12305_v1  ;;  %10783 = vmatprep.mubr.msk.f32.mxu0 %vm12306_vm0, %v12305_v1  ;;  %v133_v3 = vunpack.c.l.s4 %v12307_v2  ;;  %vm264_vm1 = vcmask 1043456   ;;  %v94_v6 = vld [vmem:[%s14673_s1 + $0x20] sm:$0xf]  ;;  %v93_v7 = vld [vmem:[%s14673_s1 + $0x18] sm:$0xff]  ;;  %v92_v8 = vld [vmem:[%s14673_s1 + $0x10] sm:$0xff]  ;;  %vm249_vm2 = vcmask 293888  }
  0x1e   :  { %11958 = vmatprep.subr.mxu1 %v12305_v1  ;;  %10821 = vmatprep.mubr.msk.f32.mxu1 %vm12306_vm0, %v12305_v1  ;;  %v12372_v5 = vshrl.u32 %v135_v0, 7  ;;  %v62_v9 = vld [vmem:[%s14672_s0] sm:$0x3]  ;;  %v91_v11 = vld [vmem:[%s14673_s1 + $0x8] sm:$0xff]  ;;  %v63_v12 = vld [vmem:[%s14672_s0 + $0x2] sm:$0x3] }
  0x1f   :  { %v134_v4 = vunpack.c.0.s8 %v133_v3  ;;  %10774 = vmatpush3.msk.msra.mxu0 %vm264_vm1, %v94_v6  ;;  %v64_v13 = vld [vmem:[%s14672_s0 + $0x4] sm:$0x3]  ;;  %v65_v14 = vld [vmem:[%s14672_s0 + $0x6] sm:$0x3]  ;;  %v130_v15 = vcombine.low %v62_v9, %v63_v12  ;;  %v66_v17 = vld [vmem:[%s14672_s0 + $0x8] sm:$0x3] }
  0x20   :  { %10775 = vmatprep.subr.mxu0 %v12305_v1  ;;  %v131_v16 = vcombine.low %v64_v13, %v65_v14  ;;  %v67_v18 = vld [vmem:[%s14672_s0 + $0xa] sm:$0x3]  ;;  %v68_v19 = vld [vmem:[%s14672_s0 + $0xc] sm:$0x3]  ;;  %v69_v20 = vld [vmem:[%s14672_s0 + $0xe] sm:$0x3] }
  0x21   :  { %v12387_v10 = vsub.s32 %v134_v4, %v12372_v5  ;;  %10776 = vmatpush3.msra.mxu0 %v93_v7  ;;  %v147_v21 = vcombine.low %v66_v17, %v67_v18  ;;  %v70_v22 = vld [vmem:[%s14672_s0 + $0x10] sm:$0x3]  ;;  %v71_v23 = vld [vmem:[%s14672_s0 + $0x12] sm:$0x3]  ;;  %v148_v26 = vcombine.low %v68_v19, %v69_v20  ;;  %v72_v27 = vld [vmem:[%s14672_s0 + $0x14] sm:$0x3] }
  0x22   :  { %10777 = vmatprep.subr.mxu0 %v12305_v1  ;;  %v73_v28 = vld [vmem:[%s14672_s0 + $0x16] sm:$0x3]  ;;  %v164_v29 = vcombine.low %v70_v22, %v71_v23  ;;  %v90_v30 = vld [vmem:[%s14673_s1] sm:$0xff]  ;;  %v74_v33 = vld [vmem:[%s14672_s0 + $0x18] sm:$0x3]  ;;  %vm375_vm3 = vcmask 254976  }
  0x23   :  { %10778 = vmatpush3.msra.mxu0 %v92_v8  ;;  %v138_v24 = vrot.slane %v130_v15, %v12387_v10  ;;  %v145_v25 = vrot.slane %v131_v16, %v12387_v10  ;;  %v155_v31 = vrot.slane %v147_v21, %v12387_v10  ;;  %v165_v32 = vcombine.low %v72_v27, %v73_v28  ;;  %v75_v36 = vld [vmem:[%s14672_s0 + $0x1a] sm:$0x3]  ;;  %v76_v37 = vld [vmem:[%s14672_s0 + $0x1c] sm:$0x3]  ;;  %v77_v38 = vld [vmem:[%s14672_s0 + $0x1e] sm:$0x3] }
  0x24   :  { %10779 = vmatprep.subr.mxu0 %v12305_v1  ;;  %v162_v35 = vrot.slane %v148_v26, %v12387_v10  ;;  %v172_v39 = vrot.slane %v164_v29, %v12387_v10  ;;  %v181_v42 = vcombine.low %v74_v33, %v75_v36  ;;  %v182_v43 = vcombine.low %v76_v37, %v77_v38  ;;  %v78_v44 = vld [vmem:[%s14672_s0 + $0x20] sm:$0x3]  ;;  %v79_v45 = vld [vmem:[%s14672_s0 + $0x22] sm:$0x3]  ;;  %v80_v46 = vld [vmem:[%s14672_s0 + $0x24] sm:$0x3] }
  0x25   :  { %10780 = vmatpush3.msra.mxu0 %v91_v11  ;;  %v146_v34 = vcombine.low %v138_v24, %v145_v25  ;;  %v179_v41 = vrot.slane %v165_v32, %v12387_v10  ;;  %v81_v47 = vld [vmem:[%s14672_s0 + $0x26] sm:$0x3]  ;;  %v82_v48 = vld [vmem:[%s14672_s0 + $0x28] sm:$0x3]  ;;  %v83_v49 = vld [vmem:[%s14672_s0 + $0x2a] sm:$0x3]  ;;  %v198_v50 = vcombine.low %v78_v44, %v79_v45 }
  0x26   :  { %10781 = vmatprep.subr.mxu0 %v12305_v1  ;;  %v163_v40 = vcombine.low %v155_v31, %v162_v35  ;;  %v84_v51 = vld [vmem:[%s14672_s0 + $0x2c] sm:$0x3]  ;;  %v85_v52 = vld [vmem:[%s14672_s0 + $0x2e] sm:$0x3]  ;;  %v189_v54 = vrot.slane %v181_v42, %v12387_v10  ;;  %v196_v55 = vrot.slane %v182_v43, %v12387_v10  ;;  %v199_v56 = vcombine.low %v80_v46, %v81_v47  ;;  %v86_v58 = vld [vmem:[%s14672_s0 + $0x30] sm:$0x3] }
  0x27   :  { %10782 = vmatpush3.msra.mxu0 %v90_v30  ;;  %v180_v53 = vcombine.low %v172_v39, %v179_v41  ;;  %v215_v57 = vcombine.low %v82_v48, %v83_v49  ;;  %v87_v59 = vld [vmem:[%s14672_s0 + $0x32] sm:$0x3]  ;;  %v88_v60 = vld [vmem:[%s14672_s0 + $0x34] sm:$0x3]  ;;  %v89_v61 = vld [vmem:[%s14672_s0 + $0x36] sm:$0x3]  ;;  %v206_v63 = vrot.slane %v198_v50, %v12387_v10  ;;  %v216_v2 = vcombine.low %v84_v51, %v85_v52 }
  0x28   :  { %10784 = vmatmul.mubr.msk.f32.vlgmr.msra.gmra.mxu0 %vm249_vm2, %v146_v34  ;;  %10804 = vmatprep.subr.mxu0 %v12305_v1  ;;  %v197_v62 = vcombine.low %v189_v54, %v196_v55  ;;  %v213_v0 = vrot.slane %v199_v56, %v12387_v10  ;;  %v232_v7 = vcombine.low %v86_v58, %v87_v59  ;;  %v653_v14 = vld [vmem:[#allocation4 + $0x38] sm:$0xff]  ;;  %v652_v18 = vld [vmem:[#allocation4 + $0x30] sm:$0xff]  ;;  %v651_v22 = vld [vmem:[#allocation4 + $0x28] sm:$0xff]  ;;  %vm801_vm4 = vcmask 261120   ;;  %s12309_s3 = smov [#allocation9]  }
  0x29   :  { %10786 = vmatprep.mubr.msk.f32.mxu0 %vm12306_vm0, %v12305_v1  ;;  %v223_v3 = vrot.slane %v215_v57, %v12387_v10  ;;  %v230_v6 = vrot.slane %v216_v2, %v12387_v10  ;;  %v233_v8 = vcombine.low %v88_v60, %v89_v61  ;;  %376 = vst.msk [vmem:[#allocation2] sm:$0x3] %vm375_vm3, %v12305_v1  ;;  %377 = vst.msk [vmem:[#allocation2 + $0x2] sm:$0x3] %vm375_vm3, %v12305_v1  ;;  %v650_v25 = vld [vmem:[#allocation4 + $0x20] sm:$0xff]  ;;  %v1210_v27 = vld [vmem:[#allocation4 + $0x58] sm:$0xff] }
  0x2a   :  { %v214_v4 = vcombine.low %v206_v63, %v213_v0  ;;  %v240_v11 = vrot.slane %v232_v7, %v12387_v10  ;;  %378 = vst.msk [vmem:[#allocation2 + $0x4] sm:$0x3] %vm375_vm3, %v12305_v1  ;;  %379 = vst.msk [vmem:[#allocation2 + $0x6] sm:$0x3] %vm375_vm3, %v12305_v1  ;;  %10805 = vmatpush3.msra.mxu0 %v653_v14  ;;  %11962 = vmatpush3.msra.mxu1 %v653_v14  ;;  %v1209_v28 = vld [vmem:[#allocation4 + $0x50] sm:$0xff]  ;;  %v1208_v29 = vld [vmem:[#allocation4 + $0x48] sm:$0xff] }
  0x2b   :  { %v231_v9 = vcombine.low %v223_v3, %v230_v6  ;;  %v247_v12 = vrot.slane %v233_v8, %v12387_v10  ;;  %380 = vst.msk [vmem:[#allocation2 + $0x8] sm:$0x3] %vm375_vm3, %v12305_v1  ;;  %381 = vst.msk [vmem:[#allocation2 + $0xa] sm:$0x3] %vm375_vm3, %v12305_v1  ;;  %10806 = vmatprep.subr.mxu0 %v12305_v1  ;;  %11959 = vmatprep.subr.mxu1 %v12305_v1  ;;  %v1207_v30 = vld [vmem:[#allocation4 + $0x40] sm:$0xff]  ;;  %vm3310_vm5 = vcmask 517120  }
  0x2c   :  { %10787 = vmatmul.mubr.msk.f32.gmra.mxu0 %vm249_vm2, %v163_v40  ;;  %382 = vst.msk [vmem:[#allocation2 + $0xc] sm:$0x3] %vm375_vm3, %v12305_v1  ;;  %383 = vst.msk [vmem:[#allocation2 + $0xe] sm:$0x3] %vm375_vm3, %v12305_v1  ;;  %11963 = vmatpush3.msra.mxu1 %v652_v18  ;;  %v12588_v31 = vld [vmem:[%s14674_s2] ss:$0 sm:$0xff] }
  0x2d   :  { %10789 = vmatprep.mubr.msk.f32.mxu0 %vm12306_vm0, %v12305_v1  ;;  %v248_v13 = vcombine.low %v240_v11, %v247_v12  ;;  %384 = vst.msk [vmem:[#allocation2 + $0x10] sm:$0x3] %vm375_vm3, %v12305_v1  ;;  %386 = vst.msk [vmem:[#allocation2 + $0x5a] sm:$0x3] %vm375_vm3, %v12305_v1  ;;  %10807 = vmatpush3.msra.mxu0 %v652_v18  ;;  %vm3744_vm6 = vcmask 523264   ;;  %s9468_s5 = sshll.u32 %s12309_s3, 4  ;;  %s9469_s5 = int_to_ptr.vmem [resolvable:$true] %s9468_s5 }
  0x2e   :  { %387 = vst.msk [vmem:[#allocation2 + $0x5c] sm:$0x3] %vm375_vm3, %v12305_v1  ;;  %388 = vst.msk [vmem:[#allocation2 + $0x5e] sm:$0x3] %vm375_vm3, %v12305_v1  ;;  %10808 = vmatprep.subr.mxu0 %v12305_v1  ;;  %11960 = vmatprep.subr.mxu1 %v12305_v1  ;;  %s12275_s21 = scalar_lea.vmem %s9469_s5, 32  ;;  %p12280_p11 = scmp.lt.s32.totalorder %s9469_s5, %s9469_s5 }
  0x2f   :  { %389 = vst.msk [vmem:[#allocation2 + $0x60] sm:$0x3] %vm375_vm3, %v12305_v1  ;;  %390 = vst.msk [vmem:[#allocation2 + $0x62] sm:$0x3] %vm375_vm3, %v12305_v1  ;;  %10809 = vmatpush3.msra.mxu0 %v651_v22  ;;  %11964 = vmatpush3.msra.mxu1 %v651_v22  ;;  %p12276_p10 = scmp.ne.s32.totalorder %s9469_s5, %s12275_s21  ;;  %p12281_p12 = scmp.lt.s32.totalorder %s12275_s21, %s12275_s21 }
  0x30   :  { %10790 = vmatmul.mubr.msk.f32.gmra.mxu0 %vm249_vm2, %v180_v53  ;;  %391 = vst.msk [vmem:[#allocation2 + $0x64] sm:$0x3] %vm375_vm3, %v12305_v1  ;;  %392 = vst.msk [vmem:[#allocation2 + $0x66] sm:$0x3] %vm375_vm3, %v12305_v1  ;;  %v621_v15 = vld [vmem:[#allocation2 + $0x2] sm:$0x3]  ;;  %10810 = vmatprep.subr.mxu0 %v12305_v1 }
  0x31   :  { %10792 = vmatprep.mubr.msk.f32.mxu0 %vm12306_vm0, %v12305_v1  ;;  %393 = vst.msk [vmem:[#allocation2 + $0x68] sm:$0x3] %vm375_vm3, %v12305_v1  ;;  %394 = vst.msk [vmem:[#allocation2 + $0x6a] sm:$0x3] %vm375_vm3, %v12305_v1  ;;  %v622_v16 = vld [vmem:[#allocation2 + $0x4] sm:$0x3]  ;;  %11961 = vmatprep.subr.mxu1 %v12305_v1  ;;  %p12282_p13 = por %p12281_p12, %p12280_p11 }
  0x32   :  { %396 = vst.msk [vmem:[#allocation2 + $0x12] sm:$0x3] %vm375_vm3, %v12305_v1  ;;  %397 = vst.msk [vmem:[#allocation2 + $0x24] sm:$0x3] %vm375_vm3, %v12305_v1  ;;  %v623_v17 = vld [vmem:[#allocation2 + $0x6] sm:$0x3]  ;;  %v682_v20 = vcombine.low %v621_v15, %v622_v16  ;;  %10811 = vmatpush3.msra.mxu0 %v650_v25  ;;  %11965 = vmatpush3.msra.mxu1 %v650_v25 }
  0x33   :  { %398 = vst.msk [vmem:[#allocation2 + $0x36] sm:$0x3] %vm375_vm3, %v12305_v1  ;;  %399 = vst.msk [vmem:[#allocation2 + $0x48] sm:$0x3] %vm375_vm3, %v12305_v1  ;;  %v624_v19 = vld [vmem:[#allocation2 + $0x8] sm:$0x3]  ;;  %10862 = vmatprep.subr.mxu0 %v12305_v1  ;;  %10833 = vmatprep.subr.mxu1 %v12305_v1  ;;  %p12283_p0 = pnand %p12282_p13, %p12276_p10 }
  0x34   :  { %10793 = vmatmul.mubr.msk.f32.gmra.mxu0 %vm249_vm2, %v197_v62  ;;  %401 = vst.msk [vmem:[#allocation2 + $0x22] sm:$0x3] %vm375_vm3, %v12305_v1  ;;  %402 = vst.msk [vmem:[#allocation2 + $0x34] sm:$0x3] %vm375_vm3, %v12305_v1  ;;  %v683_v21 = vcombine.low %v623_v17, %v624_v19  ;;  %v690_v23 = vrot.slane %v682_v20, %v12387_v10  ;;  %v625_v44 = vld [vmem:[#allocation2 + $0xa] sm:$0x3] }
  0x35   :  { %10795 = vmatprep.mubr.msk.f32.mxu0 %vm12306_vm0, %v12305_v1  ;;  %403 = vst.msk [vmem:[#allocation2 + $0x46] sm:$0x3] %vm375_vm3, %v12305_v1  ;;  %404 = vst.msk [vmem:[#allocation2 + $0x58] sm:$0x3] %vm375_vm3, %v12305_v1  ;;  %v626_v45 = vld [vmem:[#allocation2 + $0xc] sm:$0x3] }
  0x36   :  { %v697_v24 = vrot.slane %v683_v21, %v12387_v10  ;;  %v699_v52 = vcombine.low %v625_v44, %v626_v45  ;;  %v1178_v57 = vld [vmem:[#allocation2 + $0x4] sm:$0x3]  ;;  %v1179_v62 = vld [vmem:[#allocation2 + $0x6] sm:$0x3]  ;;  %v1180_v63 = vld [vmem:[#allocation2 + $0x8] sm:$0x3] }
  0x37   :  { %v1181_v0 = vld [vmem:[#allocation2 + $0xa] sm:$0x3]  ;;  %v1239_v14 = vcombine.low %v1178_v57, %v1179_v62  ;;  %v1182_v20 = vld [vmem:[#allocation2 + $0xc] sm:$0x3]  ;;  %v1183_v21 = vld [vmem:[#allocation2 + $0xe] sm:$0x3] }
  0x38   :  { %10796 = vmatmul.mubr.msk.f32.gmra.mxu0 %vm249_vm2, %v214_v4  ;;  %v698_v26 = vcombine.low %v690_v23, %v697_v24  ;;  %v707_v4 = vrot.slane %v699_v52, %v12387_v10  ;;  %v1240_v15 = vcombine.low %v1180_v63, %v1181_v0  ;;  %3311 = vst.msk [vmem:[#allocation3] sm:$0x3] %vm3310_vm5, %v12305_v1  ;;  %3312 = vst.msk [vmem:[#allocation3 + $0x2] sm:$0x3] %vm3310_vm5, %v12305_v1 }
  0x39   :  { %10798 = vmatprep.mubr.msk.f32.mxu0 %vm12306_vm0, %v12305_v1  ;;  %3313 = vst.msk [vmem:[#allocation3 + $0x4] sm:$0x3] %vm3310_vm5, %v12305_v1  ;;  %3314 = vst.msk [vmem:[#allocation3 + $0x6] sm:$0x3] %vm3310_vm5, %v12305_v1 }
  0x3a   :  { %3315 = vst.msk [vmem:[#allocation3 + $0x8] sm:$0x3] %vm3310_vm5, %v12305_v1  ;;  %3316 = vst.msk [vmem:[#allocation3 + $0xa] sm:$0x3] %vm3310_vm5, %v12305_v1 }
  0x3b   :  { %3317 = vst.msk [vmem:[#allocation3 + $0xc] sm:$0x3] %vm3310_vm5, %v12305_v1  ;;  %3318 = vst.msk [vmem:[#allocation3 + $0xe] sm:$0x3] %vm3310_vm5, %v12305_v1 }
  0x3c   :  { %10799 = vmatmul.mubr.msk.f32.gmra.mxu0 %vm249_vm2, %v231_v9  ;;  %3319 = vst.msk [vmem:[#allocation3 + $0x10] sm:$0x3] %vm3310_vm5, %v12305_v1  ;;  %3321 = vst.msk [vmem:[#allocation3 + $0x5a] sm:$0x3] %vm3310_vm5, %v12305_v1 }
  0x3d   :  { %10801 = vmatprep.mubr.msk.f32.mxu0 %vm12306_vm0, %v12305_v1  ;;  %3322 = vst.msk [vmem:[#allocation3 + $0x5c] sm:$0x3] %vm3310_vm5, %v12305_v1  ;;  %3323 = vst.msk [vmem:[#allocation3 + $0x5e] sm:$0x3] %vm3310_vm5, %v12305_v1 }
  0x3e   :  { %3324 = vst.msk [vmem:[#allocation3 + $0x60] sm:$0x3] %vm3310_vm5, %v12305_v1  ;;  %3325 = vst.msk [vmem:[#allocation3 + $0x62] sm:$0x3] %vm3310_vm5, %v12305_v1 }
  0x3f   :  { %3326 = vst.msk [vmem:[#allocation3 + $0x64] sm:$0x3] %vm3310_vm5, %v12305_v1  ;;  %3327 = vst.msk [vmem:[#allocation3 + $0x66] sm:$0x3] %vm3310_vm5, %v12305_v1 }
  0x40   :  { %10802 = vmatmul.mubr.msk.f32.gmra.mxu0 %vm249_vm2, %v248_v13  ;;  %3328 = vst.msk [vmem:[#allocation3 + $0x68] sm:$0x3] %vm3310_vm5, %v12305_v1  ;;  %3329 = vst.msk [vmem:[#allocation3 + $0x6a] sm:$0x3] %vm3310_vm5, %v12305_v1 }
  0x41   :  { %10812 = vmatprep.mubr.msk.f32.mxu0 %vm12306_vm0, %v12305_v1  ;;  %3331 = vst.msk [vmem:[#allocation3 + $0x12] sm:$0x3] %vm3310_vm5, %v12305_v1  ;;  %3332 = vst.msk [vmem:[#allocation3 + $0x24] sm:$0x3] %vm3310_vm5, %v12305_v1 }
  0x42   :  { %3333 = vst.msk [vmem:[#allocation3 + $0x36] sm:$0x3] %vm3310_vm5, %v12305_v1  ;;  %3334 = vst.msk [vmem:[#allocation3 + $0x48] sm:$0x3] %vm3310_vm5, %v12305_v1 }
  0x43   :  { %3336 = vst.msk [vmem:[#allocation3 + $0x22] sm:$0x3] %vm3310_vm5, %v12305_v1  ;;  %3337 = vst.msk [vmem:[#allocation3 + $0x34] sm:$0x3] %vm3310_vm5, %v12305_v1 }
  0x44   :  { %10813 = vmatmul.mubr.msk.f32.vlgmr.msra.gmra.mxu0 %vm801_vm4, %v698_v26  ;;  %3338 = vst.msk [vmem:[#allocation3 + $0x46] sm:$0x3] %vm3310_vm5, %v12305_v1  ;;  %3339 = vst.msk [vmem:[#allocation3 + $0x58] sm:$0x3] %vm3310_vm5, %v12305_v1 }
  0x45   :  { %10815 = vmatprep.mubr.msk.f32.mxu0 %vm12306_vm0, %v12305_v1  ;;  %10863 = vmatpush3.msra.mxu0 %v1210_v27 }
  0x46   :  { %10864 = vmatprep.subr.mxu0 %v12305_v1 }
  0x47   :  { %10865 = vmatpush3.msra.mxu0 %v1209_v28 }
  0x48   :  { %10866 = vmatprep.subr.mxu0 %v12305_v1 }
  0x49   :  { %10867 = vmatpush3.msra.mxu0 %v1208_v29 }
  0x4a   :  { %10868 = vmatprep.subr.mxu0 %v12305_v1 }
  0x4b   :  { %10869 = vmatpush3.msra.mxu0 %v1207_v30 }
  0x4c   :  { %10920 = vmatprep.subr.mxu0 %v12305_v1 }
  0xe8   :  { %v334_v32 = vpop.f32.mrf.mxu0 }
  0xe9   :  { %v335_v33 = vadd.f32 %v12588_v31, %v334_v32 }
  0xea   :  { %v10785_v34 = vpop.f32.mrf.mxu0 }
  0xeb   :  { %v368_v35 = vmax.f32 %v335_v33, 0.0 }
  0xec   :  { %v339_v36 = vpop.f32.mrf.mxu0 }
  0xed   :  { %v412_v37 = vcombine.high %v368_v35, %v368_v35  ;;  %v419_v38 = vrot.slane %v368_v35, %v12387_v10  ;;  %v340_v39 = vadd.f32 %v12588_v31, %v339_v36  ;;  %v12620_v35 = vrot.slane %v1239_v14, %v12387_v10 }
  0xee   :  { %v10788_v40 = vpop.f32.mrf.mxu0  ;;  %v12623_v36 = vrot.slane %v1240_v15, %v12387_v10  ;;  %v619_v15 = vld [vmem:[#allocation4 + $0x18] sm:$0xff] }
  0xef   :  { %v426_v41 = vrot.slane %v412_v37, %v12387_v10  ;;  %v427_v42 = vcombine.high %v419_v38, %v419_v38  ;;  %560 = vst.msk [vmem:[#allocation2 + $0x14] sm:$0x3] %vm375_vm3, %v419_v38  ;;  %v369_v43 = vmax.f32 %v340_v39, 0.0  ;;  %v1256_v37 = vcombine.low %v1182_v20, %v1183_v21 }
  0xf0   :  { %v344_v46 = vpop.f32.mrf.mxu0 }
  0xf1   :  { %v428_v47 = vcombine.high %v426_v41, %v426_v41  ;;  %561 = vst.msk [vmem:[#allocation2 + $0x16] sm:$0x3] %vm375_vm3, %v427_v42  ;;  %562 = vst.msk [vmem:[#allocation2 + $0x18] sm:$0x3] %vm375_vm3, %v426_v41  ;;  %v429_v48 = vcombine.high %v369_v43, %v369_v43  ;;  %v436_v49 = vrot.slane %v369_v43, %v12387_v10 }
  0xf2   :  { %v345_v50 = vadd.f32 %v12588_v31, %v344_v46  ;;  %v10791_v51 = vpop.f32.mrf.mxu0 }
  0xf3   :  { %563 = vst.msk [vmem:[#allocation2 + $0x1a] sm:$0x3] %vm375_vm3, %v428_v47  ;;  %v443_v53 = vrot.slane %v429_v48, %v12387_v10  ;;  %v444_v54 = vcombine.high %v436_v49, %v436_v49  ;;  %564 = vst.msk [vmem:[#allocation2 + $0x1c] sm:$0x3] %vm375_vm3, %v436_v49 }
  0xf4   :  { %v370_v55 = vmax.f32 %v345_v50, 0.0  ;;  %v349_v56 = vpop.f32.mrf.mxu0 }
  0xf5   :  { %v445_v58 = vcombine.high %v443_v53, %v443_v53  ;;  %565 = vst.msk [vmem:[#allocation2 + $0x1e] sm:$0x3] %vm375_vm3, %v444_v54  ;;  %566 = vst.msk [vmem:[#allocation2 + $0x20] sm:$0x3] %vm375_vm3, %v443_v53  ;;  %v350_v61 = vadd.f32 %v12588_v31, %v349_v56  ;;  %v1255_v56 = vcombine.low %v12620_v35, %v12623_v36 }
  0xf6   :  { %v446_v59 = vcombine.high %v370_v55, %v370_v55  ;;  %v453_v60 = vrot.slane %v370_v55, %v12387_v10  ;;  %v10794_v2 = vpop.f32.mrf.mxu0  ;;  %v11975_v3 = vld [vmem:[#allocation2 + $0xe] ss:$6 sps:$4 sm:$0x33]  }
  0xf7   :  { %567 = vst.msk [vmem:[#allocation2 + $0x26] sm:$0x3] %vm375_vm3, %v445_v58  ;;  %v371_v8 = vmax.f32 %v350_v61, 0.0  ;;  %v714_v11 = vrot.slane %v11975_v3, %v12387_v10 }
  0xf8   :  { %v460_v6 = vrot.slane %v446_v59, %v12387_v10  ;;  %v461_v7 = vcombine.high %v453_v60, %v453_v60  ;;  %568 = vst.msk [vmem:[#allocation2 + $0x28] sm:$0x3] %vm375_vm3, %v453_v60  ;;  %v354_v9 = vpop.f32.mrf.mxu0  ;;  %v629_v12 = vld [vmem:[#allocation2 + $0x16] sm:$0x3]  ;;  %v630_v13 = vld [vmem:[#allocation2 + $0x18] sm:$0x3]  ;;  %v1264_v59 = vrot.slane %v1256_v37, %v12387_v10 }
  0xf9   :  { %v463_v17 = vcombine.high %v371_v8, %v371_v8  ;;  %v470_v18 = vrot.slane %v371_v8, %v12387_v10  ;;  %v355_v19 = vadd.f32 %v12588_v31, %v354_v9  ;;  %v715_v23 = vcombine.low %v707_v4, %v714_v11  ;;  %v12636_v52 = vld [vmem:[#allocation2 + $0x10] ss:$6 sps:$4 sm:$0x33]   ;;  %v12650_v11 = vld [vmem:[#allocation2] sm:$0x3] }
  0xfa   :  { %v462_v16 = vcombine.high %v460_v6, %v460_v6  ;;  %569 = vst.msk [vmem:[#allocation2 + $0x2a] sm:$0x3] %vm375_vm3, %v461_v7  ;;  %570 = vst.msk [vmem:[#allocation2 + $0x2c] sm:$0x3] %vm375_vm3, %v460_v6  ;;  %v10797_v22 = vpop.f32.mrf.mxu0  ;;  %v631_v24 = vld [vmem:[#allocation2 + $0x1a] sm:$0x3]  ;;  %v716_v26 = vcombine.low %v629_v12, %v630_v13  ;;  %v1271_v21 = vrot.slane %v12636_v52, %v12387_v10 }
  0xfb   :  { %v632_v25 = vld [vmem:[#allocation2 + $0x1c] sm:$0x3]  ;;  %v477_v27 = vrot.slane %v463_v17, %v12387_v10  ;;  %v478_v28 = vcombine.high %v470_v18, %v470_v18  ;;  %572 = vst.msk [vmem:[#allocation2 + $0x30] sm:$0x3] %vm375_vm3, %v470_v18  ;;  %v372_v29 = vmax.f32 %v355_v19, 0.0  ;;  %10816 = vmatmul.mubr.msk.f32.gmra.mxu0 %vm801_vm4, %v715_v23 }
  0xfc   :  { %571 = vst.msk [vmem:[#allocation2 + $0x2e] sm:$0x3] %vm375_vm3, %v462_v16  ;;  %v717_v30 = vcombine.low %v631_v24, %v632_v25  ;;  %v359_v32 = vpop.f32.mrf.mxu0  ;;  %v633_v33 = vld [vmem:[#allocation2 + $0x1e] sm:$0x3]  ;;  %v634_v34 = vld [vmem:[#allocation2 + $0x20] sm:$0x3]  ;;  %10818 = vmatprep.mubr.msk.f32.mxu0 %vm12306_vm0, %v12305_v1  ;;  %v724_v43 = vrot.slane %v716_v26, %v12387_v10 }
  0xfd   :  { %v479_v38 = vcombine.high %v477_v27, %v477_v27  ;;  %573 = vst.msk [vmem:[#allocation2 + $0x32] sm:$0x3] %vm375_vm3, %v478_v28  ;;  %574 = vst.msk [vmem:[#allocation2 + $0x38] sm:$0x3] %vm375_vm3, %v477_v27  ;;  %v480_v39 = vcombine.high %v372_v29, %v372_v29  ;;  %v487_v40 = vrot.slane %v372_v29, %v12387_v10  ;;  %v1189_v53 = vld [vmem:[#allocation2 + $0x1e] sm:$0x3] }
  0xfe   :  { %v360_v41 = vadd.f32 %v12588_v31, %v359_v32  ;;  %v10800_v42 = vpop.f32.mrf.mxu0  ;;  %v731_v44 = vrot.slane %v717_v30, %v12387_v10  ;;  %v635_v45 = vld [vmem:[#allocation2 + $0x26] sm:$0x3]  ;;  %v733_v47 = vcombine.low %v633_v33, %v634_v34  ;;  %v12645_v0 = vld [vmem:[#allocation2 + $0x1a] sm:$0x3]  ;;  %v1188_v2 = vld [vmem:[#allocation2 + $0x1c] sm:$0x3] }
  0xff   :  { %v636_v46 = vld [vmem:[#allocation2 + $0x28] sm:$0x3]  ;;  %575 = vst.msk [vmem:[#allocation2 + $0x3a] sm:$0x3] %vm375_vm3, %v479_v38  ;;  %v494_v48 = vrot.slane %v480_v39, %v12387_v10  ;;  %v495_v49 = vcombine.high %v487_v40, %v487_v40  ;;  %576 = vst.msk [vmem:[#allocation2 + $0x3c] sm:$0x3] %vm375_vm3, %v487_v40  ;;  %v1274_v9 = vcombine.low %v1188_v2, %v1189_v53 }
 0x100   :  { %v373_v50 = vmax.f32 %v360_v41, 0.0  ;;  %v734_v51 = vcombine.low %v635_v45, %v636_v46  ;;  %v364_v54 = vpop.f32.mrf.mxu0  ;;  %v732_v55 = vcombine.low %v724_v43, %v731_v44  ;;  %v741_v3 = vrot.slane %v733_v47, %v12387_v10  ;;  %v1186_v17 = vld [vmem:[#allocation2 + $0x18] sm:$0x3]  ;;  %v12657_v18 = vld [vmem:[#allocation2 + $0x2] sm:$0x3]  ;;  %v618_v29 = vld [vmem:[#allocation4 + $0x10] sm:$0xff] }
 0x101   :  { %v637_v57 = vld [vmem:[#allocation2 + $0x2a] sm:$0x3]  ;;  %v638_v58 = vld [vmem:[#allocation2 + $0x2c] sm:$0x3]  ;;  %v496_v60 = vcombine.high %v494_v48, %v494_v48  ;;  %577 = vst.msk [vmem:[#allocation2 + $0x3e] sm:$0x3] %vm375_vm3, %v495_v49  ;;  %v365_v63 = vadd.f32 %v12588_v31, %v364_v54  ;;  %v1273_v22 = vcombine.low %v1186_v17, %v12645_v0  ;;  %v1288_v35 = vrot.slane %v1274_v9, %v12387_v10 }
 0x102   :  { %578 = vst.msk [vmem:[#allocation2 + $0x40] sm:$0x3] %vm375_vm3, %v494_v48  ;;  %v497_v61 = vcombine.high %v373_v50, %v373_v50  ;;  %v504_v62 = vrot.slane %v373_v50, %v12387_v10  ;;  %10819 = vmatmul.mubr.msk.f32.gmra.mxu0 %vm801_vm4, %v732_v55  ;;  %v748_v4 = vrot.slane %v734_v51, %v12387_v10  ;;  %v640_v7 = vld [vmem:[#allocation2 + $0x30] sm:$0x3]  ;;  %v10803_v12 = vpop.f32.mrf.mxu0  ;;  %v12663_v23 = vld [vmem:[#allocation2 + $0x4] sm:$0x3] }
 0x103   :  { %v639_v6 = vld [vmem:[#allocation2 + $0x2e] sm:$0x3]  ;;  %v750_v8 = vcombine.low %v637_v57, %v638_v58  ;;  %579 = vst.msk [vmem:[#allocation2 + $0x42] sm:$0x3] %vm375_vm3, %v496_v60  ;;  %v374_v14 = vmax.f32 %v365_v63, 0.0  ;;  %10870 = vmatprep.mubr.msk.f32.mxu0 %vm12306_vm0, %v12305_v1  ;;  %v944_v36 = vcombine.low %v12650_v11, %v12657_v18  ;;  %v1272_v43 = vcombine.low %v1264_v59, %v1271_v21  ;;  %v617_v49 = vld [vmem:[#allocation4 + $0x8] sm:$0xff] }
 0x104   :  { %v511_v31 = vrot.slane %v497_v61, %v12387_v10  ;;  %v512_v13 = vcombine.high %v504_v62, %v504_v62  ;;  %580 = vst.msk [vmem:[#allocation2 + $0x44] sm:$0x3] %vm375_vm3, %v504_v62  ;;  %v751_v16 = vcombine.low %v639_v6, %v640_v7  ;;  %v749_v19 = vcombine.low %v741_v3, %v748_v4  ;;  %v12665_v24 = vld [vmem:[#allocation2 + $0x6] sm:$0x3]  ;;  %v1193_v32 = vld [vmem:[#allocation2 + $0x2a] sm:$0x3] }
 0x105   :  { %v758_v20 = vrot.slane %v750_v8, %v12387_v10  ;;  %v514_v26 = vcombine.high %v374_v14, %v374_v14  ;;  %v521_v27 = vrot.slane %v374_v14, %v12387_v10  ;;  %v11977_v30 = vld [vmem:[#allocation2 + $0x32] ss:$6 sps:$4 sm:$0x33]   ;;  %v1190_v40 = vld [vmem:[#allocation2 + $0x20] sm:$0x3]  ;;  %v1281_v50 = vrot.slane %v1273_v22, %v12387_v10 }
 0x106   :  { %v513_v25 = vcombine.high %v511_v31, %v511_v31  ;;  %581 = vst.msk [vmem:[#allocation2 + $0x4a] sm:$0x3] %vm375_vm3, %v512_v13  ;;  %582 = vst.msk [vmem:[#allocation2 + $0x4c] sm:$0x3] %vm375_vm3, %v511_v31  ;;  %v765_v28 = vrot.slane %v751_v16, %v12387_v10  ;;  %10822 = vmatmul.mubr.msk.f32.vlgmr.msra.gmra.mxu1 %vm801_vm4, %v749_v19  ;;  %10871 = vmatmul.mubr.msk.f32.vlgmr.msra.gmra.mxu0 %vm801_vm4, %v1255_v56  ;;  %v643_v33 = vld [vmem:[#allocation2 + $0x3a] sm:$0x3] }
 0x107   :  { %v644_v34 = vld [vmem:[#allocation2 + $0x3c] sm:$0x3]  ;;  %v528_v37 = vrot.slane %v514_v26, %v12387_v10  ;;  %v529_v38 = vcombine.high %v521_v27, %v521_v27  ;;  %584 = vst.msk [vmem:[#allocation2 + $0x50] sm:$0x3] %vm375_vm3, %v521_v27  ;;  %10834 = vmatpush3.msra.mxu1 %v619_v15  ;;  %10824 = vmatprep.mubr.msk.f32.mxu1 %vm12306_vm0, %v12305_v1  ;;  %v1191_v41 = vld [vmem:[#allocation2 + $0x22] sm:$0x3] }
 0x108   :  { %583 = vst.msk [vmem:[#allocation2 + $0x4e] sm:$0x3] %vm375_vm3, %v513_v25  ;;  %v766_v39 = vcombine.low %v758_v20, %v765_v28  ;;  %v1192_v42 = vld [vmem:[#allocation2 + $0x28] sm:$0x3]  ;;  %10835 = vmatprep.subr.mxu1 %v12305_v1  ;;  %10873 = vmatprep.mubr.msk.f32.mxu0 %vm12306_vm0, %v12305_v1  ;;  %v768_v44 = vcombine.low %v643_v33, %v644_v34  ;;  %v645_v45 = vld [vmem:[#allocation2 + $0x3e] sm:$0x3] }
 0x109   :  { %v646_v46 = vld [vmem:[#allocation2 + $0x40] sm:$0x3]  ;;  %v1291_v47 = vcombine.low %v1192_v42, %v1193_v32  ;;  %v530_v48 = vcombine.high %v528_v37, %v528_v37  ;;  %585 = vst.msk [vmem:[#allocation2 + $0x52] sm:$0x3] %vm375_vm3, %v529_v38  ;;  %586 = vst.msk [vmem:[#allocation2 + $0x54] sm:$0x3] %vm375_vm3, %v528_v37  ;;  %10836 = vmatpush3.msra.mxu1 %v618_v29  ;;  %v945_v52 = vcombine.low %v12663_v23, %v12665_v24 }
 0x10a   :  { %v784_v51 = vcombine.low %v645_v45, %v646_v46  ;;  %v1197_v53 = vld [vmem:[#allocation2 + $0x32] sm:$0x3]  ;;  %10825 = vmatmul.mubr.msk.f32.gmra.mxu1 %vm801_vm4, %v766_v39  ;;  %10874 = vmatmul.mubr.msk.f32.gmra.mxu0 %vm801_vm4, %v1272_v43  ;;  %v775_v55 = vrot.slane %v11977_v30, %v12387_v10  ;;  %v782_v56 = vrot.slane %v768_v44, %v12387_v10  ;;  %v647_v57 = vld [vmem:[#allocation2 + $0x42] sm:$0x3]  ;;  %v592_v60 = vld [vmem:[#allocation2 + $0x8] sm:$0x3] }
 0x10b   :  { %v1812_v54 = vld [vmem:[#allocation4 + $0x98] sm:$0xff]  ;;  %v648_v58 = vld [vmem:[#allocation2 + $0x44] sm:$0x3]  ;;  %v1290_v59 = vcombine.low %v1190_v40, %v1191_v41  ;;  %587 = vst.msk [vmem:[#allocation2 + $0x56] sm:$0x3] %vm375_vm3, %v530_v48  ;;  %10827 = vmatprep.mubr.msk.f32.mxu1 %vm12306_vm0, %v12305_v1  ;;  %10837 = vmatprep.subr.mxu1 %v12305_v1  ;;  %v1289_v61 = vcombine.low %v1281_v50, %v1288_v35  ;;  %v616_v31 = vld [vmem:[#allocation4] sm:$0xff] }
 0x10c   :  { %v785_v62 = vcombine.low %v647_v57, %v648_v58  ;;  %v12698_v63 = vrot.slane %v944_v36, %v12387_v10  ;;  %v1195_v0 = vld [vmem:[#allocation2 + $0x2e] sm:$0x3]  ;;  %v1196_v2 = vld [vmem:[#allocation2 + $0x30] sm:$0x3]  ;;  %v593_v3 = vld [vmem:[#allocation2 + $0xa] sm:$0x3]  ;;  %10876 = vmatprep.mubr.msk.f32.mxu0 %vm12306_vm0, %v12305_v1  ;;  %v783_v4 = vcombine.low %v775_v55, %v782_v56  ;;  %10838 = vmatpush3.msra.mxu1 %v617_v49 }
 0x10d   :  { %v1305_v6 = vrot.slane %v1291_v47, %v12387_v10  ;;  %v1308_v7 = vcombine.low %v1196_v2, %v1197_v53  ;;  %v11978_v8 = vld [vmem:[#allocation2 + $0xc] ss:$6 sps:$4 sm:$0x33]   ;;  %v1201_v9 = vld [vmem:[#allocation2 + $0x3e] sm:$0x3]  ;;  %10839 = vmatprep.subr.mxu1 %v12305_v1  ;;  %v792_v11 = vrot.slane %v784_v51, %v12387_v10  ;;  %v959_v13 = vrot.slane %v945_v52, %v12387_v10  ;;  %v1810_v36 = vld [vmem:[#allocation4 + $0x88] sm:$0xff] }
 0x10e   :  { %v799_v12 = vrot.slane %v785_v62, %v12387_v10  ;;  %v1194_v14 = vld [vmem:[#allocation2 + $0x2c] sm:$0x3]  ;;  %10921 = vmatpush3.msra.mxu0 %v1812_v54  ;;  %10828 = vmatmul.mubr.msk.f32.gmra.mxu1 %vm801_vm4, %v783_v4  ;;  %v1298_v15 = vrot.slane %v1290_v59, %v12387_v10  ;;  %v961_v17 = vcombine.low %v592_v60, %v593_v3  ;;  %v1200_v18 = vld [vmem:[#allocation2 + $0x3c] sm:$0x3]  ;;  %v599_v25 = vld [vmem:[#allocation2 + $0x1a] sm:$0x3] }
 0x10f   :  { %10877 = vmatmul.mubr.msk.f32.gmra.mxu0 %vm801_vm4, %v1289_v61  ;;  %v1307_v16 = vcombine.low %v1194_v14, %v1195_v0  ;;  %v1811_v19 = vld [vmem:[#allocation4 + $0x90] sm:$0xff]  ;;  %10830 = vmatprep.mubr.msk.f32.mxu1 %vm12306_vm0, %v12305_v1  ;;  %v1325_v21 = vcombine.low %v1200_v18, %v1201_v9  ;;  %v1322_v23 = vrot.slane %v1308_v7, %v12387_v10  ;;  %v11979_v24 = vld [vmem:[#allocation2 + $0x34] ss:$6 sps:$4 sm:$0x33]   ;;  %v1203_v27 = vld [vmem:[#allocation2 + $0x42] sm:$0x3] }
 0x110   :  { %10879 = vmatprep.mubr.msk.f32.mxu0 %vm12306_vm0, %v12305_v1  ;;  %v800_v20 = vcombine.low %v792_v11, %v799_v12  ;;  %10840 = vmatpush3.msra.mxu1 %v616_v31  ;;  %v1306_v22 = vcombine.low %v1298_v15, %v1305_v6  ;;  %v960_v26 = vcombine.low %v12698_v63, %v959_v13  ;;  %v1204_v28 = vld [vmem:[#allocation2 + $0x44] sm:$0x3]  ;;  %v1205_v29 = vld [vmem:[#allocation2 + $0x46] sm:$0x3]  ;;  %v597_v34 = vld [vmem:[#allocation2 + $0x16] sm:$0x3] }
 0x111   :  { %10922 = vmatprep.subr.mxu0 %v12305_v1  ;;  %10891 = vmatprep.subr.mxu1 %v12305_v1  ;;  %v1315_v30 = vrot.slane %v1307_v16, %v12387_v10  ;;  %v969_v32 = vrot.slane %v961_v17, %v12387_v10  ;;  %v976_v33 = vrot.slane %v11978_v8, %v12387_v10  ;;  %v598_v35 = vld [vmem:[#allocation2 + $0x18] sm:$0x3]  ;;  %v1202_v39 = vld [vmem:[#allocation2 + $0x40] sm:$0x3]  ;;  %v602_v40 = vld [vmem:[#allocation2 + $0x24] sm:$0x3] }
 0x112   :  { %10923 = vmatpush3.msra.mxu0 %v1811_v19  ;;  %10831 = vmatmul.mubr.msk.f32.gmra.mxu1 %vm801_vm4, %v800_v20  ;;  %v1339_v37 = vrot.slane %v1325_v21, %v12387_v10  ;;  %v979_v38 = vcombine.low %v598_v35, %v599_v25  ;;  %v603_v41 = vld [vmem:[#allocation2 + $0x26] sm:$0x3]  ;;  %v1511_v43 = vld [vmem:[#allocation4 + $0x78] sm:$0xff]  ;;  %v1341_v45 = vcombine.low %v1202_v39, %v1203_v27  ;;  %v601_v47 = vld [vmem:[#allocation2 + $0x1e] sm:$0x3] }
 0x113   :  { %10880 = vmatmul.mubr.msk.f32.gmra.mxu0 %vm801_vm4, %v1306_v22  ;;  %10841 = vmatprep.mubr.msk.f32.mxu1 %vm12306_vm0, %v12305_v1  ;;  %v1323_v42 = vcombine.low %v1315_v30, %v1322_v23  ;;  %v596_v44 = vld [vmem:[#allocation2 + $0x14] sm:$0x3]  ;;  %v1342_v46 = vcombine.low %v1204_v28, %v1205_v29  ;;  %v1332_v48 = vrot.slane %v11979_v24, %v12387_v10  ;;  %v1783_v50 = vld [vmem:[#allocation2 + $0x1a] sm:$0x3]  ;;  %v1510_v52 = vld [vmem:[#allocation4 + $0x70] sm:$0xff] }
 0x114   :  { %10882 = vmatprep.mubr.msk.f32.mxu0 %vm12306_vm0, %v12305_v1  ;;  %10924 = vmatprep.subr.mxu0 %v12305_v1  ;;  %v978_v49 = vcombine.low %v596_v44, %v597_v34  ;;  %v977_v51 = vcombine.low %v969_v32, %v976_v33  ;;  %v600_v53 = vld [vmem:[#allocation2 + $0x1c] sm:$0x3]  ;;  %v996_v54 = vcombine.low %v602_v40, %v603_v41  ;;  %v1781_v58 = vld [vmem:[#allocation2 + $0x16] sm:$0x3]  ;;  %v1782_v59 = vld [vmem:[#allocation2 + $0x18] sm:$0x3] }
 0x115   :  { %10925 = vmatpush3.msra.mxu0 %v1810_v36  ;;  %v1340_v55 = vcombine.low %v1332_v48, %v1339_v37  ;;  %v993_v56 = vrot.slane %v979_v38, %v12387_v10  ;;  %v995_v57 = vcombine.low %v600_v53, %v601_v47  ;;  %v1349_v60 = vrot.slane %v1341_v45, %v12387_v10  ;;  %v607_v63 = vld [vmem:[#allocation2 + $0x2e] sm:$0x3]  ;;  %v1809_v2 = vld [vmem:[#allocation4 + $0x80] sm:$0xff]  ;;  %v1780_v3 = vld [vmem:[#allocation2 + $0x14] sm:$0x3] }
 0x116   :  { %10842 = vmatmul.mubr.msk.f32.vlgmr.msra.gmra.mxu1 %vm801_vm4, %v960_v26  ;;  %v1356_v61 = vrot.slane %v1342_v46, %v12387_v10  ;;  %v1842_v62 = vcombine.low %v1782_v59, %v1783_v50  ;;  %v986_v0 = vrot.slane %v978_v49, %v12387_v10  ;;  %10926 = vmatprep.subr.mxu0 %v12305_v1  ;;  %v1785_v4 = vld [vmem:[#allocation2 + $0x1e] sm:$0x3]  ;;  %v1509_v8 = vld [vmem:[#allocation4 + $0x68] sm:$0xff]  ;;  %v605_v9 = vld [vmem:[#allocation2 + $0x2a] sm:$0x3] }
 0x117   :  { %10883 = vmatmul.mubr.msk.f32.gmra.mxu0 %vm801_vm4, %v1323_v42  ;;  %10892 = vmatpush3.msra.mxu1 %v1511_v43  ;;  %v1010_v6 = vrot.slane %v996_v54, %v12387_v10  ;;  %v1841_v7 = vcombine.low %v1780_v3, %v1781_v58  ;;  %v606_v11 = vld [vmem:[#allocation2 + $0x2c] sm:$0x3]  ;;  %v1003_v31 = vrot.slane %v995_v57, %v12387_v10  ;;  %v1784_v14 = vld [vmem:[#allocation2 + $0x1c] sm:$0x3]  ;;  %v604_v18 = vld [vmem:[#allocation2 + $0x28] sm:$0x3] }
 0x118   :  { %10844 = vmatprep.mubr.msk.f32.mxu1 %vm12306_vm0, %v12305_v1  ;;  %10885 = vmatprep.mubr.msk.f32.mxu0 %vm12306_vm0, %v12305_v1  ;;  %v994_v12 = vcombine.low %v986_v0, %v993_v56  ;;  %v1013_v13 = vcombine.low %v606_v11, %v607_v63  ;;  %v11980_v15 = vld [vmem:[#allocation2 + $0x20] ss:$6 sps:$4 sm:$0x33]   ;;  %v1357_v16 = vcombine.low %v1349_v60, %v1356_v61  ;;  %v611_v20 = vld [vmem:[#allocation2 + $0x3a] sm:$0x3]  ;;  %v2416_v41 = vld [vmem:[#allocation4 + $0xd8] sm:$0xff] }
 0x119   :  { %10893 = vmatprep.subr.mxu1 %v12305_v1  ;;  %10927 = vmatpush3.msra.mxu0 %v1809_v2  ;;  %v1856_v17 = vrot.slane %v1842_v62, %v12387_v10  ;;  %v1858_v19 = vcombine.low %v1784_v14, %v1785_v4  ;;  %v1012_v21 = vcombine.low %v604_v18, %v605_v9  ;;  %v1791_v22 = vld [vmem:[#allocation2 + $0x2e] sm:$0x3]  ;;  %v610_v25 = vld [vmem:[#allocation2 + $0x38] sm:$0x3]  ;;  %v1789_v32 = vld [vmem:[#allocation2 + $0x2a] sm:$0x3] }
 0x11a   :  { %10894 = vmatpush3.msra.mxu1 %v1510_v52  ;;  %v1011_v23 = vcombine.low %v1003_v31, %v1010_v6  ;;  %v1849_v24 = vrot.slane %v1841_v7, %v12387_v10  ;;  %v1508_v26 = vld [vmem:[#allocation4 + $0x60] sm:$0xff]  ;;  %v1027_v27 = vrot.slane %v1013_v13, %v12387_v10  ;;  %v1873_v28 = vrot.slane %v11980_v15, %v12387_v10  ;;  %v11981_v29 = vld [vmem:[#allocation2 + $0x30] ss:$6 sps:$4 sm:$0x33]   ;;  %v1790_v33 = vld [vmem:[#allocation2 + $0x2c] sm:$0x3] }
 0x11b   :  { %10845 = vmatmul.mubr.msk.f32.gmra.mxu1 %vm801_vm4, %v977_v51  ;;  %10886 = vmatmul.mubr.msk.f32.gmra.mxu0 %vm801_vm4, %v1340_v55  ;;  %v1030_v30 = vcombine.low %v610_v25, %v611_v20  ;;  %v1866_v35 = vrot.slane %v1858_v19, %v12387_v10  ;;  %v1876_v36 = vcombine.low %v1790_v33, %v1791_v22  ;;  %v615_v37 = vld [vmem:[#allocation2 + $0x42] sm:$0x3]  ;;  %v1788_v39 = vld [vmem:[#allocation2 + $0x28] sm:$0x3]  ;;  %v1795_v40 = vld [vmem:[#allocation2 + $0x3a] sm:$0x3] }
 0x11c   :  { %10847 = vmatprep.mubr.msk.f32.mxu1 %vm12306_vm0, %v12305_v1  ;;  %10888 = vmatprep.mubr.msk.f32.mxu0 %vm12306_vm0, %v12305_v1  ;;  %v1857_v34 = vcombine.low %v1849_v24, %v1856_v17  ;;  %v1020_v38 = vrot.slane %v1012_v21, %v12387_v10  ;;  %v1875_v42 = vcombine.low %v1788_v39, %v1789_v32  ;;  %v613_v43 = vld [vmem:[#allocation2 + $0x3e] sm:$0x3]  ;;  %v614_v44 = vld [vmem:[#allocation2 + $0x40] sm:$0x3]  ;;  %v1793_v48 = vld [vmem:[#allocation2 + $0x32] sm:$0x3] }
 0x11d   :  { %10895 = vmatprep.subr.mxu1 %v12305_v1  ;;  %10978 = vmatprep.subr.mxu0 %v12305_v1  ;;  %v1044_v46 = vrot.slane %v1030_v30, %v12387_v10  ;;  %v1047_v47 = vcombine.low %v614_v44, %v615_v37  ;;  %v1794_v49 = vld [vmem:[#allocation2 + $0x38] sm:$0x3]  ;;  %v1874_v50 = vcombine.low %v1866_v35, %v1873_v28  ;;  %v612_v52 = vld [vmem:[#allocation2 + $0x3c] sm:$0x3]  ;;  %v1792_v53 = vld [vmem:[#allocation2 + $0x30] sm:$0x3] }
 0x11e   :  { %10896 = vmatpush3.msra.mxu1 %v1509_v8  ;;  %v1028_v45 = vcombine.low %v1020_v38, %v1027_v27  ;;  %v1890_v51 = vrot.slane %v1876_v36, %v12387_v10  ;;  %v1893_v54 = vcombine.low %v1794_v49, %v1795_v40  ;;  %v2415_v55 = vld [vmem:[#allocation4 + $0xd0] sm:$0xff]  ;;  %v1037_v56 = vrot.slane %v11981_v29, %v12387_v10  ;;  %v1481_v58 = vld [vmem:[#allocation2 + $0x16] sm:$0x3]  ;;  %v1482_v59 = vld [vmem:[#allocation2 + $0x18] sm:$0x3] }
 0x11f   :  { %10848 = vmatmul.mubr.msk.f32.gmra.mxu1 %vm801_vm4, %v994_v12  ;;  %10889 = vmatmul.mubr.msk.f32.gmra.mxu0 %vm801_vm4, %v1357_v16  ;;  %v1046_v57 = vcombine.low %v612_v52, %v613_v43  ;;  %v1799_v60 = vld [vmem:[#allocation2 + $0x42] sm:$0x3]  ;;  %v1883_v61 = vrot.slane %v1875_v42, %v12387_v10  ;;  %v1892_v62 = vcombine.low %v1792_v53, %v1793_v48  ;;  %v1479_v63 = vld [vmem:[#allocation2 + $0x12] sm:$0x3]  ;;  %v1480_v0 = vld [vmem:[#allocation2 + $0x14] sm:$0x3] }
 0x120   :  { %10850 = vmatprep.mubr.msk.f32.mxu1 %vm12306_vm0, %v12305_v1  ;;  %10928 = vmatprep.mubr.msk.f32.mxu0 %vm12306_vm0, %v12305_v1  ;;  %v1045_v2 = vcombine.low %v1037_v56, %v1044_v46  ;;  %v1061_v3 = vrot.slane %v1047_v47, %v12387_v10  ;;  %v1797_v4 = vld [vmem:[#allocation2 + $0x3e] sm:$0x3]  ;;  %v1798_v6 = vld [vmem:[#allocation2 + $0x40] sm:$0x3]  ;;  %v1907_v8 = vrot.slane %v1893_v54, %v12387_v10  ;;  %v1483_v12 = vld [vmem:[#allocation2 + $0x1a] sm:$0x3] }
 0x121   :  { %10897 = vmatprep.subr.mxu1 %v12305_v1  ;;  %v1891_v7 = vcombine.low %v1883_v61, %v1890_v51  ;;  %v1541_v9 = vcombine.low %v1481_v58, %v1482_v59  ;;  %v1910_v11 = vcombine.low %v1798_v6, %v1799_v60  ;;  %v1484_v31 = vld [vmem:[#allocation2 + $0x1c] sm:$0x3]  ;;  %v2414_v13 = vld [vmem:[#allocation4 + $0xc8] sm:$0xff]  ;;  %v1054_v14 = vrot.slane %v1046_v57, %v12387_v10  ;;  %v1802_v18 = vld [vmem:[#allocation2 + $0x4c] sm:$0x3] }
 0x122   :  { %10898 = vmatpush3.msra.mxu1 %v1508_v26  ;;  %v1540_v15 = vcombine.low %v1479_v63, %v1480_v0  ;;  %v1796_v16 = vld [vmem:[#allocation2 + $0x3c] sm:$0x3]  ;;  %v11982_v17 = vld [vmem:[#allocation2 + $0x1e] ss:$6 sps:$4 sm:$0x33]   ;;  %v1900_v20 = vrot.slane %v1892_v62, %v12387_v10  ;;  %v1557_v25 = vcombine.low %v1483_v12, %v1484_v31  ;;  %v2114_v48 = vld [vmem:[#allocation4 + $0xb8] sm:$0xff] }
 0x123   :  { %10851 = vmatmul.mubr.msk.f32.gmra.mxu1 %vm801_vm4, %v1011_v23  ;;  %10929 = vmatmul.mubr.msk.f32.vlgmr.msra.gmra.mxu0 %vm801_vm4, %v1857_v34  ;;  %v1803_v19 = vld [vmem:[#allocation2 + $0x4e] sm:$0x3]  ;;  %v1909_v21 = vcombine.low %v1796_v16, %v1797_v4  ;;  %v1804_v22 = vld [vmem:[#allocation2 + $0x50] sm:$0x3]  ;;  %v1805_v23 = vld [vmem:[#allocation2 + $0x52] sm:$0x3]  ;;  %v1062_v24 = vcombine.low %v1054_v14, %v1061_v3  ;;  %v1555_v29 = vrot.slane %v1541_v9, %v12387_v10 }
 0x124   :  { %10853 = vmatprep.mubr.msk.f32.mxu1 %vm12306_vm0, %v12305_v1  ;;  %10931 = vmatprep.mubr.msk.f32.mxu0 %vm12306_vm0, %v12305_v1  ;;  %v1806_v26 = vld [vmem:[#allocation2 + $0x54] sm:$0x3]  ;;  %v1807_v27 = vld [vmem:[#allocation2 + $0x56] sm:$0x3]  ;;  %v1908_v28 = vcombine.low %v1900_v20, %v1907_v8  ;;  %v1924_v30 = vrot.slane %v1910_v11, %v12387_v10  ;;  %v1927_v32 = vcombine.low %v1802_v18, %v1803_v19  ;;  %v1489_v33 = vld [vmem:[#allocation2 + $0x2a] sm:$0x3] }
 0x125   :  { %10949 = vmatprep.subr.mxu1 %v12305_v1  ;;  %10979 = vmatpush3.msra.mxu0 %v2416_v41  ;;  %v1490_v34 = vld [vmem:[#allocation2 + $0x2c] sm:$0x3]  ;;  %v1548_v35 = vrot.slane %v1540_v15, %v12387_v10  ;;  %v11983_v36 = vld [vmem:[#allocation2 + $0x44] ss:$6 sps:$4 sm:$0x33]   ;;  %v2413_v37 = vld [vmem:[#allocation4 + $0xc0] sm:$0xff]  ;;  %v1917_v38 = vrot.slane %v1909_v21, %v12387_v10  ;;  %v1943_v41 = vcombine.low %v1804_v22, %v1805_v23 }
 0x126   :  { %10980 = vmatprep.subr.mxu0 %v12305_v1  ;;  %v1487_v39 = vld [vmem:[#allocation2 + $0x26] sm:$0x3]  ;;  %v1488_v40 = vld [vmem:[#allocation2 + $0x28] sm:$0x3]  ;;  %v1944_v42 = vcombine.low %v1806_v26, %v1807_v27  ;;  %v1565_v43 = vrot.slane %v1557_v25, %v12387_v10  ;;  %v1572_v44 = vrot.slane %v11982_v17, %v12387_v10  ;;  %v1941_v49 = vrot.slane %v1927_v32, %v12387_v10  ;;  %v1494_v52 = vld [vmem:[#allocation2 + $0x38] sm:$0x3]  ;;  %v12830_v27 = vpop.f32.mrf.mxu0 }
 0x127   :  { %10854 = vmatmul.mubr.msk.f32.gmra.mxu1 %vm801_vm4, %v1028_v45  ;;  %10932 = vmatmul.mubr.msk.f32.gmra.mxu0 %vm801_vm4, %v1874_v50  ;;  %v1575_v45 = vcombine.low %v1489_v33, %v1490_v34  ;;  %v1556_v46 = vcombine.low %v1548_v35, %v1555_v29  ;;  %v1925_v47 = vcombine.low %v1917_v38, %v1924_v30  ;;  %v1493_v50 = vld [vmem:[#allocation2 + $0x36] sm:$0x3]  ;;  %v2384_v53 = vld [vmem:[#allocation2 + $0x24] sm:$0x3]  ;;  %v2387_v54 = vld [vmem:[#allocation2 + $0x2a] sm:$0x3] }
 0x128   :  { %10856 = vmatprep.mubr.msk.f32.mxu1 %vm12306_vm0, %v12305_v1  ;;  %10934 = vmatprep.mubr.msk.f32.mxu0 %vm12306_vm0, %v12305_v1  ;;  %v1574_v51 = vcombine.low %v1487_v39, %v1488_v40  ;;  %v2113_v56 = vld [vmem:[#allocation4 + $0xb0] sm:$0xff]  ;;  %v1951_v57 = vrot.slane %v1943_v41, %v12387_v10  ;;  %v1958_v58 = vrot.slane %v1944_v42, %v12387_v10  ;;  %v1492_v62 = vld [vmem:[#allocation2 + $0x30] sm:$0x3]  ;;  %v2385_v63 = vld [vmem:[#allocation2 + $0x26] sm:$0x3]  ;;  %v10814_v38 = vpop.f32.mrf.mxu0 }
 0x129   :  { %10981 = vmatpush3.msra.mxu0 %v2415_v55  ;;  %v1934_v55 = vrot.slane %v11983_v36, %v12387_v10  ;;  %v1491_v59 = vld [vmem:[#allocation2 + $0x2e] sm:$0x3]  ;;  %v1573_v60 = vcombine.low %v1565_v43, %v1572_v44  ;;  %v1589_v61 = vrot.slane %v1575_v45, %v12387_v10  ;;  %v2386_v0 = vld [vmem:[#allocation2 + $0x28] sm:$0x3]  ;;  %v1592_v3 = vcombine.low %v1493_v50, %v1494_v52  ;;  %v1497_v6 = vld [vmem:[#allocation2 + $0x3e] sm:$0x3] }
 0x12a   :  { %10982 = vmatprep.subr.mxu0 %v12305_v1  ;;  %v2446_v4 = vcombine.low %v2386_v0, %v2387_v54  ;;  %v1582_v8 = vrot.slane %v1574_v51, %v12387_v10  ;;  %v2389_v9 = vld [vmem:[#allocation2 + $0x2e] sm:$0x3]  ;;  %v1959_v11 = vcombine.low %v1951_v57, %v1958_v58  ;;  %v1591_v12 = vcombine.low %v1491_v59, %v1492_v62  ;;  %v1495_v14 = vld [vmem:[#allocation2 + $0x3a] sm:$0x3]  ;;  %v1496_v15 = vld [vmem:[#allocation2 + $0x3c] sm:$0x3] }
 0x12b   :  { %10857 = vmatmul.mubr.msk.f32.gmra.mxu1 %vm801_vm4, %v1045_v2  ;;  %10935 = vmatmul.mubr.msk.f32.gmra.mxu0 %vm801_vm4, %v1891_v7  ;;  %v1942_v2 = vcombine.low %v1934_v55, %v1941_v49  ;;  %v1498_v7 = vld [vmem:[#allocation2 + $0x40] sm:$0x3]  ;;  %v2445_v31 = vcombine.low %v2384_v53, %v2385_v63  ;;  %v2388_v17 = vld [vmem:[#allocation2 + $0x2c] sm:$0x3]  ;;  %v1606_v20 = vrot.slane %v1592_v3, %v12387_v10  ;;  %v1501_v23 = vld [vmem:[#allocation2 + $0x4a] sm:$0x3] }
 0x12c   :  { %10859 = vmatprep.mubr.msk.f32.mxu1 %vm12306_vm0, %v12305_v1  ;;  %10937 = vmatprep.mubr.msk.f32.mxu0 %vm12306_vm0, %v12305_v1  ;;  %v1609_v16 = vcombine.low %v1497_v6, %v1498_v7  ;;  %v11984_v18 = vld [vmem:[#allocation2 + $0x30] ss:$6 sps:$4 sm:$0x33]   ;;  %v1590_v19 = vcombine.low %v1582_v8, %v1589_v61  ;;  %v2460_v21 = vrot.slane %v2446_v4, %v12387_v10  ;;  %v2395_v26 = vld [vmem:[#allocation2 + $0x3e] sm:$0x3]  ;;  %v3019_v57 = vld [vmem:[#allocation4 + $0x110] sm:$0xff] }
 0x12d   :  { %10983 = vmatpush3.msra.mxu0 %v2414_v13  ;;  %v2112_v13 = vld [vmem:[#allocation4 + $0xa8] sm:$0xff]  ;;  %v2462_v22 = vcombine.low %v2388_v17, %v2389_v9  ;;  %v1608_v25 = vcombine.low %v1495_v14, %v1496_v15  ;;  %v2453_v29 = vrot.slane %v2445_v31, %v12387_v10  ;;  %v2393_v30 = vld [vmem:[#allocation2 + $0x3a] sm:$0x3]  ;;  %v2477_v34 = vrot.slane %v11984_v18, %v12387_v10  ;;  %v1505_v43 = vld [vmem:[#allocation2 + $0x52] sm:$0x3] }
 0x12e   :  { %10984 = vmatprep.subr.mxu0 %v12305_v1  ;;  %v2111_v32 = vld [vmem:[#allocation4 + $0xa0] sm:$0xff]  ;;  %v1623_v33 = vrot.slane %v1609_v16, %v12387_v10  ;;  %v11985_v35 = vld [vmem:[#allocation2 + $0x42] ss:$6 sps:$4 sm:$0x33]   ;;  %v1506_v44 = vld [vmem:[#allocation2 + $0x54] sm:$0x3] }
 0x12f   :  { %10860 = vmatmul.mubr.msk.f32.gmra.mxu1 %vm801_vm4, %v1062_v24  ;;  %10938 = vmatmul.mubr.msk.f32.gmra.mxu0 %vm801_vm4, %v1908_v28  ;;  %v1502_v24 = vld [vmem:[#allocation2 + $0x4c] sm:$0x3]  ;;  %v1599_v28 = vrot.slane %v1591_v12, %v12387_v10  ;;  %v2461_v40 = vcombine.low %v2453_v29, %v2460_v21  ;;  %v2470_v41 = vrot.slane %v2462_v22, %v12387_v10  ;;  %v2398_v45 = vld [vmem:[#allocation2 + $0x48] sm:$0x3]  ;;  %v3020_v49 = vld [vmem:[#allocation4 + $0x118] sm:$0xff] }
 0x130   :  { %10899 = vmatprep.mubr.msk.f32.mxu1 %vm12306_vm0, %v12305_v1  ;;  %10940 = vmatprep.mubr.msk.f32.mxu0 %vm12306_vm0, %v12305_v1  ;;  %v1626_v36 = vcombine.low %v1501_v23, %v1502_v24  ;;  %v1503_v51 = vld [vmem:[#allocation2 + $0x4e] sm:$0x3]  ;;  %v1504_v52 = vld [vmem:[#allocation2 + $0x50] sm:$0x3]  ;;  %v1643_v55 = vcombine.low %v1505_v43, %v1506_v44  ;;  %v2084_v62 = vld [vmem:[#allocation2 + $0x1a] sm:$0x3]  ;;  %v1633_v63 = vrot.slane %v11985_v35, %v12387_v10 }
 0x131   :  { %10985 = vmatpush3.msra.mxu0 %v2413_v37  ;;  %v2394_v37 = vld [vmem:[#allocation2 + $0x3c] sm:$0x3]  ;;  %v1607_v39 = vcombine.low %v1599_v28, %v1606_v20  ;;  %v2478_v58 = vcombine.low %v2470_v41, %v2477_v34  ;;  %v1642_v0 = vcombine.low %v1503_v51, %v1504_v52  ;;  %v2402_v3 = vld [vmem:[#allocation2 + $0x50] sm:$0x3]  ;;  %v2403_v4 = vld [vmem:[#allocation2 + $0x52] sm:$0x3] }
 0x132   :  { %11036 = vmatprep.subr.mxu0 %v12305_v1  ;;  %v2480_v42 = vcombine.low %v2394_v37, %v2395_v26  ;;  %v1640_v54 = vrot.slane %v1626_v36, %v12387_v10  ;;  %v2406_v8 = vld [vmem:[#allocation2 + $0x5c] sm:$0x3]  ;;  %v2082_v12 = vld [vmem:[#allocation2 + $0x16] sm:$0x3]  ;;  %v2083_v31 = vld [vmem:[#allocation2 + $0x18] sm:$0x3]  ;;  %v2514_v17 = vcombine.low %v2402_v3, %v2403_v4 }
 0x133   :  { %10900 = vmatmul.mubr.msk.f32.vlgmr.msra.gmra.mxu1 %vm801_vm4, %v1556_v46  ;;  %10941 = vmatmul.mubr.msk.f32.gmra.mxu0 %vm801_vm4, %v1925_v47  ;;  %v1616_v46 = vrot.slane %v1608_v25, %v12387_v10  ;;  %v2392_v47 = vld [vmem:[#allocation2 + $0x38] sm:$0x3]  ;;  %v2407_v18 = vld [vmem:[#allocation2 + $0x5e] sm:$0x3]  ;;  %v3018_v20 = vld [vmem:[#allocation4 + $0x108] sm:$0xff]  ;;  %v1650_v21 = vrot.slane %v1642_v0, %v12387_v10  ;;  %v2143_v26 = vcombine.low %v2082_v12, %v2083_v31 }
 0x134   :  { %10950 = vmatpush3.msra.mxu1 %v2114_v48  ;;  %10902 = vmatprep.mubr.msk.f32.mxu1 %vm12306_vm0, %v12305_v1  ;;  %v2399_v48 = vld [vmem:[#allocation2 + $0x4a] sm:$0x3]  ;;  %v2479_v50 = vcombine.low %v2392_v47, %v2393_v30  ;;  %v2494_v59 = vrot.slane %v2480_v42, %v12387_v10  ;;  %v1641_v9 = vcombine.low %v1633_v63, %v1640_v54  ;;  %v2400_v22 = vld [vmem:[#allocation2 + $0x4c] sm:$0x3]  ;;  %v2086_v23 = vld [vmem:[#allocation2 + $0x1e] sm:$0x3] }
 0x135   :  { %10943 = vmatprep.mubr.msk.f32.mxu0 %vm12306_vm0, %v12305_v1  ;;  %10951 = vmatprep.subr.mxu1 %v12305_v1  ;;  %v1624_v53 = vcombine.low %v1616_v46, %v1623_v33  ;;  %v2497_v61 = vcombine.low %v2398_v45, %v2399_v48  ;;  %v2087_v24 = vld [vmem:[#allocation2 + $0x20] sm:$0x3]  ;;  %v2409_v29 = vld [vmem:[#allocation2 + $0x62] sm:$0x3]  ;;  %v2410_v30 = vld [vmem:[#allocation2 + $0x64] sm:$0x3]  ;;  %v2531_v36 = vcombine.low %v2406_v8, %v2407_v18 }
 0x136   :  { %10952 = vmatpush3.msra.mxu1 %v2113_v56  ;;  %v2397_v56 = vld [vmem:[#allocation2 + $0x42] sm:$0x3]  ;;  %v2487_v6 = vrot.slane %v2479_v50, %v12387_v10  ;;  %v11987_v35 = vld [vmem:[#allocation2 + $0x54] ss:$6 sps:$4 sm:$0x33]   ;;  %v2151_v45 = vrot.slane %v2143_v26, %v12387_v10 }
 0x137   :  { %10903 = vmatmul.mubr.msk.f32.gmra.mxu1 %vm801_vm4, %v1573_v60  ;;  %10944 = vmatmul.mubr.msk.f32.gmra.mxu0 %vm801_vm4, %v1942_v2  ;;  %v2396_v60 = vld [vmem:[#allocation2 + $0x40] sm:$0x3]  ;;  %v2085_v2 = vld [vmem:[#allocation2 + $0x1c] sm:$0x3]  ;;  %v2511_v15 = vrot.slane %v2497_v61, %v12387_v10  ;;  %v2092_v41 = vld [vmem:[#allocation2 + $0x2e] sm:$0x3]  ;;  %v2545_v50 = vrot.slane %v2531_v36, %v12387_v10 }
 0x138   :  { %10905 = vmatprep.mubr.msk.f32.mxu1 %vm12306_vm0, %v12305_v1  ;;  %10946 = vmatprep.mubr.msk.f32.mxu0 %vm12306_vm0, %v12305_v1  ;;  %v2496_v7 = vcombine.low %v2396_v60, %v2397_v56  ;;  %v2495_v14 = vcombine.low %v2487_v6, %v2494_v59  ;;  %v2144_v16 = vcombine.low %v2084_v62, %v2085_v2  ;;  %v11986_v34 = vld [vmem:[#allocation2 + $0x22] ss:$6 sps:$4 sm:$0x33]   ;;  %v2093_v42 = vld [vmem:[#allocation2 + $0x30] sm:$0x3]  ;;  %v3017_v44 = vld [vmem:[#allocation4 + $0x100] sm:$0xff] }
 0x139   :  { %10953 = vmatprep.subr.mxu1 %v12305_v1  ;;  %v2175_v48 = vrot.slane %v11986_v34, %v12387_v10  ;;  %v2090_v51 = vld [vmem:[#allocation2 + $0x2a] sm:$0x3]  ;;  %v2091_v52 = vld [vmem:[#allocation2 + $0x2c] sm:$0x3]  ;;  %v2097_v59 = vld [vmem:[#allocation2 + $0x3c] sm:$0x3] }
 0x13a   :  { %10954 = vmatpush3.msra.mxu1 %v2112_v13  ;;  %v2401_v13 = vld [vmem:[#allocation2 + $0x4e] sm:$0x3]  ;;  %v2504_v25 = vrot.slane %v2496_v7, %v12387_v10  ;;  %v2158_v38 = vrot.slane %v2144_v16, %v12387_v10  ;;  %v2177_v62 = vcombine.low %v2090_v51, %v2091_v52  ;;  %v2094_v2 = vld [vmem:[#allocation2 + $0x32] sm:$0x3]  ;;  %v2095_v3 = vld [vmem:[#allocation2 + $0x34] sm:$0x3] }
 0x13b   :  { %10906 = vmatmul.mubr.msk.f32.gmra.mxu1 %vm801_vm4, %v1590_v19  ;;  %10947 = vmatmul.mubr.msk.f32.gmra.mxu0 %vm801_vm4, %v1959_v11  ;;  %v1657_v11 = vrot.slane %v1643_v55, %v12387_v10  ;;  %v2408_v19 = vld [vmem:[#allocation2 + $0x60] sm:$0x3]  ;;  %v2513_v28 = vcombine.low %v2400_v22, %v2401_v13  ;;  %v2718_v55 = vld [vmem:[#allocation4 + $0xf8] sm:$0xff]  ;;  %v2991_v60 = vld [vmem:[#allocation2 + $0x2e] sm:$0x3]  ;;  %v2194_v13 = vcombine.low %v2094_v2, %v2095_v3 }
 0x13c   :  { %10908 = vmatprep.mubr.msk.f32.mxu1 %vm12306_vm0, %v12305_v1  ;;  %10986 = vmatprep.mubr.msk.f32.mxu0 %vm12306_vm0, %v12305_v1  ;;  %v2512_v37 = vcombine.low %v2504_v25, %v2511_v15  ;;  %v2547_v43 = vcombine.low %v2408_v19, %v2409_v29  ;;  %v2717_v61 = vld [vmem:[#allocation4 + $0xf0] sm:$0xff]  ;;  %v2101_v15 = vld [vmem:[#allocation2 + $0x44] sm:$0x3]  ;;  %v2993_v16 = vld [vmem:[#allocation2 + $0x32] sm:$0x3] }
 0x13d   :  { %10955 = vmatprep.subr.mxu1 %v12305_v1  ;;  %v1658_v33 = vcombine.low %v1650_v21, %v1657_v11  ;;  %v2521_v46 = vrot.slane %v2513_v28, %v12387_v10  ;;  %v2989_v7 = vld [vmem:[#allocation2 + $0x2a] sm:$0x3]  ;;  %v2990_v8 = vld [vmem:[#allocation2 + $0x2c] sm:$0x3]  ;;  %v2988_v12 = vld [vmem:[#allocation2 + $0x28] sm:$0x3] }
 0x13e   :  { %10956 = vmatpush3.msra.mxu1 %v2111_v32  ;;  %v2411_v32 = vld [vmem:[#allocation2 + $0x66] sm:$0x3]  ;;  %v2555_v63 = vrot.slane %v2547_v43, %v12387_v10  ;;  %v3050_v31 = vcombine.low %v2990_v8, %v2991_v60  ;;  %v3049_v19 = vcombine.low %v2988_v12, %v2989_v7  ;;  %v2098_v21 = vld [vmem:[#allocation2 + $0x3e] sm:$0x3]  ;;  %v2099_v22 = vld [vmem:[#allocation2 + $0x40] sm:$0x3] }
 0x13f   :  { %10909 = vmatmul.mubr.msk.f32.gmra.mxu1 %vm801_vm4, %v1607_v39  ;;  %10987 = vmatmul.mubr.msk.f32.vlgmr.msra.gmra.mxu0 %vm801_vm4, %v2461_v40  ;;  %v2528_v39 = vrot.slane %v2514_v17, %v12387_v10  ;;  %v2160_v40 = vcombine.low %v2086_v23, %v2087_v24  ;;  %v2548_v47 = vcombine.low %v2410_v30, %v2411_v32  ;;  %v2992_v24 = vld [vmem:[#allocation2 + $0x30] sm:$0x3]  ;;  %v2104_v25 = vld [vmem:[#allocation2 + $0x4e] sm:$0x3]  ;;  %v2999_v34 = vld [vmem:[#allocation2 + $0x42] sm:$0x3] }
 0x140   :  { %10911 = vmatprep.mubr.msk.f32.mxu1 %vm12306_vm0, %v12305_v1  ;;  %10989 = vmatprep.mubr.msk.f32.mxu0 %vm12306_vm0, %v12305_v1  ;;  %v2185_v17 = vrot.slane %v2177_v62, %v12387_v10  ;;  %v2105_v26 = vld [vmem:[#allocation2 + $0x50] sm:$0x3]  ;;  %v3064_v29 = vrot.slane %v3050_v31, %v12387_v10  ;;  %v3066_v32 = vcombine.low %v2992_v24, %v2993_v16  ;;  %v2715_v36 = vld [vmem:[#allocation4 + $0xe0] sm:$0xff]  ;;  %v2106_v51 = vld [vmem:[#allocation2 + $0x52] sm:$0x3] }
 0x141   :  { %11007 = vmatprep.subr.mxu1 %v12305_v1  ;;  %11037 = vmatpush3.msra.mxu0 %v3020_v49  ;;  %v2538_v49 = vrot.slane %v11987_v35, %v12387_v10  ;;  %v2529_v54 = vcombine.low %v2521_v46, %v2528_v39  ;;  %v2168_v56 = vrot.slane %v2160_v40, %v12387_v10  ;;  %v2997_v40 = vld [vmem:[#allocation2 + $0x3e] sm:$0x3]  ;;  %v2107_v52 = vld [vmem:[#allocation2 + $0x54] sm:$0x3]  ;;  %v3001_v62 = vld [vmem:[#allocation2 + $0x46] sm:$0x3] }
 0x142   :  { %11038 = vmatprep.subr.mxu0 %v12305_v1  ;;  %v2562_v0 = vrot.slane %v2548_v47, %v12387_v10  ;;  %v2202_v35 = vrot.slane %v2194_v13, %v12387_v10  ;;  %v2229_v39 = vcombine.low %v2104_v25, %v2105_v26  ;;  %v2689_v7 = vld [vmem:[#allocation2 + $0x2c] sm:$0x3]  ;;  %v3004_v8 = vld [vmem:[#allocation2 + $0x50] sm:$0x3]  ;;  %v3006_v12 = vld [vmem:[#allocation2 + $0x54] sm:$0x3] }
 0x143   :  { %10912 = vmatmul.mubr.msk.f32.gmra.mxu1 %vm801_vm4, %v1624_v53  ;;  %10990 = vmatmul.mubr.msk.f32.gmra.mxu0 %vm801_vm4, %v2478_v58  ;;  %v2159_v53 = vcombine.low %v2151_v45, %v2158_v38  ;;  %v2096_v58 = vld [vmem:[#allocation2 + $0x3a] sm:$0x3]  ;;  %v2546_v4 = vcombine.low %v2538_v49, %v2545_v50  ;;  %v2211_v38 = vcombine.low %v2098_v21, %v2099_v22  ;;  %v2996_v45 = vld [vmem:[#allocation2 + $0x3c] sm:$0x3]  ;;  %v3007_v31 = vld [vmem:[#allocation2 + $0x56] sm:$0x3] }
 0x144   :  { %10914 = vmatprep.mubr.msk.f32.mxu1 %vm12306_vm0, %v12305_v1  ;;  %10992 = vmatprep.mubr.msk.f32.mxu0 %vm12306_vm0, %v12305_v1  ;;  %v2195_v6 = vcombine.low %v2096_v58, %v2097_v59  ;;  %v2563_v18 = vcombine.low %v2555_v63, %v2562_v0  ;;  %v3074_v49 = vrot.slane %v3066_v32, %v12387_v10  ;;  %v3002_v63 = vld [vmem:[#allocation2 + $0x4c] sm:$0x3]  ;;  %v2687_v16 = vld [vmem:[#allocation2 + $0x28] sm:$0x3]  ;;  %v3011_v21 = vld [vmem:[#allocation2 + $0x62] sm:$0x3] }
 0x145   :  { %11039 = vmatpush3.msra.mxu0 %v3019_v57  ;;  %v2178_v57 = vcombine.low %v2092_v41, %v2093_v42  ;;  %v2998_v41 = vld [vmem:[#allocation2 + $0x40] sm:$0x3]  ;;  %v2109_v42 = vld [vmem:[#allocation2 + $0x58] sm:$0x3]  ;;  %v2245_v59 = vcombine.low %v2106_v51, %v2107_v52  ;;  %v3118_v25 = vcombine.low %v3006_v12, %v3007_v31  ;;  %v2690_v26 = vld [vmem:[#allocation2 + $0x2e] sm:$0x3] }
 0x146   :  { %11040 = vmatprep.subr.mxu0 %v12305_v1  ;;  %v2209_v23 = vrot.slane %v2195_v6, %v12387_v10  ;;  %v3084_v46 = vcombine.low %v2998_v41, %v2999_v34  ;;  %v2688_v6 = vld [vmem:[#allocation2 + $0x2a] sm:$0x3]  ;;  %v3012_v34 = vld [vmem:[#allocation2 + $0x64] sm:$0x3] }
 0x147   :  { %10915 = vmatmul.mubr.msk.f32.gmra.mxu1 %vm801_vm4, %v1641_v9  ;;  %10993 = vmatmul.mubr.msk.f32.gmra.mxu0 %vm801_vm4, %v2495_v14  ;;  %v2176_v9 = vcombine.low %v2168_v56, %v2175_v48  ;;  %v2192_v11 = vrot.slane %v2178_v57, %v12387_v10  ;;  %v2100_v14 = vld [vmem:[#allocation2 + $0x42] sm:$0x3]  ;;  %v2219_v56 = vrot.slane %v2211_v38, %v12387_v10  ;;  %v3014_v38 = vld [vmem:[#allocation2 + $0x68] sm:$0x3] }
 0x148   :  { %10917 = vmatprep.mubr.msk.f32.mxu1 %vm12306_vm0, %v12305_v1  ;;  %10995 = vmatprep.mubr.msk.f32.mxu0 %vm12306_vm0, %v12305_v1  ;;  %v2212_v30 = vcombine.low %v2100_v14, %v2101_v15  ;;  %v2210_v43 = vcombine.low %v2202_v35, %v2209_v23  ;;  %v2243_v57 = vrot.slane %v2229_v39, %v12387_v10  ;;  %v2686_v15 = vld [vmem:[#allocation2 + $0x26] sm:$0x3]  ;;  %v3015_v39 = vld [vmem:[#allocation2 + $0x6a] sm:$0x3] }
 0x149   :  { %11041 = vmatpush3.msra.mxu0 %v3018_v20  ;;  %v2716_v20 = vld [vmem:[#allocation4 + $0xe8] sm:$0xff]  ;;  %v2193_v28 = vcombine.low %v2185_v17, %v2192_v11  ;;  %v3098_v58 = vrot.slane %v3084_v46, %v12387_v10  ;;  %v3005_v11 = vld [vmem:[#allocation2 + $0x52] sm:$0x3]  ;;  %v2748_v23 = vcombine.low %v2688_v6, %v2689_v7  ;;  %v2696_v46 = vld [vmem:[#allocation2 + $0x3e] sm:$0x3] }
 0x14a   :  { %11042 = vmatprep.subr.mxu0 %v12305_v1  ;;  %v2226_v48 = vrot.slane %v2212_v30, %v12387_v10  ;;  %v3117_v24 = vcombine.low %v3004_v8, %v3005_v11  ;;  %v11992_v30 = vld [vmem:[#allocation2 + $0x58] ss:$6 sps:$4 sm:$0x33]   ;;  %v2704_v8 = vld [vmem:[#allocation2 + $0x52] sm:$0x3] }
 0x14b   :  { %10918 = vmatmul.mubr.msk.f32.gmra.mxu1 %vm801_vm4, %v1658_v33  ;;  %10996 = vmatmul.mubr.msk.f32.gmra.mxu0 %vm801_vm4, %v2512_v37  ;;  %v11988_v33 = vld [vmem:[#allocation2 + $0x34] ss:$6 sps:$4 sm:$0x33]   ;;  %v3057_v37 = vrot.slane %v3049_v19, %v12387_v10  ;;  %v2762_v41 = vrot.slane %v2748_v23, %v12387_v10  ;;  %v2711_v23 = vld [vmem:[#allocation2 + $0x64] sm:$0x3] }
 0x14c   :  { %10957 = vmatprep.mubr.msk.f32.mxu1 %vm12306_vm0, %v12305_v1  ;;  %10998 = vmatprep.mubr.msk.f32.mxu0 %vm12306_vm0, %v12305_v1  ;;  %v3081_v50 = vrot.slane %v11988_v33, %v12387_v10  ;;  %v2227_v0 = vcombine.low %v2219_v56, %v2226_v48  ;;  %v3142_v48 = vrot.slane %v11992_v30, %v12387_v10 }
 0x14d   :  { %11043 = vmatpush3.msra.mxu0 %v3017_v44  ;;  %v11989_v44 = vld [vmem:[#allocation2 + $0x46] ss:$6 sps:$4 sm:$0x33]   ;;  %v3065_v47 = vcombine.low %v3057_v37, %v3064_v29  ;;  %v2747_v29 = vcombine.low %v2686_v15, %v2687_v16 }
 0x14e   :  { %11102 = vmatprep.subr.mxu0 %v12305_v1  ;;  %v3082_v2 = vcombine.low %v3074_v49, %v3081_v50  ;;  %v2236_v3 = vrot.slane %v11989_v44, %v12387_v10  ;;  %v3013_v37 = vld [vmem:[#allocation2 + $0x66] sm:$0x3]  ;;  %v11990_v44 = vld [vmem:[#allocation2 + $0x32] ss:$6 sps:$4 sm:$0x33]  }
 0x14f   :  { %10958 = vmatmul.mubr.msk.f32.vlgmr.msra.gmra.mxu1 %vm801_vm4, %v2159_v53  ;;  %10999 = vmatmul.mubr.msk.f32.gmra.mxu0 %vm801_vm4, %v2529_v54  ;;  %v2108_v53 = vld [vmem:[#allocation2 + $0x56] sm:$0x3]  ;;  %v3083_v54 = vcombine.low %v2996_v45, %v2997_v40  ;;  %v2755_v45 = vrot.slane %v2747_v29, %v12387_v10  ;;  %v2694_v49 = vld [vmem:[#allocation2 + $0x3a] sm:$0x3]  ;;  %v2695_v50 = vld [vmem:[#allocation2 + $0x3c] sm:$0x3]  ;;  %v3151_v52 = vcombine.low %v3012_v34, %v3013_v37 }
 0x150   :  { %11008 = vmatpush3.msra.mxu1 %v2718_v55  ;;  %10960 = vmatprep.mubr.msk.f32.mxu1 %vm12306_vm0, %v12305_v1  ;;  %v3003_v55 = vld [vmem:[#allocation2 + $0x4e] sm:$0x3]  ;;  %v2246_v60 = vcombine.low %v2108_v53, %v2109_v42  ;;  %v2244_v13 = vcombine.low %v2236_v3, %v2243_v57  ;;  %v3125_v42 = vrot.slane %v3117_v24, %v12387_v10  ;;  %v2699_v3 = vld [vmem:[#allocation2 + $0x44] sm:$0x3]  ;;  %v2712_v24 = vld [vmem:[#allocation2 + $0x66] sm:$0x3] }
 0x151   :  { %11001 = vmatprep.mubr.msk.f32.mxu0 %vm12306_vm0, %v12305_v1  ;;  %11009 = vmatprep.subr.mxu1 %v12305_v1  ;;  %v3152_v53 = vcombine.low %v3014_v38, %v3015_v39  ;;  %v2779_v57 = vrot.slane %v11990_v44, %v12387_v10  ;;  %v11991_v29 = vld [vmem:[#allocation2 + $0x56] ss:$6 sps:$4 sm:$0x33]   ;;  %v3594_v44 = vld [vmem:[#allocation7 + $0x68] sm:$0xff] }
 0x152   :  { %11010 = vmatpush3.msra.mxu1 %v2717_v61  ;;  %v3000_v61 = vld [vmem:[#allocation2 + $0x44] sm:$0x3]  ;;  %v2260_v19 = vrot.slane %v2246_v60, %v12387_v10  ;;  %v2700_v60 = vld [vmem:[#allocation2 + $0x4a] sm:$0x3] }
 0x153   :  { %10961 = vmatmul.mubr.msk.f32.gmra.mxu1 %vm801_vm4, %v2176_v9  ;;  %11002 = vmatmul.mubr.msk.f32.gmra.mxu0 %vm801_vm4, %v2546_v4  ;;  %v3101_v4 = vcombine.low %v3002_v63, %v3003_v55  ;;  %v3091_v9 = vrot.slane %v3083_v54, %v12387_v10  ;;  %v3100_v14 = vcombine.low %v3000_v61, %v3001_v62  ;;  %v2701_v61 = vld [vmem:[#allocation2 + $0x4c] sm:$0x3] }
 0x154   :  { %10963 = vmatprep.mubr.msk.f32.mxu1 %vm12306_vm0, %v12305_v1  ;;  %11004 = vmatprep.mubr.msk.f32.mxu0 %vm12306_vm0, %v12305_v1  ;;  %v2763_v55 = vcombine.low %v2755_v45, %v2762_v41  ;;  %v3159_v63 = vrot.slane %v3151_v52, %v12387_v10  ;;  %v2799_v7 = vcombine.low %v2700_v60, %v2701_v61  ;;  %v3591_v52 = vld [vmem:[#allocation7 + $0x50] sm:$0xff] }
 0x155   :  { %11011 = vmatprep.subr.mxu1 %v12305_v1  ;;  %v3099_v17 = vcombine.low %v3091_v9, %v3098_v58  ;;  %v3115_v22 = vrot.slane %v3101_v4, %v12387_v10  ;;  %v3108_v32 = vrot.slane %v3100_v14, %v12387_v10  ;;  %v2705_v9 = vld [vmem:[#allocation2 + $0x54] sm:$0x3]  ;;  %v2703_v14 = vld [vmem:[#allocation2 + $0x50] sm:$0x3] }
 0x156   :  { %11012 = vmatpush3.msra.mxu1 %v2716_v20  ;;  %v3010_v20 = vld [vmem:[#allocation2 + $0x60] sm:$0x3]  ;;  %v2813_v16 = vrot.slane %v2799_v7, %v12387_v10  ;;  %v3562_v7 = vld [vmem:[#allocation3 + $0x6] sm:$0x3] }
 0x157   :  { %10964 = vmatmul.mubr.msk.f32.gmra.mxu1 %vm801_vm4, %v2193_v28  ;;  %11005 = vmatmul.mubr.msk.f32.gmra.mxu0 %vm801_vm4, %v2563_v18  ;;  %v2253_v18 = vrot.slane %v2245_v59, %v12387_v10  ;;  %v2691_v28 = vld [vmem:[#allocation2 + $0x30] sm:$0x3]  ;;  %v3135_v33 = vcombine.low %v3010_v20, %v3011_v21  ;;  %v3116_v40 = vcombine.low %v3108_v32, %v3115_v22  ;;  %v2710_v22 = vld [vmem:[#allocation2 + $0x62] sm:$0x3] }
 0x158   :  { %10966 = vmatprep.mubr.msk.f32.mxu1 %vm12306_vm0, %v12305_v1  ;;  %11044 = vmatprep.mubr.msk.f32.mxu0 %vm12306_vm0, %v12305_v1  ;;  %v2781_v59 = vcombine.low %v2694_v49, %v2695_v50  ;;  %v3557_v50 = vld [vmem:[#allocation7 + $0x30] sm:$0xff] }
 0x159   :  { %11013 = vmatprep.subr.mxu1 %v12305_v1  ;;  %v2261_v35 = vcombine.low %v2253_v18, %v2260_v19  ;;  %v3149_v51 = vrot.slane %v3135_v33, %v12387_v10  ;;  %v2708_v18 = vld [vmem:[#allocation2 + $0x5e] sm:$0x3]  ;;  %v2709_v19 = vld [vmem:[#allocation2 + $0x60] sm:$0x3]  ;;  %v2849_v33 = vcombine.low %v2710_v22, %v2711_v23 }
 0x15a   :  { %11014 = vmatpush3.msra.mxu1 %v2715_v36  ;;  %v2764_v36 = vcombine.low %v2690_v26, %v2691_v28  ;;  %v2789_v11 = vrot.slane %v2781_v59, %v12387_v10  ;;  %v2833_v30 = vcombine.low %v2708_v18, %v2709_v19  ;;  %v3554_v59 = vld [vmem:[#allocation7 + $0x18] sm:$0xff] }
 0x15b   :  { %10967 = vmatmul.mubr.msk.f32.gmra.mxu1 %vm801_vm4, %v2210_v43  ;;  %11045 = vmatmul.mubr.msk.f32.vlgmr.msra.gmra.mxu0 %vm801_vm4, %v3065_v47  ;;  %v3132_v43 = vrot.slane %v3118_v25, %v12387_v10  ;;  %v2697_v47 = vld [vmem:[#allocation2 + $0x40] sm:$0x3]  ;;  %v3150_v62 = vcombine.low %v3142_v48, %v3149_v51  ;;  %v2713_v25 = vld [vmem:[#allocation2 + $0x68] sm:$0x3]  ;;  %v2857_v38 = vrot.slane %v2849_v33, %v12387_v10  ;;  %v3592_v48 = vld [vmem:[#allocation7 + $0x58] sm:$0xff] }
 0x15c   :  { %10969 = vmatprep.mubr.msk.f32.mxu1 %vm12306_vm0, %v12305_v1  ;;  %11047 = vmatprep.mubr.msk.f32.mxu0 %vm12306_vm0, %v12305_v1  ;;  %v2772_v54 = vrot.slane %v2764_v36, %v12387_v10  ;;  %v2782_v58 = vcombine.low %v2696_v46, %v2697_v47  ;;  %v2850_v34 = vcombine.low %v2712_v24, %v2713_v25  ;;  %v3593_v46 = vld [vmem:[#allocation7 + $0x60] sm:$0xff]  ;;  %v3558_v47 = vld [vmem:[#allocation7 + $0x38] sm:$0xff]  ;;  %v3556_v51 = vld [vmem:[#allocation7 + $0x28] sm:$0xff] }
 0x15d   :  { %11065 = vmatprep.subr.mxu1 %v12305_v1  ;;  %v3133_v56 = vcombine.low %v3125_v42, %v3132_v43  ;;  %v2840_v36 = vrot.slane %v11991_v29, %v12387_v10  ;;  %v2847_v37 = vrot.slane %v2833_v30, %v12387_v10  ;;  %v3596_v42 = vld [vmem:[#allocation7 + $0x78] sm:$0xff]  ;;  %v3595_v43 = vld [vmem:[#allocation7 + $0x70] sm:$0xff]  ;;  %11103 = vmatpush3.msra.mxu0 %v3558_v47  ;;  %v11994_v33 = vld [vmem:[#allocation3 + $0xc] ss:$6 sps:$4 sm:$0x33]  }
 0x15e   :  { %v2780_v4 = vcombine.low %v2772_v54, %v2779_v57  ;;  %v2796_v6 = vrot.slane %v2782_v58, %v12387_v10  ;;  %v2864_v39 = vrot.slane %v2850_v34, %v12387_v10  ;;  %11104 = vmatprep.subr.mxu0 %v12305_v1  ;;  %v3555_v57 = vld [vmem:[#allocation7 + $0x20] sm:$0xff]  ;;  %v3590_v58 = vld [vmem:[#allocation7 + $0x48] sm:$0xff]  ;;  %v3527_v24 = vld [vmem:[#allocation3 + $0x8] sm:$0x3] }
 0x15f   :  { %10970 = vmatmul.mubr.msk.f32.gmra.mxu1 %vm801_vm4, %v2227_v0  ;;  %11048 = vmatmul.mubr.msk.f32.gmra.mxu0 %vm801_vm4, %v3082_v2  ;;  %v3166_v0 = vrot.slane %v3152_v53, %v12387_v10  ;;  %v2698_v2 = vld [vmem:[#allocation2 + $0x42] sm:$0x3]  ;;  %v4157_v30 = vld [vmem:[#allocation7 + $0xb8] sm:$0xff] }
 0x160   :  { %10972 = vmatprep.mubr.msk.f32.mxu1 %vm12306_vm0, %v12305_v1  ;;  %11050 = vmatprep.mubr.msk.f32.mxu0 %vm12306_vm0, %v12305_v1  ;;  %v2798_v12 = vcombine.low %v2698_v2, %v2699_v3  ;;  %v2797_v15 = vcombine.low %v2789_v11, %v2796_v6  ;;  %v2865_v41 = vcombine.low %v2857_v38, %v2864_v39  ;;  %v3561_v6 = vld [vmem:[#allocation3 + $0x4] sm:$0x3]  ;;  %v4156_v39 = vld [vmem:[#allocation7 + $0xb0] sm:$0xff] }
 0x161   :  { %v3167_v31 = vcombine.low %v3159_v63, %v3166_v0  ;;  %11105 = vmatpush3.msra.mxu0 %v3557_v50  ;;  %v3589_v63 = vld [vmem:[#allocation7 + $0x40] sm:$0xff]  ;;  %v3552_v0 = vld [vmem:[#allocation7 + $0x8] sm:$0xff]  ;;  %v3919_v38 = vrot.slane %v11994_v33, %v12387_v10 }
 0x162   :  { %v2806_v20 = vrot.slane %v2798_v12, %v12387_v10  ;;  %11106 = vmatprep.subr.mxu0 %v12305_v1  ;;  %v4154_v50 = vld [vmem:[#allocation7 + $0xa0] sm:$0xff] }
 0x163   :  { %10973 = vmatmul.mubr.msk.f32.gmra.mxu1 %vm801_vm4, %v2244_v13  ;;  %11051 = vmatmul.mubr.msk.f32.gmra.mxu0 %vm801_vm4, %v3099_v17  ;;  %v2702_v13 = vld [vmem:[#allocation2 + $0x4e] sm:$0x3]  ;;  %v2816_v17 = vcombine.low %v2704_v8, %v2705_v9  ;;  %v3563_v8 = vld [vmem:[#allocation3 + $0x8] sm:$0x3] }
 0x164   :  { %10975 = vmatprep.mubr.msk.f32.mxu1 %vm12306_vm0, %v12305_v1  ;;  %11053 = vmatprep.mubr.msk.f32.mxu0 %vm12306_vm0, %v12305_v1  ;;  %v2815_v21 = vcombine.low %v2702_v13, %v2703_v14  ;;  %v2814_v26 = vcombine.low %v2806_v20, %v2813_v16  ;;  %v3551_v14 = vld [vmem:[#allocation7] sm:$0xff]  ;;  %v3524_v16 = vld [vmem:[#allocation3 + $0x2] sm:$0x3]  ;;  %v3525_v20 = vld [vmem:[#allocation3 + $0x4] sm:$0x3] }
 0x165   :  { %v2830_v28 = vrot.slane %v2816_v17, %v12387_v10  ;;  %11107 = vmatpush3.msra.mxu0 %v3556_v51 }
 0x166   :  { %v2823_v32 = vrot.slane %v2815_v21, %v12387_v10  ;;  %11108 = vmatprep.subr.mxu0 %v12305_v1  ;;  %v3526_v21 = vld [vmem:[#allocation3 + $0x6] sm:$0x3] }
 0x167   :  { %10976 = vmatmul.mubr.msk.f32.gmra.mxu1 %vm801_vm4, %v2261_v35  ;;  %11054 = vmatmul.mubr.msk.f32.gmra.mxu0 %vm801_vm4, %v3116_v40  ;;  %v2848_v40 = vcombine.low %v2840_v36, %v2847_v37  ;;  %v3888_v23 = vcombine.low %v3525_v20, %v3526_v21 }
 0x168   :  { %11015 = vmatprep.mubr.msk.f32.mxu1 %vm12306_vm0, %v12305_v1  ;;  %11056 = vmatprep.mubr.msk.f32.mxu0 %vm12306_vm0, %v12305_v1  ;;  %v2831_v35 = vcombine.low %v2823_v32, %v2830_v28  ;;  %v3528_v32 = vld [vmem:[#allocation3 + $0xa] sm:$0x3] }
 0x169   :  { %11109 = vmatpush3.msra.mxu0 %v3555_v57  ;;  %v3902_v34 = vrot.slane %v3888_v23, %v12387_v10  ;;  %v4153_v57 = vld [vmem:[#allocation7 + $0x98] sm:$0xff] }
 0x16a   :  { %11110 = vmatprep.subr.mxu0 %v12305_v1 }
 0x16b   :  { %11016 = vmatmul.mubr.msk.f32.vlgmr.msra.gmra.mxu1 %vm801_vm4, %v2763_v55  ;;  %11057 = vmatmul.mubr.msk.f32.gmra.mxu0 %vm801_vm4, %v3133_v56 }
 0x16c   :  { %11018 = vmatprep.mubr.msk.f32.mxu1 %vm12306_vm0, %v12305_v1  ;;  %11059 = vmatprep.mubr.msk.f32.mxu0 %vm12306_vm0, %v12305_v1 }
 0x16d   :  { %11066 = vmatpush3.msra.mxu1 %v3596_v42  ;;  %11111 = vmatpush3.msra.mxu0 %v3554_v59 }
 0x16e   :  { %11067 = vmatprep.subr.mxu1 %v12305_v1  ;;  %11112 = vmatprep.subr.mxu0 %v12305_v1 }
 0x16f   :  { %11019 = vmatmul.mubr.msk.f32.gmra.mxu1 %vm801_vm4, %v2780_v4  ;;  %11060 = vmatmul.mubr.msk.f32.gmra.mxu0 %vm801_vm4, %v3150_v62  ;;  %v3553_v62 = vld [vmem:[#allocation7 + $0x10] sm:$0xff] }
 0x170   :  { %11021 = vmatprep.mubr.msk.f32.mxu1 %vm12306_vm0, %v12305_v1  ;;  %11062 = vmatprep.mubr.msk.f32.mxu0 %vm12306_vm0, %v12305_v1  ;;  %v3560_v4 = vld [vmem:[#allocation3 + $0x2] sm:$0x3] }
 0x171   :  { %11068 = vmatpush3.msra.mxu1 %v3595_v43  ;;  %11113 = vmatpush3.msra.mxu0 %v3553_v62  ;;  %v3625_v9 = vcombine.low %v3560_v4, %v3561_v6  ;;  %v4152_v62 = vld [vmem:[#allocation7 + $0x90] sm:$0xff]  ;;  %v4151_v6 = vld [vmem:[#allocation7 + $0x88] sm:$0xff] }
 0x172   :  { %11069 = vmatprep.subr.mxu1 %v12305_v1  ;;  %11114 = vmatprep.subr.mxu0 %v12305_v1 }
 0x173   :  { %11022 = vmatmul.mubr.msk.f32.gmra.mxu1 %vm801_vm4, %v2797_v15  ;;  %11063 = vmatmul.mubr.msk.f32.gmra.mxu0 %vm801_vm4, %v3167_v31  ;;  %v3626_v31 = vcombine.low %v3562_v7, %v3563_v8  ;;  %v3633_v13 = vrot.slane %v3625_v9, %v12387_v10  ;;  %v3523_v15 = vld [vmem:[#allocation3] sm:$0x3] }
 0x174   :  { %11024 = vmatprep.mubr.msk.f32.mxu1 %vm12306_vm0, %v12305_v1  ;;  %11118 = vmatprep.mubr.msk.f32.mxu0 %vm12306_vm0, %v12305_v1  ;;  %v3887_v22 = vcombine.low %v3523_v15, %v3524_v16 }
 0x175   :  { %11070 = vmatpush3.msra.mxu1 %v3594_v44  ;;  %11115 = vmatpush3.msra.mxu0 %v3552_v0  ;;  %v3640_v19 = vrot.slane %v3626_v31, %v12387_v10  ;;  %v4155_v44 = vld [vmem:[#allocation7 + $0xa8] sm:$0xff] }
 0x176   :  { %11071 = vmatprep.subr.mxu1 %v12305_v1  ;;  %11116 = vmatprep.subr.mxu0 %v12305_v1  ;;  %v3895_v29 = vrot.slane %v3887_v22, %v12387_v10  ;;  %v4455_v22 = vld [vmem:[#allocation7 + $0xc0] sm:$0xff] }
 0x177   :  { %11025 = vmatmul.mubr.msk.f32.gmra.mxu1 %vm801_vm4, %v2814_v26  ;;  %11117 = vmatpush3.msra.mxu0 %v3551_v14  ;;  %v3641_v28 = vcombine.low %v3633_v13, %v3640_v19  ;;  %v4457_v14 = vld [vmem:[#allocation7 + $0xd0] sm:$0xff]  ;;  %v4456_v19 = vld [vmem:[#allocation7 + $0xc8] sm:$0xff] }
 0x178   :  { %11027 = vmatprep.mubr.msk.f32.mxu1 %vm12306_vm0, %v12305_v1  ;;  %11072 = vmatpush3.msra.mxu1 %v3593_v46  ;;  %v4462_v46 = vld [vmem:[#allocation7 + $0xf8] sm:$0xff] }
 0x179   :  { %11073 = vmatprep.subr.mxu1 %v12305_v1  ;;  %11176 = vmatprep.subr.mxu0 %v12305_v1 }
 0x17a   :  { %11074 = vmatpush3.msra.mxu1 %v3592_v48 }
 0x17b   :  { %11028 = vmatmul.mubr.msk.f32.gmra.mxu1 %vm801_vm4, %v2831_v35  ;;  %11075 = vmatprep.subr.mxu1 %v12305_v1  ;;  %v3904_v35 = vcombine.low %v3527_v24, %v3528_v32 }
 0x17c   :  { %11030 = vmatprep.mubr.msk.f32.mxu1 %vm12306_vm0, %v12305_v1  ;;  %11076 = vmatpush3.msra.mxu1 %v3591_v52 }
 0x17d   :  { %11077 = vmatprep.subr.mxu1 %v12305_v1 }
 0x17e   :  { %11078 = vmatpush3.msra.mxu1 %v3590_v58  ;;  %v4461_v58 = vld [vmem:[#allocation7 + $0xf0] sm:$0xff] }
 0x17f   :  { %11031 = vmatmul.mubr.msk.f32.gmra.mxu1 %vm801_vm4, %v2848_v40  ;;  %11079 = vmatprep.subr.mxu1 %v12305_v1  ;;  %v3903_v40 = vcombine.low %v3895_v29, %v3902_v34 }
 0x180   :  { %11033 = vmatprep.mubr.msk.f32.mxu1 %vm12306_vm0, %v12305_v1  ;;  %11080 = vmatpush3.msra.mxu1 %v3589_v63 }
 0x181   :  { %11139 = vmatprep.subr.mxu1 %v12305_v1  ;;  %11119 = vmatmul.mubr.msk.f32.vlgmr.msra.gmra.mxu0 %vm3744_vm6, %v3903_v40 }
 0x182   :  { %11121 = vmatprep.mubr.msk.f32.mxu0 %vm12306_vm0, %v12305_v1  ;;  %11177 = vmatpush3.msra.mxu0 %v4462_v46 }
 0x183   :  { %11034 = vmatmul.mubr.msk.f32.gmra.mxu1 %vm801_vm4, %v2865_v41  ;;  %v3912_v41 = vrot.slane %v3904_v35, %v12387_v10  ;;  %11178 = vmatprep.subr.mxu0 %v12305_v1 }
 0x184   :  { %11081 = vmatprep.mubr.msk.f32.mxu1 %vm12306_vm0, %v12305_v1  ;;  %11179 = vmatpush3.msra.mxu0 %v4461_v58 }
 0x185   :  { %v3920_v47 = vcombine.low %v3912_v41, %v3919_v38  ;;  %11180 = vmatprep.subr.mxu0 %v12305_v1 }
 0x187   :  { %11082 = vmatmul.mubr.msk.f32.vlgmr.msra.gmra.mxu1 %vm3744_vm6, %v3641_v28  ;;  %11122 = vmatmul.mubr.msk.f32.gmra.mxu0 %vm3744_vm6, %v3920_v47 }
 0x188   :  { %11140 = vmatpush3.msra.mxu1 %v4157_v30  ;;  %11084 = vmatprep.mubr.msk.f32.mxu1 %vm12306_vm0, %v12305_v1 }
 0x189   :  { %11141 = vmatprep.subr.mxu1 %v12305_v1  ;;  %11124 = vmatprep.mubr.msk.f32.mxu0 %vm12306_vm0, %v12305_v1 }
 0x18a   :  { %11142 = vmatpush3.msra.mxu1 %v4156_v39 }
 0x18b   :  { %11143 = vmatprep.subr.mxu1 %v12305_v1 }
 0x18c   :  { %11144 = vmatpush3.msra.mxu1 %v4155_v44 }
 0x18d   :  { %11145 = vmatprep.subr.mxu1 %v12305_v1 }
 0x18e   :  { %11146 = vmatpush3.msra.mxu1 %v4154_v50 }
 0x18f   :  { %11147 = vmatprep.subr.mxu1 %v12305_v1 }
 0x190   :  { %11148 = vmatpush3.msra.mxu1 %v4153_v57 }
 0x191   :  { %11149 = vmatprep.subr.mxu1 %v12305_v1 }
 0x192   :  { %11150 = vmatpush3.msra.mxu1 %v4152_v62 }
 0x193   :  { %11151 = vmatprep.subr.mxu1 %v12305_v1 }
 0x194   :  { %11152 = vmatpush3.msra.mxu1 %v4151_v6 }
 0x195   :  { %11153 = vmatprep.subr.mxu1 %v12305_v1 }
 0x1bb   :  { %v13061_v45 = vpop.f32.mrf.mxu0 }
 0x1bd   :  { %v10817_v49 = vpop.f32.mrf.mxu0 }
 0x1c2   :  { %v13066_v53 = vpop.f32.mrf.mxu0 }
 0x1c4   :  { %v10820_v54 = vpop.f32.mrf.mxu0 }
 0x1c6   :  { %v13071_v55 = vpop.f32.mrf.mxu1  ;;  %v13073_v56 = vpop.f32.mrf.mxu0 }
 0x1c8   :  { %v10823_v60 = vpop.f32.mrf.mxu1  ;;  %v10872_v61 = vpop.f32.mrf.mxu0 }
 0x1ca   :  { %v13077_v2 = vpop.f32.mrf.mxu1  ;;  %v13079_v3 = vpop.f32.mrf.mxu0 }
 0x1cc   :  { %v10826_v11 = vpop.f32.mrf.mxu1  ;;  %v10875_v12 = vpop.f32.mrf.mxu0 }
 0x1cd   :  { %v4150_v11 = vld [vmem:[#allocation7 + $0x80] sm:$0xff] }
 0x1ce   :  { %v13085_v17 = vpop.f32.mrf.mxu1  ;;  %11154 = vmatpush3.msra.mxu1 %v4150_v11 }
 0x1cf   :  { %v13087_v18 = vpop.f32.mrf.mxu0  ;;  %11213 = vmatprep.subr.mxu1 %v12305_v1 }
 0x1d0   :  { %v10829_v25 = vpop.f32.mrf.mxu1 }
 0x1d1   :  { %v10878_v26 = vpop.f32.mrf.mxu0 }
 0x1d2   :  { %v13094_v36 = vpop.f32.mrf.mxu1 }
 0x1d3   :  { %v13096_v37 = vpop.f32.mrf.mxu0 }
 0x1d4   :  { %v10832_v42 = vpop.f32.mrf.mxu1 }
 0x1d5   :  { %v10881_v43 = vpop.f32.mrf.mxu0 }
 0x1d6   :  { %v1143_v48 = vpop.f32.mrf.mxu1 }
 0x1d7   :  { %v13105_v49 = vpop.f32.mrf.mxu0  ;;  %v1144_v51 = vadd.f32 %v1143_v48, %v12830_v27  ;;  %v4460_v27 = vld [vmem:[#allocation7 + $0xe8] sm:$0xff] }
 0x1d8   :  { %v10843_v52 = vpop.f32.mrf.mxu1  ;;  %11181 = vmatpush3.msra.mxu0 %v4460_v27 }
 0x1d9   :  { %v10884_v54 = vpop.f32.mrf.mxu0  ;;  %v13114_v59 = vadd.f32 %v13073_v56, %v1144_v51  ;;  %v4459_v56 = vld [vmem:[#allocation7 + $0xe0] sm:$0xff]  ;;  %11182 = vmatprep.subr.mxu0 %v12305_v1 }
 0x1da   :  { %11183 = vmatpush3.msra.mxu0 %v4459_v56 }
 0x1db   :  { %v1148_v60 = vpop.f32.mrf.mxu1  ;;  %v1463_v61 = vpop.f32.mrf.mxu0  ;;  %11184 = vmatprep.subr.mxu0 %v12305_v1 }
 0x1dc   :  { %v1149_v63 = vadd.f32 %v1148_v60, %v13061_v45  ;;  %v4458_v45 = vld [vmem:[#allocation7 + $0xd8] sm:$0xff] }
 0x1dd   :  { %v10846_v0 = vpop.f32.mrf.mxu1  ;;  %v10887_v4 = vpop.f32.mrf.mxu0  ;;  %11185 = vmatpush3.msra.mxu0 %v4458_v45 }
 0x1de   :  { %v1473_v7 = vadd.f32 %v13079_v3, %v1149_v63  ;;  %11186 = vmatprep.subr.mxu0 %v12305_v1 }
 0x1df   :  { %v1153_v8 = vpop.f32.mrf.mxu1  ;;  %v1468_v9 = vpop.f32.mrf.mxu0  ;;  %11187 = vmatpush3.msra.mxu0 %v4457_v14 }
 0x1e0   :  { %v1154_v12 = vadd.f32 %v1153_v8, %v13066_v53  ;;  %11188 = vmatprep.subr.mxu0 %v12305_v1 }
 0x1e1   :  { %v10849_v31 = vpop.f32.mrf.mxu1  ;;  %v10890_v13 = vpop.f32.mrf.mxu0  ;;  %11189 = vmatpush3.msra.mxu0 %v4456_v19 }
 0x1e2   :  { %v1474_v3 = vadd.f32 %v13087_v18, %v1154_v12  ;;  %11190 = vmatprep.subr.mxu0 %v12305_v1 }
 0x1e3   :  { %v1158_v15 = vpop.f32.mrf.mxu1  ;;  %v2040_v16 = vpop.f32.mrf.mxu0  ;;  %11191 = vmatpush3.msra.mxu0 %v4455_v22 }
 0x1e4   :  { %v1159_v53 = vadd.f32 %v1158_v15, %v13071_v55  ;;  %11250 = vmatprep.subr.mxu0 %v12305_v1 }
 0x1e5   :  { %v10852_v20 = vpop.f32.mrf.mxu1  ;;  %v10930_v21 = vpop.f32.mrf.mxu0 }
 0x1e6   :  { %v1475_v23 = vadd.f32 %v13096_v37, %v1159_v53 }
 0x1e7   :  { %v1163_v18 = vpop.f32.mrf.mxu1  ;;  %v2045_v24 = vpop.f32.mrf.mxu0 }
 0x1e8   :  { %v1164_v25 = vadd.f32 %v1163_v18, %v13077_v2 }
 0x1e9   :  { %v10855_v26 = vpop.f32.mrf.mxu1  ;;  %v10933_v28 = vpop.f32.mrf.mxu0 }
 0x1ea   :  { %v1476_v55 = vadd.f32 %v13105_v49, %v1164_v25 }
 0x1eb   :  { %v1168_v29 = vpop.f32.mrf.mxu1  ;;  %v2050_v30 = vpop.f32.mrf.mxu0 }
 0x1ec   :  { %v1169_v32 = vadd.f32 %v1168_v29, %v13085_v17 }
 0x1ed   :  { %v10858_v33 = vpop.f32.mrf.mxu1  ;;  %v10936_v34 = vpop.f32.mrf.mxu0 }
 0x1ee   :  { %v1477_v35 = vadd.f32 %v1463_v61, %v1169_v32 }
 0x1ef   :  { %v1173_v37 = vpop.f32.mrf.mxu1  ;;  %v2055_v38 = vpop.f32.mrf.mxu0 }
 0x1f0   :  { %v1174_v39 = vadd.f32 %v1173_v37, %v13094_v36 }
 0x1f1   :  { %v10861_v40 = vpop.f32.mrf.mxu1  ;;  %v10939_v2 = vpop.f32.mrf.mxu0 }
 0x1f2   :  { %v1478_v41 = vadd.f32 %v1468_v9, %v1174_v39 }
 0x1f3   :  { %v1739_v42 = vpop.f32.mrf.mxu1  ;;  %v2060_v43 = vpop.f32.mrf.mxu0 }
 0x1f4   :  { %v1773_v44 = vadd.f32 %v1739_v42, %v13114_v59 }
 0x1f5   :  { %v10901_v46 = vpop.f32.mrf.mxu1  ;;  %v10942_v47 = vpop.f32.mrf.mxu0 }
 0x1f6   :  { %v2074_v48 = vadd.f32 %v2040_v16, %v1773_v44 }
 0x1f7   :  { %v1744_v49 = vpop.f32.mrf.mxu1  ;;  %v2065_v50 = vpop.f32.mrf.mxu0 }
 0x1f8   :  { %v1774_v17 = vadd.f32 %v1744_v49, %v1473_v7 }
 0x1f9   :  { %v10904_v51 = vpop.f32.mrf.mxu1  ;;  %v10945_v52 = vpop.f32.mrf.mxu0 }
 0x1fa   :  { %v2075_v54 = vadd.f32 %v2045_v24, %v1774_v17 }
 0x1fb   :  { %v1749_v57 = vpop.f32.mrf.mxu1  ;;  %v2070_v58 = vpop.f32.mrf.mxu0 }
 0x1fc   :  { %v1775_v60 = vadd.f32 %v1749_v57, %v1474_v3 }
 0x1fd   :  { %v10907_v36 = vpop.f32.mrf.mxu1  ;;  %v10948_v61 = vpop.f32.mrf.mxu0 }
 0x1fe   :  { %v2076_v27 = vadd.f32 %v2050_v30, %v1775_v60 }
 0x1ff   :  { %v1754_v62 = vpop.f32.mrf.mxu1  ;;  %v2644_v63 = vpop.f32.mrf.mxu0 }
 0x200   :  { %v1776_v0 = vadd.f32 %v1754_v62, %v1475_v23  ;;  %v13163_v62 = vld [vmem:[%s14676_s4] ss:$0 sm:$0xff] }
 0x201   :  { %v10910_v4 = vpop.f32.mrf.mxu1  ;;  %v10988_v59 = vpop.f32.mrf.mxu0 }
 0x202   :  { %v13142_v56 = vadd.f32 %v2055_v38, %v1776_v0 }
 0x203   :  { %v1759_v6 = vpop.f32.mrf.mxu1  ;;  %v2649_v8 = vpop.f32.mrf.mxu0 }
 0x204   :  { %v1777_v9 = vadd.f32 %v1759_v6, %v1476_v55 }
 0x205   :  { %v10913_v7 = vpop.f32.mrf.mxu1  ;;  %v10991_v45 = vpop.f32.mrf.mxu0 }
 0x206   :  { %v13144_v11 = vadd.f32 %v2060_v43, %v1777_v9 }
 0x207   :  { %v1764_v12 = vpop.f32.mrf.mxu1  ;;  %v2654_v31 = vpop.f32.mrf.mxu0 }
 0x208   :  { %v1778_v13 = vadd.f32 %v1764_v12, %v1477_v35 }
 0x209   :  { %v10916_v14 = vpop.f32.mrf.mxu1  ;;  %v10994_v3 = vpop.f32.mrf.mxu0 }
 0x20a   :  { %v13146_v15 = vadd.f32 %v2065_v50, %v1778_v13 }
 0x20b   :  { %v1769_v16 = vpop.f32.mrf.mxu1  ;;  %v13148_v19 = vpop.f32.mrf.mxu0 }
 0x20c   :  { %v1779_v53 = vadd.f32 %v1769_v16, %v1478_v41 }
 0x20d   :  { %v10919_v20 = vpop.f32.mrf.mxu1  ;;  %v10997_v21 = vpop.f32.mrf.mxu0 }
 0x20e   :  { %v13150_v22 = vadd.f32 %v2070_v58, %v1779_v53 }
 0x20f   :  { %v2342_v23 = vpop.f32.mrf.mxu1  ;;  %v13152_v18 = vpop.f32.mrf.mxu0 }
 0x210   :  { %v2376_v49 = vadd.f32 %v2342_v23, %v2074_v48 }
 0x211   :  { %v10959_v24 = vpop.f32.mrf.mxu1  ;;  %v11000_v25 = vpop.f32.mrf.mxu0 }
 0x212   :  { %v2678_v58 = vadd.f32 %v2644_v63, %v2376_v49 }
 0x213   :  { %v2347_v26 = vpop.f32.mrf.mxu1  ;;  %v13154_v28 = vpop.f32.mrf.mxu0 }
 0x214   :  { %v2377_v57 = vadd.f32 %v2347_v26, %v2075_v54 }
 0x215   :  { %v10962_v55 = vpop.f32.mrf.mxu1  ;;  %v11003_v29 = vpop.f32.mrf.mxu0 }
 0x216   :  { %v2679_v48 = vadd.f32 %v2649_v8, %v2377_v57 }
 0x217   :  { %v2352_v30 = vpop.f32.mrf.mxu1  ;;  %v13156_v32 = vpop.f32.mrf.mxu0 }
 0x218   :  { %v2378_v59 = vadd.f32 %v2352_v30, %v2076_v27  ;;  %v3564_v30 = vld [vmem:[#allocation3 + $0xa] sm:$0x3] }
 0x219   :  { %v10965_v33 = vpop.f32.mrf.mxu1  ;;  %v11006_v34 = vpop.f32.mrf.mxu0 }
 0x21a   :  { %v2680_v3 = vadd.f32 %v2654_v31, %v2378_v59  ;;  %v3565_v33 = vld [vmem:[#allocation3 + $0xc] sm:$0x3] }
 0x21b   :  { %v2357_v35 = vpop.f32.mrf.mxu1  ;;  %v3248_v37 = vpop.f32.mrf.mxu0 }
 0x21c   :  { %v2379_v16 = vadd.f32 %v2357_v35, %v13142_v56 }
 0x21d   :  { %v10968_v38 = vpop.f32.mrf.mxu1  ;;  %v11046_v39 = vpop.f32.mrf.mxu0 }
 0x21e   :  { %v2681_v34 = vadd.f32 %v13148_v19, %v2379_v16 }
 0x21f   :  { %v2362_v40 = vpop.f32.mrf.mxu1  ;;  %v3253_v2 = vpop.f32.mrf.mxu0 }
 0x220   :  { %v2380_v24 = vadd.f32 %v2362_v40, %v13144_v11 }
 0x221   :  { %v10971_v41 = vpop.f32.mrf.mxu1  ;;  %v11049_v42 = vpop.f32.mrf.mxu0 }
 0x222   :  { %v2682_v41 = vadd.f32 %v13152_v18, %v2380_v24  ;;  %v3642_v42 = vcombine.low %v3564_v30, %v3565_v33 }
 0x223   :  { %v2367_v43 = vpop.f32.mrf.mxu1  ;;  %v3258_v44 = vpop.f32.mrf.mxu0 }
 0x225   :  { %v10974_v46 = vpop.f32.mrf.mxu1  ;;  %v11052_v47 = vpop.f32.mrf.mxu0 }
 0x227   :  { %v2372_v50 = vpop.f32.mrf.mxu1  ;;  %v3263_v17 = vpop.f32.mrf.mxu0 }
 0x228   :  { %v2382_v49 = vadd.f32 %v2372_v50, %v13150_v22 }
 0x229   :  { %v10977_v51 = vpop.f32.mrf.mxu1  ;;  %v11055_v52 = vpop.f32.mrf.mxu0 }
 0x22b   :  { %v2946_v60 = vpop.f32.mrf.mxu1  ;;  %v13158_v36 = vpop.f32.mrf.mxu0 }
 0x22c   :  { %v2980_v61 = vadd.f32 %v2946_v60, %v2678_v58 }
 0x22d   :  { %v11017_v0 = vpop.f32.mrf.mxu1  ;;  %v11058_v4 = vpop.f32.mrf.mxu0 }
 0x22e   :  { %v3282_v6 = vadd.f32 %v3248_v37, %v2980_v61  ;;  %v3650_v0 = vrot.slane %v3642_v42, %v12387_v10 }
 0x22f   :  { %v2951_v9 = vpop.f32.mrf.mxu1  ;;  %v13165_v7 = vpop.f32.mrf.mxu0 }
 0x230   :  { %v3296_v54 = vadd.f32 %v13163_v62, %v3282_v6  ;;  %v2981_v63 = vadd.f32 %v2951_v9, %v2679_v48  ;;  %v2684_v48 = vadd.f32 %v13156_v32, %v2382_v49 }
 0x231   :  { %v11020_v45 = vpop.f32.mrf.mxu1  ;;  %v11061_v12 = vpop.f32.mrf.mxu0 }
 0x232   :  { %v3303_v13 = vmax.f32 %v3296_v54, 0.0  ;;  %v3283_v14 = vadd.f32 %v3253_v2, %v2981_v63 }
 0x233   :  { %v2956_v53 = vpop.f32.mrf.mxu1  ;;  %v13169_v20 = vpop.f32.mrf.mxu0 }
 0x234   :  { %v3347_v21 = vcombine.high %v3303_v13, %v3303_v13  ;;  %v3354_v27 = vrot.slane %v3303_v13, %v12387_v10  ;;  %v3297_v8 = vadd.f32 %v13163_v62, %v3283_v14  ;;  %v2982_v23 = vadd.f32 %v2956_v53, %v2680_v3 }
 0x235   :  { %v11023_v25 = vpop.f32.mrf.mxu1  ;;  %v11064_v26 = vpop.f32.mrf.mxu0 }
 0x236   :  { %v3361_v55 = vrot.slane %v3347_v21, %v12387_v10  ;;  %v3362_v29 = vcombine.high %v3354_v27, %v3354_v27  ;;  %3495 = vst.msk [vmem:[#allocation3 + $0x14] sm:$0x3] %vm3310_vm5, %v3354_v27  ;;  %v3304_v31 = vmax.f32 %v3297_v8, 0.0  ;;  %v3284_v56 = vadd.f32 %v3258_v44, %v2982_v23 }
 0x237   :  { %v2961_v35 = vpop.f32.mrf.mxu1  ;;  %v2381_v44 = vadd.f32 %v2367_v43, %v13146_v15 }
 0x238   :  { %v3363_v37 = vcombine.high %v3361_v55, %v3361_v55  ;;  %3496 = vst.msk [vmem:[#allocation3 + $0x16] sm:$0x3] %vm3310_vm5, %v3362_v29  ;;  %3497 = vst.msk [vmem:[#allocation3 + $0x18] sm:$0x3] %vm3310_vm5, %v3361_v55  ;;  %v3364_v11 = vcombine.high %v3304_v31, %v3304_v31  ;;  %v3371_v38 = vrot.slane %v3304_v31, %v12387_v10 }
 0x239   :  { %v3298_v39 = vadd.f32 %v13163_v62, %v3284_v56  ;;  %v2983_v40 = vadd.f32 %v2961_v35, %v2681_v34  ;;  %v11026_v2 = vpop.f32.mrf.mxu1  ;;  %v2683_v4 = vadd.f32 %v13154_v28, %v2381_v44 }
 0x23a   :  { %3498 = vst.msk [vmem:[#allocation3 + $0x1a] sm:$0x3] %vm3310_vm5, %v3363_v37  ;;  %v3378_v19 = vrot.slane %v3364_v11, %v12387_v10  ;;  %v3379_v46 = vcombine.high %v3371_v38, %v3371_v38  ;;  %3499 = vst.msk [vmem:[#allocation3 + $0x1c] sm:$0x3] %vm3310_vm5, %v3371_v38 }
 0x23b   :  { %v3305_v47 = vmax.f32 %v3298_v39, 0.0  ;;  %v3285_v51 = vadd.f32 %v3263_v17, %v2983_v40  ;;  %v2966_v52 = vpop.f32.mrf.mxu1 }
 0x23c   :  { %v3380_v57 = vcombine.high %v3378_v19, %v3378_v19  ;;  %3500 = vst.msk [vmem:[#allocation3 + $0x1e] sm:$0x3] %vm3310_vm5, %v3379_v46  ;;  %3501 = vst.msk [vmem:[#allocation3 + $0x20] sm:$0x3] %vm3310_vm5, %v3378_v19  ;;  %v2984_v43 = vadd.f32 %v2966_v52, %v2682_v41  ;;  %v3537_v46 = vld [vmem:[#allocation3 + $0x24] sm:$0x3] }
 0x23d   :  { %v3381_v18 = vcombine.high %v3305_v47, %v3305_v47  ;;  %v3388_v15 = vrot.slane %v3305_v47, %v12387_v10  ;;  %v3299_v58 = vadd.f32 %v13163_v62, %v3285_v51  ;;  %v11029_v60 = vpop.f32.mrf.mxu1  ;;  %v11993_v61 = vld [vmem:[#allocation3 + $0xe] ss:$6 sps:$4 sm:$0x33]  }
 0x23e   :  { %3502 = vst.msk [vmem:[#allocation3 + $0x26] sm:$0x3] %vm3310_vm5, %v3380_v57  ;;  %v3286_v17 = vadd.f32 %v13158_v36, %v2984_v43  ;;  %v3657_v9 = vrot.slane %v11993_v61, %v12387_v10  ;;  %v3531_v36 = vld [vmem:[#allocation3 + $0x14] sm:$0x3] }
 0x23f   :  { %v3395_v22 = vrot.slane %v3381_v18, %v12387_v10  ;;  %v3396_v50 = vcombine.high %v3388_v15, %v3388_v15  ;;  %3503 = vst.msk [vmem:[#allocation3 + $0x28] sm:$0x3] %vm3310_vm5, %v3388_v15  ;;  %v3306_v59 = vmax.f32 %v3299_v58, 0.0  ;;  %v2971_v6 = vpop.f32.mrf.mxu1  ;;  %v3568_v54 = vld [vmem:[#allocation3 + $0x16] sm:$0x3] }
 0x240   :  { %v3569_v63 = vld [vmem:[#allocation3 + $0x18] sm:$0x3]  ;;  %v3300_v12 = vadd.f32 %v13163_v62, %v3286_v17  ;;  %v2985_v13 = vadd.f32 %v2971_v6, %v2683_v4  ;;  %v3532_v3 = vld [vmem:[#allocation3 + $0x16] sm:$0x3]  ;;  %v3658_v32 = vcombine.low %v3650_v0, %v3657_v9 }
 0x241   :  { %v3397_v45 = vcombine.high %v3395_v22, %v3395_v22  ;;  %3504 = vst.msk [vmem:[#allocation3 + $0x2a] sm:$0x3] %vm3310_vm5, %v3396_v50  ;;  %3505 = vst.msk [vmem:[#allocation3 + $0x2c] sm:$0x3] %vm3310_vm5, %v3395_v22  ;;  %v3659_v14 = vcombine.low %v3568_v54, %v3569_v63  ;;  %v3398_v28 = vcombine.high %v3306_v59, %v3306_v59  ;;  %v11032_v53 = vpop.f32.mrf.mxu1  ;;  %v3570_v21 = vld [vmem:[#allocation3 + $0x1a] sm:$0x3] }
 0x242   :  { %v3405_v16 = vrot.slane %v3306_v59, %v12387_v10  ;;  %v3571_v27 = vld [vmem:[#allocation3 + $0x1c] sm:$0x3]  ;;  %v3534_v8 = vld [vmem:[#allocation3 + $0x1a] sm:$0x3]  ;;  %v3921_v23 = vcombine.low %v3531_v36, %v3532_v3  ;;  %v3307_v24 = vmax.f32 %v3300_v12, 0.0  ;;  %v3287_v25 = vadd.f32 %v13165_v7, %v2985_v13  ;;  %11085 = vmatmul.mubr.msk.f32.gmra.mxu1 %vm3744_vm6, %v3658_v32 }
 0x243   :  { %3506 = vst.msk [vmem:[#allocation3 + $0x2e] sm:$0x3] %vm3310_vm5, %v3397_v45  ;;  %v3660_v26 = vcombine.low %v3570_v21, %v3571_v27  ;;  %v3667_v55 = vrot.slane %v3659_v14, %v12387_v10  ;;  %v3533_v29 = vld [vmem:[#allocation3 + $0x18] sm:$0x3]  ;;  %v3412_v31 = vrot.slane %v3398_v28, %v12387_v10  ;;  %v2976_v30 = vpop.f32.mrf.mxu1  ;;  %v3572_v35 = vld [vmem:[#allocation3 + $0x1e] sm:$0x3]  ;;  %11087 = vmatprep.mubr.msk.f32.mxu1 %vm12306_vm0, %v12305_v1 }
 0x244   :  { %v3413_v56 = vcombine.high %v3405_v16, %v3405_v16  ;;  %3507 = vst.msk [vmem:[#allocation3 + $0x30] sm:$0x3] %vm3310_vm5, %v3405_v16  ;;  %v3922_v33 = vcombine.low %v3533_v29, %v3534_v8  ;;  %v3929_v34 = vrot.slane %v3921_v23, %v12387_v10  ;;  %v3573_v37 = vld [vmem:[#allocation3 + $0x20] sm:$0x3]  ;;  %v3415_v11 = vcombine.high %v3307_v24, %v3307_v24  ;;  %v3536_v18 = vld [vmem:[#allocation3 + $0x1e] sm:$0x3] }
 0x245   :  { %v3422_v7 = vrot.slane %v3307_v24, %v12387_v10  ;;  %v3301_v38 = vadd.f32 %v13163_v62, %v3287_v25  ;;  %v2986_v39 = vadd.f32 %v2976_v30, %v2684_v48  ;;  %v3414_v40 = vcombine.high %v3412_v31, %v3412_v31  ;;  %3509 = vst.msk [vmem:[#allocation3 + $0x38] sm:$0x3] %vm3310_vm5, %v3412_v31  ;;  %v3574_v42 = vld [vmem:[#allocation3 + $0x26] sm:$0x3]  ;;  %v11035_v47 = vpop.f32.mrf.mxu1  ;;  %v3535_v59 = vld [vmem:[#allocation3 + $0x1c] sm:$0x3] }
 0x246   :  { %3508 = vst.msk [vmem:[#allocation3 + $0x32] sm:$0x3] %vm3310_vm5, %v3413_v56  ;;  %v3674_v2 = vrot.slane %v3660_v26, %v12387_v10  ;;  %v3936_v41 = vrot.slane %v3922_v33, %v12387_v10  ;;  %v3575_v44 = vld [vmem:[#allocation3 + $0x28] sm:$0x3]  ;;  %v3676_v19 = vcombine.low %v3572_v35, %v3573_v37  ;;  %v3429_v49 = vrot.slane %v3415_v11, %v12387_v10  ;;  %v3538_v15 = vld [vmem:[#allocation3 + $0x26] sm:$0x3] }
 0x247   :  { %v3430_v51 = vcombine.high %v3422_v7, %v3422_v7  ;;  %3511 = vst.msk [vmem:[#allocation3 + $0x3c] sm:$0x3] %vm3310_vm5, %v3422_v7  ;;  %v3308_v52 = vmax.f32 %v3301_v38, 0.0  ;;  %v3288_v57 = vadd.f32 %v13169_v20, %v2986_v39  ;;  %3510 = vst.msk [vmem:[#allocation3 + $0x3a] sm:$0x3] %vm3310_vm5, %v3414_v40  ;;  %v3677_v60 = vcombine.low %v3574_v42, %v3575_v44 }
 0x248   :  { %v3675_v43 = vcombine.low %v3667_v55, %v3674_v2  ;;  %v3937_v58 = vcombine.low %v3929_v34, %v3936_v41  ;;  %v3684_v61 = vrot.slane %v3676_v19, %v12387_v10  ;;  %v3576_v0 = vld [vmem:[#allocation3 + $0x2a] sm:$0x3]  ;;  %v3577_v22 = vld [vmem:[#allocation3 + $0x2c] sm:$0x3]  ;;  %v3431_v50 = vcombine.high %v3429_v49, %v3429_v49  ;;  %3513 = vst.msk [vmem:[#allocation3 + $0x40] sm:$0x3] %vm3310_vm5, %v3429_v49 }
 0x249   :  { %3512 = vst.msk [vmem:[#allocation3 + $0x3e] sm:$0x3] %vm3310_vm5, %v3430_v51  ;;  %v3432_v17 = vcombine.high %v3308_v52, %v3308_v52  ;;  %v3439_v4 = vrot.slane %v3308_v52, %v12387_v10  ;;  %v3302_v20 = vadd.f32 %v13163_v62, %v3288_v57  ;;  %v3691_v6 = vrot.slane %v3677_v60, %v12387_v10  ;;  %v3540_v63 = vld [vmem:[#allocation3 + $0x2a] sm:$0x3]  ;;  %v13230_v12 = vld [vmem:[#allocation3 + $0x4] sm:$0x3] }
 0x24a   :  { %11088 = vmatmul.mubr.msk.f32.gmra.mxu1 %vm3744_vm6, %v3675_v43  ;;  %11125 = vmatmul.mubr.msk.f32.gmra.mxu0 %vm3744_vm6, %v3937_v58  ;;  %v3938_v48 = vcombine.low %v3535_v59, %v3536_v18  ;;  %v3939_v9 = vcombine.low %v3537_v46, %v3538_v15  ;;  %v3578_v54 = vld [vmem:[#allocation3 + $0x2e] sm:$0x3]  ;;  %v13232_v13 = vld [vmem:[#allocation3 + $0x6] sm:$0x3]  ;;  %3514 = vst.msk [vmem:[#allocation3 + $0x42] sm:$0x3] %vm3310_vm5, %v3431_v50 }
 0x24b   :  { %v3542_v45 = vld [vmem:[#allocation3 + $0x2e] sm:$0x3]  ;;  %v3446_v62 = vrot.slane %v3432_v17, %v12387_v10  ;;  %v3447_v14 = vcombine.high %v3439_v4, %v3439_v4  ;;  %3515 = vst.msk [vmem:[#allocation3 + $0x44] sm:$0x3] %vm3310_vm5, %v3439_v4  ;;  %v3309_v36 = vmax.f32 %v3302_v20, 0.0  ;;  %11090 = vmatprep.mubr.msk.f32.mxu1 %vm12306_vm0, %v12305_v1  ;;  %11127 = vmatprep.mubr.msk.f32.mxu0 %vm12306_vm0, %v12305_v1 }
 0x24c   :  { %v3579_v3 = vld [vmem:[#allocation3 + $0x30] sm:$0x3]  ;;  %v3693_v28 = vcombine.low %v3576_v0, %v3577_v22  ;;  %v3692_v16 = vcombine.low %v3684_v61, %v3691_v6  ;;  %v3946_v53 = vrot.slane %v3938_v48, %v12387_v10  ;;  %v3953_v32 = vrot.slane %v3939_v9, %v12387_v10  ;;  %v3539_v27 = vld [vmem:[#allocation3 + $0x28] sm:$0x3]  ;;  %v13245_v23 = vld [vmem:[#allocation3 + $0xa] sm:$0x3] }
 0x24d   :  { %v3694_v21 = vcombine.low %v3578_v54, %v3579_v3  ;;  %v13243_v8 = vld [vmem:[#allocation3 + $0x8] sm:$0x3]  ;;  %v3448_v24 = vcombine.high %v3446_v62, %v3446_v62  ;;  %3516 = vst.msk [vmem:[#allocation3 + $0x4a] sm:$0x3] %vm3310_vm5, %v3447_v14  ;;  %3517 = vst.msk [vmem:[#allocation3 + $0x4c] sm:$0x3] %vm3310_vm5, %v3446_v62  ;;  %v3449_v25 = vcombine.high %v3309_v36, %v3309_v36 }
 0x24e   :  { %v3456_v26 = vrot.slane %v3309_v36, %v12387_v10  ;;  %v3701_v55 = vrot.slane %v3693_v28, %v12387_v10  ;;  %v3541_v29 = vld [vmem:[#allocation3 + $0x2c] sm:$0x3]  ;;  %v11996_v31 = vld [vmem:[#allocation3 + $0x30] ss:$6 sps:$4 sm:$0x33]   ;;  %11091 = vmatmul.mubr.msk.f32.gmra.mxu1 %vm3744_vm6, %v3692_v16  ;;  %v3954_v56 = vcombine.low %v3946_v53, %v3953_v32  ;;  %v3955_v33 = vcombine.low %v3539_v27, %v3540_v63 }
 0x24f   :  { %v3708_v30 = vrot.slane %v3694_v21, %v12387_v10  ;;  %v3956_v34 = vcombine.low %v3541_v29, %v3542_v45  ;;  %v3583_v35 = vld [vmem:[#allocation3 + $0x3c] sm:$0x3]  ;;  %v11995_v37 = vld [vmem:[#allocation3 + $0x32] ss:$6 sps:$4 sm:$0x33]   ;;  %v3463_v11 = vrot.slane %v3449_v25, %v12387_v10  ;;  %11093 = vmatprep.mubr.msk.f32.mxu1 %vm12306_vm0, %v12305_v1  ;;  %v4186_v2 = vcombine.low %v13230_v12, %v13232_v13 }
 0x250   :  { %3518 = vst.msk [vmem:[#allocation3 + $0x4e] sm:$0x3] %vm3310_vm5, %v3448_v24  ;;  %v3464_v7 = vcombine.high %v3456_v26, %v3456_v26  ;;  %3519 = vst.msk [vmem:[#allocation3 + $0x50] sm:$0x3] %vm3310_vm5, %v3456_v26  ;;  %v3582_v38 = vld [vmem:[#allocation3 + $0x3a] sm:$0x3]  ;;  %11128 = vmatmul.mubr.msk.f32.gmra.mxu0 %vm3744_vm6, %v3954_v56  ;;  %v3963_v42 = vrot.slane %v3955_v33, %v12387_v10  ;;  %v4187_v43 = vcombine.low %v13243_v8, %v13245_v23 }
 0x251   :  { %v3545_v39 = vld [vmem:[#allocation3 + $0x38] sm:$0x3]  ;;  %v3546_v40 = vld [vmem:[#allocation3 + $0x3a] sm:$0x3]  ;;  %v3709_v41 = vcombine.low %v3701_v55, %v3708_v30  ;;  %v3970_v44 = vrot.slane %v3956_v34, %v12387_v10  ;;  %v3711_v19 = vcombine.low %v3582_v38, %v3583_v35  ;;  %v3584_v46 = vld [vmem:[#allocation3 + $0x3e] sm:$0x3]  ;;  %v3465_v51 = vcombine.high %v3463_v11, %v3463_v11  ;;  %11130 = vmatprep.mubr.msk.f32.mxu0 %vm12306_vm0, %v12305_v1 }
 0x252   :  { %v3585_v47 = vld [vmem:[#allocation3 + $0x40] sm:$0x3]  ;;  %v3548_v49 = vld [vmem:[#allocation3 + $0x3e] sm:$0x3]  ;;  %3520 = vst.msk [vmem:[#allocation3 + $0x52] sm:$0x3] %vm3310_vm5, %v3464_v7  ;;  %v3973_v52 = vcombine.low %v3545_v39, %v3546_v40  ;;  %v3718_v60 = vrot.slane %v11995_v37, %v12387_v10  ;;  %v3980_v4 = vrot.slane %v11996_v31, %v12387_v10  ;;  %v4194_v16 = vrot.slane %v4186_v2, %v12387_v10 }
 0x253   :  { %3521 = vst.msk [vmem:[#allocation3 + $0x54] sm:$0x3] %vm3310_vm5, %v3463_v11  ;;  %v3727_v57 = vcombine.low %v3584_v46, %v3585_v47  ;;  %v3547_v18 = vld [vmem:[#allocation3 + $0x3c] sm:$0x3]  ;;  %v3549_v15 = vld [vmem:[#allocation3 + $0x40] sm:$0x3]  ;;  %11094 = vmatmul.mubr.msk.f32.gmra.mxu1 %vm3744_vm6, %v3709_v41  ;;  %v3971_v58 = vcombine.low %v3963_v42, %v3970_v44  ;;  %v3725_v61 = vrot.slane %v3711_v19, %v12387_v10 }
 0x254   :  { %v3586_v0 = vld [vmem:[#allocation3 + $0x42] sm:$0x3]  ;;  %v3587_v22 = vld [vmem:[#allocation3 + $0x44] sm:$0x3]  ;;  %v3989_v17 = vcombine.low %v3547_v18, %v3548_v49  ;;  %3522 = vst.msk [vmem:[#allocation3 + $0x56] sm:$0x3] %vm3310_vm5, %v3465_v51  ;;  %11096 = vmatprep.mubr.msk.f32.mxu1 %vm12306_vm0, %v12305_v1  ;;  %v3987_v20 = vrot.slane %v3973_v52, %v12387_v10  ;;  %v4201_v53 = vrot.slane %v4187_v43, %v12387_v10 }
 0x255   :  { %v3550_v50 = vld [vmem:[#allocation3 + $0x42] sm:$0x3]  ;;  %v3728_v59 = vcombine.low %v3586_v0, %v3587_v22  ;;  %v4428_v48 = vld [vmem:[#allocation3 + $0x16] sm:$0x3]  ;;  %v4429_v9 = vld [vmem:[#allocation3 + $0x18] sm:$0x3]  ;;  %11131 = vmatmul.mubr.msk.f32.gmra.mxu0 %vm3744_vm6, %v3971_v58  ;;  %v3726_v54 = vcombine.low %v3718_v60, %v3725_v61  ;;  %v3735_v12 = vrot.slane %v3727_v57, %v12387_v10 }
 0x256   :  { %v3990_v6 = vcombine.low %v3549_v15, %v3550_v50  ;;  %v4426_v63 = vld [vmem:[#allocation3 + $0x12] sm:$0x3]  ;;  %11133 = vmatprep.mubr.msk.f32.mxu0 %vm12306_vm0, %v12305_v1  ;;  %v3988_v45 = vcombine.low %v3980_v4, %v3987_v20  ;;  %v4427_v14 = vld [vmem:[#allocation3 + $0x14] sm:$0x3]  ;;  %v4125_v36 = vld [vmem:[#allocation3 + $0xc] sm:$0x3]  ;;  %v3997_v28 = vrot.slane %v3989_v17, %v12387_v10  ;;  %v4492_v32 = vcombine.low %v4428_v48, %v4429_v9 }
 0x257   :  { %v3742_v13 = vrot.slane %v3728_v59, %v12387_v10  ;;  %v4126_v3 = vld [vmem:[#allocation3 + $0xe] sm:$0x3]  ;;  %11097 = vmatmul.mubr.msk.f32.gmra.mxu1 %vm3744_vm6, %v3726_v54  ;;  %v4430_v27 = vld [vmem:[#allocation3 + $0x1a] sm:$0x3]  ;;  %v4431_v8 = vld [vmem:[#allocation3 + $0x1c] sm:$0x3]  ;;  %v4491_v24 = vcombine.low %v4426_v63, %v4427_v14  ;;  %v4202_v31 = vcombine.low %v4194_v16, %v4201_v53 }
 0x258   :  { %v4004_v62 = vrot.slane %v3990_v6, %v12387_v10  ;;  %11099 = vmatprep.mubr.msk.f32.mxu1 %vm12306_vm0, %v12305_v1  ;;  %v4203_v25 = vcombine.low %v4125_v36, %v4126_v3  ;;  %v11997_v26 = vld [vmem:[#allocation3 + $0x10] ss:$6 sps:$4 sm:$0x33]   ;;  %v11998_v55 = vld [vmem:[#allocation3 + $0x1e] ss:$6 sps:$4 sm:$0x33]   ;;  %v4506_v56 = vrot.slane %v4492_v32, %v12387_v10  ;;  %v4508_v33 = vcombine.low %v4430_v27, %v4431_v8 }
 0x259   :  { %v3743_v21 = vcombine.low %v3735_v12, %v3742_v13  ;;  %11134 = vmatmul.mubr.msk.f32.gmra.mxu0 %vm3744_vm6, %v3988_v45  ;;  %v4132_v29 = vld [vmem:[#allocation3 + $0x1e] sm:$0x3]  ;;  %v4767_v30 = vld [vmem:[#allocation7 + $0x138] sm:$0xff]  ;;  %v4130_v34 = vld [vmem:[#allocation3 + $0x1a] sm:$0x3]  ;;  %v4499_v7 = vrot.slane %v4491_v24, %v12387_v10  ;;  %v4218_v39 = vrot.slane %v11997_v26, %v12387_v10  ;;  %v4523_v49 = vrot.slane %v11998_v55, %v12387_v10 }
 0x25a   :  { %v4005_v23 = vcombine.low %v3997_v28, %v4004_v62  ;;  %11136 = vmatprep.mubr.msk.f32.mxu0 %vm12306_vm0, %v12305_v1  ;;  %v4131_v35 = vld [vmem:[#allocation3 + $0x1c] sm:$0x3]  ;;  %v4436_v37 = vld [vmem:[#allocation3 + $0x2a] sm:$0x3]  ;;  %v4437_v11 = vld [vmem:[#allocation3 + $0x2c] sm:$0x3]  ;;  %v4211_v38 = vrot.slane %v4203_v25, %v12387_v10  ;;  %v4516_v47 = vrot.slane %v4508_v33, %v12387_v10 }
 0x25b   :  { %11100 = vmatmul.mubr.msk.f32.gmra.mxu1 %vm3744_vm6, %v3743_v21  ;;  %v4129_v40 = vld [vmem:[#allocation3 + $0x18] sm:$0x3]  ;;  %v4221_v2 = vcombine.low %v4131_v35, %v4132_v29  ;;  %v4434_v41 = vld [vmem:[#allocation3 + $0x26] sm:$0x3]  ;;  %v4435_v42 = vld [vmem:[#allocation3 + $0x28] sm:$0x3]  ;;  %v4507_v46 = vcombine.low %v4499_v7, %v4506_v56  ;;  %v4526_v52 = vcombine.low %v4436_v37, %v4437_v11 }
 0x25c   :  { %11155 = vmatprep.mubr.msk.f32.mxu1 %vm12306_vm0, %v12305_v1  ;;  %v4220_v44 = vcombine.low %v4129_v40, %v4130_v34  ;;  %v4136_v19 = vld [vmem:[#allocation3 + $0x2a] sm:$0x3]  ;;  %v4766_v51 = vld [vmem:[#allocation7 + $0x130] sm:$0xff]  ;;  %v4525_v15 = vcombine.low %v4434_v41, %v4435_v42  ;;  %v4135_v43 = vld [vmem:[#allocation3 + $0x28] sm:$0x3]  ;;  %v4219_v61 = vcombine.low %v4211_v38, %v4218_v39  ;;  %v4524_v54 = vcombine.low %v4516_v47, %v4523_v49 }
 0x25d   :  { %11137 = vmatmul.mubr.msk.f32.gmra.mxu0 %vm3744_vm6, %v4005_v23  ;;  %v4133_v57 = vld [vmem:[#allocation3 + $0x20] sm:$0x3]  ;;  %v4134_v18 = vld [vmem:[#allocation3 + $0x22] sm:$0x3]  ;;  %v4440_v58 = vld [vmem:[#allocation3 + $0x36] sm:$0x3]  ;;  %v4235_v22 = vrot.slane %v4221_v2, %v12387_v10  ;;  %v4238_v50 = vcombine.low %v4135_v43, %v4136_v19  ;;  %v4540_v63 = vrot.slane %v4526_v52, %v12387_v10 }
 0x25e   :  { %11192 = vmatprep.mubr.msk.f32.mxu0 %vm12306_vm0, %v12305_v1  ;;  %v4441_v60 = vld [vmem:[#allocation3 + $0x38] sm:$0x3]  ;;  %v4438_v17 = vld [vmem:[#allocation3 + $0x2e] sm:$0x3]  ;;  %v4439_v4 = vld [vmem:[#allocation3 + $0x30] sm:$0x3]  ;;  %v4228_v20 = vrot.slane %v4220_v44, %v12387_v10  ;;  %v4237_v6 = vcombine.low %v4133_v57, %v4134_v18  ;;  %v4533_v14 = vrot.slane %v4525_v15, %v12387_v10 }
 0x25f   :  { %11156 = vmatmul.mubr.msk.f32.vlgmr.msra.gmra.mxu1 %vm3744_vm6, %v4202_v31  ;;  %v4765_v0 = vld [vmem:[#allocation7 + $0x128] sm:$0xff]  ;;  %v4764_v59 = vld [vmem:[#allocation7 + $0x120] sm:$0xff]  ;;  %v4543_v45 = vcombine.low %v4440_v58, %v4441_v60  ;;  %v5073_v12 = vld [vmem:[#allocation7 + $0x178] sm:$0xff]  ;;  %v4542_v36 = vcombine.low %v4438_v17, %v4439_v4  ;;  %v4252_v32 = vrot.slane %v4238_v50, %v12387_v10 }
 0x260   :  { %11214 = vmatpush3.msra.mxu1 %v4767_v30  ;;  %11158 = vmatprep.mubr.msk.f32.mxu1 %vm12306_vm0, %v12305_v1  ;;  %v4138_v48 = vld [vmem:[#allocation3 + $0x2e] sm:$0x3]  ;;  %v4140_v9 = vld [vmem:[#allocation3 + $0x32] sm:$0x3]  ;;  %v4137_v13 = vld [vmem:[#allocation3 + $0x2c] sm:$0x3]  ;;  %v4236_v53 = vcombine.low %v4228_v20, %v4235_v22  ;;  %v4245_v23 = vrot.slane %v4237_v6, %v12387_v10  ;;  %v4541_v26 = vcombine.low %v4533_v14, %v4540_v63 }
 0x261   :  { %11193 = vmatmul.mubr.msk.f32.vlgmr.msra.gmra.mxu0 %vm3744_vm6, %v4507_v46  ;;  %11215 = vmatprep.subr.mxu1 %v12305_v1  ;;  %v4139_v62 = vld [vmem:[#allocation3 + $0x30] sm:$0x3]  ;;  %v4442_v3 = vld [vmem:[#allocation3 + $0x3a] sm:$0x3]  ;;  %v4444_v28 = vld [vmem:[#allocation3 + $0x3e] sm:$0x3]  ;;  %v4254_v25 = vcombine.low %v4137_v13, %v4138_v48  ;;  %v4557_v55 = vrot.slane %v4543_v45, %v12387_v10  ;;  %v4550_v11 = vrot.slane %v4542_v36, %v12387_v10 }
 0x262   :  { %11195 = vmatprep.mubr.msk.f32.mxu0 %vm12306_vm0, %v12305_v1  ;;  %11216 = vmatpush3.msra.mxu1 %v4766_v51  ;;  %v4445_v16 = vld [vmem:[#allocation3 + $0x40] sm:$0x3]  ;;  %v4255_v21 = vcombine.low %v4139_v62, %v4140_v9  ;;  %v4443_v27 = vld [vmem:[#allocation3 + $0x3c] sm:$0x3]  ;;  %v4144_v8 = vld [vmem:[#allocation3 + $0x3e] sm:$0x3]  ;;  %v4253_v37 = vcombine.low %v4245_v23, %v4252_v32 }
 0x263   :  { %11159 = vmatmul.mubr.msk.f32.gmra.mxu1 %vm3744_vm6, %v4219_v61  ;;  %11217 = vmatprep.subr.mxu1 %v12305_v1  ;;  %v4763_v24 = vld [vmem:[#allocation7 + $0x118] sm:$0xff]  ;;  %v4560_v29 = vcombine.low %v4444_v28, %v4445_v16  ;;  %v4143_v31 = vld [vmem:[#allocation3 + $0x3c] sm:$0x3]  ;;  %v4559_v30 = vcombine.low %v4442_v3, %v4443_v27  ;;  %v4449_v35 = vld [vmem:[#allocation3 + $0x4c] sm:$0x3]  ;;  %v4262_v39 = vrot.slane %v4254_v25, %v12387_v10 }
 0x264   :  { %11161 = vmatprep.mubr.msk.f32.mxu1 %vm12306_vm0, %v12305_v1  ;;  %11218 = vmatpush3.msra.mxu1 %v4765_v0  ;;  %v5072_v56 = vld [vmem:[#allocation7 + $0x170] sm:$0xff]  ;;  %v4272_v33 = vcombine.low %v4143_v31, %v4144_v8  ;;  %v4448_v34 = vld [vmem:[#allocation3 + $0x4a] sm:$0x3]  ;;  %v4269_v7 = vrot.slane %v4255_v21, %v12387_v10  ;;  %v11999_v38 = vld [vmem:[#allocation3 + $0x34] ss:$6 sps:$4 sm:$0x33]   ;;  %v4558_v42 = vcombine.low %v4550_v11, %v4557_v55 }
 0x265   :  { %11196 = vmatmul.mubr.msk.f32.gmra.mxu0 %vm3744_vm6, %v4524_v54  ;;  %11219 = vmatprep.subr.mxu1 %v12305_v1  ;;  %v4146_v40 = vld [vmem:[#allocation3 + $0x42] sm:$0x3]  ;;  %v4147_v2 = vld [vmem:[#allocation3 + $0x44] sm:$0x3]  ;;  %v4148_v41 = vld [vmem:[#allocation3 + $0x46] sm:$0x3]  ;;  %v4574_v44 = vrot.slane %v4560_v29, %v12387_v10  ;;  %v4577_v49 = vcombine.low %v4448_v34, %v4449_v35  ;;  %v4567_v51 = vrot.slane %v4559_v30, %v12387_v10 }
 0x266   :  { %11198 = vmatprep.mubr.msk.f32.mxu0 %vm12306_vm0, %v12305_v1  ;;  %11220 = vmatpush3.msra.mxu1 %v4764_v59  ;;  %v5071_v19 = vld [vmem:[#allocation7 + $0x168] sm:$0xff]  ;;  %v4762_v46 = vld [vmem:[#allocation7 + $0x110] sm:$0xff]  ;;  %v4286_v52 = vrot.slane %v4272_v33, %v12387_v10  ;;  %v4452_v18 = vld [vmem:[#allocation3 + $0x52] sm:$0x3]  ;;  %v4270_v43 = vcombine.low %v4262_v39, %v4269_v7  ;;  %v4289_v60 = vcombine.low %v4147_v2, %v4148_v41 }
 0x267   :  { %11162 = vmatmul.mubr.msk.f32.gmra.mxu1 %vm3744_vm6, %v4236_v53  ;;  %11221 = vmatprep.subr.mxu1 %v12305_v1  ;;  %v12000_v47 = vld [vmem:[#allocation3 + $0x42] ss:$6 sps:$4 sm:$0x33]   ;;  %v4145_v57 = vld [vmem:[#allocation3 + $0x40] sm:$0x3]  ;;  %v4279_v22 = vrot.slane %v11999_v38, %v12387_v10  ;;  %v4575_v17 = vcombine.low %v4567_v51, %v4574_v44  ;;  %v5070_v4 = vld [vmem:[#allocation7 + $0x160] sm:$0xff]  ;;  %v4591_v20 = vrot.slane %v4577_v49, %v12387_v10 }
 0x268   :  { %11164 = vmatprep.mubr.msk.f32.mxu1 %vm12306_vm0, %v12305_v1  ;;  %11251 = vmatpush3.msra.mxu0 %v5073_v12  ;;  %v4453_v15 = vld [vmem:[#allocation3 + $0x54] sm:$0x3]  ;;  %v4288_v58 = vcombine.low %v4145_v57, %v4146_v40  ;;  %v4450_v61 = vld [vmem:[#allocation3 + $0x4e] sm:$0x3]  ;;  %v4451_v0 = vld [vmem:[#allocation3 + $0x50] sm:$0x3]  ;;  %v4584_v9 = vrot.slane %v12000_v47, %v12387_v10  ;;  %v4303_v36 = vrot.slane %v4289_v60, %v12387_v10 }
 0x269   :  { %11199 = vmatmul.mubr.msk.f32.gmra.mxu0 %vm3744_vm6, %v4541_v26  ;;  %11222 = vmatpush3.msra.mxu1 %v4763_v24  ;;  %v4734_v50 = vld [vmem:[#allocation3 + $0x1a] sm:$0x3]  ;;  %v4594_v59 = vcombine.low %v4452_v18, %v4453_v15  ;;  %v4732_v6 = vld [vmem:[#allocation3 + $0x16] sm:$0x3]  ;;  %v4287_v48 = vcombine.low %v4279_v22, %v4286_v52  ;;  %v4593_v54 = vcombine.low %v4450_v61, %v4451_v0  ;;  %v4733_v63 = vld [vmem:[#allocation3 + $0x18] sm:$0x3] }
 0x26a   :  { %11201 = vmatprep.mubr.msk.f32.mxu0 %vm12306_vm0, %v12305_v1  ;;  %11252 = vmatprep.subr.mxu0 %v12305_v1  ;;  %v5039_v45 = vld [vmem:[#allocation3 + $0x1a] sm:$0x3]  ;;  %v5040_v12 = vld [vmem:[#allocation3 + $0x1c] sm:$0x3]  ;;  %v5069_v62 = vld [vmem:[#allocation7 + $0x158] sm:$0xff]  ;;  %v4296_v14 = vrot.slane %v4288_v58, %v12387_v10  ;;  %v4797_v28 = vcombine.low %v4733_v63, %v4734_v50  ;;  %v4592_v21 = vcombine.low %v4584_v9, %v4591_v20 }
 0x26b   :  { %11165 = vmatmul.mubr.msk.f32.gmra.mxu1 %vm3744_vm6, %v4253_v37  ;;  %11253 = vmatpush3.msra.mxu0 %v5072_v56  ;;  %v4761_v13 = vld [vmem:[#allocation7 + $0x108] sm:$0xff]  ;;  %v4608_v27 = vrot.slane %v4594_v59, %v12387_v10  ;;  %v5103_v8 = vcombine.low %v5039_v45, %v5040_v12  ;;  %v4736_v23 = vld [vmem:[#allocation3 + $0x1e] sm:$0x3]  ;;  %v4601_v25 = vrot.slane %v4593_v54, %v12387_v10  ;;  %v5042_v55 = vld [vmem:[#allocation3 + $0x20] sm:$0x3] }
 0x26c   :  { %11167 = vmatprep.mubr.msk.f32.mxu1 %vm12306_vm0, %v12305_v1  ;;  %11254 = vmatprep.subr.mxu0 %v12305_v1  ;;  %v4731_v3 = vld [vmem:[#allocation3 + $0x14] sm:$0x3]  ;;  %v5037_v53 = vld [vmem:[#allocation3 + $0x16] sm:$0x3]  ;;  %v5038_v32 = vld [vmem:[#allocation3 + $0x18] sm:$0x3]  ;;  %v4304_v29 = vcombine.low %v4296_v14, %v4303_v36  ;;  %v4811_v31 = vrot.slane %v4797_v28, %v12387_v10 }
 0x26d   :  { %11202 = vmatmul.mubr.msk.f32.gmra.mxu0 %vm3744_vm6, %v4558_v42  ;;  %11223 = vmatprep.subr.mxu1 %v12305_v1  ;;  %v4796_v16 = vcombine.low %v4731_v3, %v4732_v6  ;;  %v5068_v24 = vld [vmem:[#allocation7 + $0x150] sm:$0xff]  ;;  %v5102_v56 = vcombine.low %v5037_v53, %v5038_v32  ;;  %v4760_v34 = vld [vmem:[#allocation7 + $0x100] sm:$0xff]  ;;  %v4609_v7 = vcombine.low %v4601_v25, %v4608_v27  ;;  %v5067_v38 = vld [vmem:[#allocation7 + $0x148] sm:$0xff] }
 0x26e   :  { %11204 = vmatprep.mubr.msk.f32.mxu0 %vm12306_vm0, %v12305_v1  ;;  %11255 = vmatpush3.msra.mxu0 %v5071_v19  ;;  %v5041_v26 = vld [vmem:[#allocation3 + $0x1e] sm:$0x3]  ;;  %v4735_v30 = vld [vmem:[#allocation3 + $0x1c] sm:$0x3]  ;;  %v5117_v39 = vrot.slane %v5103_v8, %v12387_v10  ;;  %v4742_v2 = vld [vmem:[#allocation3 + $0x2e] sm:$0x3] }
 0x26f   :  { %11168 = vmatmul.mubr.msk.f32.gmra.mxu1 %vm3744_vm6, %v4270_v43  ;;  %11256 = vmatprep.subr.mxu0 %v12305_v1  ;;  %v12001_v33 = vld [vmem:[#allocation3 + $0x20] ss:$6 sps:$4 sm:$0x33]   ;;  %v4804_v35 = vrot.slane %v4796_v16, %v12387_v10  ;;  %v4813_v37 = vcombine.low %v4735_v30, %v4736_v23  ;;  %v12002_v11 = vld [vmem:[#allocation3 + $0x22] ss:$6 sps:$4 sm:$0x33]   ;;  %v5119_v40 = vcombine.low %v5041_v26, %v5042_v55 }
 0x270   :  { %11224 = vmatpush3.msra.mxu1 %v4762_v46  ;;  %11170 = vmatprep.mubr.msk.f32.mxu1 %vm12306_vm0, %v12305_v1  ;;  %v5047_v41 = vld [vmem:[#allocation3 + $0x2e] sm:$0x3]  ;;  %v5048_v42 = vld [vmem:[#allocation3 + $0x30] sm:$0x3]  ;;  %v5110_v46 = vrot.slane %v5102_v56, %v12387_v10  ;;  %v4828_v47 = vrot.slane %v12001_v33, %v12387_v10  ;;  %v4740_v49 = vld [vmem:[#allocation3 + $0x2a] sm:$0x3]  ;;  %v5134_v57 = vrot.slane %v12002_v11, %v12387_v10 }
 0x271   :  { %11205 = vmatmul.mubr.msk.f32.gmra.mxu0 %vm3744_vm6, %v4575_v17  ;;  %11225 = vmatprep.subr.mxu1 %v12305_v1  ;;  %v5066_v44 = vld [vmem:[#allocation7 + $0x140] sm:$0xff]  ;;  %v4812_v19 = vcombine.low %v4804_v35, %v4811_v31  ;;  %v4821_v52 = vrot.slane %v4813_v37, %v12387_v10  ;;  %v5045_v15 = vld [vmem:[#allocation3 + $0x2a] sm:$0x3]  ;;  %v5127_v61 = vrot.slane %v5119_v40, %v12387_v10  ;;  %v4739_v0 = vld [vmem:[#allocation3 + $0x28] sm:$0x3] }
 0x272   :  { %11207 = vmatprep.mubr.msk.f32.mxu0 %vm12306_vm0, %v12305_v1  ;;  %11257 = vmatpush3.msra.mxu0 %v5070_v4  ;;  %v4741_v51 = vld [vmem:[#allocation3 + $0x2c] sm:$0x3]  ;;  %v5118_v58 = vcombine.low %v5110_v46, %v5117_v39  ;;  %v5379_v60 = vld [vmem:[#allocation7 + $0x1b8] sm:$0xff]  ;;  %v5137_v22 = vcombine.low %v5047_v41, %v5048_v42  ;;  %v4746_v50 = vld [vmem:[#allocation3 + $0x3a] sm:$0x3]  ;;  %v4830_v17 = vcombine.low %v4739_v0, %v4740_v49 }
 0x273   :  { %11171 = vmatmul.mubr.msk.f32.gmra.mxu1 %vm3744_vm6, %v4287_v48  ;;  %11258 = vmatprep.subr.mxu0 %v12305_v1  ;;  %v4831_v18 = vcombine.low %v4741_v51, %v4742_v2  ;;  %v5046_v43 = vld [vmem:[#allocation3 + $0x2c] sm:$0x3]  ;;  %v5051_v4 = vld [vmem:[#allocation3 + $0x3a] sm:$0x3]  ;;  %v5052_v20 = vld [vmem:[#allocation3 + $0x3c] sm:$0x3]  ;;  %v4829_v54 = vcombine.low %v4821_v52, %v4828_v47  ;;  %v5135_v14 = vcombine.low %v5127_v61, %v5134_v57 }
 0x274   :  { %11226 = vmatpush3.msra.mxu1 %v4761_v13  ;;  %11259 = vmatpush3.msra.mxu0 %v5069_v62  ;;  %v5378_v59 = vld [vmem:[#allocation7 + $0x1b0] sm:$0xff]  ;;  %v5136_v6 = vcombine.low %v5045_v15, %v5046_v43  ;;  %v4744_v48 = vld [vmem:[#allocation3 + $0x32] sm:$0x3]  ;;  %v4745_v9 = vld [vmem:[#allocation3 + $0x38] sm:$0x3]  ;;  %v5151_v36 = vrot.slane %v5137_v22, %v12387_v10  ;;  %v5154_v28 = vcombine.low %v5051_v4, %v5052_v20 }
 0x275   :  { %11208 = vmatmul.mubr.msk.f32.gmra.mxu0 %vm3744_vm6, %v4592_v21  ;;  %11260 = vmatprep.subr.mxu0 %v12305_v1  ;;  %v5377_v63 = vld [vmem:[#allocation7 + $0x1a8] sm:$0xff]  ;;  %v4845_v45 = vrot.slane %v4831_v18, %v12387_v10  ;;  %v4848_v12 = vcombine.low %v4745_v9, %v4746_v50  ;;  %v5049_v13 = vld [vmem:[#allocation3 + $0x32] sm:$0x3]  ;;  %v4743_v3 = vld [vmem:[#allocation3 + $0x30] sm:$0x3]  ;;  %v4838_v32 = vrot.slane %v4830_v17, %v12387_v10 }
 0x276   :  { %11173 = vmatprep.mubr.msk.f32.mxu1 %vm12306_vm0, %v12305_v1  ;;  %11210 = vmatprep.mubr.msk.f32.mxu0 %vm12306_vm0, %v12305_v1  ;;  %v5050_v62 = vld [vmem:[#allocation3 + $0x34] sm:$0x3]  ;;  %v5685_v16 = vld [vmem:[#allocation7 + $0x1f8] sm:$0xff]  ;;  %v4750_v53 = vld [vmem:[#allocation3 + $0x42] sm:$0x3]  ;;  %v4847_v21 = vcombine.low %v4743_v3, %v4744_v48 }
 0x277   :  { %11261 = vmatpush3.msra.mxu0 %v5068_v24  ;;  %11174 = vmatmul.mubr.msk.f32.gmra.mxu1 %vm3744_vm6, %v4304_v29  ;;  %v4748_v27 = vld [vmem:[#allocation3 + $0x3e] sm:$0x3]  ;;  %v5055_v8 = vld [vmem:[#allocation3 + $0x42] sm:$0x3]  ;;  %v5056_v23 = vld [vmem:[#allocation3 + $0x44] sm:$0x3]  ;;  %v5144_v24 = vrot.slane %v5136_v6, %v12387_v10  ;;  %v5153_v25 = vcombine.low %v5049_v13, %v5050_v62  ;;  %v4846_v55 = vcombine.low %v4838_v32, %v4845_v45 }
 0x278   :  { %11227 = vmatprep.subr.mxu1 %v12305_v1  ;;  %11262 = vmatprep.subr.mxu0 %v12305_v1  ;;  %v4749_v26 = vld [vmem:[#allocation3 + $0x40] sm:$0x3]  ;;  %v4862_v29 = vrot.slane %v4848_v12, %v12387_v10  ;;  %v5053_v56 = vld [vmem:[#allocation3 + $0x3e] sm:$0x3]  ;;  %v4747_v35 = vld [vmem:[#allocation3 + $0x3c] sm:$0x3]  ;;  %v5171_v37 = vcombine.low %v5055_v8, %v5056_v23 }
 0x279   :  { %11211 = vmatmul.mubr.msk.f32.gmra.mxu0 %vm3744_vm6, %v4609_v7  ;;  %11228 = vmatpush3.msra.mxu1 %v4760_v34  ;;  %v4865_v31 = vcombine.low %v4749_v26, %v4750_v53  ;;  %v5054_v30 = vld [vmem:[#allocation3 + $0x40] sm:$0x3]  ;;  %v5152_v33 = vcombine.low %v5144_v24, %v5151_v36  ;;  %v5168_v34 = vrot.slane %v5154_v28, %v12387_v10  ;;  %v4754_v11 = vld [vmem:[#allocation3 + $0x4e] sm:$0x3]  ;;  %v5060_v2 = vld [vmem:[#allocation3 + $0x50] sm:$0x3] }
 0x27a   :  { %11263 = vmatpush3.msra.mxu0 %v5067_v38  ;;  %11229 = vmatprep.mubr.msk.f32.mxu1 %vm12306_vm0, %v12305_v1  ;;  %v5376_v7 = vld [vmem:[#allocation7 + $0x1a0] sm:$0xff]  ;;  %v4855_v38 = vrot.slane %v4847_v21, %v12387_v10  ;;  %v4864_v39 = vcombine.low %v4747_v35, %v4748_v27  ;;  %v5161_v41 = vrot.slane %v5153_v25, %v12387_v10  ;;  %v5684_v42 = vld [vmem:[#allocation7 + $0x1f0] sm:$0xff]  ;;  %v5375_v52 = vld [vmem:[#allocation7 + $0x198] sm:$0xff] }
 0x27b   :  { %11264 = vmatprep.subr.mxu0 %v12305_v1  ;;  %11266 = vmatprep.mubr.msk.f32.mxu0 %vm12306_vm0, %v12305_v1  ;;  %v5059_v40 = vld [vmem:[#allocation3 + $0x4e] sm:$0x3]  ;;  %v4879_v47 = vrot.slane %v4865_v31, %v12387_v10  ;;  %v5185_v57 = vrot.slane %v5171_v37, %v12387_v10  ;;  %v5064_v15 = vld [vmem:[#allocation3 + $0x58] sm:$0x3]  ;;  %v5063_v50 = vld [vmem:[#allocation3 + $0x56] sm:$0x3] }
 0x27c   :  { %11265 = vmatpush3.msra.mxu0 %v5066_v44  ;;  %11287 = vmatprep.subr.mxu1 %v12305_v1  ;;  %v5170_v44 = vcombine.low %v5053_v56, %v5054_v30  ;;  %v4863_v46 = vcombine.low %v4855_v38, %v4862_v29  ;;  %v5169_v51 = vcombine.low %v5161_v41, %v5168_v34  ;;  %v5683_v0 = vld [vmem:[#allocation7 + $0x1e8] sm:$0xff]  ;;  %v12004_v22 = vld [vmem:[#allocation3 + $0x46] ss:$6 sps:$4 sm:$0x33]   ;;  %v4756_v20 = vld [vmem:[#allocation3 + $0x52] sm:$0x3] }
 0x27d   :  { %11230 = vmatmul.mubr.msk.f32.vlgmr.msra.gmra.mxu1 %vm3744_vm6, %v4812_v19  ;;  %11267 = vmatmul.mubr.msk.f32.vlgmr.msra.gmra.mxu0 %vm3744_vm6, %v5118_v58  ;;  %v4753_v19 = vld [vmem:[#allocation3 + $0x4c] sm:$0x3]  ;;  %v5188_v18 = vcombine.low %v5059_v40, %v5060_v2  ;;  %v4872_v43 = vrot.slane %v4864_v39, %v12387_v10  ;;  %v12003_v58 = vld [vmem:[#allocation3 + $0x44] ss:$6 sps:$4 sm:$0x33]   ;;  %v5374_v48 = vld [vmem:[#allocation7 + $0x190] sm:$0xff]  ;;  %v5205_v62 = vcombine.low %v5063_v50, %v5064_v15 }
 0x27e   :  { %11288 = vmatpush3.msra.mxu1 %v5379_v60  ;;  %11232 = vmatprep.mubr.msk.f32.mxu1 %vm12306_vm0, %v12305_v1  ;;  %v4882_v49 = vcombine.low %v4753_v19, %v4754_v11  ;;  %v4758_v60 = vld [vmem:[#allocation3 + $0x56] sm:$0x3]  ;;  %v5178_v61 = vrot.slane %v5170_v44, %v12387_v10  ;;  %v5062_v45 = vld [vmem:[#allocation3 + $0x54] sm:$0x3]  ;;  %v4889_v12 = vrot.slane %v12003_v58, %v12387_v10  ;;  %v4755_v13 = vld [vmem:[#allocation3 + $0x50] sm:$0x3] }
 0x27f   :  { %11269 = vmatprep.mubr.msk.f32.mxu0 %vm12306_vm0, %v12305_v1  ;;  %11289 = vmatprep.subr.mxu1 %v12305_v1  ;;  %v4880_v17 = vcombine.low %v4872_v43, %v4879_v47  ;;  %v5202_v9 = vrot.slane %v5188_v18, %v12387_v10  ;;  %v5682_v36 = vld [vmem:[#allocation7 + $0x1e0] sm:$0xff]  ;;  %v5195_v3 = vrot.slane %v12004_v22, %v12387_v10  ;;  %v5344_v53 = vld [vmem:[#allocation3 + $0x26] sm:$0x3]  ;;  %v5345_v27 = vld [vmem:[#allocation3 + $0x28] sm:$0x3] }
 0x280   :  { %11290 = vmatpush3.msra.mxu1 %v5378_v59  ;;  %11324 = vmatprep.subr.mxu0 %v12305_v1  ;;  %v4896_v4 = vrot.slane %v4882_v49, %v12387_v10  ;;  %v4757_v59 = vld [vmem:[#allocation3 + $0x54] sm:$0x3]  ;;  %v5186_v6 = vcombine.low %v5178_v61, %v5185_v57  ;;  %v4898_v28 = vcombine.low %v4755_v13, %v4756_v20  ;;  %v5651_v8 = vld [vmem:[#allocation3 + $0x2a] sm:$0x3]  ;;  %v5652_v23 = vld [vmem:[#allocation3 + $0x2c] sm:$0x3] }
 0x281   :  { %11233 = vmatmul.mubr.msk.f32.gmra.mxu1 %vm3744_vm6, %v4829_v54  ;;  %11270 = vmatmul.mubr.msk.f32.gmra.mxu0 %vm3744_vm6, %v5135_v14  ;;  %v4899_v54 = vcombine.low %v4757_v59, %v4758_v60  ;;  %v5346_v14 = vld [vmem:[#allocation3 + $0x2a] sm:$0x3]  ;;  %v5203_v24 = vcombine.low %v5195_v3, %v5202_v9  ;;  %v5373_v25 = vld [vmem:[#allocation7 + $0x188] sm:$0xff]  ;;  %v5649_v29 = vld [vmem:[#allocation3 + $0x26] sm:$0x3]  ;;  %v5219_v30 = vrot.slane %v5205_v62, %v12387_v10  ;;  %v3825_v60 = vpop.f32.mrf.mxu1 }
 0x282   :  { %11291 = vmatprep.subr.mxu1 %v12305_v1  ;;  %11235 = vmatprep.mubr.msk.f32.mxu1 %vm12306_vm0, %v12305_v1  ;;  %v4897_v32 = vcombine.low %v4889_v12, %v4896_v4  ;;  %v5650_v31 = vld [vmem:[#allocation3 + $0x28] sm:$0x3]  ;;  %v5680_v34 = vld [vmem:[#allocation7 + $0x1d0] sm:$0xff]  ;;  %v4906_v35 = vrot.slane %v4898_v28, %v12387_v10  ;;  %v5715_v11 = vcombine.low %v5651_v8, %v5652_v23  ;;  %v5347_v39 = vld [vmem:[#allocation3 + $0x2c] sm:$0x3]  ;;  %v4086_v12 = vpop.f32.mrf.mxu0 }
 0x283   :  { %11272 = vmatprep.mubr.msk.f32.mxu0 %vm12306_vm0, %v12305_v1  ;;  %11292 = vmatpush3.msra.mxu1 %v5377_v63  ;;  %v5061_v63 = vld [vmem:[#allocation3 + $0x52] sm:$0x3]  ;;  %v4913_v26 = vrot.slane %v4899_v54, %v12387_v10  ;;  %v5681_v56 = vld [vmem:[#allocation7 + $0x1d8] sm:$0xff]  ;;  %v5714_v38 = vcombine.low %v5649_v29, %v5650_v31  ;;  %v5653_v40 = vld [vmem:[#allocation3 + $0x2e] sm:$0x3]  ;;  %v13477_v28 = vadd.f32 %v4086_v12, %v3825_v60 }
 0x284   :  { %11293 = vmatprep.subr.mxu1 %v12305_v1  ;;  %11325 = vmatpush3.msra.mxu0 %v5685_v16  ;;  %v5343_v16 = vld [vmem:[#allocation3 + $0x24] sm:$0x3]  ;;  %v5204_v21 = vcombine.low %v5061_v63, %v5062_v45  ;;  %v5654_v2 = vld [vmem:[#allocation3 + $0x30] sm:$0x3]  ;;  %v5679_v49 = vld [vmem:[#allocation7 + $0x1c8] sm:$0xff]  ;;  %v5729_v57 = vrot.slane %v5715_v11, %v12387_v10 }
 0x285   :  { %11236 = vmatmul.mubr.msk.f32.gmra.mxu1 %vm3744_vm6, %v4846_v55  ;;  %11273 = vmatmul.mubr.msk.f32.gmra.mxu0 %vm3744_vm6, %v5152_v33  ;;  %v5409_v55 = vcombine.low %v5345_v27, %v5346_v14  ;;  %v5348_v33 = vld [vmem:[#allocation3 + $0x2e] sm:$0x3]  ;;  %v5408_v37 = vcombine.low %v5343_v16, %v5344_v53  ;;  %v4914_v41 = vcombine.low %v4906_v35, %v4913_v26  ;;  %v13455_v19 = vld [vmem:[#allocation3 + $0x30] ss:$6 sps:$4 sm:$0x33]   ;;  %v5991_v62 = vld [vmem:[#allocation7 + $0x238] sm:$0xff]  ;;  %v11120_v27 = vpop.f32.mrf.mxu0 }
 0x286   :  { %11238 = vmatprep.mubr.msk.f32.mxu1 %vm12306_vm0, %v12305_v1  ;;  %11275 = vmatprep.mubr.msk.f32.mxu0 %vm12306_vm0, %v12305_v1  ;;  %v5425_v44 = vcombine.low %v5347_v39, %v5348_v33  ;;  %v5372_v47 = vld [vmem:[#allocation7 + $0x180] sm:$0xff]  ;;  %v5731_v18 = vcombine.low %v5653_v40, %v5654_v2  ;;  %v5354_v15 = vld [vmem:[#allocation3 + $0x3e] sm:$0x3]  ;;  %v5660_v58 = vld [vmem:[#allocation3 + $0x40] sm:$0x3]  ;;  %v5440_v4 = vrot.slane %v13455_v19, %v12387_v10 }
 0x287   :  { %11294 = vmatpush3.msra.mxu1 %v5376_v7  ;;  %11326 = vmatprep.subr.mxu0 %v12305_v1  ;;  %v5212_v7 = vrot.slane %v5204_v21, %v12387_v10  ;;  %v5659_v43 = vld [vmem:[#allocation3 + $0x3e] sm:$0x3]  ;;  %v5678_v61 = vld [vmem:[#allocation7 + $0x1c0] sm:$0xff]  ;;  %v5352_v22 = vld [vmem:[#allocation3 + $0x3a] sm:$0x3]  ;;  %v13486_v31 = vpop.f32.mrf.mxu0 }
 0x288   :  { %11295 = vmatprep.subr.mxu1 %v12305_v1  ;;  %11327 = vmatpush3.msra.mxu0 %v5684_v42  ;;  %v5423_v42 = vrot.slane %v5409_v55, %v12387_v10  ;;  %v5353_v20 = vld [vmem:[#allocation3 + $0x3c] sm:$0x3]  ;;  %v5657_v59 = vld [vmem:[#allocation3 + $0x3a] sm:$0x3]  ;;  %v5749_v63 = vcombine.low %v5659_v43, %v5660_v58  ;;  %v5357_v45 = vld [vmem:[#allocation3 + $0x48] sm:$0x3]  ;;  %v5739_v14 = vrot.slane %v5731_v18, %v12387_v10 }
 0x289   :  { %11239 = vmatmul.mubr.msk.f32.gmra.mxu1 %vm3744_vm6, %v4863_v46  ;;  %11276 = vmatmul.mubr.msk.f32.gmra.mxu0 %vm3744_vm6, %v5169_v51  ;;  %v5220_v46 = vcombine.low %v5212_v7, %v5219_v30  ;;  %v12006_v51 = vld [vmem:[#allocation3 + $0x32] ss:$6 sps:$4 sm:$0x33]   ;;  %v5443_v54 = vcombine.low %v5353_v20, %v5354_v15  ;;  %v5358_v3 = vld [vmem:[#allocation3 + $0x4a] sm:$0x3]  ;;  %v5990_v8 = vld [vmem:[#allocation7 + $0x230] sm:$0xff]  ;;  %v11123_v2 = vpop.f32.mrf.mxu0 }
 0x28a   :  { %11296 = vmatpush3.msra.mxu1 %v5375_v52  ;;  %11241 = vmatprep.mubr.msk.f32.mxu1 %vm12306_vm0, %v12305_v1  ;;  %v5416_v52 = vrot.slane %v5408_v37, %v12387_v10  ;;  %v5746_v9 = vrot.slane %v12006_v51, %v12387_v10  ;;  %v5664_v21 = vld [vmem:[#allocation3 + $0x4c] sm:$0x3]  ;;  %v5356_v23 = vld [vmem:[#allocation3 + $0x42] sm:$0x3]  ;;  %v5460_v26 = vcombine.low %v5357_v45, %v5358_v3  ;;  %v5662_v29 = vld [vmem:[#allocation3 + $0x44] sm:$0x3] }
 0x28b   :  { %11278 = vmatprep.mubr.msk.f32.mxu0 %vm12306_vm0, %v12305_v1  ;;  %11328 = vmatprep.subr.mxu0 %v12305_v1  ;;  %v5661_v55 = vld [vmem:[#allocation3 + $0x42] sm:$0x3]  ;;  %v5989_v33 = vld [vmem:[#allocation7 + $0x228] sm:$0xff]  ;;  %v5667_v39 = vld [vmem:[#allocation3 + $0x52] sm:$0x3] }
 0x28c   :  { %11297 = vmatprep.subr.mxu1 %v12305_v1  ;;  %11329 = vmatpush3.msra.mxu0 %v5683_v0  ;;  %v5722_v0 = vrot.slane %v5714_v38, %v12387_v10  ;;  %v5424_v50 = vcombine.low %v5416_v52, %v5423_v42  ;;  %v5747_v30 = vcombine.low %v5739_v14, %v5746_v9  ;;  %v5362_v38 = vld [vmem:[#allocation3 + $0x52] sm:$0x3]  ;;  %v5668_v40 = vld [vmem:[#allocation3 + $0x54] sm:$0x3]  ;;  %v5360_v42 = vld [vmem:[#allocation3 + $0x4e] sm:$0x3] }
 0x28d   :  { %11242 = vmatmul.mubr.msk.f32.gmra.mxu1 %vm3744_vm6, %v4880_v17  ;;  %11279 = vmatmul.mubr.msk.f32.gmra.mxu0 %vm3744_vm6, %v5186_v6  ;;  %v5433_v17 = vrot.slane %v5425_v44, %v12387_v10  ;;  %v5658_v6 = vld [vmem:[#allocation3 + $0x3c] sm:$0x3]  ;;  %v5366_v19 = vld [vmem:[#allocation3 + $0x5e] sm:$0x3]  ;;  %v5474_v52 = vrot.slane %v5460_v26, %v12387_v10  ;;  %v5665_v18 = vld [vmem:[#allocation3 + $0x4e] sm:$0x3] }
 0x28e   :  { %11298 = vmatpush3.msra.mxu1 %v5374_v48  ;;  %11330 = vmatprep.subr.mxu0 %v12305_v1  ;;  %v11083_v48 = vpop.f32.mrf.mxu1  ;;  %v5730_v13 = vcombine.low %v5722_v0, %v5729_v57  ;;  %v5748_v53 = vcombine.low %v5657_v59, %v5658_v6  ;;  %v5365_v44 = vld [vmem:[#allocation3 + $0x5c] sm:$0x3]  ;;  %v5361_v57 = vld [vmem:[#allocation3 + $0x50] sm:$0x3]  ;;  %v5367_v0 = vld [vmem:[#allocation3 + $0x60] sm:$0x3] }
 0x28f   :  { %11244 = vmatprep.mubr.msk.f32.mxu1 %vm12306_vm0, %v12305_v1  ;;  %11281 = vmatprep.mubr.msk.f32.mxu0 %vm12306_vm0, %v12305_v1  ;;  %v5666_v15 = vld [vmem:[#allocation3 + $0x50] sm:$0x3]  ;;  %v5477_v60 = vcombine.low %v5361_v57, %v5362_v38  ;;  %v5370_v20 = vld [vmem:[#allocation3 + $0x66] sm:$0x3]  ;;  %v5673_v9 = vld [vmem:[#allocation3 + $0x62] sm:$0x3]  ;;  %v5494_v12 = vcombine.low %v5365_v44, %v5366_v19 }
 0x290   :  { %11331 = vmatpush3.msra.mxu0 %v5682_v36  ;;  %11299 = vmatprep.subr.mxu1 %v12305_v1  ;;  %v5351_v36 = vld [vmem:[#allocation3 + $0x38] sm:$0x3]  ;;  %v5756_v11 = vrot.slane %v5748_v53, %v12387_v10  ;;  %v5988_v43 = vld [vmem:[#allocation7 + $0x220] sm:$0xff]  ;;  %v5782_v48 = vcombine.low %v5665_v18, %v5666_v15  ;;  %v12007_v45 = vld [vmem:[#allocation3 + $0x54] ss:$6 sps:$4 sm:$0x33]  }
 0x291   :  { %11245 = vmatmul.mubr.msk.f32.gmra.mxu1 %vm3744_vm6, %v4897_v32  ;;  %11282 = vmatmul.mubr.msk.f32.gmra.mxu0 %vm3744_vm6, %v5203_v24  ;;  %v5442_v16 = vcombine.low %v5351_v36, %v5352_v22  ;;  %v5663_v32 = vld [vmem:[#allocation3 + $0x4a] sm:$0x3]  ;;  %v5457_v24 = vrot.slane %v5443_v54, %v12387_v10  ;;  %v5368_v22 = vld [vmem:[#allocation3 + $0x62] sm:$0x3]  ;;  %v5674_v54 = vld [vmem:[#allocation3 + $0x64] sm:$0x3] }
 0x292   :  { %11332 = vmatprep.subr.mxu0 %v12305_v1  ;;  %11300 = vmatpush3.msra.mxu1 %v5373_v25  ;;  %v5763_v25 = vrot.slane %v5749_v63, %v12387_v10  ;;  %v5766_v35 = vcombine.low %v5663_v32, %v5664_v21  ;;  %v5675_v63 = vld [vmem:[#allocation3 + $0x66] sm:$0x3]  ;;  %v12008_v32 = vld [vmem:[#allocation3 + $0x56] ss:$6 sps:$4 sm:$0x33]   ;;  %v5510_v21 = vcombine.low %v5367_v0, %v5368_v22  ;;  %v5984_v19 = vld [vmem:[#allocation7 + $0x200] sm:$0xff] }
 0x293   :  { %11333 = vmatpush3.msra.mxu0 %v5681_v56  ;;  %11247 = vmatprep.mubr.msk.f32.mxu1 %vm12306_vm0, %v12305_v1  ;;  %v5441_v56 = vcombine.low %v5433_v17, %v5440_v4  ;;  %v5450_v37 = vrot.slane %v5442_v16, %v12387_v10  ;;  %v5359_v17 = vld [vmem:[#allocation3 + $0x4c] sm:$0x3]  ;;  %v5369_v4 = vld [vmem:[#allocation3 + $0x64] sm:$0x3]  ;;  %v5491_v16 = vrot.slane %v5477_v60, %v12387_v10  ;;  %v5959_v57 = vld [vmem:[#allocation3 + $0x30] sm:$0x3] }
 0x294   :  { %11334 = vmatprep.subr.mxu0 %v12305_v1  ;;  %11284 = vmatprep.mubr.msk.f32.mxu0 %vm12306_vm0, %v12305_v1  ;;  %v5764_v51 = vcombine.low %v5756_v11, %v5763_v25  ;;  %v5780_v58 = vrot.slane %v5766_v35, %v12387_v10  ;;  %v5476_v6 = vcombine.low %v5359_v17, %v5360_v42  ;;  %v5987_v3 = vld [vmem:[#allocation7 + $0x218] sm:$0xff]  ;;  %v5986_v25 = vld [vmem:[#allocation7 + $0x210] sm:$0xff]  ;;  %v5985_v11 = vld [vmem:[#allocation7 + $0x208] sm:$0xff] }
 0x295   :  { %11335 = vmatpush3.msra.mxu0 %v5680_v34  ;;  %11248 = vmatmul.mubr.msk.f32.gmra.mxu1 %vm3744_vm6, %v4914_v41  ;;  %v5355_v34 = vld [vmem:[#allocation3 + $0x40] sm:$0x3]  ;;  %v5765_v41 = vcombine.low %v5661_v55, %v5662_v29  ;;  %v5511_v27 = vcombine.low %v5369_v4, %v5370_v20  ;;  %v5501_v55 = vrot.slane %v12007_v45, %v12387_v10  ;;  %v5957_v2 = vld [vmem:[#allocation3 + $0x2c] sm:$0x3]  ;;  %v5963_v20 = vld [vmem:[#allocation3 + $0x3c] sm:$0x3] }
 0x296   :  { %11285 = vmatmul.mubr.msk.f32.gmra.mxu0 %vm3744_vm6, %v5220_v46  ;;  %11301 = vmatprep.subr.mxu1 %v12305_v1  ;;  %v5459_v7 = vcombine.low %v5355_v34, %v5356_v23  ;;  %v5671_v46 = vld [vmem:[#allocation3 + $0x5e] sm:$0x3]  ;;  %v5484_v23 = vrot.slane %v5476_v6, %v12387_v10  ;;  %v5508_v29 = vrot.slane %v5494_v12, %v12387_v10  ;;  %v5965_v0 = vld [vmem:[#allocation3 + $0x40] sm:$0x3] }
 0x297   :  { %11336 = vmatprep.subr.mxu0 %v12305_v1  ;;  %11302 = vmatpush3.msra.mxu1 %v5372_v47  ;;  %v5672_v47 = vld [vmem:[#allocation3 + $0x60] sm:$0x3]  ;;  %v5773_v59 = vrot.slane %v5765_v41, %v12387_v10  ;;  %v5807_v34 = vrot.slane %v12008_v32, %v12387_v10  ;;  %v5518_v35 = vrot.slane %v5510_v21, %v12387_v10 }
 0x298   :  { %11337 = vmatpush3.msra.mxu0 %v5679_v49  ;;  %11303 = vmatprep.mubr.msk.f32.mxu1 %vm12306_vm0, %v12305_v1  ;;  %v5458_v49 = vcombine.low %v5450_v37, %v5457_v24  ;;  %v5790_v24 = vrot.slane %v5782_v48, %v12387_v10  ;;  %v5958_v37 = vld [vmem:[#allocation3 + $0x2e] sm:$0x3]  ;;  %v5509_v41 = vcombine.low %v5501_v55, %v5508_v29  ;;  %v5967_v48 = vld [vmem:[#allocation3 + $0x44] sm:$0x3]  ;;  %v5980_v29 = vld [vmem:[#allocation3 + $0x66] sm:$0x3] }
 0x299   :  { %11338 = vmatprep.subr.mxu0 %v12305_v1  ;;  %11340 = vmatprep.mubr.msk.f32.mxu0 %vm12306_vm0, %v12305_v1  ;;  %v5781_v36 = vcombine.low %v5773_v59, %v5780_v58  ;;  %v6021_v44 = vcombine.low %v5957_v2, %v5958_v37  ;;  %v5966_v58 = vld [vmem:[#allocation3 + $0x42] sm:$0x3]  ;;  %v5970_v59 = vld [vmem:[#allocation3 + $0x4e] sm:$0x3]  ;;  %v5979_v55 = vld [vmem:[#allocation3 + $0x64] sm:$0x3] }
 0x29a   :  { %11339 = vmatpush3.msra.mxu0 %v5678_v61  ;;  %11361 = vmatprep.subr.mxu1 %v12305_v1  ;;  %v5783_v61 = vcombine.low %v5667_v39, %v5668_v40  ;;  %v5956_v40 = vld [vmem:[#allocation3 + $0x2a] sm:$0x3]  ;;  %v6055_v4 = vcombine.low %v5965_v0, %v5966_v58  ;;  %v12024_v0 = vld [vmem:[%s14679_s7 + $0x48] sm:$0xff]  }
 0x29b   :  { %11304 = vmatmul.mubr.msk.f32.vlgmr.msra.gmra.mxu1 %vm3744_vm6, %v5424_v50  ;;  %11341 = vmatmul.mubr.msk.f32.vlgmr.msra.gmra.mxu0 %vm3744_vm6, %v5730_v13  ;;  %v5467_v50 = vrot.slane %v5459_v7, %v12387_v10  ;;  %v5800_v13 = vcombine.low %v5671_v46, %v5672_v47  ;;  %v5525_v7 = vrot.slane %v5511_v27, %v12387_v10  ;;  %v5955_v46 = vld [vmem:[#allocation3 + $0x28] sm:$0x3]  ;;  %v5960_v47 = vld [vmem:[#allocation3 + $0x32] sm:$0x3] }
 0x29c   :  { %11362 = vmatpush3.msra.mxu1 %v5991_v62  ;;  %11306 = vmatprep.mubr.msk.f32.mxu1 %vm12306_vm0, %v12305_v1  ;;  %v5676_v62 = vld [vmem:[#allocation3 + $0x68] sm:$0x3]  ;;  %v5797_v53 = vrot.slane %v5783_v61, %v12387_v10  ;;  %v6035_v18 = vrot.slane %v6021_v44, %v12387_v10  ;;  %v6037_v15 = vcombine.low %v5959_v57, %v5960_v47  ;;  %v5964_v61 = vld [vmem:[#allocation3 + $0x3e] sm:$0x3]  ;;  %v12011_v44 = vld [vmem:[%s14679_s7 + $0x38] sm:$0xff]  }
 0x29d   :  { %11343 = vmatprep.mubr.msk.f32.mxu0 %vm12306_vm0, %v12305_v1  ;;  %11363 = vmatprep.subr.mxu1 %v12305_v1  ;;  %v5475_v14 = vcombine.low %v5467_v50, %v5474_v52  ;;  %v5817_v26 = vcombine.low %v5675_v63, %v5676_v62  ;;  %v6020_v52 = vcombine.low %v5955_v46, %v5956_v40  ;;  %v12014_v46 = vld [vmem:[%s14679_s7 + $0x70] sm:$0xff]   ;;  %v12015_v47 = vld [vmem:[%s14679_s7 + $0x28] sm:$0xff]   ;;  %v12019_v57 = vld [vmem:[%s14679_s7 + $0x18] sm:$0xff]  }
 0x29e   :  { %11364 = vmatpush3.msra.mxu1 %v5990_v8  ;;  %11398 = vmatprep.subr.bf16.mxu0 %v12305_v1  ;;  %v5816_v8 = vcombine.low %v5673_v9, %v5674_v54  ;;  %v6045_v50 = vrot.slane %v6037_v15, %v12387_v10  ;;  %v6054_v6 = vcombine.low %v5963_v20, %v5964_v61  ;;  %v5968_v9 = vld [vmem:[#allocation3 + $0x46] sm:$0x3]  ;;  %v5969_v54 = vld [vmem:[#allocation3 + $0x4c] sm:$0x3]  ;;  %v12023_v61 = vld [vmem:[%s14679_s7 + $0x8] sm:$0xff]  }
 0x29f   :  { %11307 = vmatmul.mubr.msk.f32.gmra.mxu1 %vm3744_vm6, %v5441_v56  ;;  %11344 = vmatmul.mubr.msk.f32.gmra.mxu0 %vm3744_vm6, %v5747_v30  ;;  %v5814_v56 = vrot.slane %v5800_v13, %v12387_v10  ;;  %v5492_v30 = vcombine.low %v5484_v23, %v5491_v16  ;;  %v5831_v39 = vrot.slane %v5817_v26, %v12387_v10  ;;  %v5974_v13 = vld [vmem:[#allocation3 + $0x56] sm:$0x3]  ;;  %v5977_v16 = vld [vmem:[#allocation3 + $0x60] sm:$0x3]  ;;  %v12021_v58 = vld [vmem:[%s14679_s7 + $0x10] sm:$0xff]  }
 0x2a0   :  { %11365 = vmatprep.subr.mxu1 %v12305_v1  ;;  %11309 = vmatprep.mubr.msk.f32.mxu1 %vm12306_vm0, %v12305_v1  ;;  %v5824_v38 = vrot.slane %v5816_v8, %v12387_v10  ;;  %v6028_v60 = vrot.slane %v6020_v52, %v12387_v10  ;;  %v6069_v45 = vrot.slane %v6055_v4, %v12387_v10  ;;  %v5971_v8 = vld [vmem:[#allocation3 + $0x50] sm:$0x3]  ;;  %v12010_v23 = vld [vmem:[#allocation3 + $0x58] ss:$6 sps:$4 sm:$0x33]  }
 0x2a1   :  { %11346 = vmatprep.mubr.msk.f32.mxu0 %vm12306_vm0, %v12305_v1  ;;  %11366 = vmatpush3.msra.mxu1 %v5989_v33  ;;  %v5798_v33 = vcombine.low %v5790_v24, %v5797_v53  ;;  %v5815_v42 = vcombine.low %v5807_v34, %v5814_v56  ;;  %v6072_v12 = vcombine.low %v5969_v54, %v5970_v59  ;;  %v5978_v53 = vld [vmem:[#allocation3 + $0x62] sm:$0x3]  ;;  %v5981_v56 = vld [vmem:[#allocation3 + $0x68] sm:$0x3]  ;;  %v12018_v52 = vld [vmem:[%s14679_s7 + $0x60] sm:$0xff]  }
 0x2a2   :  { %11367 = vmatprep.subr.mxu1 %v12305_v1  ;;  %v6036_v22 = vcombine.low %v6028_v60, %v6035_v18  ;;  %v6062_v62 = vrot.slane %v6054_v6, %v12387_v10  ;;  %v6106_v26 = vcombine.low %v5977_v16, %v5978_v53  ;;  %v12020_v18 = vld [vmem:[%s14679_s7 + $0x58] sm:$0xff]   ;;  %v12022_v60 = vld [vmem:[%s14679_s7 + $0x50] sm:$0xff]   ;;  %v12026_v54 = vld [vmem:[%s14679_s7 + $0x40] sm:$0xff]  }
 0x2a3   :  { %11310 = vmatmul.mubr.msk.f32.gmra.mxu1 %vm3744_vm6, %v5458_v49  ;;  %11347 = vmatmul.mubr.msk.f32.gmra.mxu0 %vm3744_vm6, %v5764_v51  ;;  %v5526_v49 = vcombine.low %v5518_v35, %v5525_v7  ;;  %v5832_v51 = vcombine.low %v5824_v38, %v5831_v39  ;;  %v6086_v21 = vrot.slane %v6072_v12, %v12387_v10 }
 0x2a4   :  { %11312 = vmatprep.mubr.msk.f32.mxu1 %vm12306_vm0, %v12305_v1  ;;  %11349 = vmatprep.mubr.msk.f32.mxu0 %vm12306_vm0, %v12305_v1  ;;  %v6070_v32 = vcombine.low %v6062_v62, %v6069_v45  ;;  %v6113_v35 = vrot.slane %v12010_v23, %v12387_v10  ;;  %v6122_v7 = vcombine.low %v5979_v55, %v5980_v29 }
 0x2a5   :  { %11368 = vmatpush3.msra.mxu1 %v5988_v43  ;;  %v12009_v43 = vld [vmem:[#allocation3 + $0x34] ss:$6 sps:$4 sm:$0x33]  }
 0x2a6   :  { %11369 = vmatprep.subr.mxu1 %v12305_v1  ;;  %v6052_v17 = vrot.slane %v12009_v43, %v12387_v10  ;;  %v6130_v2 = vrot.slane %v6122_v7, %v12387_v10 }
 0x2a7   :  { %11313 = vmatmul.mubr.msk.f32.gmra.mxu1 %vm3744_vm6, %v5475_v14  ;;  %11350 = vmatmul.mubr.msk.f32.gmra.mxu0 %vm3744_vm6, %v5781_v36  ;;  %v6071_v14 = vcombine.low %v5967_v48, %v5968_v9  ;;  %v5972_v36 = vld [vmem:[#allocation3 + $0x52] sm:$0x3]  ;;  %v12025_v9 = vld [vmem:[%s14679_s7] sm:$0xff]  }
 0x2a8   :  { %11370 = vmatpush3.msra.mxu1 %v5987_v3  ;;  %11315 = vmatprep.mubr.msk.f32.mxu1 %vm12306_vm0, %v12305_v1  ;;  %v6053_v63 = vcombine.low %v6045_v50, %v6052_v17  ;;  %v5973_v3 = vld [vmem:[#allocation3 + $0x54] sm:$0x3] }
 0x2a9   :  { %11352 = vmatprep.mubr.msk.f32.mxu0 %vm12306_vm0, %v12305_v1  ;;  %11371 = vmatprep.subr.mxu1 %v12305_v1  ;;  %v6089_v27 = vcombine.low %v5973_v3, %v5974_v13  ;;  %v6079_v24 = vrot.slane %v6071_v14, %v12387_v10 }
 0x2aa   :  { %11372 = vmatpush3.msra.mxu1 %v5986_v25  ;;  %v6088_v25 = vcombine.low %v5971_v8, %v5972_v36 }
 0x2ab   :  { %11316 = vmatmul.mubr.msk.f32.gmra.mxu1 %vm3744_vm6, %v5492_v30  ;;  %11353 = vmatmul.mubr.msk.f32.gmra.mxu0 %vm3744_vm6, %v5798_v33  ;;  %v5982_v30 = vld [vmem:[#allocation3 + $0x6a] sm:$0x3]  ;;  %v6087_v33 = vcombine.low %v6079_v24, %v6086_v21  ;;  %v6103_v34 = vrot.slane %v6089_v27, %v12387_v10 }
 0x2ac   :  { %11318 = vmatprep.mubr.msk.f32.mxu1 %vm12306_vm0, %v12305_v1  ;;  %11355 = vmatprep.mubr.msk.f32.mxu0 %vm12306_vm0, %v12305_v1  ;;  %v6096_v37 = vrot.slane %v6088_v25, %v12387_v10  ;;  %v6123_v38 = vcombine.low %v5981_v56, %v5982_v30 }
 0x2ad   :  { %11373 = vmatprep.subr.mxu1 %v12305_v1 }
 0x2ae   :  { %11374 = vmatpush3.msra.mxu1 %v5985_v11  ;;  %v6120_v11 = vrot.slane %v6106_v26, %v12387_v10  ;;  %v6104_v39 = vcombine.low %v6096_v37, %v6103_v34 }
 0x2af   :  { %11319 = vmatmul.mubr.msk.f32.gmra.mxu1 %vm3744_vm6, %v5509_v41  ;;  %11356 = vmatmul.mubr.msk.f32.gmra.mxu0 %vm3744_vm6, %v5815_v42  ;;  %v6137_v41 = vrot.slane %v6123_v38, %v12387_v10  ;;  %v12012_v10 = vld [vmem:[%s14679_s7 + $0x78] sm:$0xff]  }
 0x2b0   :  { %11321 = vmatprep.mubr.msk.f32.mxu1 %vm12306_vm0, %v12305_v1  ;;  %11375 = vmatprep.subr.mxu1 %v12305_v1  ;;  %v6121_v40 = vcombine.low %v6113_v35, %v6120_v11 }
 0x2b1   :  { %11358 = vmatprep.mubr.msk.f32.mxu0 %vm12306_vm0, %v12305_v1  ;;  %11376 = vmatpush3.msra.mxu1 %v5984_v19  ;;  %v6138_v42 = vcombine.low %v6130_v2, %v6137_v41  ;;  %v12013_v19 = vld [vmem:[%s14679_s7 + $0x30] sm:$0xff]  }
 0x2b2   :  { %11418 = vmatprep.subr.bf16.mxu1 %v12305_v1  ;;  %11399 = vmatpush3.bf16.msra.mxu0 %v12012_v10 }
 0x2b3   :  { %11322 = vmatmul.mubr.msk.f32.gmra.mxu1 %vm3744_vm6, %v5526_v49  ;;  %11359 = vmatmul.mubr.msk.f32.gmra.mxu0 %vm3744_vm6, %v5832_v51  ;;  %v12016_v49 = vld [vmem:[%s14679_s7 + $0x68] sm:$0xff]   ;;  %v12017_v51 = vld [vmem:[%s14679_s7 + $0x20] sm:$0xff]  }
 0x2b4   :  { %11377 = vmatprep.mubr.msk.f32.mxu1 %vm12306_vm0, %v12305_v1  ;;  %11414 = vmatprep.mubr.msk.bf16.mxu0 %vm12306_vm0, %v12305_v1 }
 0x2b5   :  { %11400 = vmatprep.subr.bf16.mxu0 %v12305_v1 }
 0x2b6   :  { %11401 = vmatpush3.bf16.msra.mxu0 %v12014_v46 }
 0x2b7   :  { %11378 = vmatmul.mubr.msk.f32.vlgmr.msra.gmra.mxu1 %vm3744_vm6, %v6036_v22  ;;  %11402 = vmatprep.subr.bf16.mxu0 %v12305_v1 }
 0x2b8   :  { %11380 = vmatprep.mubr.msk.f32.mxu1 %vm12306_vm0, %v12305_v1  ;;  %11419 = vmatpush3.bf16.msra.mxu1 %v12011_v44 }
 0x2b9   :  { %11420 = vmatprep.subr.bf16.mxu1 %v12305_v1 }
 0x2ba   :  { %11403 = vmatpush3.bf16.msra.mxu0 %v12016_v49 }
 0x2bb   :  { %11381 = vmatmul.mubr.msk.f32.gmra.mxu1 %vm3744_vm6, %v6053_v63  ;;  %11404 = vmatprep.subr.bf16.mxu0 %v12305_v1 }
 0x2bc   :  { %11383 = vmatprep.mubr.msk.f32.mxu1 %vm12306_vm0, %v12305_v1  ;;  %11421 = vmatpush3.bf16.msra.mxu1 %v12013_v19 }
 0x2bd   :  { %11422 = vmatprep.subr.bf16.mxu1 %v12305_v1 }
 0x2be   :  { %11405 = vmatpush3.bf16.msra.mxu0 %v12018_v52 }
 0x2bf   :  { %11384 = vmatmul.mubr.msk.f32.gmra.mxu1 %vm3744_vm6, %v6070_v32  ;;  %11406 = vmatprep.subr.bf16.mxu0 %v12305_v1 }
 0x2c0   :  { %11386 = vmatprep.mubr.msk.f32.mxu1 %vm12306_vm0, %v12305_v1  ;;  %11423 = vmatpush3.bf16.msra.mxu1 %v12015_v47 }
 0x2c1   :  { %11424 = vmatprep.subr.bf16.mxu1 %v12305_v1 }
 0x2c2   :  { %11407 = vmatpush3.bf16.msra.mxu0 %v12020_v18 }
 0x2c3   :  { %11387 = vmatmul.mubr.msk.f32.gmra.mxu1 %vm3744_vm6, %v6087_v33  ;;  %11408 = vmatprep.subr.bf16.mxu0 %v12305_v1 }
 0x2c4   :  { %11389 = vmatprep.mubr.msk.f32.mxu1 %vm12306_vm0, %v12305_v1  ;;  %11425 = vmatpush3.bf16.msra.mxu1 %v12017_v51 }
 0x2c5   :  { %11426 = vmatprep.subr.bf16.mxu1 %v12305_v1 }
 0x2c6   :  { %11409 = vmatpush3.bf16.msra.mxu0 %v12022_v60 }
 0x2c7   :  { %11390 = vmatmul.mubr.msk.f32.gmra.mxu1 %vm3744_vm6, %v6104_v39  ;;  %11410 = vmatprep.subr.bf16.mxu0 %v12305_v1 }
 0x2c8   :  { %11392 = vmatprep.mubr.msk.f32.mxu1 %vm12306_vm0, %v12305_v1  ;;  %11427 = vmatpush3.bf16.msra.mxu1 %v12019_v57 }
 0x2c9   :  { %11428 = vmatprep.subr.bf16.mxu1 %v12305_v1 }
 0x2ca   :  { %11411 = vmatpush3.bf16.msra.mxu0 %v12024_v0 }
 0x2cb   :  { %11393 = vmatmul.mubr.msk.f32.gmra.mxu1 %vm3744_vm6, %v6121_v40  ;;  %11412 = vmatprep.subr.bf16.mxu0 %v12305_v1 }
 0x2cc   :  { %11395 = vmatprep.mubr.msk.f32.mxu1 %vm12306_vm0, %v12305_v1  ;;  %11429 = vmatpush3.bf16.msra.mxu1 %v12021_v58 }
 0x2cd   :  { %11430 = vmatprep.subr.bf16.mxu1 %v12305_v1 }
 0x2ce   :  { %11413 = vmatpush3.bf16.msra.mxu0 %v12026_v54 }
 0x2cf   :  { %11396 = vmatmul.mubr.msk.f32.gmra.mxu1 %vm3744_vm6, %v6138_v42  ;;  %11438 = vmatprep.subr.bf16.mxu0 %v12305_v1 }
 0x2d0   :  { %11434 = vmatprep.mubr.msk.bf16.mxu1 %vm12306_vm0, %v12305_v1  ;;  %11431 = vmatpush3.bf16.msra.mxu1 %v12023_v61 }
 0x2d1   :  { %11432 = vmatprep.subr.bf16.mxu1 %v12305_v1 }
 0x2d4   :  { %11433 = vmatpush3.bf16.msra.mxu1 %v12025_v9 }
 0x2d5   :  { %11458 = vmatprep.subr.bf16.mxu1 %v12305_v1 }
 0x302   :  { %v3830_v15 = vpop.f32.mrf.mxu1 }
 0x303   :  { %v4092_v30 = vadd.f32 %v13486_v31, %v3830_v15 }
 0x304   :  { %v11086_v43 = vpop.f32.mrf.mxu1 }
 0x30a   :  { %v3835_v22 = vpop.f32.mrf.mxu1  ;;  %v4096_v50 = vpop.f32.mrf.mxu0 }
 0x30b   :  { %v4097_v17 = vadd.f32 %v4096_v50, %v3835_v22 }
 0x30c   :  { %v11089_v4 = vpop.f32.mrf.mxu1  ;;  %v11126_v20 = vpop.f32.mrf.mxu0 }
 0x30e   :  { %v3840_v59 = vpop.f32.mrf.mxu1 }
 0x310   :  { %v4101_v6 = vpop.f32.mrf.mxu0  ;;  %v11092_v48 = vpop.f32.mrf.mxu1 }
 0x311   :  { %v4102_v63 = vadd.f32 %v4101_v6, %v3840_v59 }
 0x312   :  { %v11129_v45 = vpop.f32.mrf.mxu0 }
 0x313   :  { %v3845_v12 = vpop.f32.mrf.mxu1 }
 0x315   :  { %v4106_v13 = vpop.f32.mrf.mxu0  ;;  %v11095_v62 = vpop.f32.mrf.mxu1 }
 0x316   :  { %v4107_v14 = vadd.f32 %v4106_v13, %v3845_v12 }
 0x317   :  { %v11132_v36 = vpop.f32.mrf.mxu0  ;;  %v3850_v3 = vpop.f32.mrf.mxu1 }
 0x319   :  { %v4111_v16 = vpop.f32.mrf.mxu0  ;;  %v11098_v53 = vpop.f32.mrf.mxu1 }
 0x31a   :  { %v4112_v32 = vadd.f32 %v4111_v16, %v3850_v3 }
 0x31b   :  { %v11135_v21 = vpop.f32.mrf.mxu0  ;;  %v3855_v27 = vpop.f32.mrf.mxu1 }
 0x31d   :  { %v4116_v8 = vpop.f32.mrf.mxu0  ;;  %v11101_v23 = vpop.f32.mrf.mxu1 }
 0x31e   :  { %v4117_v24 = vadd.f32 %v4116_v8, %v3855_v27 }
 0x31f   :  { %v11138_v25 = vpop.f32.mrf.mxu0  ;;  %v4385_v26 = vpop.f32.mrf.mxu1 }
 0x320   :  { %v4419_v55 = vadd.f32 %v4385_v26, %v13477_v28 }
 0x321   :  { %v4690_v29 = vpop.f32.mrf.mxu0  ;;  %v11157_v56 = vpop.f32.mrf.mxu1 }
 0x322   :  { %v13654_v33 = vadd.f32 %v4690_v29, %v4419_v55 }
 0x323   :  { %v11194_v34 = vpop.f32.mrf.mxu0  ;;  %v4390_v35 = vpop.f32.mrf.mxu1 }
 0x324   :  { %v4420_v37 = vadd.f32 %v4390_v35, %v4092_v30 }
 0x325   :  { %v4695_v11 = vpop.f32.mrf.mxu0  ;;  %v11160_v7 = vpop.f32.mrf.mxu1 }
 0x326   :  { %v13656_v38 = vadd.f32 %v4695_v11, %v4420_v37 }
 0x327   :  { %v11197_v39 = vpop.f32.mrf.mxu0  ;;  %v4395_v40 = vpop.f32.mrf.mxu1 }
 0x328   :  { %v4421_v2 = vadd.f32 %v4395_v40, %v4097_v17 }
 0x329   :  { %v4700_v41 = vpop.f32.mrf.mxu0  ;;  %v11163_v42 = vpop.f32.mrf.mxu1 }
 0x32a   :  { %v4726_v44 = vadd.f32 %v4700_v41, %v4421_v2 }
 0x32b   :  { %v11200_v28 = vpop.f32.mrf.mxu0  ;;  %v4400_v10 = vpop.f32.mrf.mxu1 }
 0x32c   :  { %v4422_v19 = vadd.f32 %v4400_v10, %v4102_v63 }
 0x32d   :  { %v4705_v46 = vpop.f32.mrf.mxu0  ;;  %v11166_v31 = vpop.f32.mrf.mxu1 }
 0x32e   :  { %v4727_v47 = vadd.f32 %v4705_v46, %v4422_v19 }
 0x32f   :  { %v11203_v49 = vpop.f32.mrf.mxu0  ;;  %v4405_v51 = vpop.f32.mrf.mxu1 }
 0x330   :  { %v4423_v52 = vadd.f32 %v4405_v51, %v4107_v14 }
 0x331   :  { %v4710_v57 = vpop.f32.mrf.mxu0  ;;  %v11169_v18 = vpop.f32.mrf.mxu1 }
 0x332   :  { %v4728_v15 = vadd.f32 %v4710_v57, %v4423_v52 }
 0x333   :  { %v11206_v43 = vpop.f32.mrf.mxu0  ;;  %v4410_v58 = vpop.f32.mrf.mxu1 }
 0x334   :  { %v4424_v60 = vadd.f32 %v4410_v58, %v4112_v32 }
 0x335   :  { %v4715_v61 = vpop.f32.mrf.mxu0  ;;  %v11172_v0 = vpop.f32.mrf.mxu1 }
 0x336   :  { %v4729_v22 = vadd.f32 %v4715_v61, %v4424_v60 }
 0x337   :  { %v11209_v50 = vpop.f32.mrf.mxu0  ;;  %v4415_v17 = vpop.f32.mrf.mxu1 }
 0x338   :  { %v4425_v4 = vadd.f32 %v4415_v17, %v4117_v24 }
 0x339   :  { %v4720_v20 = vpop.f32.mrf.mxu0  ;;  %v11175_v59 = vpop.f32.mrf.mxu1 }
 0x33a   :  { %v4730_v6 = vadd.f32 %v4720_v20, %v4425_v4 }
 0x33b   :  { %v11212_v48 = vpop.f32.mrf.mxu0 }
 0x33d   :  { %v4995_v9 = vpop.f32.mrf.mxu1  ;;  %v13658_v54 = vpop.f32.mrf.mxu0 }
 0x33f   :  { %v11231_v63 = vpop.f32.mrf.mxu1  ;;  %v11268_v45 = vpop.f32.mrf.mxu0 }
 0x340   :  { %v5029_v63 = vadd.f32 %v4995_v9, %v13654_v33 }
 0x341   :  { %v13660_v12 = vpop.f32.mrf.mxu1  ;;  %v13662_v13 = vpop.f32.mrf.mxu0 }
 0x343   :  { %v11234_v62 = vpop.f32.mrf.mxu1  ;;  %v11271_v14 = vpop.f32.mrf.mxu0 }
 0x345   :  { %v5005_v36 = vpop.f32.mrf.mxu1  ;;  %v5311_v3 = vpop.f32.mrf.mxu0 }
 0x346   :  { %v5031_v16 = vadd.f32 %v5005_v36, %v4726_v44 }
 0x347   :  { %v11237_v53 = vpop.f32.mrf.mxu1  ;;  %v11274_v32 = vpop.f32.mrf.mxu0 }
 0x348   :  { %v5337_v21 = vadd.f32 %v5311_v3, %v5031_v16  ;;  %v5335_v53 = vadd.f32 %v13658_v54, %v5029_v63  ;;  %v5030_v32 = vadd.f32 %v13660_v12, %v13656_v38  ;;  %v12308_v38 = vmov 1966171168  }
 0x349   :  { %v5010_v27 = vpop.f32.mrf.mxu1  ;;  %v5316_v8 = vpop.f32.mrf.mxu0  ;;  %v6291_v12 = vunpack.c.l.s4 %v12308_v38  ;;  %v12033_v38 = vld [vmem:[%s14679_s7 + $0xe0] sm:$0xff]  }
 0x34a   :  { %v5032_v23 = vadd.f32 %v5010_v27, %v4727_v47  ;;  %v5336_v33 = vadd.f32 %v13662_v13, %v5030_v32 }
 0x34b   :  { %v11240_v24 = vpop.f32.mrf.mxu1  ;;  %v11277_v25 = vpop.f32.mrf.mxu0 }
 0x34c   :  { %v5338_v26 = vadd.f32 %v5316_v8, %v5032_v23 }
 0x34d   :  { %v5015_v55 = vpop.f32.mrf.mxu1  ;;  %v5321_v29 = vpop.f32.mrf.mxu0 }
 0x34e   :  { %v5033_v56 = vadd.f32 %v5015_v55, %v4728_v15 }
 0x34f   :  { %v11243_v30 = vpop.f32.mrf.mxu1  ;;  %v11280_v34 = vpop.f32.mrf.mxu0 }
 0x350   :  { %v5339_v35 = vadd.f32 %v5321_v29, %v5033_v56 }
 0x351   :  { %v5020_v37 = vpop.f32.mrf.mxu1  ;;  %v5326_v11 = vpop.f32.mrf.mxu0 }
 0x352   :  { %v5034_v7 = vadd.f32 %v5020_v37, %v4729_v22  ;;  %v13676_v37 = vld [vmem:[%s14678_s6] ss:$0 sm:$0xff] }
 0x353   :  { %v11246_v39 = vpop.f32.mrf.mxu1  ;;  %v11283_v40 = vpop.f32.mrf.mxu0 }
 0x354   :  { %v5340_v2 = vadd.f32 %v5326_v11, %v5034_v7 }
 0x355   :  { %v5025_v41 = vpop.f32.mrf.mxu1 }
 0x356   :  { %v5035_v42 = vadd.f32 %v5025_v41, %v4730_v6  ;;  %v5331_v44 = vpop.f32.mrf.mxu0 }
 0x357   :  { %v11249_v28 = vpop.f32.mrf.mxu1 }
 0x358   :  { %v5341_v10 = vadd.f32 %v5331_v44, %v5035_v42  ;;  %v11286_v19 = vpop.f32.mrf.mxu0 }
 0x35b   :  { %v5607_v46 = vpop.f32.mrf.mxu1  ;;  %v5913_v31 = vpop.f32.mrf.mxu0 }
 0x35c   :  { %v5641_v23 = vadd.f32 %v5607_v46, %v5335_v53 }
 0x35d   :  { %v11305_v47 = vpop.f32.mrf.mxu1  ;;  %v11342_v49 = vpop.f32.mrf.mxu0 }
 0x35e   :  { %v5947_v56 = vadd.f32 %v5913_v31, %v5641_v23 }
 0x35f   :  { %v5612_v51 = vpop.f32.mrf.mxu1  ;;  %v5918_v52 = vpop.f32.mrf.mxu0 }
 0x360   :  { %v5642_v30 = vadd.f32 %v5612_v51, %v5336_v33 }
 0x361   :  { %v11308_v57 = vpop.f32.mrf.mxu1  ;;  %v11345_v18 = vpop.f32.mrf.mxu0 }
 0x362   :  { %v5948_v7 = vadd.f32 %v5918_v52, %v5642_v30 }
 0x363   :  { %v5617_v15 = vpop.f32.mrf.mxu1  ;;  %v5923_v43 = vpop.f32.mrf.mxu0 }
 0x364   :  { %v5643_v58 = vadd.f32 %v5617_v15, %v5337_v21 }
 0x365   :  { %v11311_v60 = vpop.f32.mrf.mxu1  ;;  %v11348_v61 = vpop.f32.mrf.mxu0 }
 0x366   :  { %v5949_v0 = vadd.f32 %v5923_v43, %v5643_v58  ;;  %v12027_v58 = vld [vmem:[%s14679_s7 + $0xf8] sm:$0xff]  }
 0x367   :  { %v5622_v22 = vpop.f32.mrf.mxu1  ;;  %v5928_v50 = vpop.f32.mrf.mxu0 }
 0x368   :  { %v5644_v17 = vadd.f32 %v5622_v22, %v5338_v26 }
 0x369   :  { %v11314_v4 = vpop.f32.mrf.mxu1  ;;  %v11351_v20 = vpop.f32.mrf.mxu0 }
 0x36a   :  { %v5950_v59 = vadd.f32 %v5928_v50, %v5644_v17  ;;  %v12028_v17 = vld [vmem:[%s14679_s7 + $0xb8] sm:$0xff]  }
 0x36b   :  { %v5627_v6 = vpop.f32.mrf.mxu1  ;;  %v5933_v48 = vpop.f32.mrf.mxu0 }
 0x36c   :  { %v5645_v45 = vadd.f32 %v5627_v6, %v5339_v35 }
 0x36d   :  { %v11317_v62 = vpop.f32.mrf.mxu1  ;;  %v11354_v14 = vpop.f32.mrf.mxu0 }
 0x36e   :  { %v5951_v36 = vadd.f32 %v5933_v48, %v5645_v45  ;;  %v12029_v45 = vld [vmem:[%s14679_s7 + $0xf0] sm:$0xff]  }
 0x36f   :  { %v5632_v3 = vpop.f32.mrf.mxu1  ;;  %v5938_v16 = vpop.f32.mrf.mxu0 }
 0x370   :  { %v5646_v21 = vadd.f32 %v5632_v3, %v5340_v2  ;;  %v6292_v2 = vunpack.c.0.s8 %v6291_v12 }
 0x371   :  { %v11320_v27 = vpop.f32.mrf.mxu1  ;;  %v11357_v8 = vpop.f32.mrf.mxu0 }
 0x372   :  { %v13668_v24 = vadd.f32 %v5938_v16, %v5646_v21  ;;  %v13681_v19 = vsub.s32 %v6292_v2, %v12372_v5  ;;  %v12031_v8 = vld [vmem:[%s14679_s7 + $0xe8] sm:$0xff]  }
 0x373   :  { %v5637_v25 = vpop.f32.mrf.mxu1  ;;  %v5943_v26 = vpop.f32.mrf.mxu0 }
 0x374   :  { %v5647_v9 = vadd.f32 %v5637_v25, %v5341_v10 }
 0x375   :  { %v11323_v55 = vpop.f32.mrf.mxu1  ;;  %v11360_v29 = vpop.f32.mrf.mxu0 }
 0x376   :  { %v13671_v34 = vadd.f32 %v5943_v26, %v5647_v9  ;;  %v12032_v55 = vld [vmem:[%s14679_s7 + $0xa8] sm:$0xff]  }
 0x377   :  { %v6219_v54 = vpop.f32.mrf.mxu1 }
 0x378   :  { %v6253_v35 = vadd.f32 %v6219_v54, %v5947_v56 }
 0x379   :  { %v11379_v11 = vpop.f32.mrf.mxu1 }
 0x37a   :  { %v6267_v13 = vadd.f32 %v13676_v37, %v6253_v35 }
 0x37b   :  { %v6224_v39 = vpop.f32.mrf.mxu1 }
 0x37c   :  { %v6254_v40 = vadd.f32 %v6224_v39, %v5948_v7  ;;  %v6274_v28 = vmax.f32 %v6267_v13, 0.0 }
 0x37d   :  { %v11382_v41 = vpop.f32.mrf.mxu1 }
 0x37e   :  { %v6268_v42 = vadd.f32 %v13676_v37, %v6254_v40  ;;  %v12035_v41 = vld [vmem:[%s14679_s7 + $0xd8] sm:$0xff]  }
 0x37f   :  { %v6229_v44 = vpop.f32.mrf.mxu1 }
 0x380   :  { %v6275_v10 = vmax.f32 %v6268_v42, 0.0  ;;  %v6255_v46 = vadd.f32 %v6229_v44, %v5949_v0 }
 0x381   :  { %v11385_v31 = vpop.f32.mrf.mxu1 }
 0x382   :  { %v6281_v47 = vpack.c.bf16 %v6275_v10, %v6274_v28  ;;  %v9615_v49 = vpack.c.bf16 %v6275_v10, %v6275_v10  ;;  %v6269_v51 = vadd.f32 %v13676_v37, %v6255_v46  ;;  %v12036_v46 = vld [vmem:[%s14679_s7 + $0x98] sm:$0xff]  }
 0x383   :  { %v6234_v52 = vpop.f32.mrf.mxu1 }
 0x384   :  { %v6296_v57 = vrot.slane %v6281_v47, %v13681_v19  ;;  %v6303_v18 = vrot.slane %v9615_v49, %v13681_v19  ;;  %v6256_v15 = vadd.f32 %v6234_v52, %v5950_v59  ;;  %v6276_v59 = vmax.f32 %v6269_v51, 0.0  ;;  %v12037_v51 = vld [vmem:[%s14679_s7 + $0xd0] sm:$0xff]  }
 0x385   :  { %v11388_v43 = vpop.f32.mrf.mxu1 }
 0x386   :  { %v6304_v60 = vcombine.high %v6296_v57, %v6296_v57  ;;  %v6305_v5 = vcombine.high %v6303_v18, %v6303_v18  ;;  %v13690_v61 = vrot.slane %v6296_v57, %v13681_v19  ;;  %v13693_v0 = vrot.slane %v6303_v18, %v13681_v19  ;;  %v12038_v18 = vld [vmem:[%s14679_s7 + $0x90] sm:$0xff]   ;;  %v12039_v43 = vld [vmem:[%s14679_s7 + $0xc8] sm:$0xff]  }
 0x387   :  { %v6270_v22 = vadd.f32 %v13676_v37, %v6256_v15  ;;  %v6239_v50 = vpop.f32.mrf.mxu1 }
 0x388   :  { %v13700_v4 = vrot.slane %v6304_v60, %v13681_v19  ;;  %v13703_v20 = vrot.slane %v6305_v5, %v13681_v19  ;;  %11435 = vmatmul.mubr.bf16.vlgmr.msra.gmra.mxu1 %v13690_v61  ;;  %v6257_v48 = vadd.f32 %v6239_v50, %v5951_v36  ;;  %v12030_v36 = vld [vmem:[%s14679_s7 + $0xb0] sm:$0xff]   ;;  %v12042_v60 = vld [vmem:[%s14679_s7 + $0x80] sm:$0xff]   ;;  %v12043_v5 = vld [vmem:[%s14679_s7 + $0x178] sm:$0xff]  }
 0x389   :  { %v6277_v6 = vmax.f32 %v6270_v22, 0.0  ;;  %11459 = vmatpush3.bf16.msra.mxu1 %v12027_v58  ;;  %v11391_v63 = vpop.f32.mrf.mxu1  ;;  %11474 = vmatprep.mubr.msk.bf16.mxu1 %vm12306_vm0, %v12305_v1  ;;  %v12040_v58 = vld [vmem:[%s14679_s7 + $0x88] sm:$0xff]   ;;  %v12044_v50 = vld [vmem:[%s14679_s7 + $0x138] sm:$0xff]  }
 0x38a   :  { %11415 = vmatmul.mubr.bf16.vlgmr.msra.gmra.mxu0 %v13700_v4  ;;  %11460 = vmatprep.subr.bf16.mxu1 %v12305_v1  ;;  %v6271_v3 = vadd.f32 %v13676_v37, %v6257_v48  ;;  %v6336_v22 = vcombine.high %v13700_v4, %v13700_v4  ;;  %v12046_v4 = vld [vmem:[%s14679_s7 + $0x130] sm:$0xff]   ;;  %v12049_v48 = vld [vmem:[%s14679_s7 + $0x160] sm:$0xff]  }
 0x38b   :  { %v6282_v62 = vpack.c.bf16 %v6277_v6, %v6276_v59  ;;  %v9616_v14 = vpack.c.bf16 %v6277_v6, %v6277_v6  ;;  %11439 = vmatpush3.bf16.msra.mxu0 %v12028_v17  ;;  %v6244_v16 = vpop.f32.mrf.mxu1  ;;  %11454 = vmatprep.mubr.msk.bf16.mxu0 %vm12306_vm0, %v12305_v1  ;;  %v6334_v17 = vcombine.high %v13690_v61, %v13690_v61  ;;  %v12045_v59 = vld [vmem:[%s14679_s7 + $0x170] sm:$0xff]   ;;  %v12047_v61 = vld [vmem:[%s14679_s7 + $0x168] sm:$0xff]   ;;  %v12050_v63 = vld [vmem:[%s14679_s7 + $0x120] sm:$0xff]  }
 0x38c   :  { %v6258_v53 = vadd.f32 %v6244_v16, %v13668_v24  ;;  %11440 = vmatprep.subr.bf16.mxu0 %v12305_v1  ;;  %v6278_v29 = vmax.f32 %v6271_v3, 0.0  ;;  %v12048_v6 = vld [vmem:[%s14679_s7 + $0x128] sm:$0xff]   ;;  %v12054_v3 = vld [vmem:[%s14679_s7 + $0x110] sm:$0xff]  }
 0x38d   :  { %v6345_v32 = vrot.slane %v6282_v62, %v13681_v19  ;;  %v6352_v21 = vrot.slane %v9616_v14, %v13681_v19  ;;  %11461 = vmatpush3.bf16.msra.mxu1 %v12029_v45  ;;  %v11394_v27 = vpop.f32.mrf.mxu1  ;;  %v12051_v45 = vld [vmem:[%s14679_s7 + $0x158] sm:$0xff]   ;;  %v12053_v14 = vld [vmem:[%s14679_s7 + $0x150] sm:$0xff]   ;;  %v12055_v16 = vld [vmem:[%s14679_s7 + $0x148] sm:$0xff]  }
 0x38e   :  { %v6272_v23 = vadd.f32 %v13676_v37, %v6258_v53  ;;  %11462 = vmatprep.subr.bf16.mxu1 %v12305_v1  ;;  %v12052_v62 = vld [vmem:[%s14679_s7 + $0x118] sm:$0xff]   ;;  %v12057_v53 = vld [vmem:[%s14679_s7 + $0x140] sm:$0xff]  }
 0x38f   :  { %v6353_v25 = vcombine.high %v6345_v32, %v6345_v32  ;;  %v6354_v26 = vcombine.high %v6352_v21, %v6352_v21  ;;  %v13729_v24 = vrot.slane %v6345_v32, %v13681_v19  ;;  %v13732_v33 = vrot.slane %v6352_v21, %v13681_v19  ;;  %11441 = vmatpush3.bf16.msra.mxu0 %v12030_v36  ;;  %v6249_v9 = vpop.f32.mrf.mxu1  ;;  %v12056_v36 = vld [vmem:[%s14679_s7 + $0x108] sm:$0xff]   ;;  %v12058_v32 = vld [vmem:[%s14679_s7 + $0x100] sm:$0xff]   ;;  %v12059_v21 = vld [vmem:[%s14679_s7 + $0x1f8] sm:$0xff]  }
 0x390   :  { %v6279_v56 = vmax.f32 %v6272_v23, 0.0  ;;  %v6259_v30 = vadd.f32 %v6249_v9, %v13671_v34  ;;  %11442 = vmatprep.subr.bf16.mxu0 %v12305_v1  ;;  %v12034_v34 = vld [vmem:[%s14679_s7 + $0xa0] sm:$0xff]   ;;  %v12060_v27 = vld [vmem:[%s14679_s7 + $0x1b8] sm:$0xff]   ;;  %v12062_v23 = vld [vmem:[%s14679_s7 + $0x1b0] sm:$0xff]  }
 0x391   :  { %v13740_v54 = vrot.slane %v6353_v25, %v13681_v19  ;;  %v13743_v35 = vrot.slane %v6354_v26, %v13681_v19  ;;  %11463 = vmatpush3.bf16.msra.mxu1 %v12031_v8  ;;  %v11397_v12 = vpop.f32.mrf.mxu1  ;;  %v12061_v8 = vld [vmem:[%s14679_s7 + $0x1f0] sm:$0xff]   ;;  %v12063_v25 = vld [vmem:[%s14679_s7 + $0x1e8] sm:$0xff]   ;;  %v12065_v9 = vld [vmem:[%s14679_s7 + $0x1e0] sm:$0xff]  }
 0x392   :  { %v6283_v11 = vpack.c.bf16 %v6279_v56, %v6278_v29  ;;  %v9617_v7 = vpack.c.bf16 %v6279_v56, %v6279_v56  ;;  %v6273_v39 = vadd.f32 %v13676_v37, %v6259_v30  ;;  %11464 = vmatprep.subr.bf16.mxu1 %v12305_v1  ;;  %v12064_v26 = vld [vmem:[%s14679_s7 + $0x1a8] sm:$0xff]   ;;  %v12067_v29 = vld [vmem:[%s14679_s7 + $0x1d8] sm:$0xff]   ;;  %v12069_v30 = vld [vmem:[%s14679_s7 + $0x1d0] sm:$0xff]  }
 0x393   :  { %11443 = vmatpush3.bf16.msra.mxu0 %v12032_v55  ;;  %v12066_v55 = vld [vmem:[%s14679_s7 + $0x1a0] sm:$0xff]   ;;  %v12068_v56 = vld [vmem:[%s14679_s7 + $0x198] sm:$0xff]   ;;  %v12071_v12 = vld [vmem:[%s14679_s7 + $0x1c8] sm:$0xff]  }
 0x394   :  { %v6394_v13 = vrot.slane %v6283_v11, %v13681_v19  ;;  %v6401_v40 = vrot.slane %v9617_v7, %v13681_v19  ;;  %v6280_v2 = vmax.f32 %v6273_v39, 0.0  ;;  %11444 = vmatprep.subr.bf16.mxu0 %v12305_v1  ;;  %v12072_v11 = vld [vmem:[%s14679_s7 + $0x188] sm:$0xff]   ;;  %v12073_v7 = vld [vmem:[%s14679_s7 + $0x1c0] sm:$0xff]  }
 0x395   :  { %11465 = vmatpush3.bf16.msra.mxu1 %v12033_v38  ;;  %v12070_v38 = vld [vmem:[%s14679_s7 + $0x190] sm:$0xff]   ;;  %v12074_v39 = vld [vmem:[%s14679_s7 + $0x180] sm:$0xff]  }
 0x396   :  { %v6402_v37 = vcombine.high %v6394_v13, %v6394_v13  ;;  %v6403_v42 = vcombine.high %v6401_v40, %v6401_v40  ;;  %v13760_v44 = vrot.slane %v6394_v13, %v13681_v19  ;;  %v13763_v28 = vrot.slane %v6401_v40, %v13681_v19  ;;  %11466 = vmatprep.subr.bf16.mxu1 %v12305_v1  ;;  %v12076_v40 = vld [vmem:[%s14679_s7 + $0x238] sm:$0xff]  }
 0x397   :  { %v6284_v10 = vpack.c.bf16 %v6280_v2, %v6280_v2  ;;  %11445 = vmatpush3.bf16.msra.mxu0 %v12034_v34  ;;  %v12075_v34 = vld [vmem:[%s14679_s7 + $0x278] sm:$0xff]   ;;  %v6337_v13 = vcombine.high %v13703_v20, %v13703_v20  ;;  %v6335_v2 = vcombine.high %v13693_v0, %v13693_v0 }
 0x398   :  { %v13770_v31 = vrot.slane %v6402_v37, %v13681_v19  ;;  %v13773_v47 = vrot.slane %v6403_v42, %v13681_v19  ;;  %11446 = vmatprep.subr.bf16.mxu0 %v12305_v1  ;;  %v12080_v37 = vld [vmem:[%s14679_s7 + $0x228] sm:$0xff]   ;;  %v12081_v42 = vld [vmem:[%s14679_s7 + $0x260] sm:$0xff]  }
 0x399   :  { %v6442_v49 = vrot.slane %v6284_v10, %v13681_v19  ;;  %11467 = vmatpush3.bf16.msra.mxu1 %v12035_v41  ;;  %v12077_v41 = vld [vmem:[%s14679_s7 + $0x270] sm:$0xff]   ;;  %v12082_v10 = vld [vmem:[%s14679_s7 + $0x220] sm:$0xff]  }
 0x39a   :  { %11468 = vmatprep.subr.bf16.mxu1 %v12305_v1 }
 0x39b   :  { %v6443_v52 = vcombine.high %v6442_v49, %v6442_v49  ;;  %v13782_v57 = vrot.slane %v6442_v49, %v13681_v19  ;;  %11447 = vmatpush3.bf16.msra.mxu0 %v12036_v46  ;;  %v12083_v46 = vld [vmem:[%s14679_s7 + $0x258] sm:$0xff]  }
 0x39c   :  { %11448 = vmatprep.subr.bf16.mxu0 %v12305_v1  ;;  %v12084_v49 = vld [vmem:[%s14679_s7 + $0x218] sm:$0xff]  }
 0x39d   :  { %v13789_v15 = vrot.slane %v6443_v52, %v13681_v19  ;;  %11469 = vmatpush3.bf16.msra.mxu1 %v12037_v51  ;;  %v12041_v19 = vld [vmem:[%s14679_s7 + $0xc0] sm:$0xff]   ;;  %v12085_v51 = vld [vmem:[%s14679_s7 + $0x250] sm:$0xff]  }
 0x39e   :  { %11470 = vmatprep.subr.bf16.mxu1 %v12305_v1  ;;  %v12086_v52 = vld [vmem:[%s14679_s7 + $0x210] sm:$0xff]  }
 0x39f   :  { %11449 = vmatpush3.bf16.msra.mxu0 %v12038_v18  ;;  %v12087_v18 = vld [vmem:[%s14679_s7 + $0x248] sm:$0xff]  }
 0x3a0   :  { %11450 = vmatprep.subr.bf16.mxu0 %v12305_v1 }
 0x3a1   :  { %11471 = vmatpush3.bf16.msra.mxu1 %v12039_v43  ;;  %v12088_v43 = vld [vmem:[%s14679_s7 + $0x208] sm:$0xff]  }
 0x3a2   :  { %11472 = vmatprep.subr.bf16.mxu1 %v12305_v1 }
 0x3a3   :  { %11451 = vmatpush3.bf16.msra.mxu0 %v12040_v58  ;;  %v12089_v58 = vld [vmem:[%s14679_s7 + $0x240] sm:$0xff]  }
 0x3a4   :  { %11452 = vmatprep.subr.bf16.mxu0 %v12305_v1 }
 0x3a5   :  { %11473 = vmatpush3.bf16.msra.mxu1 %v12041_v19  ;;  %v12090_v19 = vld [vmem:[%s14679_s7 + $0x200] sm:$0xff]  }
 0x3a6   :  { %11498 = vmatprep.subr.bf16.mxu1 %v12305_v1 }
 0x3a7   :  { %11453 = vmatpush3.bf16.msra.mxu0 %v12042_v60  ;;  %v12091_v60 = vld [vmem:[%s14679_s7 + $0x2f8] sm:$0xff]  }
 0x3a8   :  { %11475 = vmatmul.mubr.bf16.vlgmr.msra.gmra.mxu1 %v6336_v22  ;;  %11478 = vmatprep.subr.bf16.mxu0 %v12305_v1  ;;  %v12093_v22 = vld [vmem:[%s14679_s7 + $0x2f0] sm:$0xff]  }
 0x3a9   :  { %11499 = vmatpush3.bf16.msra.mxu1 %v12043_v5  ;;  %11514 = vmatprep.mubr.msk.bf16.mxu1 %vm12306_vm0, %v12305_v1  ;;  %v12092_v5 = vld [vmem:[%s14679_s7 + $0x2b8] sm:$0xff]  }
 0x3aa   :  { %11455 = vmatmul.mubr.bf16.vlgmr.msra.gmra.mxu0 %v6334_v17  ;;  %11500 = vmatprep.subr.bf16.mxu1 %v12305_v1  ;;  %v12095_v17 = vld [vmem:[%s14679_s7 + $0x2e8] sm:$0xff]  }
 0x3ab   :  { %11479 = vmatpush3.bf16.msra.mxu0 %v12044_v50  ;;  %11494 = vmatprep.mubr.msk.bf16.mxu0 %vm12306_vm0, %v12305_v1  ;;  %v12094_v50 = vld [vmem:[%s14679_s7 + $0x2b0] sm:$0xff]  }
 0x3ac   :  { %11480 = vmatprep.subr.bf16.mxu0 %v12305_v1 }
 0x3ad   :  { %11501 = vmatpush3.bf16.msra.mxu1 %v12045_v59  ;;  %v12096_v59 = vld [vmem:[%s14679_s7 + $0x2a8] sm:$0xff]  }
 0x3ae   :  { %11502 = vmatprep.subr.bf16.mxu1 %v12305_v1 }
 0x3af   :  { %11481 = vmatpush3.bf16.msra.mxu0 %v12046_v4  ;;  %v12097_v4 = vld [vmem:[%s14679_s7 + $0x2e0] sm:$0xff]  }
 0x3b0   :  { %11482 = vmatprep.subr.bf16.mxu0 %v12305_v1 }
 0x3b1   :  { %11503 = vmatpush3.bf16.msra.mxu1 %v12047_v61  ;;  %v12098_v61 = vld [vmem:[%s14679_s7 + $0x2a0] sm:$0xff]  }
 0x3b2   :  { %11504 = vmatprep.subr.bf16.mxu1 %v12305_v1 }
 0x3b3   :  { %11483 = vmatpush3.bf16.msra.mxu0 %v12048_v6  ;;  %v12099_v6 = vld [vmem:[%s14679_s7 + $0x2d8] sm:$0xff]  }
 0x3b4   :  { %11484 = vmatprep.subr.bf16.mxu0 %v12305_v1 }
 0x3b5   :  { %11505 = vmatpush3.bf16.msra.mxu1 %v12049_v48  ;;  %v12100_v48 = vld [vmem:[%s14679_s7 + $0x298] sm:$0xff]  }
 0x3b6   :  { %11506 = vmatprep.subr.bf16.mxu1 %v12305_v1 }
 0x3b7   :  { %11485 = vmatpush3.bf16.msra.mxu0 %v12050_v63  ;;  %v12101_v63 = vld [vmem:[%s14679_s7 + $0x2d0] sm:$0xff]  }
 0x3b8   :  { %11486 = vmatprep.subr.bf16.mxu0 %v12305_v1 }
 0x3b9   :  { %11507 = vmatpush3.bf16.msra.mxu1 %v12051_v45  ;;  %v12102_v45 = vld [vmem:[%s14679_s7 + $0x290] sm:$0xff]  }
 0x3ba   :  { %11508 = vmatprep.subr.bf16.mxu1 %v12305_v1 }
 0x3bb   :  { %11487 = vmatpush3.bf16.msra.mxu0 %v12052_v62  ;;  %v12103_v62 = vld [vmem:[%s14679_s7 + $0x2c8] sm:$0xff]  }
 0x3bc   :  { %11488 = vmatprep.subr.bf16.mxu0 %v12305_v1 }
 0x3bd   :  { %11509 = vmatpush3.bf16.msra.mxu1 %v12053_v14  ;;  %v12104_v14 = vld [vmem:[%s14679_s7 + $0x288] sm:$0xff]  }
 0x3be   :  { %11510 = vmatprep.subr.bf16.mxu1 %v12305_v1 }
 0x3bf   :  { %11489 = vmatpush3.bf16.msra.mxu0 %v12054_v3  ;;  %v12105_v3 = vld [vmem:[%s14679_s7 + $0x2c0] sm:$0xff]  }
 0x3c0   :  { %11490 = vmatprep.subr.bf16.mxu0 %v12305_v1 }
 0x3c1   :  { %11511 = vmatpush3.bf16.msra.mxu1 %v12055_v16  ;;  %v12106_v16 = vld [vmem:[%s14679_s7 + $0x280] sm:$0xff]  }
 0x3c2   :  { %11512 = vmatprep.subr.bf16.mxu1 %v12305_v1 }
 0x3c3   :  { %11491 = vmatpush3.bf16.msra.mxu0 %v12056_v36  ;;  %v12107_v36 = vld [vmem:[%s14679_s7 + $0x378] sm:$0xff]  }
 0x3c4   :  { %11492 = vmatprep.subr.bf16.mxu0 %v12305_v1 }
 0x3c5   :  { %11513 = vmatpush3.bf16.msra.mxu1 %v12057_v53  ;;  %v6385_v53 = vcombine.high %v13740_v54, %v13740_v54 }
 0x3c6   :  { %11538 = vmatprep.subr.bf16.mxu1 %v12305_v1 }
 0x3c7   :  { %11493 = vmatpush3.bf16.msra.mxu0 %v12058_v32  ;;  %v12108_v32 = vld [vmem:[%s14679_s7 + $0x338] sm:$0xff]  }
 0x3c8   :  { %11515 = vmatmul.mubr.bf16.vlgmr.msra.gmra.mxu1 %v13703_v20  ;;  %11518 = vmatprep.subr.bf16.mxu0 %v12305_v1  ;;  %v12078_v20 = vld [vmem:[%s14679_s7 + $0x230] sm:$0xff]  }
 0x3c9   :  { %11539 = vmatpush3.bf16.msra.mxu1 %v12059_v21  ;;  %11554 = vmatprep.mubr.msk.bf16.mxu1 %vm12306_vm0, %v12305_v1  ;;  %v6383_v21 = vcombine.high %v13729_v24, %v13729_v24 }
 0x3ca   :  { %11495 = vmatmul.mubr.bf16.vlgmr.msra.gmra.mxu0 %v13693_v0  ;;  %11540 = vmatprep.subr.bf16.mxu1 %v12305_v1  ;;  %v12079_v0 = vld [vmem:[%s14679_s7 + $0x268] sm:$0xff]  }
 0x3cb   :  { %11519 = vmatpush3.bf16.msra.mxu0 %v12060_v27  ;;  %11534 = vmatprep.mubr.msk.bf16.mxu0 %vm12306_vm0, %v12305_v1  ;;  %v12109_v27 = vld [vmem:[%s14679_s7 + $0x370] sm:$0xff]  }
 0x3cc   :  { %11520 = vmatprep.subr.bf16.mxu0 %v12305_v1 }
 0x3cd   :  { %11541 = vmatpush3.bf16.msra.mxu1 %v12061_v8  ;;  %v12112_v8 = vld [vmem:[%s14679_s7 + $0x328] sm:$0xff]  }
 0x3ce   :  { %11542 = vmatprep.subr.bf16.mxu1 %v12305_v1 }
 0x3cf   :  { %11521 = vmatpush3.bf16.msra.mxu0 %v12062_v23  ;;  %v12113_v23 = vld [vmem:[%s14679_s7 + $0x360] sm:$0xff]  }
 0x3d0   :  { %11522 = vmatprep.subr.bf16.mxu0 %v12305_v1 }
 0x3d1   :  { %11543 = vmatpush3.bf16.msra.mxu1 %v12063_v25  ;;  %v12114_v25 = vld [vmem:[%s14679_s7 + $0x320] sm:$0xff]  }
 0x3d2   :  { %11544 = vmatprep.subr.bf16.mxu1 %v12305_v1 }
 0x3d3   :  { %11523 = vmatpush3.bf16.msra.mxu0 %v12064_v26  ;;  %v12115_v26 = vld [vmem:[%s14679_s7 + $0x358] sm:$0xff]  }
 0x3d4   :  { %11524 = vmatprep.subr.bf16.mxu0 %v12305_v1 }
 0x3d5   :  { %11545 = vmatpush3.bf16.msra.mxu1 %v12065_v9  ;;  %v12116_v9 = vld [vmem:[%s14679_s7 + $0x318] sm:$0xff]  }
 0x3d6   :  { %11546 = vmatprep.subr.bf16.mxu1 %v12305_v1 }
 0x3d7   :  { %11525 = vmatpush3.bf16.msra.mxu0 %v12066_v55  ;;  %v12117_v55 = vld [vmem:[%s14679_s7 + $0x350] sm:$0xff]  }
 0x3d8   :  { %11526 = vmatprep.subr.bf16.mxu0 %v12305_v1 }
 0x3d9   :  { %11547 = vmatpush3.bf16.msra.mxu1 %v12067_v29  ;;  %v12118_v29 = vld [vmem:[%s14679_s7 + $0x310] sm:$0xff]  }
 0x3da   :  { %11548 = vmatprep.subr.bf16.mxu1 %v12305_v1 }
 0x3db   :  { %11527 = vmatpush3.bf16.msra.mxu0 %v12068_v56  ;;  %v12119_v56 = vld [vmem:[%s14679_s7 + $0x348] sm:$0xff]  }
 0x3dc   :  { %11528 = vmatprep.subr.bf16.mxu0 %v12305_v1 }
 0x3dd   :  { %11549 = vmatpush3.bf16.msra.mxu1 %v12069_v30  ;;  %v12120_v30 = vld [vmem:[%s14679_s7 + $0x308] sm:$0xff]  }
 0x3de   :  { %11550 = vmatprep.subr.bf16.mxu1 %v12305_v1 }
 0x3df   :  { %11529 = vmatpush3.bf16.msra.mxu0 %v12070_v38  ;;  %v12121_v38 = vld [vmem:[%s14679_s7 + $0x340] sm:$0xff]  }
 0x3e0   :  { %11530 = vmatprep.subr.bf16.mxu0 %v12305_v1 }
 0x3e1   :  { %11551 = vmatpush3.bf16.msra.mxu1 %v12071_v12  ;;  %v12122_v12 = vld [vmem:[%s14679_s7 + $0x300] sm:$0xff]  }
 0x3e2   :  { %11552 = vmatprep.subr.bf16.mxu1 %v12305_v1 }
 0x3e3   :  { %11531 = vmatpush3.bf16.msra.mxu0 %v12072_v11  ;;  %v12123_v11 = vld [vmem:[%s14679_s7 + $0x3f8] sm:$0xff]  }
 0x3e4   :  { %11532 = vmatprep.subr.bf16.mxu0 %v12305_v1 }
 0x3e5   :  { %11553 = vmatpush3.bf16.msra.mxu1 %v12073_v7  ;;  %v12124_v7 = vld [vmem:[%s14679_s7 + $0x3b8] sm:$0xff]  }
 0x3e6   :  { %11578 = vmatprep.subr.bf16.mxu1 %v12305_v1 }
 0x3e7   :  { %11533 = vmatpush3.bf16.msra.mxu0 %v12074_v39 }
 0x3e8   :  { %11555 = vmatmul.mubr.bf16.vlgmr.msra.gmra.mxu1 %v6337_v13  ;;  %11558 = vmatprep.subr.bf16.mxu0 %v12305_v1 }
 0x3e9   :  { %11579 = vmatpush3.bf16.msra.mxu1 %v12075_v34  ;;  %11594 = vmatprep.mubr.msk.bf16.mxu1 %vm12306_vm0, %v12305_v1  ;;  %v12125_v34 = vld [vmem:[%s14679_s7 + $0x3f0] sm:$0xff]  }
 0x3ea   :  { %11535 = vmatmul.mubr.bf16.vlgmr.msra.gmra.mxu0 %v6335_v2  ;;  %11580 = vmatprep.subr.bf16.mxu1 %v12305_v1 }
 0x3eb   :  { %11559 = vmatpush3.bf16.msra.mxu0 %v12076_v40  ;;  %11574 = vmatprep.mubr.msk.bf16.mxu0 %vm12306_vm0, %v12305_v1 }
 0x3ec   :  { %11560 = vmatprep.subr.bf16.mxu0 %v12305_v1 }
 0x3ed   :  { %11581 = vmatpush3.bf16.msra.mxu1 %v12077_v41  ;;  %v12126_v41 = vld [vmem:[%s14679_s7 + $0x3b0] sm:$0xff]  }
 0x3ee   :  { %11582 = vmatprep.subr.bf16.mxu1 %v12305_v1 }
 0x3ef   :  { %11561 = vmatpush3.bf16.msra.mxu0 %v12078_v20 }
 0x3f0   :  { %11562 = vmatprep.subr.bf16.mxu0 %v12305_v1 }
 0x3f1   :  { %11583 = vmatpush3.bf16.msra.mxu1 %v12079_v0 }
 0x3f2   :  { %11584 = vmatprep.subr.bf16.mxu1 %v12305_v1 }
 0x3f3   :  { %11563 = vmatpush3.bf16.msra.mxu0 %v12080_v37  ;;  %v12127_v37 = vld [vmem:[%s14679_s7 + $0x3e8] sm:$0xff]  }
 0x3f4   :  { %11564 = vmatprep.subr.bf16.mxu0 %v12305_v1 }
 0x3f5   :  { %11585 = vmatpush3.bf16.msra.mxu1 %v12081_v42 }
 0x3f6   :  { %11586 = vmatprep.subr.bf16.mxu1 %v12305_v1 }
 0x3f7   :  { %11565 = vmatpush3.bf16.msra.mxu0 %v12082_v10 }
 0x3f8   :  { %11566 = vmatprep.subr.bf16.mxu0 %v12305_v1 }
 0x3f9   :  { %11587 = vmatpush3.bf16.msra.mxu1 %v12083_v46  ;;  %v12128_v46 = vld [vmem:[%s14679_s7 + $0x3a8] sm:$0xff]  }
 0x3fa   :  { %11588 = vmatprep.subr.bf16.mxu1 %v12305_v1 }
 0x3fb   :  { %11567 = vmatpush3.bf16.msra.mxu0 %v12084_v49 }
 0x3fc   :  { %11568 = vmatprep.subr.bf16.mxu0 %v12305_v1 }
 0x3fd   :  { %11589 = vmatpush3.bf16.msra.mxu1 %v12085_v51  ;;  %v12129_v51 = vld [vmem:[%s14679_s7 + $0x3e0] sm:$0xff]  }
 0x3fe   :  { %11590 = vmatprep.subr.bf16.mxu1 %v12305_v1 }
 0x3ff   :  { %11569 = vmatpush3.bf16.msra.mxu0 %v12086_v52  ;;  %v12130_v52 = vld [vmem:[%s14679_s7 + $0x3a0] sm:$0xff]  }
 0x400   :  { %11570 = vmatprep.subr.bf16.mxu0 %v12305_v1 }
 0x401   :  { %11591 = vmatpush3.bf16.msra.mxu1 %v12087_v18  ;;  %v12131_v18 = vld [vmem:[%s14679_s7 + $0x3d8] sm:$0xff]  }
 0x402   :  { %11592 = vmatprep.subr.bf16.mxu1 %v12305_v1 }
 0x403   :  { %11571 = vmatpush3.bf16.msra.mxu0 %v12088_v43  ;;  %v12132_v43 = vld [vmem:[%s14679_s7 + $0x398] sm:$0xff]  }
 0x404   :  { %11572 = vmatprep.subr.bf16.mxu0 %v12305_v1 }
 0x405   :  { %11593 = vmatpush3.bf16.msra.mxu1 %v12089_v58  ;;  %v12133_v58 = vld [vmem:[%s14679_s7 + $0x3d0] sm:$0xff]  }
 0x406   :  { %11618 = vmatprep.subr.bf16.mxu1 %v12305_v1 }
 0x407   :  { %11573 = vmatpush3.bf16.msra.mxu0 %v12090_v19  ;;  %v12134_v19 = vld [vmem:[%s14679_s7 + $0x390] sm:$0xff]  }
 0x408   :  { %11595 = vmatmul.mubr.bf16.vlgmr.msra.gmra.mxu1 %v13740_v54  ;;  %11598 = vmatprep.subr.bf16.mxu0 %v12305_v1  ;;  %v12110_v54 = vld [vmem:[%s14679_s7 + $0x330] sm:$0xff]  }
 0x409   :  { %11619 = vmatpush3.bf16.msra.mxu1 %v12091_v60  ;;  %11634 = vmatprep.mubr.msk.bf16.mxu1 %vm12306_vm0, %v12305_v1  ;;  %v12135_v60 = vld [vmem:[%s14679_s7 + $0x3c8] sm:$0xff]  }
 0x40a   :  { %11575 = vmatmul.mubr.bf16.vlgmr.msra.gmra.mxu0 %v13729_v24  ;;  %11620 = vmatprep.subr.bf16.mxu1 %v12305_v1  ;;  %v12111_v24 = vld [vmem:[%s14679_s7 + $0x368] sm:$0xff]  }
 0x40b   :  { %11599 = vmatpush3.bf16.msra.mxu0 %v12092_v5  ;;  %11614 = vmatprep.mubr.msk.bf16.mxu0 %vm12306_vm0, %v12305_v1  ;;  %v12136_v5 = vld [vmem:[%s14679_s7 + $0x388] sm:$0xff]  }
 0x40c   :  { %11600 = vmatprep.subr.bf16.mxu0 %v12305_v1 }
 0x40d   :  { %11621 = vmatpush3.bf16.msra.mxu1 %v12093_v22  ;;  %v12137_v22 = vld [vmem:[%s14679_s7 + $0x3c0] sm:$0xff]  }
 0x40e   :  { %11622 = vmatprep.subr.bf16.mxu1 %v12305_v1 }
 0x40f   :  { %11601 = vmatpush3.bf16.msra.mxu0 %v12094_v50  ;;  %v12138_v50 = vld [vmem:[%s14679_s7 + $0x380] sm:$0xff]  }
 0x410   :  { %11602 = vmatprep.subr.bf16.mxu0 %v12305_v1 }
 0x411   :  { %11623 = vmatpush3.bf16.msra.mxu1 %v12095_v17  ;;  %v12139_v17 = vld [vmem:[%s14679_s7 + $0x478] sm:$0xff]  }
 0x412   :  { %11624 = vmatprep.subr.bf16.mxu1 %v12305_v1 }
 0x413   :  { %11603 = vmatpush3.bf16.msra.mxu0 %v12096_v59  ;;  %v6386_v59 = vcombine.high %v13743_v35, %v13743_v35 }
 0x414   :  { %11604 = vmatprep.subr.bf16.mxu0 %v12305_v1 }
 0x415   :  { %11625 = vmatpush3.bf16.msra.mxu1 %v12097_v4  ;;  %v12140_v4 = vld [vmem:[%s14679_s7 + $0x438] sm:$0xff]  }
 0x416   :  { %11626 = vmatprep.subr.bf16.mxu1 %v12305_v1 }
 0x417   :  { %11605 = vmatpush3.bf16.msra.mxu0 %v12098_v61  ;;  %v6384_v61 = vcombine.high %v13732_v33, %v13732_v33 }
 0x418   :  { %11606 = vmatprep.subr.bf16.mxu0 %v12305_v1 }
 0x419   :  { %11627 = vmatpush3.bf16.msra.mxu1 %v12099_v6 }
 0x41a   :  { %11628 = vmatprep.subr.bf16.mxu1 %v12305_v1 }
 0x41b   :  { %11607 = vmatpush3.bf16.msra.mxu0 %v12100_v48  ;;  %v12141_v48 = vld [vmem:[%s14679_s7 + $0x470] sm:$0xff]  }
 0x41c   :  { %11608 = vmatprep.subr.bf16.mxu0 %v12305_v1 }
 0x41d   :  { %11629 = vmatpush3.bf16.msra.mxu1 %v12101_v63 }
 0x41e   :  { %11630 = vmatprep.subr.bf16.mxu1 %v12305_v1 }
 0x41f   :  { %11609 = vmatpush3.bf16.msra.mxu0 %v12102_v45 }
 0x420   :  { %11610 = vmatprep.subr.bf16.mxu0 %v12305_v1 }
 0x421   :  { %11631 = vmatpush3.bf16.msra.mxu1 %v12103_v62 }
 0x422   :  { %11632 = vmatprep.subr.bf16.mxu1 %v12305_v1 }
 0x423   :  { %11611 = vmatpush3.bf16.msra.mxu0 %v12104_v14 }
 0x424   :  { %11612 = vmatprep.subr.bf16.mxu0 %v12305_v1 }
 0x425   :  { %11633 = vmatpush3.bf16.msra.mxu1 %v12105_v3  ;;  %v12143_v3 = vld [vmem:[%s14679_s7 + $0x468] sm:$0xff]  }
 0x426   :  { %11658 = vmatprep.subr.bf16.mxu1 %v12305_v1 }
 0x427   :  { %11613 = vmatpush3.bf16.msra.mxu0 %v12106_v16 }
 0x428   :  { %11635 = vmatmul.mubr.bf16.vlgmr.msra.gmra.mxu1 %v6385_v53  ;;  %11638 = vmatprep.subr.bf16.mxu0 %v12305_v1 }
 0x429   :  { %11659 = vmatpush3.bf16.msra.mxu1 %v12107_v36  ;;  %11674 = vmatprep.mubr.msk.bf16.mxu1 %vm12306_vm0, %v12305_v1 }
 0x42a   :  { %11615 = vmatmul.mubr.bf16.vlgmr.msra.gmra.mxu0 %v6383_v21  ;;  %11660 = vmatprep.subr.bf16.mxu1 %v12305_v1 }
 0x42b   :  { %11639 = vmatpush3.bf16.msra.mxu0 %v12108_v32  ;;  %11654 = vmatprep.mubr.msk.bf16.mxu0 %vm12306_vm0, %v12305_v1  ;;  %v12144_v32 = vld [vmem:[%s14679_s7 + $0x428] sm:$0xff]  }
 0x42c   :  { %11640 = vmatprep.subr.bf16.mxu0 %v12305_v1 }
 0x42d   :  { %11661 = vmatpush3.bf16.msra.mxu1 %v12109_v27  ;;  %v12145_v27 = vld [vmem:[%s14679_s7 + $0x460] sm:$0xff]  }
 0x42e   :  { %11662 = vmatprep.subr.bf16.mxu1 %v12305_v1 }
 0x42f   :  { %11641 = vmatpush3.bf16.msra.mxu0 %v12110_v54  ;;  %v12146_v54 = vld [vmem:[%s14679_s7 + $0x420] sm:$0xff]  }
 0x430   :  { %11642 = vmatprep.subr.bf16.mxu0 %v12305_v1 }
 0x431   :  { %11663 = vmatpush3.bf16.msra.mxu1 %v12111_v24  ;;  %v12147_v24 = vld [vmem:[%s14679_s7 + $0x458] sm:$0xff]  }
 0x432   :  { %11664 = vmatprep.subr.bf16.mxu1 %v12305_v1 }
 0x433   :  { %11643 = vmatpush3.bf16.msra.mxu0 %v12112_v8  ;;  %v12148_v8 = vld [vmem:[%s14679_s7 + $0x418] sm:$0xff]  }
 0x434   :  { %11644 = vmatprep.subr.bf16.mxu0 %v12305_v1 }
 0x435   :  { %11665 = vmatpush3.bf16.msra.mxu1 %v12113_v23  ;;  %v12149_v23 = vld [vmem:[%s14679_s7 + $0x450] sm:$0xff]  }
 0x436   :  { %11666 = vmatprep.subr.bf16.mxu1 %v12305_v1 }
 0x437   :  { %11645 = vmatpush3.bf16.msra.mxu0 %v12114_v25  ;;  %v12150_v25 = vld [vmem:[%s14679_s7 + $0x410] sm:$0xff]  }
 0x438   :  { %11646 = vmatprep.subr.bf16.mxu0 %v12305_v1 }
 0x439   :  { %11667 = vmatpush3.bf16.msra.mxu1 %v12115_v26  ;;  %v12151_v26 = vld [vmem:[%s14679_s7 + $0x448] sm:$0xff]  }
 0x43a   :  { %11668 = vmatprep.subr.bf16.mxu1 %v12305_v1 }
 0x43b   :  { %11647 = vmatpush3.bf16.msra.mxu0 %v12116_v9  ;;  %v12152_v9 = vld [vmem:[%s14679_s7 + $0x408] sm:$0xff]  }
 0x43c   :  { %11648 = vmatprep.subr.bf16.mxu0 %v12305_v1 }
 0x43d   :  { %11669 = vmatpush3.bf16.msra.mxu1 %v12117_v55  ;;  %v12153_v55 = vld [vmem:[%s14679_s7 + $0x440] sm:$0xff]  }
 0x43e   :  { %11670 = vmatprep.subr.bf16.mxu1 %v12305_v1 }
 0x43f   :  { %11649 = vmatpush3.bf16.msra.mxu0 %v12118_v29  ;;  %v12154_v29 = vld [vmem:[%s14679_s7 + $0x400] sm:$0xff]  }
 0x440   :  { %11650 = vmatprep.subr.bf16.mxu0 %v12305_v1 }
 0x441   :  { %11671 = vmatpush3.bf16.msra.mxu1 %v12119_v56  ;;  %v12155_v56 = vld [vmem:[%s14679_s7 + $0x4f8] sm:$0xff]  }
 0x442   :  { %11672 = vmatprep.subr.bf16.mxu1 %v12305_v1 }
 0x443   :  { %11651 = vmatpush3.bf16.msra.mxu0 %v12120_v30  ;;  %v12156_v30 = vld [vmem:[%s14679_s7 + $0x4b8] sm:$0xff]  }
 0x444   :  { %11652 = vmatprep.subr.bf16.mxu0 %v12305_v1 }
 0x445   :  { %11673 = vmatpush3.bf16.msra.mxu1 %v12121_v38 }
 0x446   :  { %11698 = vmatprep.subr.bf16.mxu1 %v12305_v1 }
 0x447   :  { %11653 = vmatpush3.bf16.msra.mxu0 %v12122_v12  ;;  %v12157_v12 = vld [vmem:[%s14679_s7 + $0x4f0] sm:$0xff]  }
 0x448   :  { %11675 = vmatmul.mubr.bf16.vlgmr.msra.gmra.mxu1 %v13743_v35  ;;  %v6691_v39 = vpop.f32.mrf.mxu1  ;;  %11678 = vmatprep.subr.bf16.mxu0 %v12305_v1 }
 0x449   :  { %11699 = vmatpush3.bf16.msra.mxu1 %v12123_v11  ;;  %11714 = vmatprep.mubr.msk.bf16.mxu1 %vm12306_vm0, %v12305_v1 }
 0x44a   :  { %11655 = vmatmul.mubr.bf16.vlgmr.msra.gmra.mxu0 %v13732_v33  ;;  %v6603_v13 = vpop.f32.mrf.mxu0  ;;  %v11436_v40 = vpop.f32.mrf.mxu1  ;;  %11700 = vmatprep.subr.bf16.mxu1 %v12305_v1  ;;  %v12142_v33 = vld [vmem:[%s14679_s7 + $0x430] sm:$0xff]  }
 0x44b   :  { %v14179_v2 = vadd.f32 %v6691_v39, %v6603_v13  ;;  %11679 = vmatpush3.bf16.msra.mxu0 %v12124_v7  ;;  %11694 = vmatprep.mubr.msk.bf16.mxu0 %vm12306_vm0, %v12305_v1 }
 0x44c   :  { %v11416_v20 = vpop.f32.mrf.mxu0  ;;  %v6694_v0 = vpop.f32.mrf.mxu1  ;;  %11680 = vmatprep.subr.bf16.mxu0 %v12305_v1 }
 0x44d   :  { %11701 = vmatpush3.bf16.msra.mxu1 %v12125_v34  ;;  %v12158_v34 = vld [vmem:[%s14679_s7 + $0x4b0] sm:$0xff]  }
 0x44e   :  { %v6606_v42 = vpop.f32.mrf.mxu0  ;;  %v11437_v10 = vpop.f32.mrf.mxu1  ;;  %11702 = vmatprep.subr.bf16.mxu1 %v12305_v1 }
 0x44f   :  { %11681 = vmatpush3.bf16.msra.mxu0 %v12126_v41  ;;  %v12161_v10 = vld [vmem:[%s14679_s7 + $0x4e0] sm:$0xff]  }
 0x450   :  { %v11417_v49 = vpop.f32.mrf.mxu0  ;;  %11682 = vmatprep.subr.bf16.mxu0 %v12305_v1 }
 0x451   :  { %11703 = vmatpush3.bf16.msra.mxu1 %v12127_v37  ;;  %v12160_v37 = vld [vmem:[%s14679_s7 + $0x4a8] sm:$0xff]   ;;  %v12163_v49 = vld [vmem:[%s14679_s7 + $0x4d8] sm:$0xff]  }
 0x452   :  { %11704 = vmatprep.subr.bf16.mxu1 %v12305_v1 }
 0x453   :  { %11683 = vmatpush3.bf16.msra.mxu0 %v12128_v46  ;;  %v12162_v46 = vld [vmem:[%s14679_s7 + $0x4a0] sm:$0xff]  }
 0x454   :  { %11684 = vmatprep.subr.bf16.mxu0 %v12305_v1 }
 0x455   :  { %11705 = vmatpush3.bf16.msra.mxu1 %v12129_v51  ;;  %v12164_v51 = vld [vmem:[%s14679_s7 + $0x498] sm:$0xff]  }
 0x456   :  { %11706 = vmatprep.subr.bf16.mxu1 %v12305_v1 }
 0x457   :  { %11685 = vmatpush3.bf16.msra.mxu0 %v12130_v52  ;;  %v12165_v52 = vld [vmem:[%s14679_s7 + $0x4d0] sm:$0xff]  }
 0x458   :  { %11686 = vmatprep.subr.bf16.mxu0 %v12305_v1 }
 0x459   :  { %11707 = vmatpush3.bf16.msra.mxu1 %v12131_v18  ;;  %v12166_v18 = vld [vmem:[%s14679_s7 + $0x490] sm:$0xff]  }
 0x45a   :  { %11708 = vmatprep.subr.bf16.mxu1 %v12305_v1 }
 0x45b   :  { %11687 = vmatpush3.bf16.msra.mxu0 %v12132_v43  ;;  %v12167_v43 = vld [vmem:[%s14679_s7 + $0x4c8] sm:$0xff]  }
 0x45c   :  { %11688 = vmatprep.subr.bf16.mxu0 %v12305_v1 }
 0x45d   :  { %11709 = vmatpush3.bf16.msra.mxu1 %v12133_v58  ;;  %v12168_v58 = vld [vmem:[%s14679_s7 + $0x488] sm:$0xff]  }
 0x45e   :  { %11710 = vmatprep.subr.bf16.mxu1 %v12305_v1 }
 0x45f   :  { %11689 = vmatpush3.bf16.msra.mxu0 %v12134_v19  ;;  %v12169_v19 = vld [vmem:[%s14679_s7 + $0x4c0] sm:$0xff]  }
 0x460   :  { %11690 = vmatprep.subr.bf16.mxu0 %v12305_v1 }
 0x461   :  { %11711 = vmatpush3.bf16.msra.mxu1 %v12135_v60  ;;  %v12170_v60 = vld [vmem:[%s14679_s7 + $0x480] sm:$0xff]  }
 0x462   :  { %11712 = vmatprep.subr.bf16.mxu1 %v12305_v1 }
 0x463   :  { %11691 = vmatpush3.bf16.msra.mxu0 %v12136_v5  ;;  %v12171_v5 = vld [vmem:[%s14679_s7 + $0x578] sm:$0xff]  }
 0x464   :  { %11692 = vmatprep.subr.bf16.mxu0 %v12305_v1 }
 0x465   :  { %11713 = vmatpush3.bf16.msra.mxu1 %v12137_v22  ;;  %v6434_v22 = vcombine.high %v13770_v31, %v13770_v31 }
 0x466   :  { %11738 = vmatprep.subr.bf16.mxu1 %v12305_v1 }
 0x467   :  { %11693 = vmatpush3.bf16.msra.mxu0 %v12138_v50  ;;  %v12172_v50 = vld [vmem:[%s14679_s7 + $0x538] sm:$0xff]  }
 0x468   :  { %v6902_v6 = vpop.f32.mrf.mxu1  ;;  %11715 = vmatmul.mubr.bf16.vlgmr.msra.gmra.mxu1 %v6386_v59  ;;  %11718 = vmatprep.subr.bf16.mxu0 %v12305_v1 }
 0x469   :  { %11739 = vmatpush3.bf16.msra.mxu1 %v12139_v17  ;;  %11754 = vmatprep.mubr.msk.bf16.mxu1 %vm12306_vm0, %v12305_v1  ;;  %v6432_v17 = vcombine.high %v13760_v44, %v13760_v44 }
 0x46a   :  { %v6796_v35 = vpop.f32.mrf.mxu0  ;;  %v11476_v63 = vpop.f32.mrf.mxu1  ;;  %11695 = vmatmul.mubr.bf16.vlgmr.msra.gmra.mxu0 %v6384_v61  ;;  %11740 = vmatprep.subr.bf16.mxu1 %v12305_v1 }
 0x46b   :  { %v6802_v45 = vadd.f32 %v6796_v35, %v14179_v2  ;;  %11719 = vmatpush3.bf16.msra.mxu0 %v12140_v4  ;;  %11734 = vmatprep.mubr.msk.bf16.mxu0 %vm12306_vm0, %v12305_v1  ;;  %v12159_v2 = vld [vmem:[%s14679_s7 + $0x4e8] sm:$0xff]   ;;  %v12173_v4 = vld [vmem:[%s14679_s7 + $0x570] sm:$0xff]  }
 0x46c   :  { %v11456_v62 = vpop.f32.mrf.mxu0  ;;  %v6905_v14 = vpop.f32.mrf.mxu1  ;;  %11720 = vmatprep.subr.bf16.mxu0 %v12305_v1  ;;  %v12175_v63 = vld [vmem:[%s14679_s7 + $0x568] sm:$0xff]  }
 0x46d   :  { %11741 = vmatpush3.bf16.msra.mxu1 %v12141_v48  ;;  %v6908_v16 = vadd.f32 %v6902_v6, %v6802_v45  ;;  %v12176_v14 = vld [vmem:[%s14679_s7 + $0x528] sm:$0xff]  }
 0x46e   :  { %v6799_v36 = vpop.f32.mrf.mxu0  ;;  %v11477_v53 = vpop.f32.mrf.mxu1  ;;  %11742 = vmatprep.subr.bf16.mxu1 %v12305_v1 }
 0x46f   :  { %11721 = vmatpush3.bf16.msra.mxu0 %v12142_v33  ;;  %v12178_v36 = vld [vmem:[%s14679_s7 + $0x520] sm:$0xff]   ;;  %v12179_v53 = vld [vmem:[%s14679_s7 + $0x558] sm:$0xff]  }
 0x470   :  { %v11457_v21 = vpop.f32.mrf.mxu0  ;;  %11722 = vmatprep.subr.bf16.mxu0 %v12305_v1 }
 0x471   :  { %11743 = vmatpush3.bf16.msra.mxu1 %v12143_v3  ;;  %v12181_v21 = vld [vmem:[%s14679_s7 + $0x550] sm:$0xff]  }
 0x472   :  { %11744 = vmatprep.subr.bf16.mxu1 %v12305_v1 }
 0x473   :  { %11723 = vmatpush3.bf16.msra.mxu0 %v12144_v32  ;;  %v12180_v32 = vld [vmem:[%s14679_s7 + $0x518] sm:$0xff]  }
 0x474   :  { %11724 = vmatprep.subr.bf16.mxu0 %v12305_v1 }
 0x475   :  { %11745 = vmatpush3.bf16.msra.mxu1 %v12145_v27  ;;  %v12182_v27 = vld [vmem:[%s14679_s7 + $0x510] sm:$0xff]  }
 0x476   :  { %11746 = vmatprep.subr.bf16.mxu1 %v12305_v1 }
 0x477   :  { %11725 = vmatpush3.bf16.msra.mxu0 %v12146_v54  ;;  %v12183_v54 = vld [vmem:[%s14679_s7 + $0x548] sm:$0xff]  }
 0x478   :  { %11726 = vmatprep.subr.bf16.mxu0 %v12305_v1 }
 0x479   :  { %11747 = vmatpush3.bf16.msra.mxu1 %v12147_v24  ;;  %v12184_v24 = vld [vmem:[%s14679_s7 + $0x508] sm:$0xff]  }
 0x47a   :  { %11748 = vmatprep.subr.bf16.mxu1 %v12305_v1 }
 0x47b   :  { %11727 = vmatpush3.bf16.msra.mxu0 %v12148_v8  ;;  %v12185_v8 = vld [vmem:[%s14679_s7 + $0x540] sm:$0xff]  }
 0x47c   :  { %11728 = vmatprep.subr.bf16.mxu0 %v12305_v1 }
 0x47d   :  { %11749 = vmatpush3.bf16.msra.mxu1 %v12149_v23  ;;  %v12186_v23 = vld [vmem:[%s14679_s7 + $0x500] sm:$0xff]  }
 0x47e   :  { %11750 = vmatprep.subr.bf16.mxu1 %v12305_v1 }
 0x47f   :  { %11729 = vmatpush3.bf16.msra.mxu0 %v12150_v25  ;;  %v12187_v25 = vld [vmem:[%s14679_s7 + $0x5f8] sm:$0xff]  }
 0x480   :  { %11730 = vmatprep.subr.bf16.mxu0 %v12305_v1 }
 0x481   :  { %11751 = vmatpush3.bf16.msra.mxu1 %v12151_v26  ;;  %v12188_v26 = vld [vmem:[%s14679_s7 + $0x5b8] sm:$0xff]  }
 0x482   :  { %11752 = vmatprep.subr.bf16.mxu1 %v12305_v1 }
 0x483   :  { %11731 = vmatpush3.bf16.msra.mxu0 %v12152_v9 }
 0x484   :  { %11732 = vmatprep.subr.bf16.mxu0 %v12305_v1 }
 0x485   :  { %11753 = vmatpush3.bf16.msra.mxu1 %v12153_v55  ;;  %v12189_v55 = vld [vmem:[%s14679_s7 + $0x5f0] sm:$0xff]  }
 0x486   :  { %11778 = vmatprep.subr.bf16.mxu1 %v12305_v1 }
 0x487   :  { %11733 = vmatpush3.bf16.msra.mxu0 %v12154_v29 }
 0x488   :  { %v7114_v38 = vpop.f32.mrf.mxu1  ;;  %11755 = vmatmul.mubr.bf16.vlgmr.msra.gmra.mxu1 %v13770_v31  ;;  %11758 = vmatprep.subr.bf16.mxu0 %v12305_v1 }
 0x489   :  { %11779 = vmatpush3.bf16.msra.mxu1 %v12155_v56  ;;  %11794 = vmatprep.mubr.msk.bf16.mxu1 %vm12306_vm0, %v12305_v1 }
 0x48a   :  { %v7008_v11 = vpop.f32.mrf.mxu0  ;;  %v11516_v7 = vpop.f32.mrf.mxu1  ;;  %11735 = vmatmul.mubr.bf16.vlgmr.msra.gmra.mxu0 %v13760_v44  ;;  %11780 = vmatprep.subr.bf16.mxu1 %v12305_v1  ;;  %v12174_v44 = vld [vmem:[%s14679_s7 + $0x530] sm:$0xff]  }
 0x48b   :  { %v7014_v39 = vadd.f32 %v7008_v11, %v6908_v16  ;;  %11759 = vmatpush3.bf16.msra.mxu0 %v12156_v30  ;;  %11774 = vmatprep.mubr.msk.bf16.mxu0 %vm12306_vm0, %v12305_v1  ;;  %v12177_v16 = vld [vmem:[%s14679_s7 + $0x560] sm:$0xff]   ;;  %v12191_v7 = vld [vmem:[%s14679_s7 + $0x5e8] sm:$0xff]  }
 0x48c   :  { %v11496_v13 = vpop.f32.mrf.mxu0  ;;  %v7117_v40 = vpop.f32.mrf.mxu1  ;;  %11760 = vmatprep.subr.bf16.mxu0 %v12305_v1 }
 0x48d   :  { %11781 = vmatpush3.bf16.msra.mxu1 %v12157_v12  ;;  %v7120_v41 = vadd.f32 %v7114_v38, %v7014_v39  ;;  %v12190_v38 = vld [vmem:[%s14679_s7 + $0x5b0] sm:$0xff]   ;;  %v12192_v40 = vld [vmem:[%s14679_s7 + $0x5a8] sm:$0xff]  }
 0x48e   :  { %v7011_v20 = vpop.f32.mrf.mxu0  ;;  %v11517_v0 = vpop.f32.mrf.mxu1  ;;  %11782 = vmatprep.subr.bf16.mxu1 %v12305_v1 }
 0x48f   :  { %11761 = vmatpush3.bf16.msra.mxu0 %v12158_v34  ;;  %v12194_v20 = vld [vmem:[%s14679_s7 + $0x5a0] sm:$0xff]   ;;  %v12195_v0 = vld [vmem:[%s14679_s7 + $0x5d8] sm:$0xff]  }
 0x490   :  { %v11497_v42 = vpop.f32.mrf.mxu0  ;;  %11762 = vmatprep.subr.bf16.mxu0 %v12305_v1 }
 0x491   :  { %11783 = vmatpush3.bf16.msra.mxu1 %v12159_v2  ;;  %v12197_v42 = vld [vmem:[%s14679_s7 + $0x5d0] sm:$0xff]  }
 0x492   :  { %11784 = vmatprep.subr.bf16.mxu1 %v12305_v1 }
 0x493   :  { %11763 = vmatpush3.bf16.msra.mxu0 %v12160_v37  ;;  %v12196_v37 = vld [vmem:[%s14679_s7 + $0x598] sm:$0xff]  }
 0x494   :  { %11764 = vmatprep.subr.bf16.mxu0 %v12305_v1 }
 0x495   :  { %11785 = vmatpush3.bf16.msra.mxu1 %v12161_v10  ;;  %v12198_v10 = vld [vmem:[%s14679_s7 + $0x590] sm:$0xff]  }
 0x496   :  { %11786 = vmatprep.subr.bf16.mxu1 %v12305_v1 }
 0x497   :  { %11765 = vmatpush3.bf16.msra.mxu0 %v12162_v46  ;;  %v12199_v46 = vld [vmem:[%s14679_s7 + $0x5c8] sm:$0xff]  }
 0x498   :  { %11766 = vmatprep.subr.bf16.mxu0 %v12305_v1 }
 0x499   :  { %11787 = vmatpush3.bf16.msra.mxu1 %v12163_v49  ;;  %v12200_v49 = vld [vmem:[%s14679_s7 + $0x588] sm:$0xff]  }
 0x49a   :  { %11788 = vmatprep.subr.bf16.mxu1 %v12305_v1 }
 0x49b   :  { %11767 = vmatpush3.bf16.msra.mxu0 %v12164_v51  ;;  %v12201_v51 = vld [vmem:[%s14679_s7 + $0x5c0] sm:$0xff]  }
 0x49c   :  { %11768 = vmatprep.subr.bf16.mxu0 %v12305_v1 }
 0x49d   :  { %11789 = vmatpush3.bf16.msra.mxu1 %v12165_v52  ;;  %v12202_v52 = vld [vmem:[%s14679_s7 + $0x580] sm:$0xff]  }
 0x49e   :  { %11790 = vmatprep.subr.bf16.mxu1 %v12305_v1 }
 0x49f   :  { %11769 = vmatpush3.bf16.msra.mxu0 %v12166_v18  ;;  %v12203_v18 = vld [vmem:[%s14679_s7 + $0x678] sm:$0xff]  }
 0x4a0   :  { %11770 = vmatprep.subr.bf16.mxu0 %v12305_v1 }
 0x4a1   :  { %11791 = vmatpush3.bf16.msra.mxu1 %v12167_v43  ;;  %v6435_v43 = vcombine.high %v13773_v47, %v13773_v47 }
 0x4a2   :  { %11792 = vmatprep.subr.bf16.mxu1 %v12305_v1 }
 0x4a3   :  { %11771 = vmatpush3.bf16.msra.mxu0 %v12168_v58  ;;  %v12204_v58 = vld [vmem:[%s14679_s7 + $0x638] sm:$0xff]  }
 0x4a4   :  { %11772 = vmatprep.subr.bf16.mxu0 %v12305_v1 }
 0x4a5   :  { %11793 = vmatpush3.bf16.msra.mxu1 %v12169_v19  ;;  %v6433_v19 = vcombine.high %v13763_v28, %v13763_v28 }
 0x4a6   :  { %11818 = vmatprep.subr.bf16.mxu1 %v12305_v1 }
 0x4a7   :  { %11773 = vmatpush3.bf16.msra.mxu0 %v12170_v60 }
 0x4a8   :  { %v7326_v59 = vpop.f32.mrf.mxu1  ;;  %11795 = vmatmul.mubr.bf16.vlgmr.msra.gmra.mxu1 %v6434_v22  ;;  %11798 = vmatprep.subr.bf16.mxu0 %v12305_v1 }
 0x4a9   :  { %11819 = vmatpush3.bf16.msra.mxu1 %v12171_v5  ;;  %11834 = vmatprep.mubr.msk.bf16.mxu1 %vm12306_vm0, %v12305_v1  ;;  %v12205_v5 = vld [vmem:[%s14679_s7 + $0x670] sm:$0xff]  }
 0x4aa   :  { %v7220_v31 = vpop.f32.mrf.mxu0  ;;  %v11556_v61 = vpop.f32.mrf.mxu1  ;;  %11775 = vmatmul.mubr.bf16.vlgmr.msra.gmra.mxu0 %v6432_v17  ;;  %11820 = vmatprep.subr.bf16.mxu1 %v12305_v1 }
 0x4ab   :  { %v7226_v6 = vadd.f32 %v7220_v31, %v7120_v41  ;;  %11799 = vmatpush3.bf16.msra.mxu0 %v12172_v50  ;;  %11814 = vmatprep.mubr.msk.bf16.mxu0 %vm12306_vm0, %v12305_v1  ;;  %v12193_v41 = vld [vmem:[%s14679_s7 + $0x5e0] sm:$0xff]  }
 0x4ac   :  { %v11536_v48 = vpop.f32.mrf.mxu0  ;;  %v7329_v35 = vpop.f32.mrf.mxu1  ;;  %11800 = vmatprep.subr.bf16.mxu0 %v12305_v1 }
 0x4ad   :  { %11821 = vmatpush3.bf16.msra.mxu1 %v12173_v4  ;;  %v7332_v45 = vadd.f32 %v7326_v59, %v7226_v6  ;;  %v12207_v4 = vld [vmem:[%s14679_s7 + $0x668] sm:$0xff]   ;;  %v12209_v35 = vld [vmem:[%s14679_s7 + $0x660] sm:$0xff]  }
 0x4ae   :  { %v7223_v33 = vpop.f32.mrf.mxu0  ;;  %v11557_v62 = vpop.f32.mrf.mxu1  ;;  %11822 = vmatprep.subr.bf16.mxu1 %v12305_v1 }
 0x4af   :  { %11801 = vmatpush3.bf16.msra.mxu0 %v12174_v44  ;;  %v12208_v44 = vld [vmem:[%s14679_s7 + $0x628] sm:$0xff]   ;;  %v12212_v33 = vld [vmem:[%s14679_s7 + $0x618] sm:$0xff]   ;;  %v12213_v62 = vld [vmem:[%s14679_s7 + $0x650] sm:$0xff]  }
 0x4b0   :  { %v11537_v3 = vpop.f32.mrf.mxu0  ;;  %11802 = vmatprep.subr.bf16.mxu0 %v12305_v1 }
 0x4b1   :  { %11823 = vmatpush3.bf16.msra.mxu1 %v12175_v63  ;;  %v12210_v63 = vld [vmem:[%s14679_s7 + $0x620] sm:$0xff]   ;;  %v12215_v3 = vld [vmem:[%s14679_s7 + $0x648] sm:$0xff]  }
 0x4b2   :  { %11824 = vmatprep.subr.bf16.mxu1 %v12305_v1 }
 0x4b3   :  { %11803 = vmatpush3.bf16.msra.mxu0 %v12176_v14  ;;  %v12214_v14 = vld [vmem:[%s14679_s7 + $0x610] sm:$0xff]  }
 0x4b4   :  { %11804 = vmatprep.subr.bf16.mxu0 %v12305_v1 }
 0x4b5   :  { %11825 = vmatpush3.bf16.msra.mxu1 %v12177_v16  ;;  %v12216_v16 = vld [vmem:[%s14679_s7 + $0x608] sm:$0xff]  }
 0x4b6   :  { %11826 = vmatprep.subr.bf16.mxu1 %v12305_v1 }
 0x4b7   :  { %11805 = vmatpush3.bf16.msra.mxu0 %v12178_v36  ;;  %v12217_v36 = vld [vmem:[%s14679_s7 + $0x640] sm:$0xff]  }
 0x4b8   :  { %11806 = vmatprep.subr.bf16.mxu0 %v12305_v1 }
 0x4b9   :  { %11827 = vmatpush3.bf16.msra.mxu1 %v12179_v53  ;;  %v12218_v53 = vld [vmem:[%s14679_s7 + $0x600] sm:$0xff]  }
 0x4ba   :  { %11828 = vmatprep.subr.bf16.mxu1 %v12305_v1 }
 0x4bb   :  { %11807 = vmatpush3.bf16.msra.mxu0 %v12180_v32  ;;  %v12219_v32 = vld [vmem:[%s14679_s7 + $0x6f8] sm:$0xff]  }
 0x4bc   :  { %11808 = vmatprep.subr.bf16.mxu0 %v12305_v1 }
 0x4bd   :  { %11829 = vmatpush3.bf16.msra.mxu1 %v12181_v21  ;;  %v12220_v21 = vld [vmem:[%s14679_s7 + $0x6b8] sm:$0xff]  }
 0x4be   :  { %11830 = vmatprep.subr.bf16.mxu1 %v12305_v1 }
 0x4bf   :  { %11809 = vmatpush3.bf16.msra.mxu0 %v12182_v27 }
 0x4c0   :  { %11810 = vmatprep.subr.bf16.mxu0 %v12305_v1 }
 0x4c1   :  { %11831 = vmatpush3.bf16.msra.mxu1 %v12183_v54  ;;  %v12221_v54 = vld [vmem:[%s14679_s7 + $0x6f0] sm:$0xff]  }
 0x4c2   :  { %11832 = vmatprep.subr.bf16.mxu1 %v12305_v1 }
 0x4c3   :  { %11811 = vmatpush3.bf16.msra.mxu0 %v12184_v24 }
 0x4c4   :  { %11812 = vmatprep.subr.bf16.mxu0 %v12305_v1 }
 0x4c5   :  { %11833 = vmatpush3.bf16.msra.mxu1 %v12185_v8 }
 0x4c6   :  { %11858 = vmatprep.subr.bf16.mxu1 %v12305_v1 }
 0x4c7   :  { %11813 = vmatpush3.bf16.msra.mxu0 %v12186_v23 }
 0x4c8   :  { %v7538_v9 = vpop.f32.mrf.mxu1  ;;  %11835 = vmatmul.mubr.bf16.vlgmr.msra.gmra.mxu1 %v13773_v47  ;;  %11838 = vmatprep.subr.bf16.mxu0 %v12305_v1 }
 0x4c9   :  { %11859 = vmatpush3.bf16.msra.mxu1 %v12187_v25  ;;  %11874 = vmatprep.mubr.msk.bf16.mxu1 %vm12306_vm0, %v12305_v1  ;;  %v12222_v25 = vld [vmem:[%s14679_s7 + $0x6b0] sm:$0xff]  }
 0x4ca   :  { %v7432_v29 = vpop.f32.mrf.mxu0  ;;  %v11596_v56 = vpop.f32.mrf.mxu1  ;;  %11815 = vmatmul.mubr.bf16.vlgmr.msra.gmra.mxu0 %v13763_v28  ;;  %11860 = vmatprep.subr.bf16.mxu1 %v12305_v1  ;;  %v12206_v28 = vld [vmem:[%s14679_s7 + $0x630] sm:$0xff]  }
 0x4cb   :  { %v7438_v30 = vadd.f32 %v7432_v29, %v7332_v45  ;;  %11839 = vmatpush3.bf16.msra.mxu0 %v12188_v26  ;;  %11854 = vmatprep.mubr.msk.bf16.mxu0 %vm12306_vm0, %v12305_v1  ;;  %v12211_v45 = vld [vmem:[%s14679_s7 + $0x658] sm:$0xff]  }
 0x4cc   :  { %v11576_v12 = vpop.f32.mrf.mxu0  ;;  %v7541_v11 = vpop.f32.mrf.mxu1  ;;  %11840 = vmatprep.subr.bf16.mxu0 %v12305_v1 }
 0x4cd   :  { %11861 = vmatpush3.bf16.msra.mxu1 %v12189_v55  ;;  %v7544_v39 = vadd.f32 %v7538_v9, %v7438_v30  ;;  %v12223_v55 = vld [vmem:[%s14679_s7 + $0x6e8] sm:$0xff]   ;;  %v12225_v11 = vld [vmem:[%s14679_s7 + $0x6e0] sm:$0xff]  }
 0x4ce   :  { %v7435_v34 = vpop.f32.mrf.mxu0  ;;  %v11597_v13 = vpop.f32.mrf.mxu1  ;;  %11862 = vmatprep.subr.bf16.mxu1 %v12305_v1 }
 0x4cf   :  { %11841 = vmatpush3.bf16.msra.mxu0 %v12190_v38  ;;  %v12224_v38 = vld [vmem:[%s14679_s7 + $0x6a8] sm:$0xff]   ;;  %v12228_v34 = vld [vmem:[%s14679_s7 + $0x698] sm:$0xff]   ;;  %v12229_v13 = vld [vmem:[%s14679_s7 + $0x6d0] sm:$0xff]  }
 0x4d0   :  { %v11577_v2 = vpop.f32.mrf.mxu0  ;;  %11842 = vmatprep.subr.bf16.mxu0 %v12305_v1 }
 0x4d1   :  { %11863 = vmatpush3.bf16.msra.mxu1 %v12191_v7  ;;  %v12226_v7 = vld [vmem:[%s14679_s7 + $0x6a0] sm:$0xff]   ;;  %v12231_v2 = vld [vmem:[%s14679_s7 + $0x6c8] sm:$0xff]  }
 0x4d2   :  { %11864 = vmatprep.subr.bf16.mxu1 %v12305_v1 }
 0x4d3   :  { %11843 = vmatpush3.bf16.msra.mxu0 %v12192_v40  ;;  %v12230_v40 = vld [vmem:[%s14679_s7 + $0x690] sm:$0xff]  }
 0x4d4   :  { %11844 = vmatprep.subr.bf16.mxu0 %v12305_v1 }
 0x4d5   :  { %11865 = vmatpush3.bf16.msra.mxu1 %v12193_v41  ;;  %v12232_v41 = vld [vmem:[%s14679_s7 + $0x688] sm:$0xff]  }
 0x4d6   :  { %11866 = vmatprep.subr.bf16.mxu1 %v12305_v1 }
 0x4d7   :  { %11845 = vmatpush3.bf16.msra.mxu0 %v12194_v20  ;;  %v12233_v20 = vld [vmem:[%s14679_s7 + $0x6c0] sm:$0xff]  }
 0x4d8   :  { %11846 = vmatprep.subr.bf16.mxu0 %v12305_v1 }
 0x4d9   :  { %11867 = vmatpush3.bf16.msra.mxu1 %v12195_v0  ;;  %v12234_v0 = vld [vmem:[%s14679_s7 + $0x680] sm:$0xff]  }
 0x4da   :  { %11868 = vmatprep.subr.bf16.mxu1 %v12305_v1 }
 0x4db   :  { %11847 = vmatpush3.bf16.msra.mxu0 %v12196_v37  ;;  %v6459_v37 = vcombine.high %v13789_v15, %v13789_v15 }
 0x4dc   :  { %11848 = vmatprep.subr.bf16.mxu0 %v12305_v1 }
 0x4dd   :  { %11869 = vmatpush3.bf16.msra.mxu1 %v12197_v42  ;;  %v6458_v42 = vcombine.high %v13782_v57, %v13782_v57 }
 0x4de   :  { %11870 = vmatprep.subr.bf16.mxu1 %v12305_v1 }
 0x4df   :  { %11849 = vmatpush3.bf16.msra.mxu0 %v12198_v10 }
 0x4e0   :  { %11850 = vmatprep.subr.bf16.mxu0 %v12305_v1 }
 0x4e1   :  { %11871 = vmatpush3.bf16.msra.mxu1 %v12199_v46 }
 0x4e2   :  { %11872 = vmatprep.subr.bf16.mxu1 %v12305_v1 }
 0x4e3   :  { %11851 = vmatpush3.bf16.msra.mxu0 %v12200_v49 }
 0x4e4   :  { %11852 = vmatprep.subr.bf16.mxu0 %v12305_v1 }
 0x4e5   :  { %11873 = vmatpush3.bf16.msra.mxu1 %v12201_v51 }
 0x4e6   :  { %11898 = vmatprep.subr.bf16.mxu1 %v12305_v1 }
 0x4e7   :  { %11853 = vmatpush3.bf16.msra.mxu0 %v12202_v52 }
 0x4e8   :  { %v7750_v60 = vpop.f32.mrf.mxu1  ;;  %11875 = vmatmul.mubr.bf16.vlgmr.msra.gmra.mxu1 %v6435_v43  ;;  %11878 = vmatprep.subr.bf16.mxu0 %v12305_v1 }
 0x4e9   :  { %11899 = vmatpush3.bf16.msra.mxu1 %v12203_v18  ;;  %11914 = vmatprep.mubr.msk.bf16.mxu1 %vm12306_vm0, %v12305_v1 }
 0x4ea   :  { %v7644_v47 = vpop.f32.mrf.mxu0  ;;  %v11636_v22 = vpop.f32.mrf.mxu1  ;;  %11855 = vmatmul.mubr.bf16.vlgmr.msra.gmra.mxu0 %v6433_v19  ;;  %11900 = vmatprep.subr.bf16.mxu1 %v12305_v1 }
 0x4eb   :  { %v7650_v50 = vadd.f32 %v7644_v47, %v7544_v39  ;;  %11879 = vmatpush3.bf16.msra.mxu0 %v12204_v58  ;;  %11894 = vmatprep.mubr.msk.bf16.mxu0 %vm12306_vm0, %v12305_v1  ;;  %v12227_v39 = vld [vmem:[%s14679_s7 + $0x6d8] sm:$0xff]  }
 0x4ec   :  { %v11616_v17 = vpop.f32.mrf.mxu0  ;;  %v7753_v59 = vpop.f32.mrf.mxu1  ;;  %11880 = vmatprep.subr.bf16.mxu0 %v12305_v1 }
 0x4ed   :  { %11901 = vmatpush3.bf16.msra.mxu1 %v12205_v5  ;;  %v7756_v31 = vadd.f32 %v7750_v60, %v7650_v50 }
 0x4ee   :  { %v7647_v61 = vpop.f32.mrf.mxu0  ;;  %v11637_v6 = vpop.f32.mrf.mxu1  ;;  %11902 = vmatprep.subr.bf16.mxu1 %v12305_v1 }
 0x4ef   :  { %11881 = vmatpush3.bf16.msra.mxu0 %v12206_v28 }
 0x4f0   :  { %v11617_v48 = vpop.f32.mrf.mxu0  ;;  %11882 = vmatprep.subr.bf16.mxu0 %v12305_v1 }
 0x4f1   :  { %11903 = vmatpush3.bf16.msra.mxu1 %v12207_v4 }
 0x4f2   :  { %11904 = vmatprep.subr.bf16.mxu1 %v12305_v1 }
 0x4f3   :  { %11883 = vmatpush3.bf16.msra.mxu0 %v12208_v44 }
 0x4f4   :  { %11884 = vmatprep.subr.bf16.mxu0 %v12305_v1 }
 0x4f5   :  { %11905 = vmatpush3.bf16.msra.mxu1 %v12209_v35 }
 0x4f6   :  { %11906 = vmatprep.subr.bf16.mxu1 %v12305_v1 }
 0x4f7   :  { %11885 = vmatpush3.bf16.msra.mxu0 %v12210_v63 }
 0x4f8   :  { %11886 = vmatprep.subr.bf16.mxu0 %v12305_v1 }
 0x4f9   :  { %11907 = vmatpush3.bf16.msra.mxu1 %v12211_v45 }
 0x4fa   :  { %11908 = vmatprep.subr.bf16.mxu1 %v12305_v1 }
 0x4fb   :  { %11887 = vmatpush3.bf16.msra.mxu0 %v12212_v33 }
 0x4fc   :  { %11888 = vmatprep.subr.bf16.mxu0 %v12305_v1 }
 0x4fd   :  { %11909 = vmatpush3.bf16.msra.mxu1 %v12213_v62 }
 0x4fe   :  { %11910 = vmatprep.subr.bf16.mxu1 %v12305_v1 }
 0x4ff   :  { %11889 = vmatpush3.bf16.msra.mxu0 %v12214_v14 }
 0x500   :  { %11890 = vmatprep.subr.bf16.mxu0 %v12305_v1 }
 0x501   :  { %11911 = vmatpush3.bf16.msra.mxu1 %v12215_v3 }
 0x502   :  { %11912 = vmatprep.subr.bf16.mxu1 %v12305_v1 }
 0x503   :  { %11891 = vmatpush3.bf16.msra.mxu0 %v12216_v16 }
 0x504   :  { %11892 = vmatprep.subr.bf16.mxu0 %v12305_v1 }
 0x505   :  { %11913 = vmatpush3.bf16.msra.mxu1 %v12217_v36 }
 0x506   :  { %11938 = vmatprep.subr.bf16.mxu1 %v12305_v1 }
 0x507   :  { %11893 = vmatpush3.bf16.msra.mxu0 %v12218_v53 }
 0x508   :  { %v7962_v27 = vpop.f32.mrf.mxu1  ;;  %11915 = vmatmul.mubr.bf16.vlgmr.msra.gmra.mxu1 %v13789_v15  ;;  %11918 = vmatprep.subr.bf16.mxu0 %v12305_v1 }
 0x509   :  { %11939 = vmatpush3.bf16.msra.mxu1 %v12219_v32  ;;  %11954 = vmatprep.mubr.msk.bf16.mxu1 %vm12306_vm0, %v12305_v1 }
 0x50a   :  { %v7856_v24 = vpop.f32.mrf.mxu0  ;;  %v11676_v8 = vpop.f32.mrf.mxu1  ;;  %11895 = vmatmul.mubr.bf16.vlgmr.msra.gmra.mxu0 %v13782_v57  ;;  %11940 = vmatprep.subr.bf16.mxu1 %v12305_v1 }
 0x50b   :  { %v7862_v23 = vadd.f32 %v7856_v24, %v7756_v31  ;;  %11919 = vmatpush3.bf16.msra.mxu0 %v12220_v21  ;;  %11934 = vmatprep.mubr.msk.bf16.mxu0 %vm12306_vm0, %v12305_v1 }
 0x50c   :  { %v11656_v26 = vpop.f32.mrf.mxu0  ;;  %v7965_v9 = vpop.f32.mrf.mxu1  ;;  %11920 = vmatprep.subr.bf16.mxu0 %v12305_v1 }
 0x50d   :  { %11941 = vmatpush3.bf16.msra.mxu1 %v12221_v54  ;;  %v7968_v29 = vadd.f32 %v7962_v27, %v7862_v23 }
 0x50e   :  { %v7859_v56 = vpop.f32.mrf.mxu0  ;;  %v11677_v30 = vpop.f32.mrf.mxu1  ;;  %11942 = vmatprep.subr.bf16.mxu1 %v12305_v1 }
 0x50f   :  { %11921 = vmatpush3.bf16.msra.mxu0 %v12222_v25 }
 0x510   :  { %v11657_v12 = vpop.f32.mrf.mxu0  ;;  %11922 = vmatprep.subr.bf16.mxu0 %v12305_v1 }
 0x511   :  { %11943 = vmatpush3.bf16.msra.mxu1 %v12223_v55 }
 0x512   :  { %11944 = vmatprep.subr.bf16.mxu1 %v12305_v1 }
 0x513   :  { %11923 = vmatpush3.bf16.msra.mxu0 %v12224_v38 }
 0x514   :  { %11924 = vmatprep.subr.bf16.mxu0 %v12305_v1 }
 0x515   :  { %11945 = vmatpush3.bf16.msra.mxu1 %v12225_v11 }
 0x516   :  { %11946 = vmatprep.subr.bf16.mxu1 %v12305_v1 }
 0x517   :  { %11925 = vmatpush3.bf16.msra.mxu0 %v12226_v7 }
 0x518   :  { %11926 = vmatprep.subr.bf16.mxu0 %v12305_v1 }
 0x519   :  { %11947 = vmatpush3.bf16.msra.mxu1 %v12227_v39 }
 0x51a   :  { %11948 = vmatprep.subr.bf16.mxu1 %v12305_v1 }
 0x51b   :  { %11927 = vmatpush3.bf16.msra.mxu0 %v12228_v34 }
 0x51c   :  { %11928 = vmatprep.subr.bf16.mxu0 %v12305_v1 }
 0x51d   :  { %11949 = vmatpush3.bf16.msra.mxu1 %v12229_v13 }
 0x51e   :  { %11950 = vmatprep.subr.bf16.mxu1 %v12305_v1 }
 0x51f   :  { %11929 = vmatpush3.bf16.msra.mxu0 %v12230_v40 }
 0x520   :  { %11930 = vmatprep.subr.bf16.mxu0 %v12305_v1 }
 0x521   :  { %11951 = vmatpush3.bf16.msra.mxu1 %v12231_v2 }
 0x522   :  { %11952 = vmatprep.subr.bf16.mxu1 %v12305_v1 }
 0x523   :  { %11931 = vmatpush3.bf16.msra.mxu0 %v12232_v41 }
 0x524   :  { %11932 = vmatprep.subr.bf16.mxu0 %v12305_v1 }
 0x525   :  { %11953 = vmatpush3.bf16.msra.mxu1 %v12233_v20 }
 0x527   :  { %11933 = vmatpush3.bf16.msra.mxu0 %v12234_v0 }
 0x528   :  { %v8174_v10 = vpop.f32.mrf.mxu1  ;;  %11955 = vmatmul.mubr.bf16.vlgmr.msra.gmra.mxu1 %v6459_v37 }
 0x52a   :  { %v8068_v46 = vpop.f32.mrf.mxu0  ;;  %v11716_v49 = vpop.f32.mrf.mxu1  ;;  %11935 = vmatmul.mubr.bf16.vlgmr.msra.gmra.mxu0 %v6458_v42 }
 0x52b   :  { %v8074_v51 = vadd.f32 %v8068_v46, %v7968_v29  ;;  %v10274_v49 = vld [vmem:[%s14680_s8] ss:$0 sm:$0xff] }
 0x52c   :  { %v11696_v52 = vpop.f32.mrf.mxu0  ;;  %v8177_v18 = vpop.f32.mrf.mxu1 }
 0x52d   :  { %v8180_v43 = vadd.f32 %v8174_v10, %v8074_v51 }
 0x52e   :  { %v8071_v58 = vpop.f32.mrf.mxu0  ;;  %v11717_v19 = vpop.f32.mrf.mxu1 }
 0x530   :  { %v11697_v1 = vpop.f32.mrf.mxu0 }
 0x548   :  { %v8386_v60 = vpop.f32.mrf.mxu1 }
 0x54a   :  { %v8280_v5 = vpop.f32.mrf.mxu0  ;;  %v11756_v47 = vpop.f32.mrf.mxu1 }
 0x54b   :  { %v8286_v15 = vadd.f32 %v8280_v5, %v8180_v43 }
 0x54c   :  { %v11736_v22 = vpop.f32.mrf.mxu0  ;;  %v8389_v50 = vpop.f32.mrf.mxu1 }
 0x54d   :  { %v8392_v28 = vadd.f32 %v8386_v60, %v8286_v15 }
 0x54e   :  { %v8283_v57 = vpop.f32.mrf.mxu0  ;;  %v11757_v17 = vpop.f32.mrf.mxu1 }
 0x550   :  { %v11737_v59 = vpop.f32.mrf.mxu0 }
 0x568   :  { %v8598_v4 = vpop.f32.mrf.mxu1 }
 0x56a   :  { %v8492_v31 = vpop.f32.mrf.mxu0  ;;  %v11796_v61 = vpop.f32.mrf.mxu1 }
 0x56b   :  { %v8498_v6 = vadd.f32 %v8492_v31, %v8392_v28 }
 0x56c   :  { %v11776_v44 = vpop.f32.mrf.mxu0  ;;  %v8601_v48 = vpop.f32.mrf.mxu1 }
 0x56d   :  { %v8604_v35 = vadd.f32 %v8598_v4, %v8498_v6 }
 0x56e   :  { %v8495_v63 = vpop.f32.mrf.mxu0  ;;  %v11797_v45 = vpop.f32.mrf.mxu1 }
 0x570   :  { %v11777_v33 = vpop.f32.mrf.mxu0 }
 0x588   :  { %v8810_v62 = vpop.f32.mrf.mxu1 }
 0x58a   :  { %v8704_v14 = vpop.f32.mrf.mxu0  ;;  %v11836_v3 = vpop.f32.mrf.mxu1 }
 0x58b   :  { %v8710_v16 = vadd.f32 %v8704_v14, %v8604_v35 }
 0x58c   :  { %v11816_v36 = vpop.f32.mrf.mxu0  ;;  %v8813_v53 = vpop.f32.mrf.mxu1 }
 0x58d   :  { %v8816_v32 = vadd.f32 %v8810_v62, %v8710_v16 }
 0x58e   :  { %v8707_v21 = vpop.f32.mrf.mxu0  ;;  %v11837_v27 = vpop.f32.mrf.mxu1 }
 0x590   :  { %v11817_v54 = vpop.f32.mrf.mxu0 }
 0x5a8   :  { %v9022_v24 = vpop.f32.mrf.mxu1 }
 0x5aa   :  { %v8916_v8 = vpop.f32.mrf.mxu0  ;;  %v11876_v23 = vpop.f32.mrf.mxu1 }
 0x5ab   :  { %v8922_v13 = vadd.f32 %v8916_v8, %v8816_v32 }
 0x5ac   :  { %v11856_v25 = vpop.f32.mrf.mxu0  ;;  %v9025_v26 = vpop.f32.mrf.mxu1 }
 0x5ad   :  { %v9028_v40 = vadd.f32 %v9022_v24, %v8922_v13 }
 0x5ae   :  { %v8919_v9 = vpop.f32.mrf.mxu0  ;;  %v11877_v55 = vpop.f32.mrf.mxu1 }
 0x5b0   :  { %v11857_v29 = vpop.f32.mrf.mxu0 }
 0x5c8   :  { %v9234_v56 = vpop.f32.mrf.mxu1 }
 0x5ca   :  { %v9128_v30 = vpop.f32.mrf.mxu0  ;;  %v11916_v38 = vpop.f32.mrf.mxu1 }
 0x5cb   :  { %v9134_v2 = vadd.f32 %v9128_v30, %v9028_v40 }
 0x5cc   :  { %v11896_v12 = vpop.f32.mrf.mxu0  ;;  %v9237_v11 = vpop.f32.mrf.mxu1 }
 0x5cd   :  { %v9240_v20 = vadd.f32 %v9234_v56, %v9134_v2 }
 0x5ce   :  { %v9131_v7 = vpop.f32.mrf.mxu0  ;;  %v11917_v39 = vpop.f32.mrf.mxu1 }
 0x5d0   :  { %v11897_v34 = vpop.f32.mrf.mxu0 }
 0x5e8   :  { %v9446_v41 = vpop.f32.mrf.mxu1 }
 0x5ea   :  { %v9340_v0 = vpop.f32.mrf.mxu0  ;;  %v11956_v37 = vpop.f32.mrf.mxu1 }
 0x5eb   :  { %v9346_v42 = vadd.f32 %v9340_v0, %v9240_v20 }
 0x5ec   :  { %v11936_v10 = vpop.f32.mrf.mxu0  ;;  %v9449_v46 = vpop.f32.mrf.mxu1 }
 0x5ed   :  { %v9452_v51 = vadd.f32 %v9446_v41, %v9346_v42 }
 0x5ee   :  { %v9343_v52 = vpop.f32.mrf.mxu0  ;;  %v11957_v18 = vpop.f32.mrf.mxu1 }
 0x5ef   :  { %v9460_v43 = vadd.f32 %v10274_v49, %v9452_v51 }
 0x5f0   :  { %v11937_v58 = vpop.f32.mrf.mxu0 }
 0x5f1   :  { %9461 = vst [vmem:[#allocation9] sm:$0x3] %v9460_v43 }
 0x5f2   :  { %12286 = shalt.err (!%p12283_p0)
}
 0x5f3   :  { %9471 = dma.vmem_to_hbm [thread:$0]  %s9469_s5, 32, %s14681_s9, [#allocation6]  }
 0x5f4   :  { %12299 = dma.done.wait [#allocation6], 32  }
 0x5f5   :  { %12300 = vsyncadd [#allocation6], 4294967264 }
 0x5f6   :  { %9475 = vsyncpa [#allocation5], 1 }
 0x5f7   :  { %9476 = vsyncpa [#allocation8], 1 }
 0x5f8   :  { %9477 = vsyncpa [#allocation6], 1 }

</bundles_post_ra>
